<compile_context>
chip_gen: v7x
topology: tpu7x:2x2x1
jax: 0.10.0
libtpu: 0.0.40
codegen_flags: <defaults>
</compile_context>

<pallas_src>
import functools

import jax
import jax.numpy as jnp
from jax.experimental import pallas as pl
from jax.experimental.pallas import tpu as pltpu

LN_EPS = 1e-5
_SQRT_2_OVER_PI = 0.7978845608028654


# ----------------------------- small math helpers -----------------------------

def _layernorm(x, w, b):
    """LayerNorm over the last dim.  w, b are (1, C) f32."""
    mu = jnp.mean(x, axis=-1, keepdims=True)
    var = jnp.mean(jnp.square(x - mu), axis=-1, keepdims=True)
    return (x - mu) * jax.lax.rsqrt(var + LN_EPS) * w + b


def _gelu_tanh(x):
    # nn.GELU(approximate='tanh'): one EUP tanh + a few VALU ops.
    # Max deviation from the exact erf GELU is ~1e-3 (documented tradeoff).
    return 0.5 * x * (1.0 + jnp.tanh(_SQRT_2_OVER_PI * (x + 0.044715 * x * x * x)))


def _gelu_erf(x):
    # Exact-GELU path: Abramowitz & Stegun 7.1.26 erf rational (|err|<=1.5e-7)
    # with an EXACT divide — an approx reciprocal would be amplified through
    # the 5th-degree polynomial.
    a1, a2, a3, a4, a5 = 0.254829592, -0.284496736, 1.421413741, -1.453152027, 1.061405429
    p = 0.3275911
    z = x * (2.0 ** -0.5)
    s = jnp.sign(z)
    az = jnp.abs(z)
    t = 1.0 / (1.0 + p * az)
    poly = ((((a5 * t + a4) * t + a3) * t + a2) * t + a1) * t
    erf = s * (1.0 - poly * jnp.exp(-az * az))
    return 0.5 * x * (1.0 + erf)


# ---------------------------------- kernel ------------------------------------

def block_kernel(x_ref,
                 ln1w_ref, ln1b_ref,
                 wqkv_ref,
                 wproj_ref, bproj_ref,
                 ln2w_ref, ln2b_ref,
                 w1_ref, b1_ref,
                 w2_ref, b2_ref,
                 o_ref,
                 xn_sc, k_sc, v_sc,
                 *, num_heads, q_tile, k_tile, use_exact_gelu):
    N = x_ref.shape[1]
    C = x_ref.shape[2]
    D = C // num_heads
    n_kt = N // k_tile

    # ---- once per batch (q-tile axis is "arbitrary"): LN1 + K/V projections ----
    @pl.when(pl.program_id(1) == 0)
    def _():
        x_full = x_ref[0].astype(jnp.float32)                               # (N, C)
        xn = _layernorm(x_full,
                        ln1w_ref[...].astype(jnp.float32),
                        ln1b_ref[...].astype(jnp.float32)).astype(jnp.bfloat16)
        xn_sc[...] = xn
        k_sc[...] = jnp.dot(xn, wqkv_ref[:, C:2 * C],
                            preferred_element_type=jnp.float32).astype(jnp.bfloat16)
        v_sc[...] = jnp.dot(xn, wqkv_ref[:, 2 * C:3 * C],
                            preferred_element_type=jnp.float32).astype(jnp.bfloat16)

    # ---- per q-tile attention ----
    row0 = pl.multiple_of(pl.program_id(1) * q_tile, q_tile)
    x_q = x_ref[0, pl.ds(row0, q_tile), :].astype(jnp.float32)              # residual (TQ, C)
    xn_q = xn_sc[pl.ds(row0, q_tile), :]                                    # (TQ, C) bf16
    # Attention scale (head_dim ** -0.5) is pre-folded into the Q columns of wqkv.
    q_all = jnp.dot(xn_q, wqkv_ref[:, 0:C],
                    preferred_element_type=jnp.float32).astype(jnp.bfloat16)  # (TQ, C)

    heads = []
    for h in range(num_heads):
        lo, hi = h * D, (h + 1) * D
        qh = q_all[:, lo:hi]                                                # (TQ, D) bf16

        def kv_step(kt, carry, _lo=lo, _hi=hi, _qh=qh):
            m, l, acc = carry
            off = pl.multiple_of(kt * k_tile, k_tile)
            kh = k_sc[pl.ds(off, k_tile), _lo:_hi]                          # (KT, D) bf16
            vh = v_sc[pl.ds(off, k_tile), _lo:_hi]                          # (KT, D) bf16
            # contract on the last dims -> (TQ, KT); no materialized transpose
            s = jax.lax.dot_general(_qh, kh, (((1,), (1,)), ((), ())),
                                    preferred_element_type=jnp.float32)
            m_new = jnp.maximum(m, jnp.max(s, axis=-1, keepdims=True))
            alpha = jnp.exp(m - m_new)
            p = jnp.exp(s - m_new)
            l = alpha * l + jnp.sum(p, axis=-1, keepdims=True)
            acc = alpha * acc + jnp.dot(p.astype(jnp.bfloat16), vh,
                                        preferred_element_type=jnp.float32)
            return m_new, l, acc

        init = (jnp.full((q_tile, 1), -jnp.inf, jnp.float32),
                jnp.zeros((q_tile, 1), jnp.float32),
                jnp.zeros((q_tile, D), jnp.float32))
        m_i, l_i, acc = jax.lax.fori_loop(0, n_kt, kv_step, init)
        # approx reciprocal (EUP slot): ~2^-12 rel error on attention probs —
        # acceptable here, documented.
        heads.append((acc * pl.reciprocal(l_i, approx=True)).astype(jnp.bfloat16))

    # Re-assemble the heads into one (TQ, C) bf16 tile and do a single K=C
    # output projection (full MXU depth) instead of H small-K matmuls.
    attn_cat = heads[0] if num_heads == 1 else jnp.concatenate(heads, axis=-1)
    attn = jnp.dot(attn_cat, wproj_ref[...],
                   preferred_element_type=jnp.float32) + bproj_ref[...].astype(jnp.float32)

    x1 = x_q + attn                                                         # f32 residual

    # ---- MLP branch ----
    x1n = _layernorm(x1,
                     ln2w_ref[...].astype(jnp.float32),
                     ln2b_ref[...].astype(jnp.float32))
    h1 = jnp.dot(x1n.astype(jnp.bfloat16), w1_ref[...],
                 preferred_element_type=jnp.float32) + b1_ref[...].astype(jnp.float32)
    h1 = _gelu_erf(h1) if use_exact_gelu else _gelu_tanh(h1)
    y = jnp.dot(h1.astype(jnp.bfloat16), w2_ref[...],
                preferred_element_type=jnp.float32) + b2_ref[...].astype(jnp.float32)

    o_ref[0] = (x1 + y).astype(o_ref.dtype)


# ------------------------------ build / wrapper --------------------------------

def _device_kind():
    try:
        return jax.devices()[0].device_kind.lower()
    except Exception:
        return ""


def _device_vmem_cap_bytes():
    """Cap for vmem_limit_bytes, with headroom below physical VMEM."""
    kind = _device_kind()
    if "v7" in kind:
        return 52 << 20           # v7x: 64 MiB physical per TensorCore
    return 96 << 20               # v5e / v6e: 128 MiB physical


def _default_q_tile(N):
    kind = _device_kind()
    is_v5e = ("v5 lite" in kind) or ("v5e" in kind) or ("v5lite" in kind)
    if (not is_v5e) and N % 256 == 0:
        return 256                # fill the 256x256 MXU rows on v6e / v7x
    if N % 128 == 0:
        return 128
    return N


def _default_k_tile(N):
    if N <= 512:
        return N
    for kt in (512, 256, 128):
        if N % kt == 0:
            return kt
    return N


def _vmem_budget_bytes(N, C, hidden, q_tile, k_tile, weight_buffers):
    """Explicit VMEM budget (weights + pipelined blocks + scratch + working set)."""
    f32, bf16 = 4, 2
    wb = 2 if weight_buffers is None else max(1, weight_buffers)
    mat_w = (3 * C * C + C * C + C * hidden + hidden * C) * bf16 * wb
    vec_w = (6 * C + hidden) * f32 * wb
    x_blk = N * C * f32 * 2                    # input block, double-buffered
    o_blk = q_tile * C * f32 * 2               # output block, double-buffered
    scratch = 3 * N * C * bf16                 # xn / K / V scratch
    work = (q_tile * hidden + 4 * q_tile * C + q_tile * k_tile + N * C) * f32
    total = int((mat_w + vec_w + x_blk + o_blk + scratch + work) * 1.5) + (8 << 20)
    return max(32 << 20, min(total, _device_vmem_cap_bytes()))


def prepare_params(raw, num_heads):
    """One-time host-side weight prep: fold the attention scale into the Q
    columns of the qkv weight and cast matmul weights to bf16 (LayerNorm
    params and biases stay f32)."""
    C = raw["wqkv_t"].shape[0]
    D = C // num_heads
    scale = jnp.float32(D) ** -0.5
    wqkv = raw["wqkv_t"].at[:, :C].multiply(scale)
    p = dict(raw)
    p["wqkv_t"] = wqkv.astype(jnp.bfloat16)
    p["wproj_t"] = raw["wproj_t"].astype(jnp.bfloat16)
    p["w1"] = raw["w1"].astype(jnp.bfloat16)
    p["w2"] = raw["w2"].astype(jnp.bfloat16)
    return p


def vit_block(x, params, num_heads, q_tile=None, k_tile=None,
              weight_buffers=None, use_exact_gelu=False):
    B, N, C = x.shape
    hidden = params["w1"].shape[1]

    if q_tile is None:
        q_tile = _default_q_tile(N)
    q_tile = min(q_tile, N)
    if k_tile is None:
        k_tile = _default_k_tile(N)
    k_tile = min(k_tile, N)

    assert C % num_heads == 0, "dim must be divisible by num_heads"
    assert N % q_tile == 0 and (q_tile % 8 == 0 or q_tile == N)
    assert N % k_tile == 0

    if weight_buffers is not None and not hasattr(pl, "Buffered"):
        raise ValueError("weight_buffers requested but pl.Buffered is not "
                         "available in this jax version")

    def wspec(shape):
        kwargs = {}
        if weight_buffers is not None:
            kwargs["pipeline_mode"] = pl.Buffered(weight_buffers)
        return pl.BlockSpec(shape, lambda b, q: (0,) * len(shape), **kwargs)

    in_specs = [
        pl.BlockSpec((1, N, C), lambda b, q: (b, 0, 0)),   # x: full sequence per batch
        wspec((1, C)), wspec((1, C)),                      # ln1 w, b
        wspec((C, 3 * C)),                                 # qkv weight (transposed, bf16, Q pre-scaled)
        wspec((C, C)), wspec((1, C)),                      # proj weight (transposed, bf16), bias
        wspec((1, C)), wspec((1, C)),                      # ln2 w, b
        wspec((C, hidden)), wspec((1, hidden)),            # fc1 weight (transposed, bf16), bias
        wspec((hidden, C)), wspec((1, C)),                 # fc2 weight (transposed, bf16), bias
    ]
    out_specs = pl.BlockSpec((1, q_tile, C), lambda b, q: (b, q, 0))

    kernel = functools.partial(block_kernel, num_heads=num_heads, q_tile=q_tile,
                               k_tile=k_tile, use_exact_gelu=use_exact_gelu)

    call = pl.pallas_call(
        kernel,
        out_shape=jax.ShapeDtypeStruct((B, N, C), x.dtype),
        grid=(B, N // q_tile),
        in_specs=in_specs,
        out_specs=out_specs,
        scratch_shapes=[
            pltpu.VMEM((N, C), jnp.bfloat16),   # LN1(x) for the whole sequence
            pltpu.VMEM((N, C), jnp.bfloat16),   # K for the whole sequence
            pltpu.VMEM((N, C), jnp.bfloat16),   # V for the whole sequence
        ],
        compiler_params=pltpu.CompilerParams(
            # batch axis "parallel" (megacore); the q axis MUST be "arbitrary"
            # so the per-batch scratch written at q == 0 is reused by later
            # q-tiles on the same core.
            dimension_semantics=("parallel", "arbitrary"),
            vmem_limit_bytes=_vmem_budget_bytes(N, C, hidden, q_tile, k_tile,
                                                weight_buffers),
        ),
    )
    return call(x,
                params["ln1_w"], params["ln1_b"],
                params["wqkv_t"],
                params["wproj_t"], params["b_proj"],
                params["ln2_w"], params["ln2_b"],
                params["w1"], params["b1"],
                params["w2"], params["b2"])


# ------------------------------- pure-JAX reference ----------------------------

def reference(x, raw, num_heads):
    """Pure-JAX f32 reference mirroring the PyTorch forward (uses raw params)."""
    B, N, C = x.shape
    D = C // num_heads

    def ln(v, w, b):
        mu = v.mean(-1, keepdims=True)
        var = ((v - mu) ** 2).mean(-1, keepdims=True)
        return (v - mu) / jnp.sqrt(var + LN_EPS) * w + b

    xn = ln(x, raw["ln1_w"][0], raw["ln1_b"][0])
    qkv = xn @ raw["wqkv_t"]                                   # (B, N, 3C)
    qkv = qkv.reshape(B, N, 3, num_heads, D).transpose(2, 0, 3, 1, 4)
    q, k, v = qkv[0], qkv[1], qkv[2]                           # (B, H, N, D)
    s = jnp.einsum("bhnd,bhmd->bhnm", q, k) * (D ** -0.5)
    p = jax.nn.softmax(s, axis=-1)
    o = jnp.einsum("bhnm,bhmd->bhnd", p, v)
    o = o.transpose(0, 2, 1, 3).reshape(B, N, C)
    o = o @ raw["wproj_t"] + raw["b_proj"][0]
    x1 = x + o
    x1n = ln(x1, raw["ln2_w"][0], raw["ln2_b"][0])
    h = jax.nn.gelu(x1n @ raw["w1"] + raw["b1"][0], approximate=False)
    y = h @ raw["w2"] + raw["b2"][0]
    return x1 + y


# ------------------------------------- main -------------------------------------

if __name__ == "__main__":
    # Small but TPU-layout-friendly shapes (lane-dense: C, N multiples of 128).
    B, N, C = 2, 128, 128
    num_heads = 4
    hidden = int(C * 4.0)

    key = jax.random.PRNGKey(0)
    keys = jax.random.split(key, 7)

    raw = {
        # LayerNorm params (PyTorch default init: weight=1, bias=0)
        "ln1_w": jnp.ones((1, C), jnp.float32),
        "ln1_b": jnp.zeros((1, C), jnp.float32),
        "ln2_w": jnp.ones((1, C), jnp.float32),
        "ln2_b": jnp.zeros((1, C), jnp.float32),
        # Linear weights, stored pre-transposed (in_features, out_features)
        "wqkv_t": 0.02 * jax.random.normal(keys[0], (C, 3 * C), jnp.float32),
        "wproj_t": 0.02 * jax.random.normal(keys[1], (C, C), jnp.float32),
        "b_proj": 0.01 * jax.random.normal(keys[2], (1, C), jnp.float32),
        "w1": 0.02 * jax.random.normal(keys[3], (C, hidden), jnp.float32),
        "b1": 0.01 * jax.random.normal(keys[4], (1, hidden), jnp.float32),
        "w2": 0.02 * jax.random.normal(keys[5], (hidden, C), jnp.float32),
        "b2": jnp.zeros((1, C), jnp.float32),
    }
    params = prepare_params(raw, num_heads)

    x = jax.random.normal(keys[6], (B, N, C), jnp.float32)

    out = jax.block_until_ready(vit_block(x, params, num_heads))
    ref = reference(x, raw, num_heads)

    assert out.shape == (B, N, C)
    max_err = float(jnp.max(jnp.abs(out - ref)))
    # bf16 matmul operands + tanh-approx GELU + approx softmax reciprocal
    # -> relaxed tolerance vs the f32 exact-GELU reference.
    assert jnp.allclose(out, ref, atol=2e-2, rtol=2e-2), f"max abs err = {max_err}"

    print("KERNEL_OK")
</pallas_src>

<mosaic_0001>
module attributes {stable_mosaic.version = 11 : i64} {
  func.func @block_kernel(%arg0: i32, %arg1: i32, %arg2: memref<1x128x128xf32, #tpu.memory_space<vmem>>, %arg3: memref<1x128xf32, #tpu.memory_space<vmem>>, %arg4: memref<1x128xf32, #tpu.memory_space<vmem>>, %arg5: memref<128x384xbf16, #tpu.memory_space<vmem>>, %arg6: memref<128x128xbf16, #tpu.memory_space<vmem>>, %arg7: memref<1x128xf32, #tpu.memory_space<vmem>>, %arg8: memref<1x128xf32, #tpu.memory_space<vmem>>, %arg9: memref<1x128xf32, #tpu.memory_space<vmem>>, %arg10: memref<128x512xbf16, #tpu.memory_space<vmem>>, %arg11: memref<1x512xf32, #tpu.memory_space<vmem>>, %arg12: memref<512x128xbf16, #tpu.memory_space<vmem>>, %arg13: memref<1x128xf32, #tpu.memory_space<vmem>>, %arg14: memref<1x128x128xf32, #tpu.memory_space<vmem>>, %arg15: memref<128x128xbf16, #tpu.memory_space<vmem>>, %arg16: memref<128x128xbf16, #tpu.memory_space<vmem>>, %arg17: memref<128x128xbf16, #tpu.memory_space<vmem>>) attributes {dimension_semantics = [#tpu.dimension_semantics<parallel>, #tpu.dimension_semantics<arbitrary>], iteration_bounds = array<i64: 2, 1>, scalar_prefetch = 0 : i64, scratch_operands = 3 : i64, tpu.core_type = #tpu.core_type<tc>, window_params = [{transform_indices = @transform_0, window_bounds = array<i64: 1, 128, 128>}, {pipeline_mode = #tpu.pipeline_mode<synchronous>, transform_indices = @transform_1, window_bounds = array<i64: 1, 128>}, {pipeline_mode = #tpu.pipeline_mode<synchronous>, transform_indices = @transform_2, window_bounds = array<i64: 1, 128>}, {pipeline_mode = #tpu.pipeline_mode<synchronous>, transform_indices = @transform_3, window_bounds = array<i64: 128, 384>}, {pipeline_mode = #tpu.pipeline_mode<synchronous>, transform_indices = @transform_4, window_bounds = array<i64: 128, 128>}, {pipeline_mode = #tpu.pipeline_mode<synchronous>, transform_indices = @transform_5, window_bounds = array<i64: 1, 128>}, {pipeline_mode = #tpu.pipeline_mode<synchronous>, transform_indices = @transform_6, window_bounds = array<i64: 1, 128>}, {pipeline_mode = #tpu.pipeline_mode<synchronous>, transform_indices = @transform_7, window_bounds = array<i64: 1, 128>}, {pipeline_mode = #tpu.pipeline_mode<synchronous>, transform_indices = @transform_8, window_bounds = array<i64: 128, 512>}, {pipeline_mode = #tpu.pipeline_mode<synchronous>, transform_indices = @transform_9, window_bounds = array<i64: 1, 512>}, {pipeline_mode = #tpu.pipeline_mode<synchronous>, transform_indices = @transform_10, window_bounds = array<i64: 512, 128>}, {pipeline_mode = #tpu.pipeline_mode<synchronous>, transform_indices = @transform_11, window_bounds = array<i64: 1, 128>}, {transform_indices = @transform_12, window_bounds = array<i64: 1, 128, 128>}]} {
    %c0_i32 = arith.constant 0 : i32
    %0 = arith.cmpi eq, %arg1, %c0_i32 : i32
    %1 = arith.extui %0 : i1 to i32
    %c0_i32_0 = arith.constant 0 : i32
    %2 = arith.cmpi ne, %1, %c0_i32_0 : i32
    scf.if %2 {
      %c0_80 = arith.constant 0 : index
      %c0_81 = arith.constant 0 : index
      %c0_82 = arith.constant 0 : index
      %201 = vector.load %arg2[%c0_80, %c0_81, %c0_82] : memref<1x128x128xf32, #tpu.memory_space<vmem>>, vector<1x128x128xf32>
      %202 = vector.shape_cast %201 : vector<1x128x128xf32> to vector<128x128xf32>
      %c0_83 = arith.constant 0 : index
      %c0_84 = arith.constant 0 : index
      %203 = vector.load %arg3[%c0_83, %c0_84] : memref<1x128xf32, #tpu.memory_space<vmem>>, vector<1x128xf32>
      %c0_85 = arith.constant 0 : index
      %c0_86 = arith.constant 0 : index
      %204 = vector.load %arg4[%c0_85, %c0_86] : memref<1x128xf32, #tpu.memory_space<vmem>>, vector<1x128xf32>
      %cst_87 = arith.constant dense<0.000000e+00> : vector<128xf32>
      %205 = vector.multi_reduction <add>, %202, %cst_87 [1] : vector<128x128xf32> to vector<128xf32>
      %206 = vector.shape_cast %205 : vector<128xf32> to vector<128x1xf32>
      %cst_88 = arith.constant 1.280000e+02 : f32
      %207 = vector.broadcast %cst_88 : f32 to vector<128x1xf32>
      %208 = arith.divf %206, %207 : vector<128x1xf32>
      %209 = vector.broadcast %208 : vector<128x1xf32> to vector<128x128xf32>
      %210 = arith.subf %202, %209 : vector<128x128xf32>
      %211 = arith.mulf %210, %210 : vector<128x128xf32>
      %cst_89 = arith.constant dense<0.000000e+00> : vector<128xf32>
      %212 = vector.multi_reduction <add>, %211, %cst_89 [1] : vector<128x128xf32> to vector<128xf32>
      %213 = vector.shape_cast %212 : vector<128xf32> to vector<128x1xf32>
      %cst_90 = arith.constant 1.280000e+02 : f32
      %214 = vector.broadcast %cst_90 : f32 to vector<128x1xf32>
      %215 = arith.divf %213, %214 : vector<128x1xf32>
      %216 = vector.broadcast %208 : vector<128x1xf32> to vector<128x128xf32>
      %217 = arith.subf %202, %216 : vector<128x128xf32>
      %cst_91 = arith.constant 9.99999974E-6 : f32
      %218 = vector.broadcast %cst_91 : f32 to vector<128x1xf32>
      %219 = arith.addf %215, %218 : vector<128x1xf32>
      %220 = math.rsqrt %219 : vector<128x1xf32>
      %221 = vector.broadcast %220 : vector<128x1xf32> to vector<128x128xf32>
      %222 = arith.mulf %217, %221 : vector<128x128xf32>
      %223 = vector.broadcast %203 : vector<1x128xf32> to vector<128x128xf32>
      %224 = arith.mulf %222, %223 : vector<128x128xf32>
      %225 = vector.broadcast %204 : vector<1x128xf32> to vector<128x128xf32>
      %226 = arith.addf %224, %225 : vector<128x128xf32>
      %227 = arith.truncf %226 : vector<128x128xf32> to vector<128x128xbf16>
      %c0_92 = arith.constant 0 : index
      %c0_93 = arith.constant 0 : index
      %228 = vector.load %arg15[%c0_92, %c0_93] : memref<128x128xbf16, #tpu.memory_space<vmem>>, vector<128x128xbf16>
      tpu.vector_store %arg15[%c0_92, %c0_93], %227 {strides = array<i32>} : memref<128x128xbf16, #tpu.memory_space<vmem>>, vector<128x128xbf16>,
      %c0_94 = arith.constant 0 : index
      %c128 = arith.constant 128 : index
      %229 = vector.load %arg5[%c0_94, %c128] : memref<128x384xbf16, #tpu.memory_space<vmem>>, vector<128x128xbf16>
      %cst_95 = arith.constant dense<0.000000e+00> : vector<128x128xf32>
      %230 = tpu.matmul %227, %229, %cst_95 {dimension_numbers = #tpu.dot_dimension_numbers<[1], [0], [0], [1], [0, 0, 1, 1], [], []>} : vector<128x128xbf16>, vector<128x128xbf16>, vector<128x128xf32> -> vector<128x128xf32>
      %231 = arith.truncf %230 : vector<128x128xf32> to vector<128x128xbf16>
      %c0_96 = arith.constant 0 : index
      %c0_97 = arith.constant 0 : index
      %232 = vector.load %arg16[%c0_96, %c0_97] : memref<128x128xbf16, #tpu.memory_space<vmem>>, vector<128x128xbf16>
      tpu.vector_store %arg16[%c0_96, %c0_97], %231 {strides = array<i32>} : memref<128x128xbf16, #tpu.memory_space<vmem>>, vector<128x128xbf16>,
      %c0_98 = arith.constant 0 : index
      %c256 = arith.constant 256 : index
      %233 = vector.load %arg5[%c0_98, %c256] : memref<128x384xbf16, #tpu.memory_space<vmem>>, vector<128x128xbf16>
      %cst_99 = arith.constant dense<0.000000e+00> : vector<128x128xf32>
      %234 = tpu.matmul %227, %233, %cst_99 {dimension_numbers = #tpu.dot_dimension_numbers<[1], [0], [0], [1], [0, 0, 1, 1], [], []>} : vector<128x128xbf16>, vector<128x128xbf16>, vector<128x128xf32> -> vector<128x128xf32>
      %235 = arith.truncf %234 : vector<128x128xf32> to vector<128x128xbf16>
      %c0_100 = arith.constant 0 : index
      %c0_101 = arith.constant 0 : index
      %236 = vector.load %arg17[%c0_100, %c0_101] : memref<128x128xbf16, #tpu.memory_space<vmem>>, vector<128x128xbf16>
      tpu.vector_store %arg17[%c0_100, %c0_101], %235 {strides = array<i32>} : memref<128x128xbf16, #tpu.memory_space<vmem>>, vector<128x128xbf16>,
    } else {
    }
    %c128_i32 = arith.constant 128 : i32
    %3 = arith.muli %arg1, %c128_i32 : i32
    %4 = tpu.assume_multiple %3, 128 : i32
    %c0 = arith.constant 0 : index
    %5 = arith.index_cast %4 : i32 to index
    %c0_1 = arith.constant 0 : index
    %6 = vector.load %arg2[%c0, %5, %c0_1] : memref<1x128x128xf32, #tpu.memory_space<vmem>>, vector<1x128x128xf32>
    %7 = vector.shape_cast %6 : vector<1x128x128xf32> to vector<128x128xf32>
    %8 = arith.index_cast %4 : i32 to index
    %c0_2 = arith.constant 0 : index
    %9 = vector.load %arg15[%8, %c0_2] : memref<128x128xbf16, #tpu.memory_space<vmem>>, vector<128x128xbf16>
    %c0_3 = arith.constant 0 : index
    %c0_4 = arith.constant 0 : index
    %10 = vector.load %arg5[%c0_3, %c0_4] : memref<128x384xbf16, #tpu.memory_space<vmem>>, vector<128x128xbf16>
    %cst = arith.constant dense<0.000000e+00> : vector<128x128xf32>
    %11 = tpu.matmul %9, %10, %cst {dimension_numbers = #tpu.dot_dimension_numbers<[1], [0], [0], [1], [0, 0, 1, 1], [], []>} : vector<128x128xbf16>, vector<128x128xbf16>, vector<128x128xf32> -> vector<128x128xf32>
    %12 = arith.truncf %11 : vector<128x128xf32> to vector<128x128xbf16>
    %13 = vector.extract_strided_slice %12 {offsets = [0, 0], sizes = [128, 32], strides = [1, 1]} : vector<128x128xbf16> to vector<128x32xbf16>
    %cst_5 = arith.constant 0xFF800000 : f32
    %14 = vector.broadcast %cst_5 : f32 to vector<128x1xf32>
    %cst_6 = arith.constant 0.000000e+00 : f32
    %15 = vector.broadcast %cst_6 : f32 to vector<128x1xf32>
    %cst_7 = arith.constant 0.000000e+00 : f32
    %16 = vector.broadcast %cst_7 : f32 to vector<128x32xf32>
    %c0_i32_8 = arith.constant 0 : i32
    %c128_i32_9 = arith.constant 128 : i32
    %17 = arith.muli %c0_i32_8, %c128_i32_9 : i32
    %18 = tpu.assume_multiple %17, 128 : i32
    %19 = arith.index_cast %18 : i32 to index
    %c0_10 = arith.constant 0 : index
    %20 = vector.load %arg16[%19, %c0_10] : memref<128x128xbf16, #tpu.memory_space<vmem>>, vector<128x32xbf16>
    %21 = arith.index_cast %18 : i32 to index
    %c0_11 = arith.constant 0 : index
    %22 = vector.load %arg17[%21, %c0_11] : memref<128x128xbf16, #tpu.memory_space<vmem>>, vector<128x32xbf16>
    %cst_12 = arith.constant dense<0.000000e+00> : vector<128x128xf32>
    %23 = tpu.matmul %13, %20, %cst_12 {dimension_numbers = #tpu.dot_dimension_numbers<[1], [1], [0], [0], [0, 0, 1, 0], [], []>} : vector<128x32xbf16>, vector<128x32xbf16>, vector<128x128xf32> -> vector<128x128xf32>
    %cst_13 = arith.constant dense<0xFF800000> : vector<128xf32>
    %24 = vector.multi_reduction <maximumf>, %23, %cst_13 [1] : vector<128x128xf32> to vector<128xf32>
    %25 = vector.shape_cast %24 : vector<128xf32> to vector<128x1xf32>
    %26 = arith.maximumf %14, %25 : vector<128x1xf32>
    %27 = arith.subf %14, %26 : vector<128x1xf32>
    %28 = math.exp %27 : vector<128x1xf32>
    %29 = vector.broadcast %26 : vector<128x1xf32> to vector<128x128xf32>
    %30 = arith.subf %23, %29 : vector<128x128xf32>
    %31 = math.exp %30 : vector<128x128xf32>
    %32 = arith.mulf %28, %15 : vector<128x1xf32>
    %cst_14 = arith.constant dense<0.000000e+00> : vector<128xf32>
    %33 = vector.multi_reduction <add>, %31, %cst_14 [1] : vector<128x128xf32> to vector<128xf32>
    %34 = vector.shape_cast %33 : vector<128xf32> to vector<128x1xf32>
    %35 = arith.addf %32, %34 : vector<128x1xf32>
    %36 = vector.broadcast %28 : vector<128x1xf32> to vector<128x32xf32>
    %37 = arith.mulf %36, %16 : vector<128x32xf32>
    %38 = arith.truncf %31 : vector<128x128xf32> to vector<128x128xbf16>
    %cst_15 = arith.constant dense<0.000000e+00> : vector<128x32xf32>
    %39 = tpu.matmul %38, %22, %cst_15 {dimension_numbers = #tpu.dot_dimension_numbers<[1], [0], [0], [1], [0, 0, 1, 1], [], []>} : vector<128x128xbf16>, vector<128x32xbf16>, vector<128x32xf32> -> vector<128x32xf32>
    %40 = arith.addf %37, %39 : vector<128x32xf32>
    %c1_i32 = arith.constant 1 : i32
    %41 = tpu.reciprocal %35 {approx = true} : vector<128x1xf32> -> vector<128x1xf32>
    %42 = vector.broadcast %41 : vector<128x1xf32> to vector<128x32xf32>
    %43 = arith.mulf %40, %42 : vector<128x32xf32>
    %44 = arith.truncf %43 : vector<128x32xf32> to vector<128x32xbf16>
    %45 = vector.extract_strided_slice %12 {offsets = [0, 32], sizes = [128, 32], strides = [1, 1]} : vector<128x128xbf16> to vector<128x32xbf16>
    %cst_16 = arith.constant 0xFF800000 : f32
    %46 = vector.broadcast %cst_16 : f32 to vector<128x1xf32>
    %cst_17 = arith.constant 0.000000e+00 : f32
    %47 = vector.broadcast %cst_17 : f32 to vector<128x1xf32>
    %cst_18 = arith.constant 0.000000e+00 : f32
    %48 = vector.broadcast %cst_18 : f32 to vector<128x32xf32>
    %c0_i32_19 = arith.constant 0 : i32
    %c128_i32_20 = arith.constant 128 : i32
    %49 = arith.muli %c0_i32_19, %c128_i32_20 : i32
    %50 = tpu.assume_multiple %49, 128 : i32
    %51 = arith.index_cast %50 : i32 to index
    %c32 = arith.constant 32 : index
    %52 = vector.load %arg16[%51, %c32] : memref<128x128xbf16, #tpu.memory_space<vmem>>, vector<128x32xbf16>
    %53 = arith.index_cast %50 : i32 to index
    %c32_21 = arith.constant 32 : index
    %54 = vector.load %arg17[%53, %c32_21] : memref<128x128xbf16, #tpu.memory_space<vmem>>, vector<128x32xbf16>
    %cst_22 = arith.constant dense<0.000000e+00> : vector<128x128xf32>
    %55 = tpu.matmul %45, %52, %cst_22 {dimension_numbers = #tpu.dot_dimension_numbers<[1], [1], [0], [0], [0, 0, 1, 0], [], []>} : vector<128x32xbf16>, vector<128x32xbf16>, vector<128x128xf32> -> vector<128x128xf32>
    %cst_23 = arith.constant dense<0xFF800000> : vector<128xf32>
    %56 = vector.multi_reduction <maximumf>, %55, %cst_23 [1] : vector<128x128xf32> to vector<128xf32>
    %57 = vector.shape_cast %56 : vector<128xf32> to vector<128x1xf32>
    %58 = arith.maximumf %46, %57 : vector<128x1xf32>
    %59 = arith.subf %46, %58 : vector<128x1xf32>
    %60 = math.exp %59 : vector<128x1xf32>
    %61 = vector.broadcast %58 : vector<128x1xf32> to vector<128x128xf32>
    %62 = arith.subf %55, %61 : vector<128x128xf32>
    %63 = math.exp %62 : vector<128x128xf32>
    %64 = arith.mulf %60, %47 : vector<128x1xf32>
    %cst_24 = arith.constant dense<0.000000e+00> : vector<128xf32>
    %65 = vector.multi_reduction <add>, %63, %cst_24 [1] : vector<128x128xf32> to vector<128xf32>
    %66 = vector.shape_cast %65 : vector<128xf32> to vector<128x1xf32>
    %67 = arith.addf %64, %66 : vector<128x1xf32>
    %68 = vector.broadcast %60 : vector<128x1xf32> to vector<128x32xf32>
    %69 = arith.mulf %68, %48 : vector<128x32xf32>
    %70 = arith.truncf %63 : vector<128x128xf32> to vector<128x128xbf16>
    %cst_25 = arith.constant dense<0.000000e+00> : vector<128x32xf32>
    %71 = tpu.matmul %70, %54, %cst_25 {dimension_numbers = #tpu.dot_dimension_numbers<[1], [0], [0], [1], [0, 0, 1, 1], [], []>} : vector<128x128xbf16>, vector<128x32xbf16>, vector<128x32xf32> -> vector<128x32xf32>
    %72 = arith.addf %69, %71 : vector<128x32xf32>
    %c1_i32_26 = arith.constant 1 : i32
    %73 = tpu.reciprocal %67 {approx = true} : vector<128x1xf32> -> vector<128x1xf32>
    %74 = vector.broadcast %73 : vector<128x1xf32> to vector<128x32xf32>
    %75 = arith.mulf %72, %74 : vector<128x32xf32>
    %76 = arith.truncf %75 : vector<128x32xf32> to vector<128x32xbf16>
    %77 = vector.extract_strided_slice %12 {offsets = [0, 64], sizes = [128, 32], strides = [1, 1]} : vector<128x128xbf16> to vector<128x32xbf16>
    %cst_27 = arith.constant 0xFF800000 : f32
    %78 = vector.broadcast %cst_27 : f32 to vector<128x1xf32>
    %cst_28 = arith.constant 0.000000e+00 : f32
    %79 = vector.broadcast %cst_28 : f32 to vector<128x1xf32>
    %cst_29 = arith.constant 0.000000e+00 : f32
    %80 = vector.broadcast %cst_29 : f32 to vector<128x32xf32>
    %c0_i32_30 = arith.constant 0 : i32
    %c128_i32_31 = arith.constant 128 : i32
    %81 = arith.muli %c0_i32_30, %c128_i32_31 : i32
    %82 = tpu.assume_multiple %81, 128 : i32
    %83 = arith.index_cast %82 : i32 to index
    %c64 = arith.constant 64 : index
    %84 = vector.load %arg16[%83, %c64] : memref<128x128xbf16, #tpu.memory_space<vmem>>, vector<128x32xbf16>
    %85 = arith.index_cast %82 : i32 to index
    %c64_32 = arith.constant 64 : index
    %86 = vector.load %arg17[%85, %c64_32] : memref<128x128xbf16, #tpu.memory_space<vmem>>, vector<128x32xbf16>
    %cst_33 = arith.constant dense<0.000000e+00> : vector<128x128xf32>
    %87 = tpu.matmul %77, %84, %cst_33 {dimension_numbers = #tpu.dot_dimension_numbers<[1], [1], [0], [0], [0, 0, 1, 0], [], []>} : vector<128x32xbf16>, vector<128x32xbf16>, vector<128x128xf32> -> vector<128x128xf32>
    %cst_34 = arith.constant dense<0xFF800000> : vector<128xf32>
    %88 = vector.multi_reduction <maximumf>, %87, %cst_34 [1] : vector<128x128xf32> to vector<128xf32>
    %89 = vector.shape_cast %88 : vector<128xf32> to vector<128x1xf32>
    %90 = arith.maximumf %78, %89 : vector<128x1xf32>
    %91 = arith.subf %78, %90 : vector<128x1xf32>
    %92 = math.exp %91 : vector<128x1xf32>
    %93 = vector.broadcast %90 : vector<128x1xf32> to vector<128x128xf32>
    %94 = arith.subf %87, %93 : vector<128x128xf32>
    %95 = math.exp %94 : vector<128x128xf32>
    %96 = arith.mulf %92, %79 : vector<128x1xf32>
    %cst_35 = arith.constant dense<0.000000e+00> : vector<128xf32>
    %97 = vector.multi_reduction <add>, %95, %cst_35 [1] : vector<128x128xf32> to vector<128xf32>
    %98 = vector.shape_cast %97 : vector<128xf32> to vector<128x1xf32>
    %99 = arith.addf %96, %98 : vector<128x1xf32>
    %100 = vector.broadcast %92 : vector<128x1xf32> to vector<128x32xf32>
    %101 = arith.mulf %100, %80 : vector<128x32xf32>
    %102 = arith.truncf %95 : vector<128x128xf32> to vector<128x128xbf16>
    %cst_36 = arith.constant dense<0.000000e+00> : vector<128x32xf32>
    %103 = tpu.matmul %102, %86, %cst_36 {dimension_numbers = #tpu.dot_dimension_numbers<[1], [0], [0], [1], [0, 0, 1, 1], [], []>} : vector<128x128xbf16>, vector<128x32xbf16>, vector<128x32xf32> -> vector<128x32xf32>
    %104 = arith.addf %101, %103 : vector<128x32xf32>
    %c1_i32_37 = arith.constant 1 : i32
    %105 = tpu.reciprocal %99 {approx = true} : vector<128x1xf32> -> vector<128x1xf32>
    %106 = vector.broadcast %105 : vector<128x1xf32> to vector<128x32xf32>
    %107 = arith.mulf %104, %106 : vector<128x32xf32>
    %108 = arith.truncf %107 : vector<128x32xf32> to vector<128x32xbf16>
    %109 = vector.extract_strided_slice %12 {offsets = [0, 96], sizes = [128, 32], strides = [1, 1]} : vector<128x128xbf16> to vector<128x32xbf16>
    %cst_38 = arith.constant 0xFF800000 : f32
    %110 = vector.broadcast %cst_38 : f32 to vector<128x1xf32>
    %cst_39 = arith.constant 0.000000e+00 : f32
    %111 = vector.broadcast %cst_39 : f32 to vector<128x1xf32>
    %cst_40 = arith.constant 0.000000e+00 : f32
    %112 = vector.broadcast %cst_40 : f32 to vector<128x32xf32>
    %c0_i32_41 = arith.constant 0 : i32
    %c128_i32_42 = arith.constant 128 : i32
    %113 = arith.muli %c0_i32_41, %c128_i32_42 : i32
    %114 = tpu.assume_multiple %113, 128 : i32
    %115 = arith.index_cast %114 : i32 to index
    %c96 = arith.constant 96 : index
    %116 = vector.load %arg16[%115, %c96] : memref<128x128xbf16, #tpu.memory_space<vmem>>, vector<128x32xbf16>
    %117 = arith.index_cast %114 : i32 to index
    %c96_43 = arith.constant 96 : index
    %118 = vector.load %arg17[%117, %c96_43] : memref<128x128xbf16, #tpu.memory_space<vmem>>, vector<128x32xbf16>
    %cst_44 = arith.constant dense<0.000000e+00> : vector<128x128xf32>
    %119 = tpu.matmul %109, %116, %cst_44 {dimension_numbers = #tpu.dot_dimension_numbers<[1], [1], [0], [0], [0, 0, 1, 0], [], []>} : vector<128x32xbf16>, vector<128x32xbf16>, vector<128x128xf32> -> vector<128x128xf32>
    %cst_45 = arith.constant dense<0xFF800000> : vector<128xf32>
    %120 = vector.multi_reduction <maximumf>, %119, %cst_45 [1] : vector<128x128xf32> to vector<128xf32>
    %121 = vector.shape_cast %120 : vector<128xf32> to vector<128x1xf32>
    %122 = arith.maximumf %110, %121 : vector<128x1xf32>
    %123 = arith.subf %110, %122 : vector<128x1xf32>
    %124 = math.exp %123 : vector<128x1xf32>
    %125 = vector.broadcast %122 : vector<128x1xf32> to vector<128x128xf32>
    %126 = arith.subf %119, %125 : vector<128x128xf32>
    %127 = math.exp %126 : vector<128x128xf32>
    %128 = arith.mulf %124, %111 : vector<128x1xf32>
    %cst_46 = arith.constant dense<0.000000e+00> : vector<128xf32>
    %129 = vector.multi_reduction <add>, %127, %cst_46 [1] : vector<128x128xf32> to vector<128xf32>
    %130 = vector.shape_cast %129 : vector<128xf32> to vector<128x1xf32>
    %131 = arith.addf %128, %130 : vector<128x1xf32>
    %132 = vector.broadcast %124 : vector<128x1xf32> to vector<128x32xf32>
    %133 = arith.mulf %132, %112 : vector<128x32xf32>
    %134 = arith.truncf %127 : vector<128x128xf32> to vector<128x128xbf16>
    %cst_47 = arith.constant dense<0.000000e+00> : vector<128x32xf32>
    %135 = tpu.matmul %134, %118, %cst_47 {dimension_numbers = #tpu.dot_dimension_numbers<[1], [0], [0], [1], [0, 0, 1, 1], [], []>} : vector<128x128xbf16>, vector<128x32xbf16>, vector<128x32xf32> -> vector<128x32xf32>
    %136 = arith.addf %133, %135 : vector<128x32xf32>
    %c1_i32_48 = arith.constant 1 : i32
    %137 = tpu.reciprocal %131 {approx = true} : vector<128x1xf32> -> vector<128x1xf32>
    %138 = vector.broadcast %137 : vector<128x1xf32> to vector<128x32xf32>
    %139 = arith.mulf %136, %138 : vector<128x32xf32>
    %140 = arith.truncf %139 : vector<128x32xf32> to vector<128x32xbf16>
    %141 = tpu.concatenate %44, %76, %108, %140 in 1 : vector<128x32xbf16>, vector<128x32xbf16>, vector<128x32xbf16>, vector<128x32xbf16> -> vector<128x128xbf16>
    %c0_49 = arith.constant 0 : index
    %c0_50 = arith.constant 0 : index
    %142 = vector.load %arg6[%c0_49, %c0_50] : memref<128x128xbf16, #tpu.memory_space<vmem>>, vector<128x128xbf16>
    %cst_51 = arith.constant dense<0.000000e+00> : vector<128x128xf32>
    %143 = tpu.matmul %141, %142, %cst_51 {dimension_numbers = #tpu.dot_dimension_numbers<[1], [0], [0], [1], [0, 0, 1, 1], [], []>} : vector<128x128xbf16>, vector<128x128xbf16>, vector<128x128xf32> -> vector<128x128xf32>
    %c0_52 = arith.constant 0 : index
    %c0_53 = arith.constant 0 : index
    %144 = vector.load %arg7[%c0_52, %c0_53] : memref<1x128xf32, #tpu.memory_space<vmem>>, vector<1x128xf32>
    %145 = vector.broadcast %144 : vector<1x128xf32> to vector<128x128xf32>
    %146 = arith.addf %143, %145 : vector<128x128xf32>
    %147 = arith.addf %7, %146 : vector<128x128xf32>
    %c0_54 = arith.constant 0 : index
    %c0_55 = arith.constant 0 : index
    %148 = vector.load %arg8[%c0_54, %c0_55] : memref<1x128xf32, #tpu.memory_space<vmem>>, vector<1x128xf32>
    %c0_56 = arith.constant 0 : index
    %c0_57 = arith.constant 0 : index
    %149 = vector.load %arg9[%c0_56, %c0_57] : memref<1x128xf32, #tpu.memory_space<vmem>>, vector<1x128xf32>
    %cst_58 = arith.constant dense<0.000000e+00> : vector<128xf32>
    %150 = vector.multi_reduction <add>, %147, %cst_58 [1] : vector<128x128xf32> to vector<128xf32>
    %151 = vector.shape_cast %150 : vector<128xf32> to vector<128x1xf32>
    %cst_59 = arith.constant 1.280000e+02 : f32
    %152 = vector.broadcast %cst_59 : f32 to vector<128x1xf32>
    %153 = arith.divf %151, %152 : vector<128x1xf32>
    %154 = vector.broadcast %153 : vector<128x1xf32> to vector<128x128xf32>
    %155 = arith.subf %147, %154 : vector<128x128xf32>
    %156 = arith.mulf %155, %155 : vector<128x128xf32>
    %cst_60 = arith.constant dense<0.000000e+00> : vector<128xf32>
    %157 = vector.multi_reduction <add>, %156, %cst_60 [1] : vector<128x128xf32> to vector<128xf32>
    %158 = vector.shape_cast %157 : vector<128xf32> to vector<128x1xf32>
    %cst_61 = arith.constant 1.280000e+02 : f32
    %159 = vector.broadcast %cst_61 : f32 to vector<128x1xf32>
    %160 = arith.divf %158, %159 : vector<128x1xf32>
    %161 = vector.broadcast %153 : vector<128x1xf32> to vector<128x128xf32>
    %162 = arith.subf %147, %161 : vector<128x128xf32>
    %cst_62 = arith.constant 9.99999974E-6 : f32
    %163 = vector.broadcast %cst_62 : f32 to vector<128x1xf32>
    %164 = arith.addf %160, %163 : vector<128x1xf32>
    %165 = math.rsqrt %164 : vector<128x1xf32>
    %166 = vector.broadcast %165 : vector<128x1xf32> to vector<128x128xf32>
    %167 = arith.mulf %162, %166 : vector<128x128xf32>
    %168 = vector.broadcast %148 : vector<1x128xf32> to vector<128x128xf32>
    %169 = arith.mulf %167, %168 : vector<128x128xf32>
    %170 = vector.broadcast %149 : vector<1x128xf32> to vector<128x128xf32>
    %171 = arith.addf %169, %170 : vector<128x128xf32>
    %172 = arith.truncf %171 : vector<128x128xf32> to vector<128x128xbf16>
    %c0_63 = arith.constant 0 : index
    %c0_64 = arith.constant 0 : index
    %173 = vector.load %arg10[%c0_63, %c0_64] : memref<128x512xbf16, #tpu.memory_space<vmem>>, vector<128x512xbf16>
    %cst_65 = arith.constant dense<0.000000e+00> : vector<128x512xf32>
    %174 = tpu.matmul %172, %173, %cst_65 {dimension_numbers = #tpu.dot_dimension_numbers<[1], [0], [0], [1], [0, 0, 1, 1], [], []>} : vector<128x128xbf16>, vector<128x512xbf16>, vector<128x512xf32> -> vector<128x512xf32>
    %c0_66 = arith.constant 0 : index
    %c0_67 = arith.constant 0 : index
    %175 = vector.load %arg11[%c0_66, %c0_67] : memref<1x512xf32, #tpu.memory_space<vmem>>, vector<1x512xf32>
    %176 = vector.broadcast %175 : vector<1x512xf32> to vector<128x512xf32>
    %177 = arith.addf %174, %176 : vector<128x512xf32>
    %cst_68 = arith.constant 5.000000e-01 : f32
    %178 = vector.broadcast %cst_68 : f32 to vector<128x512xf32>
    %179 = arith.mulf %178, %177 : vector<128x512xf32>
    %cst_69 = arith.constant 4.471500e-02 : f32
    %180 = vector.broadcast %cst_69 : f32 to vector<128x512xf32>
    %181 = arith.mulf %180, %177 : vector<128x512xf32>
    %182 = arith.mulf %181, %177 : vector<128x512xf32>
    %183 = arith.mulf %182, %177 : vector<128x512xf32>
    %184 = arith.addf %177, %183 : vector<128x512xf32>
    %cst_70 = arith.constant 0.797884583 : f32
    %185 = vector.broadcast %cst_70 : f32 to vector<128x512xf32>
    %186 = arith.mulf %185, %184 : vector<128x512xf32>
    %187 = math.tanh %186 : vector<128x512xf32>
    %cst_71 = arith.constant 1.000000e+00 : f32
    %188 = vector.broadcast %cst_71 : f32 to vector<128x512xf32>
    %189 = arith.addf %188, %187 : vector<128x512xf32>
    %190 = arith.mulf %179, %189 : vector<128x512xf32>
    %191 = arith.truncf %190 : vector<128x512xf32> to vector<128x512xbf16>
    %c0_72 = arith.constant 0 : index
    %c0_73 = arith.constant 0 : index
    %192 = vector.load %arg12[%c0_72, %c0_73] : memref<512x128xbf16, #tpu.memory_space<vmem>>, vector<512x128xbf16>
    %cst_74 = arith.constant dense<0.000000e+00> : vector<128x128xf32>
    %193 = tpu.matmul %191, %192, %cst_74 {dimension_numbers = #tpu.dot_dimension_numbers<[1], [0], [0], [1], [0, 0, 1, 1], [], []>} : vector<128x512xbf16>, vector<512x128xbf16>, vector<128x128xf32> -> vector<128x128xf32>
    %c0_75 = arith.constant 0 : index
    %c0_76 = arith.constant 0 : index
    %194 = vector.load %arg13[%c0_75, %c0_76] : memref<1x128xf32, #tpu.memory_space<vmem>>, vector<1x128xf32>
    %195 = vector.broadcast %194 : vector<1x128xf32> to vector<128x128xf32>
    %196 = arith.addf %193, %195 : vector<128x128xf32>
    %197 = arith.addf %147, %196 : vector<128x128xf32>
    %c0_77 = arith.constant 0 : index
    %c0_78 = arith.constant 0 : index
    %c0_79 = arith.constant 0 : index
    %198 = vector.load %arg14[%c0_77, %c0_78, %c0_79] : memref<1x128x128xf32, #tpu.memory_space<vmem>>, vector<1x128x128xf32>
    %199 = vector.shape_cast %198 : vector<1x128x128xf32> to vector<128x128xf32>
    %200 = vector.shape_cast %197 : vector<128x128xf32> to vector<1x128x128xf32>
    tpu.vector_store %arg14[%c0_77, %c0_78, %c0_79], %200 {strides = array<i32>} : memref<1x128x128xf32, #tpu.memory_space<vmem>>, vector<1x128x128xf32>,
    return
  }
  func.func @transform_0(%arg0: i32, %arg1: i32) -> (i32, i32, i32) {
    %c0_i32 = arith.constant 0 : i32
    %c0_i32_0 = arith.constant 0 : i32
    %c0_i32_1 = arith.constant 0 : i32
    return %arg0, %c0_i32, %c0_i32_0 : i32, i32, i32
  }
  func.func @transform_1(%arg0: i32, %arg1: i32) -> (i32, i32) {
    %c0_i32 = arith.constant 0 : i32
    %c0_i32_0 = arith.constant 0 : i32
    %c0_i32_1 = arith.constant 0 : i32
    return %c0_i32, %c0_i32_0 : i32, i32
  }
  func.func @transform_2(%arg0: i32, %arg1: i32) -> (i32, i32) {
    %c0_i32 = arith.constant 0 : i32
    %c0_i32_0 = arith.constant 0 : i32
    %c0_i32_1 = arith.constant 0 : i32
    return %c0_i32, %c0_i32_0 : i32, i32
  }
  func.func @transform_3(%arg0: i32, %arg1: i32) -> (i32, i32) {
    %c0_i32 = arith.constant 0 : i32
    %c0_i32_0 = arith.constant 0 : i32
    %c0_i32_1 = arith.constant 0 : i32
    return %c0_i32, %c0_i32_0 : i32, i32
  }
  func.func @transform_4(%arg0: i32, %arg1: i32) -> (i32, i32) {
    %c0_i32 = arith.constant 0 : i32
    %c0_i32_0 = arith.constant 0 : i32
    %c0_i32_1 = arith.constant 0 : i32
    return %c0_i32, %c0_i32_0 : i32, i32
  }
  func.func @transform_5(%arg0: i32, %arg1: i32) -> (i32, i32) {
    %c0_i32 = arith.constant 0 : i32
    %c0_i32_0 = arith.constant 0 : i32
    %c0_i32_1 = arith.constant 0 : i32
    return %c0_i32, %c0_i32_0 : i32, i32
  }
  func.func @transform_6(%arg0: i32, %arg1: i32) -> (i32, i32) {
    %c0_i32 = arith.constant 0 : i32
    %c0_i32_0 = arith.constant 0 : i32
    %c0_i32_1 = arith.constant 0 : i32
    return %c0_i32, %c0_i32_0 : i32, i32
  }
  func.func @transform_7(%arg0: i32, %arg1: i32) -> (i32, i32) {
    %c0_i32 = arith.constant 0 : i32
    %c0_i32_0 = arith.constant 0 : i32
    %c0_i32_1 = arith.constant 0 : i32
    return %c0_i32, %c0_i32_0 : i32, i32
  }
  func.func @transform_8(%arg0: i32, %arg1: i32) -> (i32, i32) {
    %c0_i32 = arith.constant 0 : i32
    %c0_i32_0 = arith.constant 0 : i32
    %c0_i32_1 = arith.constant 0 : i32
    return %c0_i32, %c0_i32_0 : i32, i32
  }
  func.func @transform_9(%arg0: i32, %arg1: i32) -> (i32, i32) {
    %c0_i32 = arith.constant 0 : i32
    %c0_i32_0 = arith.constant 0 : i32
    %c0_i32_1 = arith.constant 0 : i32
    return %c0_i32, %c0_i32_0 : i32, i32
  }
  func.func @transform_10(%arg0: i32, %arg1: i32) -> (i32, i32) {
    %c0_i32 = arith.constant 0 : i32
    %c0_i32_0 = arith.constant 0 : i32
    %c0_i32_1 = arith.constant 0 : i32
    return %c0_i32, %c0_i32_0 : i32, i32
  }
  func.func @transform_11(%arg0: i32, %arg1: i32) -> (i32, i32) {
    %c0_i32 = arith.constant 0 : i32
    %c0_i32_0 = arith.constant 0 : i32
    %c0_i32_1 = arith.constant 0 : i32
    return %c0_i32, %c0_i32_0 : i32, i32
  }
  func.func @transform_12(%arg0: i32, %arg1: i32) -> (i32, i32, i32) {
    %c0_i32 = arith.constant 0 : i32
    %c0_i32_0 = arith.constant 0 : i32
    return %arg0, %arg1, %c0_i32 : i32, i32, i32
  }
}

</mosaic_0001>

<bundles_post_ra>
// kernel: tpu_custom_call.1
= control target key start
LH: loop header
LB: loop body
LE: loop exit
PB: predicated region body
PF: predicated region fallthrough
CT: control target
= control target key end

     0   :  { %s10913_s0 = inlined_call_operand.hbm [shape: f32[2,128,128], index: 0, kind: input, shape index: {}]   ;;  %s10914_s1 = inlined_call_operand.vmem [shape: f32[1,128], index: 1, kind: input, shape index: {}]   ;;  %s10915_s2 = inlined_call_operand.vmem [shape: f32[1,128], index: 2, kind: input, shape index: {}]   ;;  %s10916_s3 = inlined_call_operand.hbm [shape: bf16[128,384], index: 3, kind: input, shape index: {}]   ;;  %s10917_s4 = inlined_call_operand.hbm [shape: bf16[128,128], index: 4, kind: input, shape index: {}]   ;;  %s10918_s5 = inlined_call_operand.vmem [shape: f32[1,128], index: 5, kind: input, shape index: {}]   ;;  %s10919_s6 = inlined_call_operand.vmem [shape: f32[1,128], index: 6, kind: input, shape index: {}]   ;;  %s10920_s7 = inlined_call_operand.vmem [shape: f32[1,128], index: 7, kind: input, shape index: {}]   ;;  %s10921_s8 = inlined_call_operand.hbm [shape: bf16[128,512], index: 8, kind: input, shape index: {}]   ;;  %s10922_s9 = inlined_call_operand.vmem [shape: f32[1,512], index: 9, kind: input, shape index: {}]   ;;  %s10923_s10 = inlined_call_operand.hbm [shape: bf16[512,128], index: 10, kind: input, shape index: {}]   ;;  %s10924_s11 = inlined_call_operand.vmem [shape: f32[1,128], index: 11, kind: input, shape index: {}]   ;;  %s10925_s12 = inlined_call_operand.hbm [shape: f32[2,128,128], index: 12, kind: output, shape index: {}]  }
   0x1   :  { %11041 = sst [smem:[#allocation108_spill]] %s10916_s3 }
   0x2   :  { %11042 = sst [smem:[#allocation109_spill]] %s10919_s6 }
   0x3   :  { %11043 = sst [smem:[#allocation110_spill]] %s10920_s7 }
   0x4   :  { %11044 = sst [smem:[#allocation111_spill]] %s10922_s9 }
   0x5   :  { %11045 = sst [smem:[#allocation112_spill]] %s10924_s11 }
   0x6   :  { %11046 = sst [smem:[#allocation113_spill]] %s10925_s12 }
   0x7   :  { %17 = vsyncpa [#allocation6], 0 }
   0x8   :  { %19 = vsyncpa [#allocation6 + $0x1], 0 }
   0x9   :  { %20 = vsyncpa [#allocation9], 0 }
   0xa   :  { %21 = vsyncpa [#allocation12], 0 }
   0xb   :  { %22 = vsyncpa [#allocation7], 0 }
   0xc   :  { %24 = vsyncpa [#allocation7 + $0x1], 0  ;;  %s7770_s21 = smov 0   ;;  %s7772_s22 = smov 0  }
   0xd   :  { %s7774_s23 = smov 0   ;;  %s7776_s24 = smov 0  }
   0xe   :  { %s7778_s25 = smov 0   ;;  %s7780_s26 = smov 0  }
   0xf LB: > { %11047 = sst [smem:[#allocation19_spill]] %s7663_s21  ;;  %s5751_s27 = sadd.s32 4294967295, %s7683_s26   ;;  %s7683_s26 = sphi %s7780_s26, %s30_s26   ;;  %s7679_s25 = sphi %s7778_s25, %s11397_s25   ;;  %s7675_s24 = sphi %s7776_s24, %s11396_s24   ;;  %s7671_s23 = sphi %s7774_s23, %s11395_s23   ;;  %s7667_s22 = sphi %s7772_s22, %s11394_s22   ;;  %s7663_s21 = sphi %s7770_s21, %s11393_s21  }
  0x10   : > { %11048 = sst [smem:[#allocation20_spill]] %s7675_s24  ;;  %s5752_s28 = sadd.s32 4294967294, %s7683_s26  }
  0x11   : > { %p62_p0 = scmp.ne.s32.totalorder %s7667_s22, %s7663_s21  ;;  %p7804_p1 = scmp.eq.s32.totalorder %s5751_s27, 0 }
  0x12   : > { %p7808_p2 = scmp.eq.s32.totalorder %s5751_s27, 1  ;;  %p325_p3 = scmp.eq.s32.totalorder %s5752_s28, 1 }
  0x13   : > { %s11049_s29 = scalar_select %p7804_p1, 1, 0 }
  0x14   : > { %s11050_s30 = scalar_select %p7808_p2, 1, 0 }
  0x15   : > { %p7814_p4 = por %p7804_p1, %p62_p0  ;;  %p5753_p5 = scmp.ge.s32.totalorder %s7683_s26, 1 }
  0x16   : > { %p7819_p6 = por %p325_p3, %p62_p0  ;;  %p332_p7 = scmp.lt.s32.totalorder %s7683_s26, 3 }
  0x17   : > { %s11051_s13 = scalar_select %p7814_p4, 1, 0 }
  0x18   : > { %s11052_s14 = scalar_select %p7819_p6, 1, 0 }
  0x19   : > { %p7824_p8 = pnand %p5753_p5, %p332_p7  ;;  %s7685_s16 = smov [#allocation8]  }
  0x1a   : > { %11053 = sst [smem:[#allocation21_spill]] %s11052_s14  ;;  %s350_s17 = sshll.u32 %s7685_s16, 4  ;;  %s7828_s17 = int_to_ptr.vmem [resolvable:$true] %s350_s17 }
  0x1b   : > { %s11054_s15 = scalar_select %p7824_p8, 1, 0 }
  0x1c   : > { %p6666_p9 = pneg %p7824_p8  ;;  %s7686_s19 = smov [#allocation11]  }
  0x1d   : > { %s385_s20 = sshll.u32 %s7686_s19, 4  ;;  %s11056_s3 = sld [smem:[#allocation108_spill]]  ;;  %s7839_s20 = int_to_ptr.vmem [resolvable:$true] %s385_s20 }
  0x1e   : > { %p7835_p11 = pnand %p6666_p9, %p7804_p1 }
  0x20   : > { %p7849_p13 = pneg %p7835_p11 }
  0x23   : > { %s7451_s14 = scalar_lea.hbm %s11056_s3, 3072 }
  0x24   : > { %p7452_p12 = scmp.ne.s32.totalorder %s11056_s3, %s7451_s14  ;;  %p7458_p5 = scmp.lt.u32.totalorder %s7451_s14, %s11056_s3 }
  0x26   : > { %p7454_p0 = pnand %p7849_p13, %p7452_p12 }
  0x28   : > { %p7455_p3 = pneg %p7454_p0 }
  0x2a   : > { %p7460_p7 = pnand %p7458_p5, %p7455_p3 }
  0x2c   : > { %7463 = shalt.err (!%p7460_p7)
}
  0x2d   : > { %s7464_s21 = scalar_lea.vmem %s7828_s17, 3072  ;;  %p7472_p1 = scmp.lt.s32.totalorder %s7828_s17, %s7828_s17 }
  0x2e   : > { %p7465_p9 = scmp.ne.s32.totalorder %s7828_s17, %s7464_s21  ;;  %p7473_p4 = scmp.lt.s32.totalorder %s7464_s21, %s7464_s21 }
  0x30   : > { %p7467_p10 = pnand %p7465_p9, %p7849_p13  ;;  %p7474_p12 = por %p7473_p4, %p7472_p1 }
  0x32   : > { %p7468_p6 = pneg %p7467_p10 }
  0x34   : > { %p7475_p0 = pnand %p7474_p12, %p7468_p6 }
  0x36   : > { %7478 = shalt.err (!%p7475_p0)
}
  0x37   : > { %s7687_s27 = smov 192   ;;  %s7688_s24 = smov 12  }
  0x38   : > { %6669 = dma.hbm_to_vmem [thread:$0]  (!%p7835_p11), %s11056_s3, 3072, %s7828_s17, [#allocation9], %s7687_s27, %s7687_s27, %s7688_s24  }
  0x39   : > { %s7479_s11 = scalar_lea.hbm %s10921_s8, 4096 }
  0x3a   : > { %p7480_p1 = scmp.ne.s32.totalorder %s10921_s8, %s7479_s11  ;;  %p7486_p10 = scmp.lt.u32.totalorder %s7479_s11, %s10921_s8 }
  0x3c   : > { %p7482_p4 = pnand %p7480_p1, %p7849_p13 }
  0x3e   : > { %p7483_p6 = pneg %p7482_p4 }
  0x40   : > { %p7488_p3 = pnand %p7486_p10, %p7483_p6 }
  0x42   : > { %7491 = shalt.err (!%p7488_p3)
}
  0x43   : > { %s7492_s17 = scalar_lea.vmem %s7839_s20, 4096  ;;  %p7500_p12 = scmp.lt.s32.totalorder %s7839_s20, %s7839_s20 }
  0x44   : > { %p7493_p5 = scmp.ne.s32.totalorder %s7839_s20, %s7492_s17  ;;  %p7501_p0 = scmp.lt.s32.totalorder %s7492_s17, %s7492_s17 }
  0x46   : > { %p7495_p7 = pnand %p7493_p5, %p7849_p13  ;;  %p7502_p1 = por %p7501_p0, %p7500_p12 }
  0x48   : > { %p7496_p9 = pneg %p7495_p7 }
  0x4a   : > { %p7503_p4 = pnand %p7502_p1, %p7496_p9 }
  0x4c   : > { %7506 = shalt.err (!%p7503_p4)
}
  0x4d   : > { %s7689_s7 = smov 256   ;;  %s7690_s6 = smov 16  }
  0x4e   : > { %6675 = dma.hbm_to_vmem [thread:$0]  (!%p7835_p11), %s10921_s8, 4096, %s7839_s20, [#allocation12], %s7689_s7, %s7689_s7, %s7690_s6  }
  0x4f   : > { %s7691_s27 = smov [#allocation10]   ;;  %s7507_s16 = scalar_lea.hbm %s10917_s4, 1024 }
  0x50   : > { %s363_s24 = sshll.u32 %s7691_s27, 4  ;;  %p7508_p6 = scmp.ne.s32.totalorder %s10917_s4, %s7507_s16  ;;  %s364_s24 = int_to_ptr.vmem [resolvable:$true] %s363_s24 }
  0x51   : > { %p7514_p5 = scmp.lt.u32.totalorder %s7507_s16, %s10917_s4 }
  0x52   : > { %p7510_p10 = pnand %p7508_p6, %p7849_p13 }
  0x54   : > { %p7511_p3 = pneg %p7510_p10 }
  0x56   : > { %p7516_p7 = pnand %p7514_p5, %p7511_p3 }
  0x58   : > { %7519 = shalt.err (!%p7516_p7)
}
  0x59   : > { %s7520_s20 = scalar_lea.vmem %s364_s24, 1024  ;;  %p7528_p1 = scmp.lt.s32.totalorder %s364_s24, %s364_s24 }
  0x5a   : > { %p7521_p9 = scmp.ne.s32.totalorder %s364_s24, %s7520_s20  ;;  %p7529_p4 = scmp.lt.s32.totalorder %s7520_s20, %s7520_s20 }
  0x5c   : > { %p7523_p12 = pnand %p7521_p9, %p7849_p13  ;;  %p7530_p8 = por %p7529_p4, %p7528_p1 }
  0x5e   : > { %p7524_p0 = pneg %p7523_p12 }
  0x60   : > { %p7531_p2 = pnand %p7530_p8, %p7524_p0 }
  0x62   : > { %7534 = shalt.err (!%p7531_p2)
}
  0x63   : > { %s7692_s7 = smov 64   ;;  %s7693_s6 = smov 4  }
  0x64   : > { %6672 = dma.hbm_to_vmem [thread:$0]  (!%p7835_p11), %s10917_s4, 1024, %s364_s24, [#allocation9], %s7692_s7, %s7692_s7, %s7693_s6  }
  0x65   : > { %s7694_s11 = smov [#allocation13]   ;;  %s7535_s16 = scalar_lea.hbm %s10923_s10, 4096 }
  0x66   : > { %s401_s27 = sshll.u32 %s7694_s11, 4  ;;  %p7536_p2 = scmp.ne.s32.totalorder %s10923_s10, %s7535_s16  ;;  %s402_s27 = int_to_ptr.vmem [resolvable:$true] %s401_s27 }
  0x67   : > { %p7542_p10 = scmp.lt.u32.totalorder %s7535_s16, %s10923_s10 }
  0x68   : > { %p7538_p8 = pnand %p7536_p2, %p7849_p13 }
  0x6a   : > { %p7539_p6 = pneg %p7538_p8 }
  0x6c   : > { %p7544_p3 = pnand %p7542_p10, %p7539_p6 }
  0x6e   : > { %7547 = shalt.err (!%p7544_p3)
}
  0x6f   : > { %s7548_s24 = scalar_lea.vmem %s402_s27, 4096  ;;  %p7556_p12 = scmp.lt.s32.totalorder %s402_s27, %s402_s27 }
  0x70   : > { %p7549_p5 = scmp.ne.s32.totalorder %s402_s27, %s7548_s24  ;;  %p7557_p0 = scmp.lt.s32.totalorder %s7548_s24, %s7548_s24 }
  0x72   : > { %p7551_p7 = pnand %p7549_p5, %p7849_p13  ;;  %p7558_p1 = por %p7557_p0, %p7556_p12 }
  0x74   : > { %p7552_p9 = pneg %p7551_p7 }
  0x76   : > { %p7559_p4 = pnand %p7558_p1, %p7552_p9 }
  0x78   : > { %7562 = shalt.err (!%p7559_p4)
}
  0x79   : > { %6678 = dma.hbm_to_vmem [thread:$0]  (!%p7835_p11), %s10923_s10, 4096, %s402_s27, [#allocation12], %s7692_s7, %s7692_s7, %s7693_s6  }
  0x7a   : > { %s42_s12 = sadd.s32 1, %s7679_s25  ;;  %s49_s11 = sadd.s32 1, %s7671_s23 }
  0x7b   : > { %p44_p13 = scmp.ge.s32.totalorder %s42_s12, 2  ;;  %p56_p2 = scmp.ne.s32.totalorder %s7671_s23, %s7667_s22 }
  0x7c   : > { %p57_p8 = scmp.eq.s32.totalorder %s7683_s26, 0  ;;  %p6691_p6 = scmp.lt.s32.totalorder %s7683_s26, 2 }
  0x7d   : > { %s11399_s12 = smov (%p44_p13, %s42_s12), 0  ;;  %p11058_p3 = scmp.ne.s32.totalorder %s11050_s30, 0 }
  0x7e   : > { %p58_p10 = por %p57_p8, %p56_p2  ;;  %s46_s14 = ssub.s32 %s7679_s25, %s11399_s12 }
  0x7f   : > { %p7939_p5 = por %p11058_p3, %p56_p2  ;;  %s418_s28 = sand.u32 1, %s7671_s23  }
  0x80   : > { %p47_p7 = scmp.eq.s32.totalorder %s46_s14, 0  ;;  %s5759_s7 = sshll.u32 %s418_s28, 7 }
  0x81   : > { %s5908_s6 = sshll.u32 %s7679_s25, 11  ;;  %s422_s30 = scalar_lea.vmem [#allocation5], %s5759_s7 }
  0x82   : > { %s7948_s27 = scalar_select %p47_p7, %s7671_s23, %s49_s11  }
  0x83   : > { %s7953_s21 = scalar_lea.hbm %s10913_s0, %s5908_s6  ;;  %s429_s17 = sshll.u32 %s422_s30, 4  ;;  %s7961_s17 = int_to_ptr.vmem [resolvable:$true] %s429_s17 }
  0x84   : > { %p7957_p11 = pnand %p6691_p6, %p58_p10  ;;  %s7963_s24 = scalar_lea.sflag [#allocation6], %s418_s28 }
  0x85   : > { %s7563_s3 = scalar_lea.hbm %s7953_s21, 2048  ;;  %s7568_s14 = scalar_lea.hbm %s10913_s0, 4096 }
  0x86   : > { %p7564_p9 = scmp.ne.s32.totalorder %s7953_s21, %s7563_s3  ;;  %p7565_p12 = pneg %p7957_p11 }
  0x87   : > { %p7569_p4 = scmp.lt.u32.totalorder %s7953_s21, %s10913_s0  ;;  %p7570_p13 = scmp.lt.u32.totalorder %s7568_s14, %s7563_s3 }
  0x88   : > { %p7566_p0 = pnand %p7565_p12, %p7564_p9  ;;  %p7572_p8 = scmp.lt.u32.totalorder %s7563_s3, %s7953_s21 }
  0x89   : > { %p7571_p2 = por %p7570_p13, %p7569_p4 }
  0x8a   : > { %p7567_p1 = pneg %p7566_p0 }
  0x8b   : > { %p7573_p6 = por %p7572_p8, %p7571_p2 }
  0x8d   : > { %p7574_p10 = pnand %p7573_p6, %p7567_p1 }
  0x8f   : > { %7577 = shalt.err (!%p7574_p10)
}
  0x90   : > { %s7578_s28 = scalar_lea.vmem %s7961_s17, 2048  ;;  %s7695_s16 = smov [#allocation5]  }
  0x91   : > { %p7579_p3 = scmp.ne.s32.totalorder %s7961_s17, %s7578_s28  ;;  %s7583_s19 = sshll.u32 %s7695_s16, 4  ;;  %s7584_s19 = int_to_ptr.vmem [resolvable:$false] %s7583_s19 }
  0x92   : > { %s7585_s30 = scalar_lea.vmem %s7584_s19, 4096  ;;  %p7586_p0 = scmp.lt.s32.totalorder %s7961_s17, %s7584_s19 }
  0x93   : > { %p7581_p7 = pnand %p7579_p3, %p7565_p12  ;;  %p7587_p4 = scmp.lt.s32.totalorder %s7585_s30, %s7578_s28 }
  0x95   : > { %p7582_p9 = pneg %p7581_p7  ;;  %p7588_p13 = por %p7587_p4, %p7586_p0 }
  0x97   : > { %p7589_p2 = pnand %p7588_p13, %p7582_p9 }
  0x99   : > { %7592 = shalt.err (!%p7589_p2)
}
  0x9a   : > { %s7696_s3 = smov 128   ;;  %s7697_s9 = smov 8  }
  0x9b   : > { %6682 = dma.hbm_to_vmem [thread:$0]  (!%p7957_p11), %s7953_s21, 2048, %s7961_s17, %s7963_s24, %s7696_s3, %s7696_s3, %s7697_s9  }
  0x9c   : > { %p11061_p12 = scmp.ne.s32.totalorder %s11054_s15, 0 }
  0x9e   : > { %441 = sbr.rel (%p11061_p12) target bundleno = 4103 (0x1007), region = 68 }
  0xa5   : > { %s7994_s11 = sand.u32 1, %s7667_s22   ;;  %p11062_p1 = scmp.ne.s32.totalorder %s11051_s13, 0 }
  0xa6   : > { %s5763_s14 = sshll.u32 %s7994_s11, 7  ;;  %s444_s7 = scalar_lea.sflag [#allocation6], %s7994_s11 }
  0xa7   : > { %s8000_s6 = scalar_lea.vmem [#allocation5], %s5763_s14 }
  0xa8   : > { %7646 = dma.done.wait (%p11062_p1), %s444_s7, 2048  }
  0xa9   : > { %7648 = vsyncadd (%p11062_p1), %s444_s7, 4294965248  ;;  %p11063_p11 = scmp.ne.s32.totalorder %s11049_s29, 0 }
  0xab   : > { %7650 = dma.done.wait (%p11063_p11), [#allocation9], 4096  }
  0xac   : > { %7652 = vsyncadd (%p11063_p11), [#allocation9], 4294963200 }
  0xad   : > { %7654 = dma.done.wait (%p11063_p11), [#allocation12], 8192  }
  0xae   : > { %7656 = vsyncadd (%p11063_p11), [#allocation12], 4294959104  ;;  %v510_v0 = vld [vmem:[%s8000_s6] sm:$0xff]  ;;  %v512_v1 = vld [vmem:[%s8000_s6 + $0x10] sm:$0xff]  ;;  %vm1334_vm0 = vcmask 261120   ;;  %s7698_s17 = smov 96  }
  0xaf   : > { %528 = vadd.xlane.f32.xlu0 %v510_v0  ;;  %532 = vadd.xlane.f32.xlu1 %v512_v1  ;;  %v511_v2 = vld [vmem:[%s8000_s6 + $0x8] sm:$0xff]  ;;  %v513_v3 = vld [vmem:[%s8000_s6 + $0x18] sm:$0xff]  ;;  %v514_v4 = vld [vmem:[%s8000_s6 + $0x20] sm:$0xff]  ;;  %s7699_s20 = smov 64   ;;  %s7700_s24 = smov 32   ;;  %vm3615_vm1 = vcmask 523264  }
  0xb0   : > { %v515_v5 = vld [vmem:[%s8000_s6 + $0x28] sm:$0xff]  ;;  %v516_v6 = vld [vmem:[%s8000_s6 + $0x30] sm:$0xff]  ;;  %v517_v7 = vld [vmem:[%s8000_s6 + $0x38] sm:$0xff]  ;;  %vm3632_vm2 = vcmask 785408   ;;  %s11289_s3 = sld [smem:[#allocation109_spill]]  ;;  %s11291_s15 = sld [smem:[#allocation111_spill]] }
  0xb1   : > { %v8023_v8 = vld [vmem:[%s8000_s6 + $0x40] sm:$0xff]  ;;  %v8026_v9 = vld [vmem:[%s8000_s6 + $0x48] sm:$0xff]  ;;  %v8029_v10 = vld [vmem:[%s8000_s6 + $0x50] sm:$0xff]  ;;  %s5610_s7 = scalar_lea.sflag [#allocation7], %s7994_s11  ;;  %s7702_s29 = smov [#allocation14]  }
  0xb2   : > { %v8032_v11 = vld [vmem:[%s8000_s6 + $0x58] sm:$0xff]  ;;  %v8037_v12 = vld [vmem:[%s8000_s6 + $0x60] sm:$0xff]  ;;  %v8040_v13 = vld [vmem:[%s8000_s6 + $0x68] sm:$0xff]  ;;  %s7597_s13 = sshll.u32 %s7702_s29, 4  ;;  %s7598_s13 = int_to_ptr.vmem [resolvable:$false] %s7597_s13 }
  0xb3   : > { %530 = vadd.xlane.f32.xlu0 %v511_v2  ;;  %534 = vadd.xlane.f32.xlu1 %v513_v3  ;;  %v8045_v14 = vld [vmem:[%s8000_s6 + $0x70] sm:$0xff]  ;;  %v8048_v15 = vld [vmem:[%s8000_s6 + $0x78] sm:$0xff]  ;;  %v6766_v62 = vld [vmem:[#allocation8 + $0x20] ss:$12 sps:$4 sm:$0xff]  }
  0xb4   : > { %v6763_v16 = vld [vmem:[#allocation8 + $0x4] ss:$12 sps:$4 sm:$0xff]   ;;  %v6764_v17 = vld [vmem:[#allocation8 + $0x8] ss:$12 sps:$4 sm:$0xff]  }
  0xb5   : > { %6230 = vmatprep.subr.bf16.mxu0 %v6763_v16  ;;  %6262 = vmatprep.subr.bf16.mxu1 %v6764_v17  ;;  %v6765_v61 = vld [vmem:[#allocation8 + $0x1c] ss:$12 sps:$4 sm:$0xff]  }
  0xb6   : > { %6231 = vmatpush3.bf16.msra.mxu0 %v6763_v16  ;;  %6263 = vmatpush3.bf16.msra.mxu1 %v6764_v17 }
  0xb7   : > { %536 = vadd.xlane.f32.xlu0 %v514_v4  ;;  %538 = vadd.xlane.f32.xlu1 %v515_v5 }
  0xb8   : > { %6232 = vmatprep.subr.bf16.mxu0 %v6765_v61  ;;  %6264 = vmatprep.subr.bf16.mxu1 %v6766_v62 }
  0xba   : > { %6233 = vmatpush3.bf16.msra.mxu0 %v6765_v61  ;;  %6265 = vmatpush3.bf16.msra.mxu1 %v6766_v62 }
  0xbb   : > { %540 = vadd.xlane.f32.xlu0 %v516_v6  ;;  %542 = vadd.xlane.f32.xlu1 %v517_v7 }
  0xbf   : > { %544 = vadd.xlane.f32.xlu0 %v8023_v8  ;;  %546 = vadd.xlane.f32.xlu1 %v8026_v9 }
  0xc3   : > { %548 = vadd.xlane.f32.xlu0 %v8029_v10  ;;  %550 = vadd.xlane.f32.xlu1 %v8032_v11 }
  0xc7   : > { %552 = vadd.xlane.f32.xlu0 %v8037_v12  ;;  %554 = vadd.xlane.f32.xlu1 %v8040_v13 }
  0xcb   : > { %556 = vadd.xlane.f32.xlu0 %v8045_v14  ;;  %558 = vadd.xlane.f32.xlu1 %v8048_v15 }
 0x13c   : > { %v529_v18 = vpop.xlane.xlu0 %528  ;;  %v533_v19 = vpop.xlane.xlu1 %532 }
 0x13d   : > { %v561_v20 = vmul.f32 0.0078125, %v529_v18  ;;  %v563_v21 = vmul.f32 0.0078125, %v533_v19 }
 0x13f   : > { %v8054_v22 = vsub.f32 %v510_v0, %v561_v20  ;;  %v8056_v23 = vsub.f32 %v512_v1, %v563_v21 }
 0x140   : > { %v531_v24 = vpop.xlane.xlu0 %530  ;;  %v535_v25 = vpop.xlane.xlu1 %534 }
 0x141   : > { %v562_v26 = vmul.f32 0.0078125, %v531_v24  ;;  %v593_v27 = vmul.f32 %v8054_v22, %v8054_v22  ;;  %v564_v28 = vmul.f32 0.0078125, %v535_v25  ;;  %v595_v29 = vmul.f32 %v8056_v23, %v8056_v23  ;;  %v6769_v24 = vld [vmem:[#allocation8 + $0x4c] ss:$12 sps:$4 sm:$0xff]   ;;  %v6770_v25 = vld [vmem:[#allocation8 + $0x50] ss:$12 sps:$4 sm:$0xff]  }
 0x143   : > { %609 = vadd.xlane.f32.xlu0 %v593_v27  ;;  %v8062_v30 = vsub.f32 %v511_v2, %v562_v26  ;;  %v8064_v31 = vsub.f32 %v513_v3, %v564_v28  ;;  %v6771_v28 = vld [vmem:[#allocation8 + $0x64] ss:$12 sps:$4 sm:$0xff]  }
 0x144   : > { %v537_v32 = vpop.xlane.xlu0 %536  ;;  %v539_v33 = vpop.xlane.xlu1 %538 }
 0x145   : > { %v565_v34 = vmul.f32 0.0078125, %v537_v32  ;;  %v594_v35 = vmul.f32 %v8062_v30, %v8062_v30  ;;  %v566_v36 = vmul.f32 0.0078125, %v539_v33  ;;  %v596_v37 = vmul.f32 %v8064_v31, %v8064_v31  ;;  %v6775_v32 = vld [vmem:[#allocation8 + $0x94] ss:$12 sps:$4 sm:$0xff]   ;;  %v6776_v33 = vld [vmem:[#allocation8 + $0x98] ss:$12 sps:$4 sm:$0xff]  }
 0x147   : > { %613 = vadd.xlane.f32.xlu0 %v595_v29  ;;  %611 = vadd.xlane.f32.xlu1 %v594_v35  ;;  %v8070_v38 = vsub.f32 %v514_v4, %v565_v34  ;;  %v8072_v39 = vsub.f32 %v515_v5, %v566_v36  ;;  %v6774_v29 = vld [vmem:[#allocation8 + $0x80] ss:$12 sps:$4 sm:$0xff]   ;;  %v6778_v35 = vld [vmem:[#allocation8 + $0xb0] ss:$12 sps:$4 sm:$0xff]  }
 0x148   : > { %v541_v40 = vpop.xlane.xlu0 %540  ;;  %v543_v41 = vpop.xlane.xlu1 %542  ;;  %v6777_v34 = vld [vmem:[#allocation8 + $0xac] ss:$12 sps:$4 sm:$0xff]  }
 0x149   : > { %v567_v42 = vmul.f32 0.0078125, %v541_v40  ;;  %v597_v43 = vmul.f32 %v8070_v38, %v8070_v38  ;;  %v568_v44 = vmul.f32 0.0078125, %v543_v41  ;;  %v598_v45 = vmul.f32 %v8072_v39, %v8072_v39  ;;  %v8126_v36 = vld [vmem:[#allocation8] ss:$12 sps:$4 sm:$0xff]  }
 0x14b   : > { %615 = vadd.xlane.f32.xlu1 %v596_v37  ;;  %617 = vadd.xlane.f32.xlu0 %v597_v43  ;;  %v8078_v46 = vsub.f32 %v516_v6, %v567_v42  ;;  %v8080_v47 = vsub.f32 %v517_v7, %v568_v44 }
 0x14c   : > { %v545_v48 = vpop.xlane.xlu0 %544  ;;  %v547_v49 = vpop.xlane.xlu1 %546 }
 0x14d   : > { %v569_v50 = vmul.f32 0.0078125, %v545_v48  ;;  %v599_v51 = vmul.f32 %v8078_v46, %v8078_v46  ;;  %v570_v52 = vmul.f32 0.0078125, %v547_v49  ;;  %v600_v53 = vmul.f32 %v8080_v47, %v8080_v47 }
 0x14f   : > { %619 = vadd.xlane.f32.xlu1 %v598_v45  ;;  %621 = vadd.xlane.f32.xlu0 %v599_v51  ;;  %v8087_v54 = vsub.f32 %v8023_v8, %v569_v50  ;;  %v8090_v55 = vsub.f32 %v8026_v9, %v570_v52 }
 0x150   : > { %v549_v56 = vpop.xlane.xlu0 %548  ;;  %v551_v57 = vpop.xlane.xlu1 %550 }
 0x151   : > { %v571_v58 = vmul.f32 0.0078125, %v549_v56  ;;  %v601_v59 = vmul.f32 %v8087_v54, %v8087_v54  ;;  %v572_v60 = vmul.f32 0.0078125, %v551_v57  ;;  %v602_v63 = vmul.f32 %v8090_v55, %v8090_v55 }
 0x153   : > { %623 = vadd.xlane.f32.xlu1 %v600_v53  ;;  %625 = vadd.xlane.f32.xlu0 %v601_v59  ;;  %v8097_v0 = vsub.f32 %v8029_v10, %v571_v58  ;;  %v8100_v1 = vsub.f32 %v8032_v11, %v572_v60  ;;  %v6767_v10 = vld [vmem:[#allocation8 + $0x34] ss:$12 sps:$4 sm:$0xff]   ;;  %v6768_v11 = vld [vmem:[#allocation8 + $0x38] ss:$12 sps:$4 sm:$0xff]  }
 0x154   : > { %v553_v2 = vpop.xlane.xlu0 %552  ;;  %v555_v3 = vpop.xlane.xlu1 %554  ;;  %6234 = vmatprep.subr.bf16.mxu0 %v6767_v10  ;;  %6266 = vmatprep.subr.bf16.mxu1 %v6768_v11 }
 0x155   : > { %v573_v4 = vmul.f32 0.0078125, %v553_v2  ;;  %v603_v5 = vmul.f32 %v8097_v0, %v8097_v0  ;;  %v574_v6 = vmul.f32 0.0078125, %v555_v3  ;;  %v604_v7 = vmul.f32 %v8100_v1, %v8100_v1  ;;  %6235 = vmatpush3.bf16.msra.mxu0 %v6767_v10  ;;  %6267 = vmatpush3.bf16.msra.mxu1 %v6768_v11  ;;  %v8133_v10 = vld [vmem:[%s10914_s1] ss:$0 sm:$0xff] }
 0x156   : > { %6236 = vmatprep.subr.bf16.mxu0 %v6769_v24  ;;  %6268 = vmatprep.subr.bf16.mxu1 %v6770_v25 }
 0x157   : > { %627 = vadd.xlane.f32.xlu1 %v602_v63  ;;  %629 = vadd.xlane.f32.xlu0 %v603_v5  ;;  %v8107_v8 = vsub.f32 %v8037_v12, %v573_v4  ;;  %v8110_v9 = vsub.f32 %v8040_v13, %v574_v6 }
 0x158   : > { %v557_v16 = vpop.xlane.xlu0 %556  ;;  %v559_v17 = vpop.xlane.xlu1 %558 }
 0x159   : > { %v575_v18 = vmul.f32 0.0078125, %v557_v16  ;;  %v605_v19 = vmul.f32 %v8107_v8, %v8107_v8  ;;  %v576_v20 = vmul.f32 0.0078125, %v559_v17  ;;  %v606_v12 = vmul.f32 %v8110_v9, %v8110_v9  ;;  %6237 = vmatpush3.bf16.msra.mxu0 %v6769_v24  ;;  %6269 = vmatpush3.bf16.msra.mxu1 %v6770_v25 }
 0x15a   : > { %6238 = vmatprep.subr.bf16.mxu0 %v6771_v28 }
 0x15b   : > { %631 = vadd.xlane.f32.xlu1 %v604_v7  ;;  %633 = vadd.xlane.f32.xlu0 %v605_v19  ;;  %v8117_v13 = vsub.f32 %v8045_v14, %v575_v18  ;;  %v8120_v21 = vsub.f32 %v8048_v15, %v576_v20  ;;  %v6772_v14 = vld [vmem:[#allocation8 + $0x68] ss:$12 sps:$4 sm:$0xff]  }
 0x15c   : > { %6270 = vmatprep.subr.bf16.mxu1 %v6772_v14  ;;  %v6773_v15 = vld [vmem:[#allocation8 + $0x7c] ss:$12 sps:$4 sm:$0xff]  }
 0x15d   : > { %v607_v26 = vmul.f32 %v8117_v13, %v8117_v13  ;;  %v608_v27 = vmul.f32 %v8120_v21, %v8120_v21  ;;  %6239 = vmatpush3.bf16.msra.mxu0 %v6771_v28  ;;  %6271 = vmatpush3.bf16.msra.mxu1 %v6772_v14 }
 0x15e   : > { %6240 = vmatprep.subr.bf16.mxu0 %v6773_v15  ;;  %6272 = vmatprep.subr.bf16.mxu1 %v6774_v29 }
 0x15f   : > { %635 = vadd.xlane.f32.xlu1 %v606_v12  ;;  %637 = vadd.xlane.f32.xlu0 %v607_v26  ;;  %v8140_v26 = vld [vmem:[%s10915_s2] ss:$0 sm:$0xff] }
 0x161   : > { %6241 = vmatpush3.bf16.msra.mxu0 %v6773_v15  ;;  %6273 = vmatpush3.bf16.msra.mxu1 %v6774_v29 }
 0x162   : > { %6242 = vmatprep.subr.bf16.mxu0 %v6775_v32  ;;  %6274 = vmatprep.subr.bf16.mxu1 %v6776_v33 }
 0x163   : > { %639 = vadd.xlane.f32.xlu1 %v608_v27 }
 0x165   : > { %6243 = vmatpush3.bf16.msra.mxu0 %v6775_v32  ;;  %6275 = vmatpush3.bf16.msra.mxu1 %v6776_v33 }
 0x166   : > { %6244 = vmatprep.subr.bf16.mxu0 %v6777_v34  ;;  %6276 = vmatprep.subr.bf16.mxu1 %v6778_v35 }
 0x169   : > { %6245 = vmatpush3.bf16.msra.mxu0 %v6777_v34  ;;  %6277 = vmatpush3.bf16.msra.mxu1 %v6778_v35 }
 0x16a   : > { %6294 = vmatprep.subr.bf16.mxu0 %v8126_v36 }
 0x1d0   : > { %v610_v37 = vpop.xlane.xlu0 %609 }
 0x1d1   : > { %v641_v40 = vmul.f32 0.0078125, %v610_v37 }
 0x1d3   : > { %v657_v41 = vadd.f32 1e-05, %v641_v40 }
 0x1d4   : > { %v612_v42 = vpop.xlane.xlu1 %611  ;;  %v614_v43 = vpop.xlane.xlu0 %613 }
 0x1d5   : > { %6875 = vrsqrt.f32 %v657_v41  ;;  %v642_v44 = vmul.f32 0.0078125, %v612_v42  ;;  %v643_v45 = vmul.f32 0.0078125, %v614_v43 }
 0x1d7   : > { %v658_v48 = vadd.f32 1e-05, %v642_v44  ;;  %v659_v49 = vadd.f32 1e-05, %v643_v45 }
 0x1d8   : > { %v616_v50 = vpop.xlane.xlu1 %615  ;;  %v618_v51 = vpop.xlane.xlu0 %617 }
 0x1d9   : > { %6877 = vrsqrt.f32 %v658_v48  ;;  %v644_v52 = vmul.f32 0.0078125, %v616_v50  ;;  %v645_v53 = vmul.f32 0.0078125, %v618_v51 }
 0x1da   : > { %6879 = vrsqrt.f32 %v659_v49 }
 0x1db   : > { %v660_v56 = vadd.f32 1e-05, %v644_v52  ;;  %v661_v57 = vadd.f32 1e-05, %v645_v53 }
 0x1dc   : > { %v620_v58 = vpop.xlane.xlu1 %619  ;;  %v622_v59 = vpop.xlane.xlu0 %621 }
 0x1dd   : > { %6881 = vrsqrt.f32 %v660_v56  ;;  %v646_v60 = vmul.f32 0.0078125, %v620_v58  ;;  %v647_v61 = vmul.f32 0.0078125, %v622_v59 }
 0x1de   : > { %6883 = vrsqrt.f32 %v661_v57 }
 0x1df   : > { %v6876_v62 = vpop.eup %6875  ;;  %v662_v63 = vadd.f32 1e-05, %v646_v60  ;;  %v663_v2 = vadd.f32 1e-05, %v647_v61 }
 0x1e0   : > { %v624_v3 = vpop.xlane.xlu1 %623  ;;  %v626_v4 = vpop.xlane.xlu0 %625  ;;  %v689_v5 = vmul.f32 %v6876_v62, %v8054_v22  ;;  %v6780_v62 = vld [vmem:[#allocation8 + $0x18] ss:$12 sps:$4 sm:$0xff]  }
 0x1e1   : > { %6885 = vrsqrt.f32 %v662_v63  ;;  %v648_v6 = vmul.f32 0.0078125, %v624_v3  ;;  %v649_v7 = vmul.f32 0.0078125, %v626_v4 }
 0x1e2   : > { %6887 = vrsqrt.f32 %v663_v2  ;;  %v711_v24 = vmul.f32 %v8133_v10, %v689_v5 }
 0x1e3   : > { %v6878_v11 = vpop.eup %6877  ;;  %v664_v16 = vadd.f32 1e-05, %v648_v6  ;;  %v665_v17 = vadd.f32 1e-05, %v649_v7 }
 0x1e4   : > { %v6880_v18 = vpop.eup %6879  ;;  %v628_v19 = vpop.xlane.xlu1 %627  ;;  %v690_v12 = vmul.f32 %v6878_v11, %v8062_v30  ;;  %v733_v35 = vadd.f32 %v8140_v26, %v711_v24 }
 0x1e5   : > { %v630_v20 = vpop.xlane.xlu0 %629  ;;  %6889 = vrsqrt.f32 %v664_v16  ;;  %v650_v22 = vmul.f32 0.0078125, %v628_v19  ;;  %v691_v27 = vmul.f32 %v6880_v18, %v8056_v23  ;;  %v6781_v19 = vld [vmem:[#allocation8 + $0x30] ss:$12 sps:$4 sm:$0xff]  }
 0x1e6   : > { %v651_v25 = vmul.f32 0.0078125, %v630_v20  ;;  %6891 = vrsqrt.f32 %v665_v17  ;;  %v712_v28 = vmul.f32 %v8133_v10, %v690_v12 }
 0x1e7   : > { %v6882_v14 = vpop.eup %6881  ;;  %v666_v15 = vadd.f32 1e-05, %v650_v22  ;;  %v713_v30 = vmul.f32 %v8133_v10, %v691_v27 }
 0x1e8   : > { %v667_v29 = vadd.f32 1e-05, %v651_v25  ;;  %v6884_v32 = vpop.eup %6883  ;;  %v632_v33 = vpop.xlane.xlu1 %631  ;;  %v734_v37 = vadd.f32 %v8140_v26, %v712_v28  ;;  %v692_v40 = vmul.f32 %v6882_v14, %v8064_v31  ;;  %v6782_v14 = vld [vmem:[#allocation8 + $0x48] ss:$12 sps:$4 sm:$0xff]  }
 0x1e9   : > { %v634_v34 = vpop.xlane.xlu0 %633  ;;  %6893 = vrsqrt.f32 %v666_v15  ;;  %v652_v41 = vmul.f32 0.0078125, %v632_v33  ;;  %v693_v44 = vmul.f32 %v6884_v32, %v8070_v38  ;;  %v735_v50 = vadd.f32 %v8140_v26, %v713_v30 }
 0x1ea   : > { %v653_v23 = vmul.f32 0.0078125, %v634_v34  ;;  %6895 = vrsqrt.f32 %v667_v29  ;;  %v8148_v42 = vpack.c.bf16 %v734_v37, %v733_v35  ;;  %v714_v43 = vmul.f32 %v8133_v10, %v692_v40  ;;  %v6783_v37 = vld [vmem:[#allocation8 + $0x60] ss:$12 sps:$4 sm:$0xff]  }
 0x1eb   : > { %v6886_v45 = vpop.eup %6885  ;;  %v668_v48 = vadd.f32 1e-05, %v652_v41  ;;  %v715_v57 = vmul.f32 %v8133_v10, %v693_v44 }
 0x1ec   : > { %v669_v49 = vadd.f32 1e-05, %v653_v23  ;;  %v6888_v51 = vpop.eup %6887  ;;  %v636_v52 = vpop.xlane.xlu1 %635  ;;  %6246 = vmatprep.mubr.bf16.mxu0 %v8148_v42  ;;  %6278 = vmatprep.mubr.bf16.mxu1 %v8148_v42  ;;  %v736_v53 = vadd.f32 %v8140_v26, %v714_v43  ;;  %v694_v56 = vmul.f32 %v6886_v45, %v8072_v39 }
 0x1ed   : > { %v638_v31 = vpop.xlane.xlu0 %637  ;;  %6897 = vrsqrt.f32 %v668_v48  ;;  %v654_v38 = vmul.f32 0.0078125, %v636_v52  ;;  %v695_v59 = vmul.f32 %v6888_v51, %v8078_v46  ;;  %v737_v4 = vadd.f32 %v8140_v26, %v715_v57 }
 0x1ee   : > { %v655_v58 = vmul.f32 0.0078125, %v638_v31  ;;  %6899 = vrsqrt.f32 %v669_v49  ;;  %v8159_v60 = vpack.c.bf16 %v736_v53, %v735_v50  ;;  %v716_v61 = vmul.f32 %v8133_v10, %v694_v56  ;;  %v6784_v49 = vld [vmem:[#allocation8 + $0x78] ss:$12 sps:$4 sm:$0xff]   ;;  %v6785_v56 = vld [vmem:[#allocation8 + $0x90] ss:$12 sps:$4 sm:$0xff]  }
 0x1ef   : > { %v6890_v63 = vpop.eup %6889  ;;  %v670_v2 = vadd.f32 1e-05, %v654_v38  ;;  %v717_v7 = vmul.f32 %v8133_v10, %v695_v59  ;;  %v6786_v59 = vld [vmem:[#allocation8 + $0xa8] ss:$12 sps:$4 sm:$0xff]  }
 0x1f0   : > { %v671_v3 = vadd.f32 1e-05, %v655_v58  ;;  %v6892_v5 = vpop.eup %6891  ;;  %v640_v39 = vpop.xlane.xlu1 %639  ;;  %6247 = vmatmul.mubr.bf16.vlgmr.msra.gmra.mrb[0].mxu0 %v8159_v60  ;;  %6279 = vmatmul.mubr.bf16.vlgmr.msra.gmra.mrb[0].mxu1 %v8159_v60  ;;  %v738_v6 = vadd.f32 %v8140_v26, %v716_v61  ;;  %v696_v46 = vmul.f32 %v6890_v63, %v8080_v47 }
 0x1f1   : > { %6901 = vrsqrt.f32 %v670_v2  ;;  %v656_v11 = vmul.f32 0.0078125, %v640_v39  ;;  %6295 = vmatpush3.bf16.msra.mxu0 %v8126_v36  ;;  %v697_v16 = vmul.f32 %v6892_v5, %v8087_v54  ;;  %v739_v36 = vadd.f32 %v8140_v26, %v717_v7 }
 0x1f2   : > { %6903 = vrsqrt.f32 %v671_v3  ;;  %v8170_v17 = vpack.c.bf16 %v738_v6, %v737_v4  ;;  %6296 = vmatprep.subr.bf16.mxu0 %v6780_v62  ;;  %v718_v18 = vmul.f32 %v8133_v10, %v696_v46 }
 0x1f3   : > { %v6894_v20 = vpop.eup %6893  ;;  %v672_v12 = vadd.f32 1e-05, %v656_v11  ;;  %v719_v24 = vmul.f32 %v8133_v10, %v697_v16 }
 0x1f4   : > { %v6896_v47 = vpop.eup %6895  ;;  %6250 = vmatprep.mubr.bf16.mxu0 %v8170_v17  ;;  %6282 = vmatprep.mubr.bf16.mxu1 %v8170_v17  ;;  %v740_v54 = vadd.f32 %v8140_v26, %v718_v18  ;;  %v698_v22 = vmul.f32 %v6894_v20, %v8090_v55 }
 0x1f5   : > { %6905 = vrsqrt.f32 %v672_v12  ;;  %6297 = vmatpush3.bf16.msra.mxu0 %v6780_v62  ;;  %v699_v25 = vmul.f32 %v6896_v47, %v8097_v0  ;;  %v741_v29 = vadd.f32 %v8140_v26, %v719_v24 }
 0x1f6   : > { %v752_v27 = vpack.c.bf16 %v740_v54, %v739_v36  ;;  %6298 = vmatprep.subr.bf16.mxu0 %v6781_v19  ;;  %v720_v28 = vmul.f32 %v8133_v10, %v698_v22 }
 0x1f7   : > { %v6898_v15 = vpop.eup %6897  ;;  %v721_v55 = vmul.f32 %v8133_v10, %v699_v25 }
 0x1f8   : > { %v6900_v30 = vpop.eup %6899  ;;  %6251 = vmatmul.mubr.bf16.gmra.mrb[4].mxu0 %v752_v27  ;;  %6283 = vmatmul.mubr.bf16.gmra.mrb[4].mxu1 %v752_v27  ;;  %v742_v32 = vadd.f32 %v8140_v26, %v720_v28  ;;  %v700_v33 = vmul.f32 %v6898_v15, %v8100_v1 }
 0x1f9   : > { %6299 = vmatpush3.bf16.msra.mxu0 %v6781_v19  ;;  %v701_v0 = vmul.f32 %v6900_v30, %v8107_v8  ;;  %v743_v43 = vadd.f32 %v8140_v26, %v721_v55 }
 0x1fa   : > { %v753_v34 = vpack.c.bf16 %v742_v32, %v741_v29  ;;  %6300 = vmatprep.subr.bf16.mxu0 %v6782_v14  ;;  %v722_v35 = vmul.f32 %v8133_v10, %v700_v33 }
 0x1fb   : > { %v6902_v40 = vpop.eup %6901  ;;  %v723_v41 = vmul.f32 %v8133_v10, %v701_v0 }
 0x1fc   : > { %v6904_v23 = vpop.eup %6903  ;;  %6254 = vmatprep.mubr.bf16.mxu0 %v753_v34  ;;  %6286 = vmatprep.mubr.bf16.mxu1 %v753_v34  ;;  %v744_v1 = vadd.f32 %v8140_v26, %v722_v35  ;;  %v702_v44 = vmul.f32 %v6902_v40, %v8110_v9 }
 0x1fd   : > { %6301 = vmatpush3.bf16.msra.mxu0 %v6782_v14  ;;  %v703_v8 = vmul.f32 %v6904_v23, %v8117_v13  ;;  %v745_v51 = vadd.f32 %v8140_v26, %v723_v41 }
 0x1fe   : > { %v754_v45 = vpack.c.bf16 %v744_v1, %v743_v43  ;;  %6302 = vmatprep.subr.bf16.mxu0 %v6783_v37  ;;  %v724_v48 = vmul.f32 %v8133_v10, %v702_v44 }
 0x1ff   : > { %v6906_v50 = vpop.eup %6905  ;;  %v725_v53 = vmul.f32 %v8133_v10, %v703_v8 }
 0x200   : > { %6255 = vmatmul.mubr.bf16.gmra.mrb[8].mxu0 %v754_v45  ;;  %6287 = vmatmul.mubr.bf16.gmra.mrb[8].mxu1 %v754_v45  ;;  %v746_v52 = vadd.f32 %v8140_v26, %v724_v48  ;;  %v704_v31 = vmul.f32 %v6906_v50, %v8120_v21 }
 0x201   : > { %6303 = vmatpush3.bf16.msra.mxu0 %v6783_v37  ;;  %v747_v57 = vadd.f32 %v8140_v26, %v725_v53 }
 0x202   : > { %v755_v9 = vpack.c.bf16 %v746_v52, %v745_v51  ;;  %6304 = vmatprep.subr.bf16.mxu0 %v6784_v49  ;;  %v726_v13 = vmul.f32 %v8133_v10, %v704_v31 }
 0x204   : > { %6258 = vmatprep.mubr.bf16.mxu0 %v755_v9  ;;  %6290 = vmatprep.mubr.bf16.mxu1 %v755_v9  ;;  %v748_v38 = vadd.f32 %v8140_v26, %v726_v13 }
 0x205   : > { %6305 = vmatpush3.bf16.msra.mxu0 %v6784_v49 }
 0x206   : > { %v756_v58 = vpack.c.bf16 %v748_v38, %v747_v57  ;;  %6306 = vmatprep.subr.bf16.mxu0 %v6785_v56 }
 0x208   : > { %6259 = vmatmul.mubr.bf16.gmra.mrb[12].mxu0 %v756_v58  ;;  %6291 = vmatmul.mubr.bf16.gmra.mrb[12].mxu1 %v756_v58 }
 0x209   : > { %6307 = vmatpush3.bf16.msra.mxu0 %v6785_v56  ;;  %6310 = vmatprep.mubr.bf16.mxu0 %v8148_v42 }
 0x20a   : > { %6308 = vmatprep.subr.bf16.mxu0 %v6786_v59 }
 0x20d   : > { %6309 = vmatpush3.bf16.msra.mxu0 %v6786_v59 }
 0x210   : > { %6311 = vmatmul.mubr.bf16.vlgmr.msra.gmra.mrb[16].mxu0 %v8159_v60 }
 0x211   : > { %6314 = vmatprep.mubr.bf16.mxu0 %v8170_v17 }
 0x218   : > { %6315 = vmatmul.mubr.bf16.gmra.mrb[20].mxu0 %v752_v27 }
 0x219   : > { %6318 = vmatprep.mubr.bf16.mxu0 %v753_v34 }
 0x220   : > { %6319 = vmatmul.mubr.bf16.gmra.mrb[24].mxu0 %v754_v45 }
 0x221   : > { %6322 = vmatprep.mubr.bf16.mxu0 %v755_v9 }
 0x228   : > { %6323 = vmatmul.mubr.bf16.gmra.mrb[28].mxu0 %v756_v58 }
 0x2c3   : > { %v6248_v21 = vpop.f32.mrb[0].mxu0  ;;  %v6280_v10 = vpop.f32.mrb[0].mxu1 }
 0x2c4   : > { %v863_v26 = vpop.f32.mrb[1].mxu0  ;;  %v1040_v61 = vpop.f32.mrb[1].mxu1 }
 0x2c5   : > { %v6249_v62 = vpop.f32.mrb[2].mxu0  ;;  %v6281_v63 = vpop.f32.mrb[2].mxu1 }
 0x2c6   : > { %v8203_v2 = vpack.c.bf16 %v6249_v62, %v6248_v21  ;;  %v8205_v42 = vpack.c.bf16 %v6281_v63, %v6280_v10  ;;  %v866_v3 = vpop.f32.mrb[3].mxu0  ;;  %v1043_v4 = vpop.f32.mrb[3].mxu1 }
 0x2c7   : > { %v8207_v60 = vpack.c.bf16 %v866_v3, %v863_v26  ;;  %v8209_v5 = vpack.c.bf16 %v1043_v4, %v1040_v61 }
 0x2c8   : > { %1867 = vrot.lane.b32.xlu1 %v8203_v2, %s7698_s17  ;;  %v1363_v36 = vsel %vm1334_vm0, %v8203_v2, 0 }
 0x2c9   : > { %6358 = vmatprep.subr.bf16.mxu0 %v8209_v5  ;;  %1865 = vrot.lane.b32.xlu0 %v8207_v60, %s7698_s17  ;;  %v1360_v39 = vsel %vm1334_vm0, %v8207_v60, 0 }
 0x2ca   : > { %6614 = vmatprep.subr.msk.bf16.mxu1 %vm1334_vm0, %v8207_v60  ;;  %6359 = vmatpush3.bf16.msra.mxu0 %v8209_v5 }
 0x2cb   : > { %6327 = vmatpush3.bf16.xpose.msra.mxu1 %v1360_v39  ;;  %v6252_v6 = vpop.f32.mrb[4].mxu0  ;;  %v6284_v46 = vpop.f32.mrb[4].mxu1  ;;  %6360 = vmatprep.subr.bf16.mxu0 %v8205_v42 }
 0x2cc   : > { %6615 = vmatprep.subr.msk.bf16.mxu1 %vm1334_vm0, %v8203_v2  ;;  %v879_v7 = vpop.f32.mrb[5].mxu0  ;;  %v1056_v11 = vpop.f32.mrb[5].mxu1 }
 0x2cd   : > { %v6253_v16 = vpop.f32.mrb[6].mxu0  ;;  %v6285_v17 = vpop.f32.mrb[6].mxu1 }
 0x2ce   : > { %v8224_v18 = vpack.c.bf16 %v6253_v16, %v6252_v6  ;;  %v8226_v19 = vpack.c.bf16 %v6285_v17, %v6284_v46  ;;  %v882_v20 = vpop.f32.mrb[7].mxu0  ;;  %v1059_v12 = vpop.f32.mrb[7].mxu1  ;;  %6361 = vmatpush3.bf16.msra.mxu0 %v8205_v42 }
 0x2cf   : > { %v8229_v24 = vpack.c.bf16 %v882_v20, %v879_v7  ;;  %v8231_v47 = vpack.c.bf16 %v1059_v12, %v1056_v11 }
 0x2d0   : > { %v1369_v49 = vsel %vm1334_vm0, %v8224_v18, 0 }
 0x2d1   : > { %1869 = vrot.lane.b32.xlu0 %v8229_v24, %s7698_s17  ;;  %6362 = vmatprep.subr.bf16.mxu0 %v8231_v47  ;;  %v1366_v0 = vsel %vm1334_vm0, %v8229_v24, 0 }
 0x2d2   : > { %6363 = vmatpush3.bf16.msra.mxu0 %v8231_v47 }
 0x2d3   : > { %6329 = vmatpush3.bf16.xpose.msra.mxu1 %v1363_v36  ;;  %v6256_v54 = vpop.f32.mrb[8].mxu0  ;;  %v6288_v22 = vpop.f32.mrb[8].mxu1  ;;  %6364 = vmatprep.subr.bf16.mxu0 %v8226_v19 }
 0x2d4   : > { %6616 = vmatprep.subr.msk.bf16.mxu1 %vm1334_vm0, %v8229_v24  ;;  %v895_v25 = vpop.f32.mrb[9].mxu0  ;;  %v1072_v27 = vpop.f32.mrb[9].mxu1 }
 0x2d5   : > { %v6257_v28 = vpop.f32.mrb[10].mxu0  ;;  %v6289_v14 = vpop.f32.mrb[10].mxu1 }
 0x2d6   : > { %v8242_v15 = vpack.c.bf16 %v6257_v28, %v6256_v54  ;;  %v8244_v29 = vpack.c.bf16 %v6289_v14, %v6288_v22  ;;  %v898_v30 = vpop.f32.mrb[11].mxu0  ;;  %v1075_v32 = vpop.f32.mrb[11].mxu1  ;;  %6365 = vmatpush3.bf16.msra.mxu0 %v8226_v19 }
 0x2d7   : > { %v8247_v33 = vpack.c.bf16 %v898_v30, %v895_v25  ;;  %v8249_v55 = vpack.c.bf16 %v1075_v32, %v1072_v27 }
 0x2d8   : > { %v1375_v10 = vsel %vm1334_vm0, %v8242_v15, 0 }
 0x2d9   : > { %6366 = vmatprep.subr.bf16.mxu0 %v8249_v55  ;;  %v1372_v13 = vsel %vm1334_vm0, %v8247_v33, 0 }
 0x2da   : > { %6367 = vmatpush3.bf16.msra.mxu0 %v8249_v55 }
 0x2db   : > { %6331 = vmatpush3.bf16.xpose.msra.mxu1 %v1366_v0  ;;  %v6260_v34 = vpop.f32.mrb[12].mxu0  ;;  %v6292_v35 = vpop.f32.mrb[12].mxu1  ;;  %6368 = vmatprep.subr.bf16.mxu0 %v8244_v29 }
 0x2dc   : > { %6617 = vmatprep.subr.msk.bf16.mxu1 %vm1334_vm0, %v8224_v18  ;;  %v911_v37 = vpop.f32.mrb[13].mxu0  ;;  %v1088_v40 = vpop.f32.mrb[13].mxu1 }
 0x2dd   : > { %v6261_v41 = vpop.f32.mrb[14].mxu0  ;;  %v6293_v23 = vpop.f32.mrb[14].mxu1 }
 0x2de   : > { %v8258_v43 = vpack.c.bf16 %v6261_v41, %v6260_v34  ;;  %v8260_v1 = vpack.c.bf16 %v6293_v23, %v6292_v35  ;;  %v914_v44 = vpop.f32.mrb[15].mxu0  ;;  %v1091_v8 = vpop.f32.mrb[15].mxu1  ;;  %6369 = vmatpush3.bf16.msra.mxu0 %v8244_v29 }
 0x2df   : > { %v8263_v45 = vpack.c.bf16 %v914_v44, %v911_v37  ;;  %v8265_v48 = vpack.c.bf16 %v1091_v8, %v1088_v40 }
 0x2e0   : > { %v1381_v20 = vsel %vm1334_vm0, %v8258_v43, 0 }
 0x2e1   : > { %6370 = vmatprep.subr.bf16.mxu0 %v8265_v48  ;;  %v1378_v39 = vsel %vm1334_vm0, %v8263_v45, 0 }
 0x2e2   : > { %6371 = vmatpush3.bf16.msra.mxu0 %v8265_v48 }
 0x2e3   : > { %6333 = vmatpush3.bf16.xpose.msra.mxu1 %v1369_v49  ;;  %v6312_v50 = vpop.f32.mrb[16].mxu0  ;;  %6372 = vmatprep.subr.bf16.mxu0 %v8260_v1 }
 0x2e4   : > { %6618 = vmatprep.subr.msk.bf16.mxu1 %vm1334_vm0, %v8247_v33  ;;  %v1247_v51 = vpop.f32.mrb[17].mxu0 }
 0x2e5   : > { %v6313_v52 = vpop.f32.mrb[18].mxu0 }
 0x2e6   : > { %v8274_v31 = vpack.c.bf16 %v6313_v52, %v6312_v50  ;;  %v1250_v53 = vpop.f32.mrb[19].mxu0  ;;  %6373 = vmatpush3.bf16.msra.mxu0 %v8260_v1 }
 0x2e7   : > { %v8277_v9 = vpack.c.bf16 %v1250_v53, %v1247_v51 }
 0x2e9   : > { %6342 = vmatprep.mubr.msk.bf16.mxu1 %vm1334_vm0, %v8277_v9 }
 0x2eb   : > { %6335 = vmatpush3.bf16.xpose.msra.mxu1 %v1372_v13  ;;  %v6316_v56 = vpop.f32.mrb[20].mxu0 }
 0x2ec   : > { %6619 = vmatprep.subr.msk.bf16.mxu1 %vm1334_vm0, %v8242_v15  ;;  %v1263_v57 = vpop.f32.mrb[21].mxu0 }
 0x2ed   : > { %v6317_v38 = vpop.f32.mrb[22].mxu0 }
 0x2ee   : > { %v8285_v58 = vpack.c.bf16 %v6317_v38, %v6316_v56  ;;  %v1266_v59 = vpop.f32.mrb[23].mxu0 }
 0x2ef   : > { %v8287_v21 = vpack.c.bf16 %v1266_v59, %v1263_v57 }
 0x2f3   : > { %6337 = vmatpush3.bf16.xpose.msra.mxu1 %v1375_v10  ;;  %v6320_v26 = vpop.f32.mrb[24].mxu0 }
 0x2f4   : > { %6620 = vmatprep.subr.msk.bf16.mxu1 %vm1334_vm0, %v8263_v45  ;;  %v1279_v61 = vpop.f32.mrb[25].mxu0 }
 0x2f5   : > { %v6321_v62 = vpop.f32.mrb[26].mxu0 }
 0x2f6   : > { %v8293_v63 = vpack.c.bf16 %v6321_v62, %v6320_v26  ;;  %v1282_v3 = vpop.f32.mrb[27].mxu0 }
 0x2f7   : > { %v8295_v4 = vpack.c.bf16 %v1282_v3, %v1279_v61 }
 0x2fb   : > { %6339 = vmatpush3.bf16.xpose.msra.mxu1 %v1378_v39  ;;  %v6324_v6 = vpop.f32.mrb[28].mxu0 }
 0x2fc   : > { %6621 = vmatprep.subr.msk.bf16.mxu1 %vm1334_vm0, %v8258_v43  ;;  %v1295_v46 = vpop.f32.mrb[29].mxu0 }
 0x2fd   : > { %v6325_v7 = vpop.f32.mrb[30].mxu0 }
 0x2fe   : > { %v8301_v11 = vpack.c.bf16 %v6325_v7, %v6324_v6  ;;  %v1298_v16 = vpop.f32.mrb[31].mxu0 }
 0x2ff   : > { %v8303_v17 = vpack.c.bf16 %v1298_v16, %v1295_v46 }
 0x303   : > { %6341 = vmatpush3.bf16.xpose.msra.mxu1 %v1381_v20 }
 0x30a   : > { %6343 = vmatmul.mubr.msk.bf16.vlgmr.msra.gmra.mrb[16].mxu1 %vm1334_vm0, %v8274_v31 }
 0x30b   : > { %6346 = vmatprep.mubr.msk.bf16.mxu1 %vm1334_vm0, %v8287_v21 }
 0x312   : > { %6347 = vmatmul.mubr.msk.bf16.gmra.mrb[20].mxu1 %vm1334_vm0, %v8285_v58 }
 0x313   : > { %6350 = vmatprep.mubr.msk.bf16.mxu1 %vm1334_vm0, %v8295_v4 }
 0x31a   : > { %6351 = vmatmul.mubr.msk.bf16.gmra.mrb[24].mxu1 %vm1334_vm0, %v8293_v63 }
 0x31b   : > { %6354 = vmatprep.mubr.msk.bf16.mxu1 %vm1334_vm0, %v8303_v17 }
 0x322   : > { %6355 = vmatmul.mubr.msk.bf16.gmra.mrb[28].mxu1 %vm1334_vm0, %v8301_v11 }
 0x33a   : > { %v1868_v8 = vpop.permute.xlu1 %1867 }
 0x33b   : > { %v8321_v12 = vpop.permute.xlu0 %1865  ;;  %v1909_v16 = vsel %vm1334_vm0, %v1868_v8, 0 }
 0x33c   : > { %6622 = vmatprep.subr.msk.bf16.mxu0 %vm1334_vm0, %v8321_v12  ;;  %v1906_v7 = vsel %vm1334_vm0, %v8321_v12, 0 }
 0x343   : > { %v1870_v44 = vpop.permute.xlu0 %1869 }
 0x344   : > { %v1912_v20 = vsel %vm1334_vm0, %v1870_v44, 0 }
 0x3dd   : > { %v8325_v36 = vpop.f32.mrb[16].mxu1 }
 0x3de   : > { %1484 = vmax.xlane.f32.xlu0 %v8325_v36  ;;  %v8328_v54 = vpop.f32.mrb[17].mxu1 }
 0x3df   : > { %v6345_v22 = vpop.f32.mrb[18].mxu1 }
 0x3e0   : > { %1486 = vmax.xlane.f32.xlu1 %v6345_v22  ;;  %v8330_v25 = vpop.f32.mrb[19].mxu1 }
 0x3e2   : > { %1480 = vmax.xlane.f32.xlu0 %v8328_v54 }
 0x3e4   : > { %1482 = vmax.xlane.f32.xlu1 %v8330_v25 }
 0x3e5   : > { %v8334_v27 = vpop.f32.mrb[20].mxu1 }
 0x3e6   : > { %v8336_v28 = vpop.f32.mrb[21].mxu1 }
 0x3e7   : > { %v8338_v14 = vpop.f32.mrb[22].mxu1 }
 0x3e8   : > { %v8340_v30 = vpop.f32.mrb[23].mxu1 }
 0x3ed   : > { %v8342_v32 = vpop.f32.mrb[24].mxu1 }
 0x3ee   : > { %v8344_v0 = vpop.f32.mrb[25].mxu1 }
 0x3ef   : > { %v8346_v34 = vpop.f32.mrb[26].mxu1 }
 0x3f0   : > { %v8348_v35 = vpop.f32.mrb[27].mxu1 }
 0x3f5   : > { %1871 = vrot.lane.b32.xlu1 %v8224_v18, %s7698_s17  ;;  %v8352_v37 = vpop.f32.mrb[28].mxu1 }
 0x3f6   : > { %v8354_v40 = vpop.f32.mrb[29].mxu1 }
 0x3f7   : > { %v8356_v41 = vpop.f32.mrb[30].mxu1 }
 0x3f8   : > { %1873 = vrot.lane.b32.xlu0 %v8247_v33, %s7698_s17  ;;  %v8360_v23 = vpop.f32.mrb[31].mxu1 }
 0x417   : > { %1492 = vmax.xlane.f32.xlu0 %v8334_v27 }
 0x419   : > { %1488 = vmax.xlane.f32.xlu1 %v8336_v28 }
 0x41b   : > { %1496 = vmax.xlane.f32.xlu0 %v8344_v0 }
 0x41d   : > { %1494 = vmax.xlane.f32.xlu1 %v8338_v14 }
 0x41f   : > { %1498 = vmax.xlane.f32.xlu0 %v8348_v35 }
 0x421   : > { %1490 = vmax.xlane.f32.xlu1 %v8340_v30 }
 0x423   : > { %1508 = vmax.xlane.f32.xlu0 %v8352_v37 }
 0x425   : > { %1500 = vmax.xlane.f32.xlu1 %v8342_v32 }
 0x429   : > { %1502 = vmax.xlane.f32.xlu1 %v8346_v34 }
 0x42d   : > { %1504 = vmax.xlane.f32.xlu1 %v8354_v40 }
 0x431   : > { %1510 = vmax.xlane.f32.xlu1 %v8356_v41 }
 0x435   : > { %1506 = vmax.xlane.f32.xlu1 %v8360_v23 }
 0x439   : > { %1877 = vrot.lane.b32.xlu0 %v8263_v45, %s7698_s17 }
 0x43d   : > { %1879 = vrot.lane.b32.xlu0 %v8258_v43, %s7698_s17 }
 0x441   : > { %1841 = vrot.lane.b32.xlu0 %v8277_v9, %s7698_s17 }
 0x445   : > { %1845 = vrot.lane.b32.xlu0 %v8287_v21, %s7698_s17 }
 0x446   : > { %1875 = vrot.lane.b32.xlu1 %v8242_v15, %s7698_s17 }
 0x449   : > { %1849 = vrot.lane.b32.xlu0 %v8295_v4, %s7698_s17 }
 0x44a   : > { %1843 = vrot.lane.b32.xlu1 %v8274_v31, %s7698_s17 }
 0x44d   : > { %1853 = vrot.lane.b32.xlu0 %v8303_v17, %s7698_s17 }
 0x44e   : > { %1847 = vrot.lane.b32.xlu1 %v8285_v58, %s7698_s17 }
 0x451   : > { %2234 = vrot.lane.b32.xlu0 %v8209_v5, %s7698_s17 }
 0x452   : > { %1851 = vrot.lane.b32.xlu1 %v8293_v63, %s7698_s17 }
 0x455   : > { %2238 = vrot.lane.b32.xlu0 %v8231_v47, %s7698_s17 }
 0x456   : > { %1855 = vrot.lane.b32.xlu1 %v8301_v11, %s7698_s17 }
 0x459   : > { %2246 = vrot.lane.b32.xlu0 %v8265_v48, %s7698_s17 }
 0x45a   : > { %2236 = vrot.lane.b32.xlu1 %v8205_v42, %s7698_s17 }
 0x45d   : > { %2427 = vrot.lane.b32.xlu0 %v8207_v60, %s7699_s20 }
 0x45e   : > { %2240 = vrot.lane.b32.xlu1 %v8226_v19, %s7698_s17 }
 0x461   : > { %2429 = vrot.lane.b32.xlu0 %v8203_v2, %s7699_s20 }
 0x462   : > { %2242 = vrot.lane.b32.xlu1 %v8249_v55, %s7698_s17 }
 0x465   : > { %2433 = vrot.lane.b32.xlu0 %v8224_v18, %s7699_s20 }
 0x466   : > { %2244 = vrot.lane.b32.xlu1 %v8244_v29, %s7698_s17 }
 0x46a   : > { %2248 = vrot.lane.b32.xlu1 %v8260_v1, %s7698_s17 }
 0x46b   : > { %v8418_v49 = vpop.xlane.xlu0 %1484 }
 0x46c   : > { %11064 = vst [vmem:[#allocation22_spill] sm:$0xff] %v8418_v49  ;;  %v1562_v53 = vsub.f32 %v8325_v36, %v8418_v49 }
 0x46d   : > { %v8420_v50 = vpop.xlane.xlu1 %1486 }
 0x46e   : > { %11065 = vst [vmem:[#allocation23_spill] sm:$0xff] %v8420_v50  ;;  %v1563_v51 = vsub.f32 %v6345_v22, %v8420_v50  ;;  %2431 = vrot.lane.b32.xlu1 %v8229_v24, %s7699_s20  ;;  %v1580_v10 = vmul.f32 1.442695, %v1562_v53 }
 0x46f   : > { %v8425_v52 = vpop.xlane.xlu0 %1480 }
 0x470   : > { %11066 = vst [vmem:[#allocation24_spill] sm:$0xff] %v8425_v52  ;;  %v1582_v13 = vmul.f32 1.442695, %v1563_v51  ;;  %v1560_v56 = vsub.f32 %v8328_v54, %v8425_v52 }
 0x471   : > { %v8431_v57 = vpop.xlane.xlu1 %1482 }
 0x472   : > { %11067 = vst [vmem:[#allocation25_spill] sm:$0xff] %v8431_v57  ;;  %v1561_v38 = vsub.f32 %v8330_v25, %v8431_v57  ;;  %v1576_v59 = vmul.f32 1.442695, %v1560_v56  ;;  %6907 = vpow2.f32 %v1582_v13 }
 0x473   : > { %v1874_v22 = vpop.permute.xlu0 %1873 }
 0x474   : > { %v1578_v26 = vmul.f32 1.442695, %v1561_v38  ;;  %6909 = vpow2.f32 %v1576_v59  ;;  %v1918_v25 = vsel %vm1334_vm0, %v1874_v22, 0 }
 0x475   : > { %v1872_v36 = vpop.permute.xlu1 %1871 }
 0x476   : > { %6911 = vpow2.f32 %v1578_v26  ;;  %v1915_v54 = vsel %vm1334_vm0, %v1872_v36, 0 }
 0x477   : > { %6913 = vpow2.f32 %v1580_v10 }
 0x47c   : > { %v8435_v61 = vpop.eup %6907 }
 0x47e   : > { %v8437_v62 = vpop.eup %6909 }
 0x480   : > { %v8439_v3 = vpop.eup %6911 }
 0x481   : > { %v8441_v39 = vpop.eup %6913  ;;  %v1672_v6 = vpack.c.bf16 %v8439_v3, %v8437_v62 }
 0x482   : > { %v1673_v46 = vpack.c.bf16 %v8435_v61, %v8441_v39 }
 0x483   : > { %6374 = vmatprep.mubr.bf16.mxu0 %v1672_v6 }
 0x484   : > { %6375 = vmatmul.mubr.bf16.vlgmr.msra.gmra.mrb[32].mxu0 %v1673_v46 }
 0x485   : > { %6391 = vmatpush3.bf16.xpose.msra.mxu0 %v1906_v7 }
 0x486   : > { %6623 = vmatprep.subr.msk.bf16.mxu0 %vm1334_vm0, %v1868_v8 }
 0x48d   : > { %6393 = vmatpush3.bf16.xpose.msra.mxu0 %v1909_v16 }
 0x48e   : > { %6624 = vmatprep.subr.msk.bf16.mxu0 %vm1334_vm0, %v1870_v44 }
 0x495   : > { %6395 = vmatpush3.bf16.xpose.msra.mxu0 %v1912_v20 }
 0x496   : > { %6625 = vmatprep.subr.msk.bf16.mxu0 %vm1334_vm0, %v1872_v36 }
 0x49d   : > { %6397 = vmatpush3.bf16.xpose.msra.mxu0 %v1915_v54 }
 0x49e   : > { %6626 = vmatprep.subr.msk.bf16.mxu0 %vm1334_vm0, %v1874_v22 }
 0x4a4   : > { %v8456_v12 = vpop.xlane.xlu0 %1492 }
 0x4a5   : > { %11068 = vst [vmem:[#allocation26_spill] sm:$0xff] %v8456_v12  ;;  %6399 = vmatpush3.bf16.xpose.msra.mxu0 %v1918_v25  ;;  %v1566_v38 = vsub.f32 %v8334_v27, %v8456_v12 }
 0x4a6   : > { %v8459_v8 = vpop.xlane.xlu1 %1488 }
 0x4a7   : > { %11069 = vst [vmem:[#allocation27_spill] sm:$0xff] %v8459_v8  ;;  %v1564_v44 = vsub.f32 %v8336_v28, %v8459_v8  ;;  %v1588_v16 = vmul.f32 1.442695, %v1566_v38 }
 0x4a8   : > { %v8461_v51 = vpop.xlane.xlu0 %1496 }
 0x4a9   : > { %11070 = vst [vmem:[#allocation28_spill] sm:$0xff] %v8461_v51  ;;  %v1584_v59 = vmul.f32 1.442695, %v1564_v44  ;;  %v1568_v10 = vsub.f32 %v8344_v0, %v8461_v51 }
 0x4aa   : > { %v8465_v53 = vpop.xlane.xlu1 %1494 }
 0x4ab   : > { %11071 = vst [vmem:[#allocation29_spill] sm:$0xff] %v8465_v53  ;;  %v1567_v13 = vsub.f32 %v8338_v14, %v8465_v53  ;;  %6915 = vpow2.f32 %v1584_v59  ;;  %v1592_v27 = vmul.f32 1.442695, %v1568_v10 }
 0x4ac   : > { %v8469_v56 = vpop.xlane.xlu0 %1498 }
 0x4ad   : > { %11072 = vst [vmem:[#allocation30_spill] sm:$0xff] %v8469_v56  ;;  %v1590_v26 = vmul.f32 1.442695, %v1567_v13  ;;  %v1569_v6 = vsub.f32 %v8348_v35, %v8469_v56 }
 0x4ae   : > { %v8477_v46 = vpop.xlane.xlu1 %1490 }
 0x4af   : > { %11073 = vst [vmem:[#allocation31_spill] sm:$0xff] %v8477_v46  ;;  %v1565_v28 = vsub.f32 %v8340_v30, %v8477_v46  ;;  %v1594_v7 = vmul.f32 1.442695, %v1569_v6  ;;  %6917 = vpow2.f32 %v1590_v26 }
 0x4b0   : > { %v8481_v14 = vpop.xlane.xlu0 %1508 }
 0x4b1   : > { %11074 = vst [vmem:[#allocation32_spill] sm:$0xff] %v8481_v14  ;;  %v1586_v20 = vmul.f32 1.442695, %v1565_v28  ;;  %6919 = vpow2.f32 %v1594_v7 }
 0x4b2   : > { %v8483_v36 = vpop.xlane.xlu1 %1500 }
 0x4b3   : > { %11075 = vst [vmem:[#allocation33_spill] sm:$0xff] %v8483_v36  ;;  %v1570_v0 = vsub.f32 %v8342_v32, %v8483_v36  ;;  %6921 = vpow2.f32 %v1586_v20 }
 0x4b4   : > { %v1878_v35 = vpop.permute.xlu0 %1877  ;;  %6923 = vpow2.f32 %v1588_v16 }
 0x4b5   : > { %6925 = vpow2.f32 %v1592_v27  ;;  %v1596_v30 = vmul.f32 1.442695, %v1570_v0  ;;  %v8495_v38 = vpop.eup %6915 }
 0x4b6   : > { %v8487_v54 = vpop.xlane.xlu1 %1502 }
 0x4b7   : > { %11076 = vst [vmem:[#allocation34_spill] sm:$0xff] %v8487_v54  ;;  %v1571_v22 = vsub.f32 %v8346_v34, %v8487_v54  ;;  %6927 = vpow2.f32 %v1596_v30  ;;  %v1574_v30 = vsub.f32 %v8352_v37, %v8481_v14 }
 0x4b8   : > { %v8491_v25 = vpop.permute.xlu0 %1879 }
 0x4b9   : > { %v1598_v44 = vmul.f32 1.442695, %v1571_v22  ;;  %v8497_v59 = vpop.eup %6917  ;;  %v1604_v54 = vmul.f32 1.442695, %v1574_v30  ;;  %v1924_v30 = vsel %vm1334_vm0, %v1878_v35, 0 }
 0x4ba   : > { %v8493_v13 = vpop.xlane.xlu1 %1504  ;;  %11078 = vst [vmem:[#allocation36_spill] sm:$0xff] %v8497_v59 }
 0x4bb   : > { %11077 = vst [vmem:[#allocation35_spill] sm:$0xff] %v8493_v13  ;;  %6929 = vpow2.f32 %v1598_v44  ;;  %v8499_v10 = vpop.eup %6919  ;;  %v1572_v6 = vsub.f32 %v8354_v40, %v8493_v13 }
 0x4bc   : > { %v1842_v32 = vpop.permute.xlu0 %1841  ;;  %11079 = vst [vmem:[#allocation37_spill] sm:$0xff] %v8499_v10 }
 0x4bd   : > { %v8501_v26 = vpop.eup %6921  ;;  %v1600_v22 = vmul.f32 1.442695, %v1572_v6 }
 0x4be   : > { %v8505_v34 = vpop.xlane.xlu1 %1510  ;;  %v8507_v28 = vpop.eup %6923  ;;  %v1674_v16 = vpack.c.bf16 %v8501_v26, %v8495_v38 }
 0x4bf   : > { %11080 = vst [vmem:[#allocation38_spill] sm:$0xff] %v8505_v34  ;;  %v1575_v7 = vsub.f32 %v8356_v41, %v8505_v34  ;;  %v8513_v20 = vpop.eup %6925  ;;  %v1675_v0 = vpack.c.bf16 %v8497_v59, %v8507_v28  ;;  %6931 = vpow2.f32 %v1600_v22 }
 0x4c0   : > { %11081 = vst [vmem:[#allocation39_spill] sm:$0xff] %v8513_v20  ;;  %v1846_v27 = vpop.permute.xlu0 %1845  ;;  %6378 = vmatprep.mubr.bf16.mxu0 %v1674_v16  ;;  %v1676_v40 = vpack.c.bf16 %v8499_v10, %v8513_v20 }
 0x4c1   : > { %6379 = vmatmul.mubr.bf16.gmra.mrb[36].mxu0 %v1675_v0  ;;  %v1606_v41 = vmul.f32 1.442695, %v1575_v7  ;;  %v8525_v36 = vpop.eup %6927 }
 0x4c2   : > { %v8521_v44 = vpop.xlane.xlu1 %1506  ;;  %6382 = vmatprep.mubr.bf16.mxu0 %v1676_v40  ;;  %11083 = vst [vmem:[#allocation41_spill] sm:$0xff] %v8525_v36 }
 0x4c3   : > { %11082 = vst [vmem:[#allocation40_spill] sm:$0xff] %v8521_v44  ;;  %v1573_v34 = vsub.f32 %v8360_v23, %v8521_v44  ;;  %6933 = vpow2.f32 %v1606_v41 }
 0x4c4   : > { %v1850_v13 = vpop.permute.xlu0 %1849 }
 0x4c5   : > { %v1602_v56 = vmul.f32 1.442695, %v1573_v34  ;;  %v8527_v51 = vpop.eup %6929 }
 0x4c6   : > { %11084 = vst [vmem:[#allocation42_spill] sm:$0xff] %v8527_v51  ;;  %v1876_v37 = vpop.permute.xlu1 %1875  ;;  %v1677_v7 = vpack.c.bf16 %v8527_v51, %v8525_v36 }
 0x4c7   : > { %6627 = vmatprep.subr.msk.bf16.mxu0 %vm1334_vm0, %v1876_v37  ;;  %v1921_v6 = vsel %vm1334_vm0, %v1876_v37, 0  ;;  %6935 = vpow2.f32 %v1602_v56 }
 0x4c8   : > { %6401 = vmatpush3.bf16.xpose.msra.mxu0 %v1921_v6  ;;  %v1854_v23 = vpop.permute.xlu0 %1853  ;;  %6937 = vpow2.f32 %v1604_v54 }
 0x4c9   : > { %6628 = vmatprep.subr.msk.bf16.mxu0 %vm1334_vm0, %v1878_v35  ;;  %6383 = vmatmul.mubr.bf16.gmra.mrb[40].mxu0 %v1677_v7  ;;  %v8535_v40 = vpop.eup %6931  ;;  %v1927_v7 = vsel %vm1334_vm0, %v8491_v25, 0 }
 0x4ca   : > { %v1844_v34 = vpop.permute.xlu1 %1843  ;;  %11085 = vst [vmem:[#allocation43_spill] sm:$0xff] %v8535_v40 }
 0x4cc   : > { %v2235_v16 = vpop.permute.xlu0 %2234 }
 0x4cd   : > { %6422 = vmatprep.subr.bf16.mxu1 %v2235_v16  ;;  %v8537_v22 = vpop.eup %6933 }
 0x4ce   : > { %v1848_v0 = vpop.permute.xlu1 %1847  ;;  %6423 = vmatpush3.bf16.msra.mxu1 %v2235_v16  ;;  %11086 = vst [vmem:[#allocation44_spill] sm:$0xff] %v8537_v22 }
 0x4d0   : > { %6403 = vmatpush3.bf16.xpose.msra.mxu0 %v1924_v30  ;;  %v2239_v30 = vpop.permute.xlu0 %2238 }
 0x4d1   : > { %6629 = vmatprep.subr.msk.bf16.mxu0 %vm1334_vm0, %v8491_v25  ;;  %v8541_v56 = vpop.eup %6935 }
 0x4d2   : > { %11087 = vst [vmem:[#allocation45_spill] sm:$0xff] %v8541_v56  ;;  %v1852_v54 = vpop.permute.xlu1 %1851  ;;  %v8543_v41 = vpop.eup %6937  ;;  %v1678_v37 = vpack.c.bf16 %v8541_v56, %v8535_v40 }
 0x4d3   : > { %11088 = vst [vmem:[#allocation46_spill] sm:$0xff] %v8543_v41  ;;  %v1679_v6 = vpack.c.bf16 %v8537_v22, %v8543_v41 }
 0x4d4   : > { %6386 = vmatprep.mubr.bf16.mxu0 %v1678_v37  ;;  %v2247_v25 = vpop.permute.xlu0 %2246 }
 0x4d5   : > { %6387 = vmatmul.mubr.bf16.gmra.mrb[44].mxu0 %v1679_v6 }
 0x4d6   : > { %v1856_v35 = vpop.permute.xlu1 %1855  ;;  %6406 = vmatprep.mubr.msk.bf16.mxu0 %vm1334_vm0, %v1842_v32 }
 0x4d8   : > { %6405 = vmatpush3.bf16.xpose.msra.mxu0 %v1927_v7 }
 0x4da   : > { %v2237_v16 = vpop.permute.xlu1 %2236 }
 0x4db   : > { %6424 = vmatprep.subr.bf16.mxu1 %v2237_v16 }
 0x4dc   : > { %6425 = vmatpush3.bf16.msra.mxu1 %v2237_v16 }
 0x4dd   : > { %6426 = vmatprep.subr.bf16.mxu1 %v2239_v30 }
 0x4de   : > { %v2241_v14 = vpop.permute.xlu1 %2240 }
 0x4df   : > { %6407 = vmatmul.mubr.msk.bf16.vlgmr.msra.gmra.mrb[48].mxu0 %vm1334_vm0, %v1844_v34 }
 0x4e0   : > { %6410 = vmatprep.mubr.msk.bf16.mxu0 %vm1334_vm0, %v1846_v27  ;;  %6427 = vmatpush3.bf16.msra.mxu1 %v2239_v30  ;;  %v8558_v27 = vpop.permute.xlu0 %2427 }
 0x4e1   : > { %6428 = vmatprep.subr.bf16.mxu1 %v2241_v14 }
 0x4e2   : > { %v2243_v37 = vpop.permute.xlu1 %2242 }
 0x4e4   : > { %6429 = vmatpush3.bf16.msra.mxu1 %v2241_v14 }
 0x4e5   : > { %6430 = vmatprep.subr.bf16.mxu1 %v2243_v37 }
 0x4e6   : > { %v2245_v32 = vpop.permute.xlu1 %2244 }
 0x4e7   : > { %6411 = vmatmul.mubr.msk.bf16.gmra.mrb[52].mxu0 %vm1334_vm0, %v1848_v0 }
 0x4e8   : > { %6414 = vmatprep.mubr.msk.bf16.mxu0 %vm1334_vm0, %v1850_v13  ;;  %6431 = vmatpush3.bf16.msra.mxu1 %v2243_v37 }
 0x4e9   : > { %6432 = vmatprep.subr.bf16.mxu1 %v2245_v32 }
 0x4ea   : > { %v2249_v34 = vpop.permute.xlu1 %2248 }
 0x4ec   : > { %6433 = vmatpush3.bf16.msra.mxu1 %v2245_v32 }
 0x4ed   : > { %6434 = vmatprep.subr.bf16.mxu1 %v2247_v25 }
 0x4ef   : > { %6415 = vmatmul.mubr.msk.bf16.gmra.mrb[56].mxu0 %vm1334_vm0, %v1852_v54 }
 0x4f0   : > { %6418 = vmatprep.mubr.msk.bf16.mxu0 %vm1334_vm0, %v1854_v23  ;;  %6435 = vmatpush3.bf16.msra.mxu1 %v2247_v25 }
 0x4f1   : > { %6436 = vmatprep.subr.bf16.mxu1 %v2249_v34 }
 0x4f4   : > { %6437 = vmatpush3.bf16.msra.mxu1 %v2249_v34 }
 0x4f5   : > { %6630 = vmatprep.subr.msk.bf16.mxu1 %vm1334_vm0, %v8558_v27 }
 0x4f7   : > { %6419 = vmatmul.mubr.msk.bf16.gmra.mrb[60].mxu0 %vm1334_vm0, %v1856_v35 }
 0x557   : > { %v8563_v14 = vpop.f32.mrb[32].mxu0 }
 0x558   : > { %11089 = vst [vmem:[#allocation47_spill] sm:$0xff] %v8563_v14  ;;  %v8565_v13 = vpop.f32.mrb[33].mxu0 }
 0x559   : > { %11090 = vst [vmem:[#allocation48_spill] sm:$0xff] %v8565_v13  ;;  %v8567_v0 = vpop.f32.mrb[34].mxu0  ;;  %v8688_v13 = vpop.permute.xlu1 %2431 }
 0x55a   : > { %11091 = vst [vmem:[#allocation49_spill] sm:$0xff] %v8567_v0  ;;  %v8569_v54 = vpop.f32.mrb[35].mxu0 }
 0x55b   : > { %11092 = vst [vmem:[#allocation50_spill] sm:$0xff] %v8569_v54 }
 0x594   : > { %v8571_v6 = vpop.f32.mrb[36].mxu0 }
 0x595   : > { %11093 = vst [vmem:[#allocation51_spill] sm:$0xff] %v8571_v6  ;;  %v8573_v23 = vpop.f32.mrb[37].mxu0 }
 0x596   : > { %11094 = vst [vmem:[#allocation52_spill] sm:$0xff] %v8573_v23  ;;  %v8575_v7 = vpop.f32.mrb[38].mxu0 }
 0x597   : > { %11095 = vst [vmem:[#allocation53_spill] sm:$0xff] %v8575_v7  ;;  %v8577_v16 = vpop.f32.mrb[39].mxu0 }
 0x598   : > { %11096 = vst [vmem:[#allocation54_spill] sm:$0xff] %v8577_v16 }
 0x59c   : > { %v8579_v30 = vpop.f32.mrb[40].mxu0 }
 0x59d   : > { %11097 = vst [vmem:[#allocation55_spill] sm:$0xff] %v8579_v30  ;;  %v8581_v37 = vpop.f32.mrb[41].mxu0 }
 0x59e   : > { %11098 = vst [vmem:[#allocation56_spill] sm:$0xff] %v8581_v37  ;;  %v8583_v35 = vpop.f32.mrb[42].mxu0 }
 0x59f   : > { %11099 = vst [vmem:[#allocation57_spill] sm:$0xff] %v8583_v35  ;;  %v8585_v32 = vpop.f32.mrb[43].mxu0 }
 0x5a0   : > { %11100 = vst [vmem:[#allocation58_spill] sm:$0xff] %v8585_v32 }
 0x5a8   : > { %v8587_v25 = vpop.f32.mrb[44].mxu0 }
 0x5a9   : > { %11101 = vst [vmem:[#allocation59_spill] sm:$0xff] %v8587_v25  ;;  %v8589_v34 = vpop.f32.mrb[45].mxu0 }
 0x5aa   : > { %11102 = vst [vmem:[#allocation60_spill] sm:$0xff] %v8589_v34  ;;  %v8591_v41 = vpop.f32.mrb[46].mxu0 }
 0x5ab   : > { %11103 = vst [vmem:[#allocation61_spill] sm:$0xff] %v8591_v41  ;;  %v8593_v44 = vpop.f32.mrb[47].mxu0 }
 0x5ac   : > { %11104 = vst [vmem:[#allocation62_spill] sm:$0xff] %v8593_v44 }
 0x5b2   : > { %v8595_v22 = vpop.f32.mrb[48].mxu0 }
 0x5b3   : > { %2030 = vmax.xlane.f32.xlu0 %v8595_v22  ;;  %v8598_v7 = vpop.f32.mrb[49].mxu0 }
 0x5b4   : > { %v8600_v30 = vpop.f32.mrb[50].mxu0 }
 0x5b5   : > { %v1966_v37 = vpop.f32.mrb[51].mxu0 }
 0x5b6   : > { %2028 = vmax.xlane.f32.xlu1 %v1966_v37 }
 0x5b7   : > { %2026 = vmax.xlane.f32.xlu0 %v8598_v7 }
 0x5ba   : > { %v8603_v35 = vpop.f32.mrb[52].mxu0 }
 0x5bb   : > { %2032 = vmax.xlane.f32.xlu0 %v8600_v30  ;;  %2038 = vmax.xlane.f32.xlu1 %v8603_v35  ;;  %v8607_v41 = vpop.f32.mrb[53].mxu0 }
 0x5bc   : > { %v8609_v25 = vpop.f32.mrb[54].mxu0 }
 0x5bd   : > { %v8611_v44 = vpop.f32.mrb[55].mxu0 }
 0x5bf   : > { %2034 = vmax.xlane.f32.xlu1 %v8607_v41  ;;  %2036 = vmax.xlane.f32.xlu0 %v8611_v44 }
 0x5c2   : > { %v8615_v34 = vpop.f32.mrb[56].mxu0 }
 0x5c3   : > { %2040 = vmax.xlane.f32.xlu1 %v8609_v25  ;;  %2046 = vmax.xlane.f32.xlu0 %v8615_v34  ;;  %v8619_v32 = vpop.f32.mrb[57].mxu0 }
 0x5c4   : > { %v8621_v56 = vpop.f32.mrb[58].mxu0 }
 0x5c5   : > { %v8623_v16 = vpop.f32.mrb[59].mxu0 }
 0x5c7   : > { %2042 = vmax.xlane.f32.xlu1 %v8619_v32 }
 0x5ca   : > { %v8626_v6 = vpop.f32.mrb[60].mxu0 }
 0x5cb   : > { %2048 = vmax.xlane.f32.xlu1 %v8621_v56  ;;  %v8629_v0 = vpop.f32.mrb[61].mxu0 }
 0x5cc   : > { %2050 = vmax.xlane.f32.xlu0 %v8629_v0  ;;  %v8632_v23 = vpop.f32.mrb[62].mxu0 }
 0x5cd   : > { %v8634_v54 = vpop.f32.mrb[63].mxu0 }
 0x5cf   : > { %2044 = vmax.xlane.f32.xlu1 %v8623_v16 }
 0x5d3   : > { %2054 = vmax.xlane.f32.xlu1 %v8626_v6 }
 0x5d7   : > { %2056 = vmax.xlane.f32.xlu1 %v8632_v23 }
 0x5e2   : > { %2437 = vrot.lane.b32.xlu0 %v8242_v15, %s7699_s20 }
 0x5e8   : > { %2435 = vrot.lane.b32.xlu1 %v8247_v33, %s7699_s20 }
 0x5ec   : > { %2413 = vrot.lane.b32.xlu1 %v8274_v31, %s7699_s20 }
 0x5f0   : > { %2417 = vrot.lane.b32.xlu1 %v8285_v58, %s7699_s20 }
 0x5f4   : > { %2421 = vrot.lane.b32.xlu1 %v8293_v63, %s7699_s20 }
 0x5f8   : > { %2425 = vrot.lane.b32.xlu1 %v8301_v11, %s7699_s20 }
 0x5fc   : > { %2790 = vrot.lane.b32.xlu1 %v8205_v42, %s7699_s20 }
 0x600   : > { %2794 = vrot.lane.b32.xlu1 %v8226_v19, %s7699_s20 }
 0x601   : > { %2052 = vmax.xlane.f32.xlu0 %v8634_v54 }
 0x604   : > { %2796 = vrot.lane.b32.xlu1 %v8249_v55, %s7699_s20 }
 0x608   : > { %2798 = vrot.lane.b32.xlu1 %v8244_v29, %s7699_s20 }
 0x60c   : > { %2802 = vrot.lane.b32.xlu1 %v8260_v1, %s7699_s20 }
 0x610   : > { %2985 = vrot.lane.b32.xlu1 %v8229_v24, %s7700_s24  ;;  %v8680_v24 = vpop.permute.xlu0 %2429 }
 0x614   : > { %v8686_v14 = vpop.permute.xlu0 %2433 }
 0x617   : > { %2439 = vrot.lane.b32.xlu0 %v8263_v45, %s7699_s20 }
 0x61b   : > { %2441 = vrot.lane.b32.xlu0 %v8258_v43, %s7699_s20 }
 0x61f   : > { %2411 = vrot.lane.b32.xlu0 %v8277_v9, %s7699_s20 }
 0x623   : > { %2415 = vrot.lane.b32.xlu0 %v8287_v21, %s7699_s20 }
 0x627   : > { %2419 = vrot.lane.b32.xlu0 %v8295_v4, %s7699_s20 }
 0x62b   : > { %2423 = vrot.lane.b32.xlu0 %v8303_v17, %s7699_s20 }
 0x62f   : > { %2788 = vrot.lane.b32.xlu0 %v8209_v5, %s7699_s20 }
 0x633   : > { %2792 = vrot.lane.b32.xlu0 %v8231_v47, %s7699_s20 }
 0x637   : > { %2800 = vrot.lane.b32.xlu0 %v8265_v48, %s7699_s20 }
 0x63b   : > { %2981 = vrot.lane.b32.xlu0 %v8207_v60, %s7700_s24 }
 0x63f   : > { %2983 = vrot.lane.b32.xlu0 %v8203_v2, %s7700_s24 }
 0x640   : > { %v8692_v53 = vpop.xlane.xlu0 %2030 }
 0x641   : > { %11105 = vst [vmem:[#allocation63_spill] sm:$0xff] %v8692_v53  ;;  %v2108_v36 = vsub.f32 %v8595_v22, %v8692_v53 }
 0x643   : > { %v8694_v46 = vpop.xlane.xlu1 %2028  ;;  %2987 = vrot.lane.b32.xlu0 %v8224_v18, %s7700_s24  ;;  %v2126_v52 = vmul.f32 1.442695, %v2108_v36 }
 0x644   : > { %v2107_v8 = vsub.f32 %v1966_v37, %v8694_v46  ;;  %v8699_v40 = vpop.xlane.xlu0 %2026 }
 0x645   : > { %v2106_v60 = vsub.f32 %v8598_v7, %v8699_v40 }
 0x646   : > { %v2124_v12 = vmul.f32 1.442695, %v2107_v8 }
 0x647   : > { %v2122_v51 = vmul.f32 1.442695, %v2106_v60 }
 0x648   : > { %v8705_v2 = vpop.xlane.xlu1 %2038  ;;  %v8707_v57 = vpop.xlane.xlu0 %2032  ;;  %6939 = vpow2.f32 %v2124_v12 }
 0x649   : > { %11106 = vst [vmem:[#allocation64_spill] sm:$0xff] %v8705_v2  ;;  %11107 = vst [vmem:[#allocation65_spill] sm:$0xff] %v8707_v57  ;;  %v2109_v18 = vsub.f32 %v8600_v30, %v8707_v57  ;;  %6941 = vpow2.f32 %v2122_v51  ;;  %v2112_v8 = vsub.f32 %v8603_v35, %v8705_v2 }
 0x64a   : > { %6943 = vpow2.f32 %v2126_v52 }
 0x64b   : > { %v2128_v37 = vmul.f32 1.442695, %v2109_v18  ;;  %v2134_v51 = vmul.f32 1.442695, %v2112_v8 }
 0x64c   : > { %v8711_v50 = vpop.xlane.xlu1 %2034  ;;  %v8713_v49 = vpop.xlane.xlu0 %2036 }
 0x64d   : > { %11108 = vst [vmem:[#allocation66_spill] sm:$0xff] %v8711_v50  ;;  %11109 = vst [vmem:[#allocation67_spill] sm:$0xff] %v8713_v49  ;;  %v2110_v22 = vsub.f32 %v8607_v41, %v8711_v50  ;;  %v2111_v7 = vsub.f32 %v8611_v44, %v8713_v49  ;;  %6945 = vpow2.f32 %v2128_v37 }
 0x64f   : > { %v2130_v12 = vmul.f32 1.442695, %v2110_v22  ;;  %v2132_v30 = vmul.f32 1.442695, %v2111_v7 }
 0x650   : > { %v8721_v36 = vpop.xlane.xlu1 %2040  ;;  %v8733_v44 = vpop.xlane.xlu0 %2046 }
 0x651   : > { %11110 = vst [vmem:[#allocation68_spill] sm:$0xff] %v8721_v36  ;;  %v2113_v60 = vsub.f32 %v8609_v25, %v8721_v36  ;;  %6947 = vpow2.f32 %v2130_v12  ;;  %11112 = vst [vmem:[#allocation70_spill] sm:$0xff] %v8733_v44  ;;  %v2116_v12 = vsub.f32 %v8615_v34, %v8733_v44 }
 0x652   : > { %v8725_v18 = vpop.eup %6939  ;;  %6949 = vpow2.f32 %v2132_v30 }
 0x653   : > { %v2136_v35 = vmul.f32 1.442695, %v2113_v60  ;;  %v8729_v41 = vpop.eup %6941  ;;  %6951 = vpow2.f32 %v2134_v51 }
 0x654   : > { %v8727_v2 = vpop.xlane.xlu1 %2042  ;;  %v2218_v52 = vpack.c.bf16 %v8725_v18, %v8729_v41  ;;  %v8739_v8 = vpop.eup %6943 }
 0x655   : > { %11111 = vst [vmem:[#allocation69_spill] sm:$0xff] %v8727_v2  ;;  %6953 = vpow2.f32 %v2136_v35  ;;  %v2114_v37 = vsub.f32 %v8619_v32, %v8727_v2  ;;  %v2142_v2 = vmul.f32 1.442695, %v2116_v12 }
 0x656   : > { %6438 = vmatprep.mubr.bf16.mxu1 %v2218_v52  ;;  %v2468_v52 = vsel %vm1334_vm0, %v8558_v27, 0 }
 0x657   : > { %v8743_v7 = vpop.eup %6945  ;;  %v2138_v60 = vmul.f32 1.442695, %v2114_v37 }
 0x658   : > { %v8737_v25 = vpop.xlane.xlu1 %2048  ;;  %v2219_v30 = vpack.c.bf16 %v8743_v7, %v8739_v8 }
 0x659   : > { %11113 = vst [vmem:[#allocation71_spill] sm:$0xff] %v8737_v25  ;;  %v2117_v22 = vsub.f32 %v8621_v56, %v8737_v25  ;;  %6955 = vpow2.f32 %v2138_v60 }
 0x65a   : > { %6439 = vmatmul.mubr.bf16.vlgmr.msra.gmra.mrb[32].mxu1 %v2219_v30 }
 0x65b   : > { %v8749_v51 = vpop.eup %6947  ;;  %v2144_v35 = vmul.f32 1.442695, %v2117_v22  ;;  %6455 = vmatpush3.bf16.xpose.msra.mxu1 %v2468_v52 }
 0x65c   : > { %v8751_v32 = vpop.xlane.xlu1 %2044  ;;  %v8757_v25 = vpop.eup %6949  ;;  %6631 = vmatprep.subr.msk.bf16.mxu1 %vm1334_vm0, %v8680_v24 }
 0x65d   : > { %11114 = vst [vmem:[#allocation72_spill] sm:$0xff] %v8751_v32  ;;  %v2115_v56 = vsub.f32 %v8623_v16, %v8751_v32  ;;  %v8759_v34 = vpop.eup %6951  ;;  %v2220_v22 = vpack.c.bf16 %v8757_v25, %v8749_v51  ;;  %6957 = vpow2.f32 %v2144_v35  ;;  %v2471_v16 = vsel %vm1334_vm0, %v8680_v24, 0 }
 0x65f   : > { %v2140_v37 = vmul.f32 1.442695, %v2115_v56  ;;  %v8765_v30 = vpop.eup %6953  ;;  %6442 = vmatprep.mubr.bf16.mxu1 %v2220_v22 }
 0x660   : > { %v2221_v27 = vpack.c.bf16 %v8765_v30, %v8759_v34  ;;  %v8775_v52 = vpop.xlane.xlu1 %2054 }
 0x661   : > { %6959 = vpow2.f32 %v2140_v37  ;;  %11115 = vst [vmem:[#allocation73_spill] sm:$0xff] %v8775_v52 }
 0x662   : > { %6961 = vpow2.f32 %v2142_v2  ;;  %6443 = vmatmul.mubr.bf16.gmra.mrb[36].mxu1 %v2221_v27  ;;  %v2474_v2 = vsel %vm1334_vm0, %v8688_v13, 0  ;;  %v2477_v27 = vsel %vm1334_vm0, %v8686_v14, 0 }
 0x663   : > { %6457 = vmatpush3.bf16.xpose.msra.mxu1 %v2471_v16  ;;  %v8773_v12 = vpop.eup %6955 }
 0x664   : > { %6632 = vmatprep.subr.msk.bf16.mxu1 %vm1334_vm0, %v8688_v13  ;;  %v8791_v22 = vpop.xlane.xlu1 %2056  ;;  %v8796_v13 = vpop.xlane.xlu0 %2050 }
 0x665   : > { %11116 = vst [vmem:[#allocation74_spill] sm:$0xff] %v8791_v22  ;;  %11117 = vst [vmem:[#allocation75_spill] sm:$0xff] %v8796_v13 }
 0x667   : > { %v8777_v60 = vpop.eup %6957 }
 0x668   : > { %v2436_v16 = vpop.permute.xlu1 %2435  ;;  %v2438_v32 = vpop.permute.xlu0 %2437 }
 0x66b   : > { %v8779_v35 = vpop.eup %6959  ;;  %6459 = vmatpush3.bf16.xpose.msra.mxu1 %v2474_v2  ;;  %v2480_v2 = vsel %vm1334_vm0, %v2436_v16, 0 }
 0x66c   : > { %v8781_v56 = vpop.eup %6961  ;;  %v2222_v24 = vpack.c.bf16 %v8779_v35, %v8773_v12  ;;  %6633 = vmatprep.subr.msk.bf16.mxu1 %vm1334_vm0, %v8686_v14  ;;  %v2121_v14 = vsub.f32 %v8632_v23, %v8791_v22 }
 0x66d   : > { %v2223_v37 = vpack.c.bf16 %v8777_v60, %v8781_v56 }
 0x66e   : > { %6446 = vmatprep.mubr.bf16.mxu1 %v2222_v24  ;;  %v2483_v24 = vsel %vm1334_vm0, %v2438_v32, 0 }
 0x66f   : > { %6447 = vmatmul.mubr.bf16.gmra.mrb[40].mxu1 %v2223_v37  ;;  %v2118_v37 = vsub.f32 %v8629_v0, %v8796_v13 }
 0x671   : > { %v2146_v44 = vmul.f32 1.442695, %v2118_v37 }
 0x673   : > { %6461 = vmatpush3.bf16.xpose.msra.mxu1 %v2477_v27  ;;  %v2120_v27 = vsub.f32 %v8626_v6, %v8775_v52  ;;  %6963 = vpow2.f32 %v2146_v44 }
 0x674   : > { %6634 = vmatprep.subr.msk.bf16.mxu1 %vm1334_vm0, %v2436_v16  ;;  %v2152_v16 = vmul.f32 1.442695, %v2121_v14 }
 0x675   : > { %v2150_v49 = vmul.f32 1.442695, %v2120_v27 }
 0x676   : > { %6965 = vpow2.f32 %v2152_v16 }
 0x67b   : > { %6463 = vmatpush3.bf16.xpose.msra.mxu1 %v2480_v2 }
 0x67c   : > { %6635 = vmatprep.subr.msk.bf16.mxu1 %vm1334_vm0, %v2438_v32  ;;  %v2414_v32 = vpop.permute.xlu1 %2413 }
 0x67d   : > { %v8815_v14 = vpop.eup %6963 }
 0x680   : > { %v2418_v23 = vpop.permute.xlu1 %2417  ;;  %v8817_v44 = vpop.eup %6965 }
 0x683   : > { %6465 = vmatpush3.bf16.xpose.msra.mxu1 %v2483_v24 }
 0x684   : > { %v2422_v16 = vpop.permute.xlu1 %2421 }
 0x68e   : > { %v8807_v36 = vpop.xlane.xlu0 %2052 }
 0x68f   : > { %11118 = vst [vmem:[#allocation76_spill] sm:$0xff] %v8807_v36  ;;  %v2119_v2 = vsub.f32 %v8634_v54, %v8807_v36 }
 0x691   : > { %v2148_v50 = vmul.f32 1.442695, %v2119_v2 }
 0x692   : > { %v2440_v24 = vpop.permute.xlu0 %2439 }
 0x693   : > { %6636 = vmatprep.subr.msk.bf16.mxu1 %vm1334_vm0, %v2440_v24  ;;  %v2486_v0 = vsel %vm1334_vm0, %v2440_v24, 0  ;;  %6967 = vpow2.f32 %v2148_v50 }
 0x694   : > { %6467 = vmatpush3.bf16.xpose.msra.mxu1 %v2486_v0  ;;  %6969 = vpow2.f32 %v2150_v49 }
 0x696   : > { %v2442_v6 = vpop.permute.xlu0 %2441 }
 0x697   : > { %6637 = vmatprep.subr.msk.bf16.mxu1 %vm1334_vm0, %v2442_v6  ;;  %v2489_v54 = vsel %vm1334_vm0, %v2442_v6, 0  ;;  %v2426_v6 = vpop.permute.xlu1 %2425 }
 0x69a   : > { %v2412_v37 = vpop.permute.xlu0 %2411 }
 0x69b   : > { %v2791_v36 = vpop.permute.xlu1 %2790 }
 0x69c   : > { %6469 = vmatpush3.bf16.xpose.msra.mxu1 %v2489_v54 }
 0x69d   : > { %v8819_v27 = vpop.eup %6967 }
 0x69e   : > { %v2416_v2 = vpop.permute.xlu0 %2415  ;;  %v8821_v24 = vpop.eup %6969  ;;  %v2224_v49 = vpack.c.bf16 %v8819_v27, %v8815_v14 }
 0x69f   : > { %v2225_v50 = vpack.c.bf16 %v8817_v44, %v8821_v24  ;;  %v2795_v52 = vpop.permute.xlu1 %2794 }
 0x6a0   : > { %6450 = vmatprep.mubr.bf16.mxu1 %v2224_v49 }
 0x6a1   : > { %6451 = vmatmul.mubr.bf16.gmra.mrb[44].mxu1 %v2225_v50 }
 0x6a2   : > { %v2420_v0 = vpop.permute.xlu0 %2419  ;;  %6470 = vmatprep.mubr.msk.bf16.mxu1 %vm1334_vm0, %v2412_v37 }
 0x6a3   : > { %v2797_v37 = vpop.permute.xlu1 %2796 }
 0x6a6   : > { %v2424_v54 = vpop.permute.xlu0 %2423 }
 0x6a9   : > { %6471 = vmatmul.mubr.msk.bf16.vlgmr.msra.gmra.mrb[48].mxu1 %vm1334_vm0, %v2414_v32  ;;  %v2799_v32 = vpop.permute.xlu1 %2798 }
 0x6aa   : > { %v2789_v22 = vpop.permute.xlu0 %2788  ;;  %6474 = vmatprep.mubr.msk.bf16.mxu1 %vm1334_vm0, %v2416_v2 }
 0x6ab   : > { %6486 = vmatprep.subr.bf16.mxu0 %v2789_v22 }
 0x6ac   : > { %6487 = vmatpush3.bf16.msra.mxu0 %v2789_v22 }
 0x6ad   : > { %6488 = vmatprep.subr.bf16.mxu0 %v2791_v36 }
 0x6ae   : > { %v2793_v13 = vpop.permute.xlu0 %2792 }
 0x6b0   : > { %6489 = vmatpush3.bf16.msra.mxu0 %v2791_v36  ;;  %v2803_v36 = vpop.permute.xlu1 %2802 }
 0x6b1   : > { %6490 = vmatprep.subr.bf16.mxu0 %v2793_v13  ;;  %6475 = vmatmul.mubr.msk.bf16.gmra.mrb[52].mxu1 %vm1334_vm0, %v2418_v23 }
 0x6b2   : > { %6478 = vmatprep.mubr.msk.bf16.mxu1 %vm1334_vm0, %v2420_v0  ;;  %v2801_v22 = vpop.permute.xlu0 %2800 }
 0x6b4   : > { %6491 = vmatpush3.bf16.msra.mxu0 %v2793_v13 }
 0x6b5   : > { %6492 = vmatprep.subr.bf16.mxu0 %v2795_v52 }
 0x6b6   : > { %v8835_v13 = vpop.permute.xlu0 %2981 }
 0x6b8   : > { %6493 = vmatpush3.bf16.msra.mxu0 %v2795_v52 }
 0x6b9   : > { %6494 = vmatprep.subr.bf16.mxu0 %v2797_v37  ;;  %6479 = vmatmul.mubr.msk.bf16.gmra.mrb[56].mxu1 %vm1334_vm0, %v2422_v16 }
 0x6ba   : > { %6482 = vmatprep.mubr.msk.bf16.mxu1 %vm1334_vm0, %v2424_v54 }
 0x6bc   : > { %6495 = vmatpush3.bf16.msra.mxu0 %v2797_v37 }
 0x6bd   : > { %6496 = vmatprep.subr.bf16.mxu0 %v2799_v32 }
 0x6c0   : > { %6497 = vmatpush3.bf16.msra.mxu0 %v2799_v32 }
 0x6c1   : > { %6498 = vmatprep.subr.bf16.mxu0 %v2801_v22  ;;  %6483 = vmatmul.mubr.msk.bf16.gmra.mrb[60].mxu1 %vm1334_vm0, %v2426_v6 }
 0x6c4   : > { %6499 = vmatpush3.bf16.msra.mxu0 %v2801_v22 }
 0x6c5   : > { %6500 = vmatprep.subr.bf16.mxu0 %v2803_v36 }
 0x6c8   : > { %6501 = vmatpush3.bf16.msra.mxu0 %v2803_v36 }
 0x6c9   : > { %6638 = vmatprep.subr.msk.bf16.mxu0 %vm1334_vm0, %v8835_v13 }
 0x72d   : > { %v8839_v52 = vpop.f32.mrb[32].mxu1 }
 0x72e   : > { %11119 = vst [vmem:[#allocation77_spill] sm:$0xff] %v8839_v52  ;;  %v8841_v23 = vpop.f32.mrb[33].mxu1 }
 0x72f   : > { %v8843_v16 = vpop.f32.mrb[34].mxu1 }
 0x730   : > { %11120 = vst [vmem:[#allocation78_spill] sm:$0xff] %v8843_v16  ;;  %v8845_v2 = vpop.f32.mrb[35].mxu1 }
 0x735   : > { %v8847_v49 = vpop.f32.mrb[36].mxu1 }
 0x736   : > { %11121 = vst [vmem:[#allocation79_spill] sm:$0xff] %v8847_v49  ;;  %v8849_v50 = vpop.f32.mrb[37].mxu1 }
 0x737   : > { %11122 = vst [vmem:[#allocation80_spill] sm:$0xff] %v8849_v50  ;;  %v8851_v0 = vpop.f32.mrb[38].mxu1 }
 0x738   : > { %11123 = vst [vmem:[#allocation81_spill] sm:$0xff] %v8851_v0  ;;  %v8853_v6 = vpop.f32.mrb[39].mxu1 }
 0x739   : > { %11124 = vst [vmem:[#allocation82_spill] sm:$0xff] %v8853_v6 }
 0x742   : > { %v8855_v54 = vpop.f32.mrb[40].mxu1 }
 0x743   : > { %11125 = vst [vmem:[#allocation83_spill] sm:$0xff] %v8855_v54  ;;  %v8857_v37 = vpop.f32.mrb[41].mxu1 }
 0x744   : > { %11126 = vst [vmem:[#allocation84_spill] sm:$0xff] %v8857_v37  ;;  %v8859_v32 = vpop.f32.mrb[42].mxu1 }
 0x745   : > { %11127 = vst [vmem:[#allocation85_spill] sm:$0xff] %v8859_v32  ;;  %v8861_v22 = vpop.f32.mrb[43].mxu1 }
 0x746   : > { %11128 = vst [vmem:[#allocation86_spill] sm:$0xff] %v8861_v22 }
 0x774   : > { %v8863_v36 = vpop.f32.mrb[44].mxu1 }
 0x775   : > { %11129 = vst [vmem:[#allocation87_spill] sm:$0xff] %v8863_v36  ;;  %v8865_v52 = vpop.f32.mrb[45].mxu1 }
 0x776   : > { %11130 = vst [vmem:[#allocation88_spill] sm:$0xff] %v8865_v52  ;;  %v8867_v16 = vpop.f32.mrb[46].mxu1 }
 0x777   : > { %11131 = vst [vmem:[#allocation89_spill] sm:$0xff] %v8867_v16  ;;  %v8869_v49 = vpop.f32.mrb[47].mxu1 }
 0x778   : > { %11132 = vst [vmem:[#allocation90_spill] sm:$0xff] %v8869_v49 }
 0x77c   : > { %v8871_v50 = vpop.f32.mrb[48].mxu1 }
 0x77d   : > { %2592 = vmax.xlane.f32.xlu0 %v8871_v50  ;;  %v2525_v0 = vpop.f32.mrb[49].mxu1 }
 0x77e   : > { %v8874_v54 = vpop.f32.mrb[50].mxu1 }
 0x77f   : > { %v2528_v37 = vpop.f32.mrb[51].mxu1 }
 0x780   : > { %2590 = vmax.xlane.f32.xlu1 %v2528_v37 }
 0x781   : > { %2588 = vmax.xlane.f32.xlu0 %v2525_v0 }
 0x784   : > { %v8876_v32 = vpop.f32.mrb[52].mxu1 }
 0x785   : > { %2594 = vmax.xlane.f32.xlu0 %v8874_v54  ;;  %2600 = vmax.xlane.f32.xlu1 %v8876_v32  ;;  %v8880_v36 = vpop.f32.mrb[53].mxu1 }
 0x786   : > { %v8882_v16 = vpop.f32.mrb[54].mxu1 }
 0x787   : > { %v8884_v49 = vpop.f32.mrb[55].mxu1 }
 0x789   : > { %2596 = vmax.xlane.f32.xlu1 %v8880_v36  ;;  %2598 = vmax.xlane.f32.xlu0 %v8884_v49 }
 0x78c   : > { %v8888_v52 = vpop.f32.mrb[56].mxu1 }
 0x78d   : > { %2602 = vmax.xlane.f32.xlu1 %v8882_v16  ;;  %2608 = vmax.xlane.f32.xlu0 %v8888_v52  ;;  %v8892_v22 = vpop.f32.mrb[57].mxu1 }
 0x78e   : > { %v8894_v6 = vpop.f32.mrb[58].mxu1 }
 0x78f   : > { %v8896_v53 = vpop.f32.mrb[59].mxu1 }
 0x791   : > { %2604 = vmax.xlane.f32.xlu1 %v8892_v22 }
 0x794   : > { %v8899_v57 = vpop.f32.mrb[60].mxu1 }
 0x795   : > { %2610 = vmax.xlane.f32.xlu1 %v8894_v6  ;;  %v8902_v10 = vpop.f32.mrb[61].mxu1 }
 0x796   : > { %2612 = vmax.xlane.f32.xlu0 %v8902_v10  ;;  %v8905_v20 = vpop.f32.mrb[62].mxu1 }
 0x797   : > { %v8907_v59 = vpop.f32.mrb[63].mxu1 }
 0x799   : > { %2606 = vmax.xlane.f32.xlu1 %v8896_v53 }
 0x79d   : > { %2616 = vmax.xlane.f32.xlu1 %v8899_v57 }
 0x7a1   : > { %2618 = vmax.xlane.f32.xlu1 %v8905_v20 }
 0x7ac   : > { %2991 = vrot.lane.b32.xlu0 %v8242_v15, %s7700_s24 }
 0x7b2   : > { %2989 = vrot.lane.b32.xlu1 %v8247_v33, %s7700_s24 }
 0x7b6   : > { %2967 = vrot.lane.b32.xlu1 %v8274_v31, %s7700_s24 }
 0x7ba   : > { %2971 = vrot.lane.b32.xlu1 %v8285_v58, %s7700_s24 }
 0x7be   : > { %2975 = vrot.lane.b32.xlu1 %v8293_v63, %s7700_s24 }
 0x7c2   : > { %2979 = vrot.lane.b32.xlu1 %v8301_v11, %s7700_s24 }
 0x7c6   : > { %3344 = vrot.lane.b32.xlu1 %v8205_v42, %s7700_s24  ;;  %v8946_v42 = vpop.permute.xlu0 %2983 }
 0x7ca   : > { %3352 = vrot.lane.b32.xlu1 %v8244_v29, %s7700_s24  ;;  %v8952_v15 = vpop.permute.xlu0 %2987  ;;  %v8954_v29 = vpop.permute.xlu1 %2985 }
 0x7cb   : > { %2614 = vmax.xlane.f32.xlu0 %v8907_v59 }
 0x7e1   : > { %2993 = vrot.lane.b32.xlu0 %v8263_v45, %s7700_s24 }
 0x7e5   : > { %2995 = vrot.lane.b32.xlu0 %v8258_v43, %s7700_s24 }
 0x7e9   : > { %2965 = vrot.lane.b32.xlu0 %v8277_v9, %s7700_s24 }
 0x7ed   : > { %2969 = vrot.lane.b32.xlu0 %v8287_v21, %s7700_s24 }
 0x7ee   : > { %2172 = vadd.xlane.f32.xlu1 %v8725_v18 }
 0x7f1   : > { %2973 = vrot.lane.b32.xlu0 %v8295_v4, %s7700_s24 }
 0x7f5   : > { %2977 = vrot.lane.b32.xlu0 %v8303_v17, %s7700_s24 }
 0x7f9   : > { %3342 = vrot.lane.b32.xlu0 %v8209_v5, %s7700_s24 }
 0x7fd   : > { %3346 = vrot.lane.b32.xlu0 %v8231_v47, %s7700_s24 }
 0x801   : > { %3348 = vrot.lane.b32.xlu0 %v8226_v19, %s7700_s24 }
 0x805   : > { %3350 = vrot.lane.b32.xlu0 %v8249_v55, %s7700_s24 }
 0x809   : > { %3354 = vrot.lane.b32.xlu0 %v8265_v48, %s7700_s24 }
 0x80a   : > { %v8958_v33 = vpop.xlane.xlu0 %2592 }
 0x80b   : > { %v2670_v45 = vsub.f32 %v8871_v50, %v8958_v33 }
 0x80d   : > { %v8960_v5 = vpop.xlane.xlu1 %2590  ;;  %3356 = vrot.lane.b32.xlu0 %v8260_v1, %s7700_s24  ;;  %v2688_v1 = vmul.f32 1.442695, %v2670_v45 }
 0x80e   : > { %v2669_v47 = vsub.f32 %v2528_v37, %v8960_v5  ;;  %v8965_v19 = vpop.xlane.xlu0 %2588 }
 0x80f   : > { %v2668_v55 = vsub.f32 %v2525_v0, %v8965_v19 }
 0x810   : > { %v2686_v43 = vmul.f32 1.442695, %v2669_v47 }
 0x811   : > { %v2684_v31 = vmul.f32 1.442695, %v2668_v55 }
 0x812   : > { %v8970_v9 = vpop.xlane.xlu1 %2600  ;;  %v8972_v48 = vpop.xlane.xlu0 %2594  ;;  %6971 = vpow2.f32 %v2686_v43 }
 0x813   : > { %v2671_v58 = vsub.f32 %v8874_v54, %v8972_v48  ;;  %6973 = vpow2.f32 %v2684_v31  ;;  %v2674_v11 = vsub.f32 %v8876_v32, %v8970_v9 }
 0x814   : > { %6975 = vpow2.f32 %v2688_v1 }
 0x815   : > { %v2690_v21 = vmul.f32 1.442695, %v2671_v58  ;;  %v2696_v37 = vmul.f32 1.442695, %v2674_v11 }
 0x816   : > { %v8976_v63 = vpop.xlane.xlu1 %2596  ;;  %v8978_v4 = vpop.xlane.xlu0 %2598 }
 0x817   : > { %v2672_v17 = vsub.f32 %v8880_v36, %v8976_v63  ;;  %v2673_v18 = vsub.f32 %v8884_v49, %v8978_v4  ;;  %6977 = vpow2.f32 %v2690_v21 }
 0x819   : > { %v2692_v50 = vmul.f32 1.442695, %v2672_v17  ;;  %v2694_v0 = vmul.f32 1.442695, %v2673_v18 }
 0x81a   : > { %v8986_v54 = vpop.xlane.xlu1 %2602  ;;  %v8998_v45 = vpop.xlane.xlu0 %2608 }
 0x81b   : > { %v2675_v47 = vsub.f32 %v8882_v16, %v8986_v54  ;;  %6979 = vpow2.f32 %v2692_v50  ;;  %v2678_v11 = vsub.f32 %v8888_v52, %v8998_v45 }
 0x81c   : > { %v8990_v55 = vpop.eup %6971  ;;  %6981 = vpow2.f32 %v2694_v0 }
 0x81d   : > { %v2698_v32 = vmul.f32 1.442695, %v2675_v47  ;;  %v8994_v36 = vpop.eup %6973  ;;  %6983 = vpow2.f32 %v2696_v37  ;;  %v3022_v37 = vsel %vm1334_vm0, %v8835_v13, 0  ;;  %v3025_v13 = vsel %vm1334_vm0, %v8946_v42, 0 }
 0x81e   : > { %v8992_v43 = vpop.xlane.xlu1 %2604  ;;  %v2780_v49 = vpack.c.bf16 %v8990_v55, %v8994_v36  ;;  %v9004_v58 = vpop.eup %6975 }
 0x81f   : > { %11133 = vst [vmem:[#allocation91_spill] sm:$0xff] %v8992_v43  ;;  %6985 = vpow2.f32 %v2698_v32  ;;  %v2676_v31 = vsub.f32 %v8892_v22, %v8992_v43  ;;  %v2704_v32 = vmul.f32 1.442695, %v2678_v11 }
 0x820   : > { %6502 = vmatprep.mubr.bf16.mxu0 %v2780_v49 }
 0x821   : > { %v9008_v21 = vpop.eup %6977  ;;  %v2700_v50 = vmul.f32 1.442695, %v2676_v31 }
 0x822   : > { %v9002_v16 = vpop.xlane.xlu1 %2610  ;;  %v2781_v17 = vpack.c.bf16 %v9008_v21, %v9004_v58 }
 0x823   : > { %11134 = vst [vmem:[#allocation92_spill] sm:$0xff] %v9002_v16  ;;  %v2679_v1 = vsub.f32 %v8894_v6, %v9002_v16  ;;  %6987 = vpow2.f32 %v2700_v50 }
 0x824   : > { %6503 = vmatmul.mubr.bf16.vlgmr.msra.gmra.mrb[64].mxu0 %v2781_v17 }
 0x825   : > { %v9014_v18 = vpop.eup %6979  ;;  %v2706_v0 = vmul.f32 1.442695, %v2679_v1  ;;  %6519 = vmatpush3.bf16.xpose.msra.mxu0 %v3022_v37 }
 0x826   : > { %v9016_v22 = vpop.xlane.xlu1 %2606  ;;  %v9022_v47 = vpop.eup %6981  ;;  %6639 = vmatprep.subr.msk.bf16.mxu0 %vm1334_vm0, %v8946_v42 }
 0x827   : > { %11135 = vst [vmem:[#allocation93_spill] sm:$0xff] %v9016_v22  ;;  %v2677_v6 = vsub.f32 %v8896_v53, %v9016_v22  ;;  %v9024_v52 = vpop.eup %6983  ;;  %v2782_v31 = vpack.c.bf16 %v9022_v47, %v9014_v18  ;;  %6989 = vpow2.f32 %v2706_v0 }
 0x829   : > { %v2702_v49 = vmul.f32 1.442695, %v2677_v6  ;;  %v9030_v1 = vpop.eup %6985  ;;  %6506 = vmatprep.mubr.bf16.mxu0 %v2782_v31 }
 0x82a   : > { %v2783_v53 = vpack.c.bf16 %v9030_v1, %v9024_v52  ;;  %v9041_v17 = vpop.xlane.xlu1 %2616 }
 0x82b   : > { %6991 = vpow2.f32 %v2702_v49  ;;  %11136 = vst [vmem:[#allocation94_spill] sm:$0xff] %v9041_v17  ;;  %v3031_v49 = vsel %vm1334_vm0, %v8952_v15, 0 }
 0x82c   : > { %2170 = vadd.xlane.f32.xlu0 %v8729_v41  ;;  %6993 = vpow2.f32 %v2704_v32  ;;  %6507 = vmatmul.mubr.bf16.gmra.mrb[68].mxu0 %v2783_v53  ;;  %v3028_v41 = vsel %vm1334_vm0, %v8954_v29, 0 }
 0x82d   : > { %6521 = vmatpush3.bf16.xpose.msra.mxu0 %v3025_v13  ;;  %v9039_v11 = vpop.eup %6987 }
 0x82e   : > { %6640 = vmatprep.subr.msk.bf16.mxu0 %vm1334_vm0, %v8954_v29  ;;  %v9057_v32 = vpop.xlane.xlu1 %2618  ;;  %v9062_v29 = vpop.xlane.xlu0 %2612 }
 0x82f   : > { %11137 = vst [vmem:[#allocation95_spill] sm:$0xff] %v9057_v32  ;;  %11138 = vst [vmem:[#allocation96_spill] sm:$0xff] %v9062_v29 }
 0x831   : > { %v9043_v50 = vpop.eup %6989 }
 0x832   : > { %v2990_v31 = vpop.permute.xlu1 %2989  ;;  %v2992_v13 = vpop.permute.xlu0 %2991 }
 0x833   : > { %v3034_v53 = vsel %vm1334_vm0, %v2990_v31, 0 }
 0x835   : > { %v9045_v0 = vpop.eup %6991  ;;  %6523 = vmatpush3.bf16.xpose.msra.mxu0 %v3028_v41  ;;  %v3037_v41 = vsel %vm1334_vm0, %v2992_v13, 0 }
 0x836   : > { %v9047_v37 = vpop.eup %6993  ;;  %v2784_v42 = vpack.c.bf16 %v9045_v0, %v9039_v11  ;;  %6641 = vmatprep.subr.msk.bf16.mxu0 %vm1334_vm0, %v8952_v15  ;;  %v2683_v15 = vsub.f32 %v8905_v20, %v9057_v32  ;;  %v2968_v20 = vpop.permute.xlu1 %2967 }
 0x837   : > { %v2785_v6 = vpack.c.bf16 %v9043_v50, %v9047_v37 }
 0x838   : > { %6510 = vmatprep.mubr.bf16.mxu0 %v2784_v42  ;;  %v2680_v42 = vsub.f32 %v8902_v10, %v9062_v29 }
 0x839   : > { %6511 = vmatmul.mubr.bf16.gmra.mrb[72].mxu0 %v2785_v6  ;;  %v2682_v6 = vsub.f32 %v8899_v57, %v9041_v17 }
 0x83b   : > { %v2712_v22 = vmul.f32 1.442695, %v2682_v6 }
 0x83d   : > { %6525 = vmatpush3.bf16.xpose.msra.mxu0 %v3031_v49  ;;  %v2708_v49 = vmul.f32 1.442695, %v2680_v42 }
 0x83e   : > { %6642 = vmatprep.subr.msk.bf16.mxu0 %vm1334_vm0, %v2990_v31  ;;  %v2714_v31 = vmul.f32 1.442695, %v2683_v15 }
 0x83f   : > { %6995 = vpow2.f32 %v2708_v49 }
 0x840   : > { %6997 = vpow2.f32 %v2714_v31 }
 0x845   : > { %6527 = vmatpush3.bf16.xpose.msra.mxu0 %v3034_v53 }
 0x846   : > { %6643 = vmatprep.subr.msk.bf16.mxu0 %vm1334_vm0, %v2992_v13 }
 0x849   : > { %v9081_v15 = vpop.eup %6995 }
 0x84a   : > { %v9083_v6 = vpop.eup %6997 }
 0x84d   : > { %6529 = vmatpush3.bf16.xpose.msra.mxu0 %v3037_v41  ;;  %v2972_v41 = vpop.permute.xlu1 %2971 }
 0x858   : > { %v9073_v16 = vpop.xlane.xlu0 %2614 }
 0x859   : > { %11139 = vst [vmem:[#allocation97_spill] sm:$0xff] %v9073_v16  ;;  %v2681_v53 = vsub.f32 %v8907_v59, %v9073_v16 }
 0x85b   : > { %v2710_v43 = vmul.f32 1.442695, %v2681_v53 }
 0x85c   : > { %v2994_v13 = vpop.permute.xlu0 %2993 }
 0x85d   : > { %6644 = vmatprep.subr.msk.bf16.mxu0 %vm1334_vm0, %v2994_v13  ;;  %v3040_v10 = vsel %vm1334_vm0, %v2994_v13, 0  ;;  %6999 = vpow2.f32 %v2710_v43 }
 0x85e   : > { %6531 = vmatpush3.bf16.xpose.msra.mxu0 %v3040_v10  ;;  %7001 = vpow2.f32 %v2712_v22  ;;  %v2976_v22 = vpop.permute.xlu1 %2975 }
 0x860   : > { %v2996_v57 = vpop.permute.xlu0 %2995 }
 0x861   : > { %6645 = vmatprep.subr.msk.bf16.mxu0 %vm1334_vm0, %v2996_v57  ;;  %v3043_v59 = vsel %vm1334_vm0, %v2996_v57, 0 }
 0x862   : > { %v2980_v57 = vpop.permute.xlu1 %2979 }
 0x864   : > { %v2966_v42 = vpop.permute.xlu0 %2965 }
 0x866   : > { %6533 = vmatpush3.bf16.xpose.msra.mxu0 %v3043_v59  ;;  %v3345_v16 = vpop.permute.xlu1 %3344 }
 0x867   : > { %v9085_v49 = vpop.eup %6999 }
 0x868   : > { %v2970_v31 = vpop.permute.xlu0 %2969  ;;  %v9087_v53 = vpop.eup %7001  ;;  %v2786_v43 = vpack.c.bf16 %v9085_v49, %v9081_v15 }
 0x869   : > { %v2787_v13 = vpack.c.bf16 %v9083_v6, %v9087_v53 }
 0x86a   : > { %6514 = vmatprep.mubr.bf16.mxu0 %v2786_v43 }
 0x86b   : > { %6515 = vmatmul.mubr.bf16.gmra.mrb[76].mxu0 %v2787_v13 }
 0x86c   : > { %v2974_v10 = vpop.permute.xlu0 %2973  ;;  %6534 = vmatprep.mubr.msk.bf16.mxu0 %vm1334_vm0, %v2966_v42 }
 0x870   : > { %v2978_v59 = vpop.permute.xlu0 %2977 }
 0x873   : > { %6535 = vmatmul.mubr.msk.bf16.vlgmr.msra.gmra.mrb[80].mxu0 %vm1334_vm0, %v2968_v20  ;;  %v3353_v20 = vpop.permute.xlu1 %3352 }
 0x874   : > { %v3343_v32 = vpop.permute.xlu0 %3342  ;;  %6538 = vmatprep.mubr.msk.bf16.mxu0 %vm1334_vm0, %v2970_v31  ;;  %v2058_v31 = vsub.f32 -inf, %v8699_v40 }
 0x875   : > { %6550 = vmatprep.subr.bf16.mxu1 %v3343_v32 }
 0x876   : > { %6551 = vmatpush3.bf16.msra.mxu1 %v3343_v32 }
 0x877   : > { %6552 = vmatprep.subr.bf16.mxu1 %v3345_v16 }
 0x878   : > { %v3347_v17 = vpop.permute.xlu0 %3346 }
 0x87a   : > { %6553 = vmatpush3.bf16.msra.mxu1 %v3345_v16 }
 0x87b   : > { %6554 = vmatprep.subr.bf16.mxu1 %v3347_v17  ;;  %6539 = vmatmul.mubr.msk.bf16.gmra.mrb[84].mxu0 %vm1334_vm0, %v2972_v41 }
 0x87c   : > { %v3349_v43 = vpop.permute.xlu0 %3348  ;;  %6542 = vmatprep.mubr.msk.bf16.mxu0 %vm1334_vm0, %v2974_v10  ;;  %v2173_v10 = vpop.xlane.xlu1 %2172 }
 0x87e   : > { %6555 = vmatpush3.bf16.msra.mxu1 %v3347_v17  ;;  %v2059_v17 = vsub.f32 -inf, %v8694_v46 }
 0x87f   : > { %6556 = vmatprep.subr.bf16.mxu1 %v3349_v43 }
 0x880   : > { %v3351_v42 = vpop.permute.xlu0 %3350  ;;  %v2076_v41 = vmul.f32 1.442695, %v2059_v17 }
 0x882   : > { %6557 = vmatpush3.bf16.msra.mxu1 %v3349_v43  ;;  %7003 = vpow2.f32 %v2076_v41 }
 0x883   : > { %6558 = vmatprep.subr.bf16.mxu1 %v3351_v42  ;;  %6543 = vmatmul.mubr.msk.bf16.gmra.mrb[88].mxu0 %vm1334_vm0, %v2976_v22  ;;  %v2074_v22 = vmul.f32 1.442695, %v2058_v31 }
 0x884   : > { %6546 = vmatprep.mubr.msk.bf16.mxu0 %vm1334_vm0, %v2978_v59  ;;  %v3355_v32 = vpop.permute.xlu0 %3354 }
 0x885   : > { %7005 = vpow2.f32 %v2074_v22 }
 0x886   : > { %6559 = vmatpush3.bf16.msra.mxu1 %v3351_v42 }
 0x887   : > { %6560 = vmatprep.subr.bf16.mxu1 %v3353_v20 }
 0x888   : > { %v3357_v16 = vpop.permute.xlu0 %3356 }
 0x88a   : > { %6561 = vmatpush3.bf16.msra.mxu1 %v3353_v20 }
 0x88b   : > { %6562 = vmatprep.subr.bf16.mxu1 %v3355_v32  ;;  %6547 = vmatmul.mubr.msk.bf16.gmra.mrb[92].mxu0 %vm1334_vm0, %v2980_v57 }
 0x88c   : > { %v7004_v13 = vpop.eup %7003 }
 0x88d   : > { %v2155_v59 = vmul.f32 0.0, %v7004_v13 }
 0x88e   : > { %6563 = vmatpush3.bf16.msra.mxu1 %v3355_v32 }
 0x88f   : > { %6564 = vmatprep.subr.bf16.mxu1 %v3357_v16  ;;  %v7006_v43 = vpop.eup %7005  ;;  %v2203_v42 = vadd.f32 %v2173_v10, %v2155_v59  ;;  %v2356_v46 = vadd.f32 %v8845_v2, %v2155_v59 }
 0x890   : > { %v2154_v20 = vmul.f32 0.0, %v7006_v43 }
 0x891   : > { %7007 = vrcp.f32 %v2203_v42 }
 0x892   : > { %6565 = vmatpush3.bf16.msra.mxu1 %v3357_v16  ;;  %v2355_v16 = vadd.f32 %v8841_v23, %v2154_v20 }
 0x89b   : > { %v7008_v32 = vpop.eup %7007 }
 0x89c   : > { %v9107_v41 = vmul.f32 %v7008_v32, %v2356_v46 }
 0x8b9   : > { %v2171_v29 = vpop.xlane.xlu0 %2170 }
 0x8ba   : > { %v2202_v57 = vadd.f32 %v2171_v29, %v2154_v20 }
 0x8bc   : > { %7009 = vrcp.f32 %v2202_v57 }
 0x8c6   : > { %v7010_v17 = vpop.eup %7009 }
 0x8c7   : > { %v9105_v40 = vmul.f32 %v7010_v17, %v2355_v16 }
 0x8f7   : > { %v9111_v22 = vpop.f32.mrb[64].mxu0 }
 0x8f8   : > { %v9113_v13 = vpop.f32.mrb[65].mxu0 }
 0x8f9   : > { %v9115_v10 = vpop.f32.mrb[66].mxu0 }
 0x8fa   : > { %v9117_v29 = vpop.f32.mrb[67].mxu0 }
 0x8ff   : > { %v9119_v43 = vpop.f32.mrb[68].mxu0 }
 0x900   : > { %11140 = vst [vmem:[#allocation98_spill] sm:$0xff] %v9119_v43  ;;  %v9121_v23 = vpop.f32.mrb[69].mxu0 }
 0x901   : > { %v9123_v2 = vpop.f32.mrb[70].mxu0 }
 0x902   : > { %11141 = vst [vmem:[#allocation99_spill] sm:$0xff] %v9123_v2  ;;  %v9125_v59 = vpop.f32.mrb[71].mxu0 }
 0x90c   : > { %v9127_v42 = vpop.f32.mrb[72].mxu0 }
 0x90d   : > { %11142 = vst [vmem:[#allocation100_spill] sm:$0xff] %v9127_v42  ;;  %v9129_v20 = vpop.f32.mrb[73].mxu0 }
 0x90e   : > { %11143 = vst [vmem:[#allocation101_spill] sm:$0xff] %v9129_v20  ;;  %v9131_v57 = vpop.f32.mrb[74].mxu0 }
 0x90f   : > { %11144 = vst [vmem:[#allocation102_spill] sm:$0xff] %v9131_v57  ;;  %v9133_v32 = vpop.f32.mrb[75].mxu0 }
 0x910   : > { %11145 = vst [vmem:[#allocation103_spill] sm:$0xff] %v9133_v32 }
 0x93e   : > { %v9135_v16 = vpop.f32.mrb[76].mxu0 }
 0x93f   : > { %11146 = vst [vmem:[#allocation104_spill] sm:$0xff] %v9135_v16  ;;  %v9137_v46 = vpop.f32.mrb[77].mxu0 }
 0x940   : > { %11147 = vst [vmem:[#allocation105_spill] sm:$0xff] %v9137_v46  ;;  %v9139_v17 = vpop.f32.mrb[78].mxu0 }
 0x941   : > { %11148 = vst [vmem:[#allocation106_spill] sm:$0xff] %v9139_v17  ;;  %v9141_v31 = vpop.f32.mrb[79].mxu0 }
 0x942   : > { %11149 = vst [vmem:[#allocation107_spill] sm:$0xff] %v9141_v31 }
 0x946   : > { %v9143_v43 = vpop.f32.mrb[80].mxu0 }
 0x947   : > { %3146 = vmax.xlane.f32.xlu1 %v9143_v43  ;;  %v9146_v2 = vpop.f32.mrb[81].mxu0 }
 0x948   : > { %3142 = vmax.xlane.f32.xlu0 %v9146_v2  ;;  %v9149_v20 = vpop.f32.mrb[82].mxu0 }
 0x949   : > { %v9151_v57 = vpop.f32.mrb[83].mxu0 }
 0x94b   : > { %2176 = vadd.xlane.f32.xlu1 %v8743_v7 }
 0x94c   : > { %2174 = vadd.xlane.f32.xlu0 %v8739_v8 }
 0x94e   : > { %v9155_v16 = vpop.f32.mrb[84].mxu0 }
 0x94f   : > { %2734 = vadd.xlane.f32.xlu1 %v8990_v55  ;;  %v9158_v17 = vpop.f32.mrb[85].mxu0 }
 0x950   : > { %2732 = vadd.xlane.f32.xlu0 %v8994_v36  ;;  %v9161_v31 = vpop.f32.mrb[86].mxu0 }
 0x951   : > { %v9163_v46 = vpop.f32.mrb[87].mxu0 }
 0x953   : > { %2738 = vadd.xlane.f32.xlu1 %v9008_v21 }
 0x954   : > { %2736 = vadd.xlane.f32.xlu0 %v9004_v58 }
 0x956   : > { %v9167_v32 = vpop.f32.mrb[88].mxu0 }
 0x957   : > { %3148 = vmax.xlane.f32.xlu1 %v9149_v20  ;;  %v9170_v8 = vpop.f32.mrb[89].mxu0 }
 0x958   : > { %3150 = vmax.xlane.f32.xlu0 %v9158_v17  ;;  %v9173_v7 = vpop.f32.mrb[90].mxu0 }
 0x959   : > { %v9175_v55 = vpop.f32.mrb[91].mxu0 }
 0x95b   : > { %3144 = vmax.xlane.f32.xlu1 %v9151_v57 }
 0x95c   : > { %2178 = vadd.xlane.f32.xlu0 %v8749_v51  ;;  %v11151_v51 = vld [vmem:[#allocation39_spill] sm:$0xff] }
 0x95e   : > { %v9179_v36 = vpop.f32.mrb[92].mxu0 }
 0x95f   : > { %3154 = vmax.xlane.f32.xlu1 %v9155_v16  ;;  %v9182_v58 = vpop.f32.mrb[93].mxu0 }
 0x960   : > { %2182 = vadd.xlane.f32.xlu0 %v8759_v34  ;;  %v9185_v21 = vpop.f32.mrb[94].mxu0  ;;  %v11152_v34 = vld [vmem:[#allocation37_spill] sm:$0xff] }
 0x961   : > { %v9187_v42 = vpop.f32.mrb[95].mxu0 }
 0x963   : > { %2180 = vadd.xlane.f32.xlu1 %v8757_v25  ;;  %v11150_v25 = vld [vmem:[#allocation36_spill] sm:$0xff] }
 0x964   : > { %3162 = vmax.xlane.f32.xlu0 %v9167_v32 }
 0x967   : > { %3156 = vmax.xlane.f32.xlu1 %v9161_v31 }
 0x968   : > { %3158 = vmax.xlane.f32.xlu0 %v9170_v8 }
 0x96b   : > { %3152 = vmax.xlane.f32.xlu1 %v9163_v46 }
 0x96c   : > { %3164 = vmax.xlane.f32.xlu0 %v9173_v7 }
 0x96f   : > { %2184 = vadd.xlane.f32.xlu1 %v8765_v30 }
 0x970   : > { %2740 = vadd.xlane.f32.xlu0 %v9014_v18  ;;  %v11156_v18 = vld [vmem:[#allocation66_spill] sm:$0xff] }
 0x973   : > { %2742 = vadd.xlane.f32.xlu1 %v9022_v47 }
 0x974   : > { %3170 = vmax.xlane.f32.xlu0 %v9179_v36 }
 0x977   : > { %3160 = vmax.xlane.f32.xlu1 %v9175_v55 }
 0x978   : > { %3166 = vmax.xlane.f32.xlu0 %v9182_v58 }
 0x97b   : > { %2746 = vadd.xlane.f32.xlu1 %v9030_v1 }
 0x97c   : > { %2744 = vadd.xlane.f32.xlu0 %v9024_v52 }
 0x97f   : > { %2188 = vadd.xlane.f32.xlu1 %v8779_v35  ;;  %v2623_v35 = vsub.f32 -inf, %v8972_v48 }
 0x980   : > { %2186 = vadd.xlane.f32.xlu0 %v8773_v12 }
 0x983   : > { %2192 = vadd.xlane.f32.xlu1 %v8777_v60 }
 0x984   : > { %2190 = vadd.xlane.f32.xlu0 %v8781_v56  ;;  %v2622_v56 = vsub.f32 -inf, %v8958_v33 }
 0x987   : > { %3172 = vmax.xlane.f32.xlu1 %v9185_v21 }
 0x988   : > { %2748 = vadd.xlane.f32.xlu0 %v9039_v11 }
 0x98b   : > { %3168 = vmax.xlane.f32.xlu1 %v9187_v42 }
 0x98c   : > { %2752 = vadd.xlane.f32.xlu0 %v9047_v37 }
 0x98f   : > { %2750 = vadd.xlane.f32.xlu1 %v9045_v0 }
 0x990   : > { %2194 = vadd.xlane.f32.xlu0 %v8815_v14 }
 0x993   : > { %2754 = vadd.xlane.f32.xlu1 %v9043_v50 }
 0x994   : > { %2198 = vadd.xlane.f32.xlu0 %v8821_v24 }
 0x997   : > { %2196 = vadd.xlane.f32.xlu1 %v8819_v27  ;;  %v2640_v27 = vmul.f32 1.442695, %v2622_v56  ;;  %v11160_v56 = vld [vmem:[#allocation68_spill] sm:$0xff] }
 0x998   : > { %2756 = vadd.xlane.f32.xlu0 %v9081_v15 }
 0x99b   : > { %2200 = vadd.xlane.f32.xlu1 %v8817_v44  ;;  %v2642_v44 = vmul.f32 1.442695, %v2623_v35 }
 0x99c   : > { %2760 = vadd.xlane.f32.xlu0 %v9087_v53 }
 0x99f   : > { %2758 = vadd.xlane.f32.xlu1 %v9085_v49 }
 0x9a0   : > { %1624 = vadd.xlane.f32.xlu0 %v8437_v62  ;;  %v11153_v62 = vld [vmem:[#allocation65_spill] sm:$0xff] }
 0x9a1   : > { %v2061_v30 = vsub.f32 -inf, %v11153_v62 }
 0x9a3   : > { %2762 = vadd.xlane.f32.xlu1 %v9083_v6  ;;  %v11157_v6 = vld [vmem:[#allocation67_spill] sm:$0xff] }
 0x9a4   : > { %1628 = vadd.xlane.f32.xlu0 %v8441_v39  ;;  %v11155_v39 = vld [vmem:[#allocation63_spill] sm:$0xff]  ;;  %v2063_v49 = vsub.f32 -inf, %v11157_v6 }
 0x9a7   : > { %1626 = vadd.xlane.f32.xlu1 %v8439_v3  ;;  %v11154_v3 = vpack.c.bf16 %v9107_v41, %v9105_v40 }
 0x9a8   : > { %1632 = vadd.xlane.f32.xlu0 %v8495_v38  ;;  %v2060_v38 = vsub.f32 -inf, %v11155_v39 }
 0x9aa   : > { %v2078_v12 = vmul.f32 1.442695, %v2060_v38  ;;  %v2084_v38 = vmul.f32 1.442695, %v2063_v49 }
 0x9ab   : > { %1630 = vadd.xlane.f32.xlu1 %v8435_v61  ;;  %v2080_v61 = vmul.f32 1.442695, %v2061_v30 }
 0x9ac   : > { %1636 = vadd.xlane.f32.xlu0 %v8507_v28  ;;  %v2621_v28 = vsub.f32 -inf, %v8960_v5  ;;  %v2062_v5 = vsub.f32 -inf, %v11156_v18  ;;  %v11161_v18 = vld [vmem:[#allocation23_spill] sm:$0xff] }
 0x9ad   : > { %7011 = vpow2.f32 %v2080_v61 }
 0x9ae   : > { %v2638_v60 = vmul.f32 1.442695, %v2621_v28  ;;  %7013 = vpow2.f32 %v2078_v12  ;;  %v2082_v11 = vmul.f32 1.442695, %v2062_v5  ;;  %v11159_v12 = vld [vmem:[#allocation64_spill] sm:$0xff]  ;;  %v1515_v5 = vsub.f32 -inf, %v11161_v18 }
 0x9af   : > { %1634 = vadd.xlane.f32.xlu1 %v8501_v26  ;;  %v2620_v26 = vsub.f32 -inf, %v8965_v19 }
 0x9b0   : > { %7015 = vpow2.f32 %v2638_v60 }
 0x9b1   : > { %v2636_v14 = vmul.f32 1.442695, %v2620_v26  ;;  %v2064_v26 = vsub.f32 -inf, %v11159_v12 }
 0x9b3   : > { %1638 = vadd.xlane.f32.xlu1 %v11150_v25  ;;  %7017 = vpow2.f32 %v2636_v14  ;;  %v2065_v14 = vsub.f32 -inf, %v11160_v56 }
 0x9b4   : > { %7019 = vpow2.f32 %v2642_v44 }
 0x9b5   : > { %7021 = vpow2.f32 %v2640_v27 }
 0x9b6   : > { %7023 = vpow2.f32 %v2082_v11  ;;  %v2086_v11 = vmul.f32 1.442695, %v2064_v26 }
 0x9b7   : > { %1640 = vadd.xlane.f32.xlu1 %v11151_v51  ;;  %v7012_v24 = vpop.eup %7011 }
 0x9b8   : > { %v7014_v19 = vpop.eup %7013  ;;  %v2157_v1 = vmul.f32 0.0, %v7012_v24 }
 0x9b9   : > { %v2156_v50 = vmul.f32 0.0, %v7014_v19 }
 0x9ba   : > { %v7016_v48 = vpop.eup %7015 }
 0x9bb   : > { %1642 = vadd.xlane.f32.xlu1 %v11152_v34  ;;  %v2717_v40 = vmul.f32 0.0, %v7016_v48  ;;  %v2624_v48 = vsub.f32 -inf, %v8976_v63 }
 0x9bd   : > { %v7018_v0 = vpop.eup %7017 }
 0x9be   : > { %v7020_v41 = vpop.eup %7019  ;;  %v2716_v25 = vmul.f32 0.0, %v7018_v0 }
 0x9bf   : > { %v7022_v34 = vpop.eup %7021  ;;  %v2719_v28 = vmul.f32 0.0, %v7020_v41  ;;  %v11163_v41 = vld [vmem:[#allocation78_spill] sm:$0xff] }
 0x9c0   : > { %v2718_v60 = vmul.f32 0.0, %v7022_v34  ;;  %v7024_v49 = vpop.eup %7023  ;;  %v11164_v34 = vld [vmem:[#allocation24_spill] sm:$0xff] }
 0x9c2   : > { %3527 = vrot.lane.b32.xlu0 %v11154_v3, %s7700_s24  ;;  %v11158_v3 = vld [vmem:[#allocation22_spill] sm:$0xff] }
 0x9c3   : > { %v1514_v39 = vsub.f32 -inf, %v11158_v3 }
 0x9c5   : > { %v1532_v24 = vmul.f32 1.442695, %v1514_v39 }
 0x9d4   : > { %v9242_v47 = vpop.xlane.xlu1 %3146 }
 0x9d5   : > { %v9244_v52 = vpop.xlane.xlu0 %3142  ;;  %v3224_v39 = vsub.f32 %v9143_v43, %v9242_v47  ;;  %v2625_v43 = vsub.f32 -inf, %v8978_v4  ;;  %v2911_v4 = vadd.f32 %v9111_v22, %v2718_v60 }
 0x9d8   : > { %v2177_v33 = vpop.xlane.xlu1 %2176 }
 0x9d9   : > { %v2205_v37 = vadd.f32 %v2177_v33, %v2157_v1  ;;  %v2175_v15 = vpop.xlane.xlu0 %2174  ;;  %v3222_v33 = vsub.f32 %v9146_v2, %v9244_v52  ;;  %v2644_v2 = vmul.f32 1.442695, %v2624_v48  ;;  %v11166_v48 = vld [vmem:[#allocation70_spill] sm:$0xff] }
 0x9da   : > { %v2204_v53 = vadd.f32 %v2175_v15, %v2156_v50 }
 0x9db   : > { %7025 = vrcp.f32 %v2205_v37  ;;  %v2088_v37 = vmul.f32 1.442695, %v2065_v14 }
 0x9dc   : > { %v2735_v51 = vpop.xlane.xlu1 %2734  ;;  %7027 = vrcp.f32 %v2204_v53  ;;  %v1534_v53 = vmul.f32 1.442695, %v1515_v5 }
 0x9dd   : > { %v2765_v62 = vadd.f32 %v2735_v51, %v2717_v40  ;;  %v2733_v30 = vpop.xlane.xlu0 %2732  ;;  %v2358_v51 = vadd.f32 %v11163_v41, %v2157_v1 }
 0x9de   : > { %v2764_v61 = vadd.f32 %v2733_v30, %v2716_v25  ;;  %v11165_v30 = vld [vmem:[#allocation77_spill] sm:$0xff] }
 0x9df   : > { %7029 = vrcp.f32 %v2765_v62  ;;  %v1512_v62 = vsub.f32 -inf, %v11164_v34  ;;  %v2357_v3 = vadd.f32 %v11165_v30, %v2156_v50 }
 0x9e0   : > { %7031 = vrcp.f32 %v2764_v61  ;;  %v2739_v35 = vpop.xlane.xlu1 %2738  ;;  %v3238_v61 = vmul.f32 1.442695, %v3222_v33  ;;  %v2912_v33 = vadd.f32 %v9115_v10, %v2719_v28 }
 0x9e1   : > { %v2767_v44 = vadd.f32 %v2739_v35, %v2719_v28  ;;  %v2737_v27 = vpop.xlane.xlu0 %2736  ;;  %7033 = vpow2.f32 %v2084_v38  ;;  %v11168_v28 = vld [vmem:[#allocation71_spill] sm:$0xff] }
 0x9e2   : > { %v2766_v19 = vadd.f32 %v2737_v27, %v2718_v60  ;;  %v9270_v27 = vmul.f32 0.0, %v7024_v49  ;;  %v11167_v49 = vld [vmem:[#allocation69_spill] sm:$0xff]  ;;  %v2069_v30 = vsub.f32 -inf, %v11168_v28  ;;  %v1528_v60 = vmul.f32 1.442695, %v1512_v62 }
 0x9e3   : > { %7035 = vrcp.f32 %v2767_v44  ;;  %v2066_v41 = vsub.f32 -inf, %v11167_v49 }
 0x9e4   : > { %7037 = vrcp.f32 %v2766_v19  ;;  %v9254_v0 = vpop.xlane.xlu1 %3148 }
 0x9e5   : > { %v3225_v15 = vsub.f32 %v9149_v20, %v9254_v0  ;;  %v9258_v6 = vpop.xlane.xlu0 %3150  ;;  %7039 = vpow2.f32 %v1532_v24  ;;  %v7026_v63 = vpop.eup %7025  ;;  %v2910_v20 = vadd.f32 %v9117_v29, %v2717_v40  ;;  %v2909_v24 = vadd.f32 %v9113_v13, %v2716_v25 }
 0x9e6   : > { %11162 = vst [vmem:[#allocation36_spill] sm:$0xff] %v9258_v6  ;;  %v7028_v38 = vpop.eup %7027  ;;  %7041 = vpow2.f32 %v2086_v11  ;;  %v2390_v26 = vmul.f32 %v7026_v63, %v2358_v51  ;;  %v3242_v40 = vmul.f32 1.442695, %v3224_v39  ;;  %v2068_v11 = vsub.f32 -inf, %v11166_v48 }
 0x9e7   : > { %7043 = vpow2.f32 %v2088_v37  ;;  %v3244_v1 = vmul.f32 1.442695, %v3225_v15  ;;  %v2389_v50 = vmul.f32 %v7028_v38, %v2357_v3  ;;  %v2646_v63 = vmul.f32 1.442695, %v2625_v43  ;;  %v11169_v38 = vld [vmem:[#allocation72_spill] sm:$0xff] }
 0x9e8   : > { %v9266_v12 = vpop.xlane.xlu1 %3144  ;;  %7045 = vpow2.f32 %v2644_v2  ;;  %v2094_v39 = vmul.f32 1.442695, %v2068_v11  ;;  %v3226_v43 = vsub.f32 %v9158_v17, %v9258_v6  ;;  %v11201_v6 = vld [vmem:[#allocation95_spill] sm:$0xff] }
 0x9e9   : > { %v7030_v35 = vpop.eup %7029  ;;  %v3223_v56 = vsub.f32 %v9151_v57, %v9266_v12  ;;  %v2179_v14 = vpop.xlane.xlu0 %2178  ;;  %v2404_v5 = vpack.c.bf16 %v2390_v26, %v2389_v50  ;;  %7047 = vpow2.f32 %v3238_v61  ;;  %v2626_v26 = vsub.f32 -inf, %v8970_v9 }
 0x9ea   : > { %v7032_v44 = vpop.eup %7031  ;;  %v2942_v29 = vmul.f32 %v7030_v35, %v2910_v20  ;;  %7049 = vpow2.f32 %v3244_v1  ;;  %v2206_v13 = vadd.f32 %v2179_v14, %v9270_v27  ;;  %v2067_v20 = vsub.f32 -inf, %v11169_v38 }
 0x9eb   : > { %v3240_v18 = vmul.f32 1.442695, %v3223_v56  ;;  %v7034_v19 = vpop.eup %7033  ;;  %v2941_v37 = vmul.f32 %v7032_v44, %v2909_v24  ;;  %3529 = vrot.lane.b32.xlu1 %v2404_v5, %s7700_s24  ;;  %v2090_v50 = vmul.f32 1.442695, %v2066_v41  ;;  %v2096_v44 = vmul.f32 1.442695, %v2069_v30 }
 0x9ec   : > { %v9276_v57 = vpop.xlane.xlu1 %3154  ;;  %v9285_v3 = vmul.f32 0.0, %v7034_v19  ;;  %v2092_v9 = vmul.f32 1.442695, %v2067_v20 }
 0x9ed   : > { %v7036_v15 = vpop.eup %7035  ;;  %v2183_v25 = vpop.xlane.xlu0 %2182  ;;  %7051 = vpow2.f32 %v3240_v18  ;;  %v2957_v34 = vpack.c.bf16 %v2942_v29, %v2941_v37  ;;  %v3246_v37 = vmul.f32 1.442695, %v3226_v43  ;;  %v11178_v43 = vld [vmem:[#allocation74_spill] sm:$0xff] }
 0x9ee   : > { %v7038_v51 = vpop.eup %7037  ;;  %v9282_v10 = vmul.f32 %v7036_v15, %v2912_v33  ;;  %7053 = vpow2.f32 %v3242_v40  ;;  %v2648_v40 = vmul.f32 1.442695, %v2626_v26  ;;  %v3228_v15 = vsub.f32 %v9155_v16, %v9276_v57  ;;  %v11176_v26 = vld [vmem:[#allocation80_spill] sm:$0xff] }
 0x9ef   : > { %v9287_v2 = vmul.f32 %v7038_v51, %v2911_v4  ;;  %v9289_v22 = vpop.eup %7039  ;;  %7055 = vpow2.f32 %v1534_v53  ;;  %3551 = vrot.lane.b32.xlu0 %v2957_v34, %s7699_s20  ;;  %v2627_v53 = vsub.f32 -inf, %v8986_v54  ;;  %v11172_v54 = vld [vmem:[#allocation75_spill] sm:$0xff] }
 0x9f0   : > { %v2181_v61 = vpop.xlane.xlu1 %2180  ;;  %7057 = vrcp.f32 %v2206_v13  ;;  %v7042_v14 = vpop.eup %7041  ;;  %v2070_v48 = vsub.f32 -inf, %v11172_v54  ;;  %v3250_v20 = vmul.f32 1.442695, %v3228_v15 }
 0x9f1   : > { %v2207_v35 = vadd.f32 %v2181_v61, %v9285_v3  ;;  %v9295_v1 = vpop.xlane.xlu0 %3162  ;;  %7059 = vpow2.f32 %v2646_v63  ;;  %v7044_v62 = vpop.eup %7043  ;;  %v9311_v11 = vmul.f32 0.0, %v7042_v14  ;;  %v2650_v17 = vmul.f32 1.442695, %v2627_v53  ;;  %v11177_v14 = vld [vmem:[#allocation82_spill] sm:$0xff] }
 0x9f2   : > { %11170 = vst [vmem:[#allocation39_spill] sm:$0xff] %v9295_v1  ;;  %v7046_v29 = vpop.eup %7045  ;;  %v2098_v28 = vmul.f32 1.442695, %v2070_v48  ;;  %v9332_v30 = vmul.f32 0.0, %v7044_v62 }
 0x9f3   : > { %7061 = vrcp.f32 %v2207_v35  ;;  %v9308_v19 = vpop.eup %7047  ;;  %v2359_v35 = vadd.f32 %v11176_v26, %v9270_v27  ;;  %v9341_v53 = vmul.f32 0.0, %v7046_v29 }
 0x9f4   : > { %7063 = vpow2.f32 %v1528_v60  ;;  %v9302_v24 = vpop.xlane.xlu1 %3156  ;;  %v9313_v33 = vpop.eup %7049 }
 0x9f5   : > { %7065 = vpow2.f32 %v2094_v39  ;;  %v3229_v18 = vsub.f32 %v9161_v31, %v9302_v24  ;;  %v9306_v5 = vpop.xlane.xlu0 %3158  ;;  %v2208_v31 = vadd.f32 %v2183_v25, %v9311_v11  ;;  %v11175_v39 = vld [vmem:[#allocation73_spill] sm:$0xff] }
 0x9f6   : > { %11171 = vst [vmem:[#allocation37_spill] sm:$0xff] %v9306_v5  ;;  %7067 = vpow2.f32 %v2090_v50  ;;  %v2072_v38 = vsub.f32 -inf, %v11175_v39  ;;  %v2360_v50 = vadd.f32 %v11177_v14, %v9285_v3 }
 0x9f7   : > { %7069 = vpow2.f32 %v2096_v44  ;;  %v9317_v49 = vpop.eup %7051  ;;  %v3252_v13 = vmul.f32 1.442695, %v3229_v18 }
 0x9f8   : > { %7071 = vpow2.f32 %v2092_v9  ;;  %v9320_v41 = vpop.xlane.xlu1 %3152  ;;  %v9322_v4 = vpop.eup %7053  ;;  %v3334_v34 = vpack.c.bf16 %v9317_v49, %v9308_v19  ;;  %v2073_v9 = vsub.f32 -inf, %v11178_v43 }
 0x9f9   : > { %11173 = vst [vmem:[#allocation65_spill] sm:$0xff] %v9320_v41  ;;  %7073 = vpow2.f32 %v2648_v40  ;;  %v3227_v51 = vsub.f32 %v9163_v46, %v9320_v41  ;;  %v9326_v63 = vpop.xlane.xlu0 %3164  ;;  %v9330_v16 = vpop.eup %7055  ;;  %v3335_v25 = vpack.c.bf16 %v9313_v33, %v9322_v4  ;;  %v2630_v40 = vsub.f32 -inf, %v8998_v45 }
 0x9fa   : > { %11174 = vst [vmem:[#allocation63_spill] sm:$0xff] %v9326_v63  ;;  %7075 = vpow2.f32 %v2650_v17  ;;  %v7058_v60 = vpop.eup %7057  ;;  %6566 = vmatprep.mubr.bf16.mxu1 %v3334_v34  ;;  %v2104_v39 = vmul.f32 1.442695, %v2073_v9  ;;  %v2635_v41 = vsub.f32 -inf, %v11201_v6 }
 0x9fb   : > { %7077 = vpow2.f32 %v3246_v37  ;;  %v3248_v46 = vmul.f32 1.442695, %v3227_v51  ;;  %v7060_v61 = vpop.eup %7059  ;;  %6567 = vmatmul.mubr.bf16.vlgmr.msra.gmra.mrb[64].mxu1 %v3335_v25  ;;  %v9349_v3 = vmul.f32 %v7058_v60, %v2359_v35  ;;  %v11179_v37 = vld [vmem:[#allocation91_spill] sm:$0xff]  ;;  %v3230_v51 = vsub.f32 %v9170_v8, %v9306_v5 }
 0x9fc   : > { %7079 = vrcp.f32 %v2208_v31  ;;  %v2185_v62 = vpop.xlane.xlu1 %2184  ;;  %v2628_v15 = vsub.f32 -inf, %v11179_v37  ;;  %v9356_v31 = vmul.f32 0.0, %v7060_v61  ;;  %v3232_v35 = vsub.f32 %v9167_v32, %v9295_v1 }
 0x9fd   : > { %v7062_v44 = vpop.eup %7061  ;;  %7081 = vpow2.f32 %v3252_v13  ;;  %v2209_v18 = vadd.f32 %v2185_v62, %v9332_v30  ;;  %v2741_v54 = vpop.xlane.xlu0 %2740  ;;  %v2102_v13 = vmul.f32 1.442695, %v2072_v38  ;;  %v2656_v38 = vmul.f32 1.442695, %v2630_v40 }
 0x9fe   : > { %v9346_v48 = vpop.eup %7063  ;;  %7083 = vpow2.f32 %v3248_v46  ;;  %v2768_v27 = vadd.f32 %v2741_v54, %v9341_v53  ;;  %v9351_v29 = vmul.f32 %v7062_v44, %v2360_v50  ;;  %v3233_v46 = vsub.f32 %v9173_v7, %v9326_v63  ;;  %v11181_v50 = vld [vmem:[#allocation93_spill] sm:$0xff]  ;;  %v11198_v63 = vld [vmem:[#allocation43_spill] sm:$0xff] }
 0x9ff   : > { %v9353_v17 = vpop.eup %7065  ;;  %7085 = vpow2.f32 %v3250_v20  ;;  %v2652_v8 = vmul.f32 1.442695, %v2628_v15  ;;  %v2629_v62 = vsub.f32 -inf, %v11181_v50  ;;  %v3254_v44 = vmul.f32 1.442695, %v3230_v51 }
 0xa00   : > { %v7068_v45 = vpop.eup %7067  ;;  %7087 = vpow2.f32 %v2098_v28  ;;  %v2743_v34 = vpop.xlane.xlu1 %2742  ;;  %v3260_v9 = vmul.f32 1.442695, %v3233_v46 }
 0xa01   : > { %v9362_v60 = vpop.eup %7069  ;;  %7089 = vrcp.f32 %v2209_v18  ;;  %v2769_v61 = vadd.f32 %v2743_v34, %v9356_v31  ;;  %v9367_v20 = vpop.xlane.xlu0 %3170  ;;  %v9381_v37 = vmul.f32 0.0, %v7068_v45  ;;  %v3258_v34 = vmul.f32 1.442695, %v3232_v35 }
 0xa02   : > { %11180 = vst [vmem:[#allocation66_spill] sm:$0xff] %v9367_v20  ;;  %v7072_v28 = vpop.eup %7071  ;;  %7091 = vrcp.f32 %v2768_v27  ;;  %v11184_v27 = vld [vmem:[#allocation76_spill] sm:$0xff]  ;;  %v2654_v50 = vmul.f32 1.442695, %v2629_v62 }
 0xa03   : > { %v7074_v26 = vpop.eup %7073  ;;  %7093 = vrcp.f32 %v2769_v61  ;;  %v2071_v32 = vsub.f32 -inf, %v11184_v27  ;;  %v9383_v15 = vmul.f32 0.0, %v7072_v28 }
 0xa04   : > { %v7076_v14 = vpop.eup %7075  ;;  %7095 = vpow2.f32 %v2102_v13  ;;  %v9372_v7 = vpop.xlane.xlu1 %3160  ;;  %v9393_v25 = vmul.f32 0.0, %v7074_v26 }
 0xa05   : > { %11182 = vst [vmem:[#allocation67_spill] sm:$0xff] %v9372_v7  ;;  %v9374_v43 = vpop.eup %7077  ;;  %7097 = vpow2.f32 %v2104_v39  ;;  %v3231_v40 = vsub.f32 %v9175_v55, %v9372_v7  ;;  %v9378_v18 = vpop.xlane.xlu0 %3166  ;;  %v9387_v51 = vmul.f32 0.0, %v7076_v14  ;;  %v11185_v55 = vld [vmem:[#allocation79_spill] sm:$0xff] }
 0xa06   : > { %11183 = vst [vmem:[#allocation22_spill] sm:$0xff] %v9378_v18  ;;  %v7080_v54 = vpop.eup %7079  ;;  %7099 = vpow2.f32 %v2656_v38  ;;  %v2361_v61 = vadd.f32 %v11185_v55, %v9311_v11  ;;  %v11186_v38 = vld [vmem:[#allocation92_spill] sm:$0xff]  ;;  %v11187_v11 = vld [vmem:[#allocation81_spill] sm:$0xff] }
 0xa07   : > { %v9385_v13 = vpop.eup %7081  ;;  %7101 = vpow2.f32 %v2652_v8  ;;  %v3256_v39 = vmul.f32 1.442695, %v3231_v40  ;;  %v2631_v27 = vsub.f32 -inf, %v11186_v38  ;;  %v2362_v62 = vadd.f32 %v11187_v11, %v9332_v30 }
 0xa08   : > { %v9389_v46 = vpop.eup %7083  ;;  %7103 = vpow2.f32 %v3254_v44  ;;  %v2747_v45 = vpop.xlane.xlu1 %2746  ;;  %v2100_v38 = vmul.f32 1.442695, %v2071_v32  ;;  %v2914_v30 = vadd.f32 %v9125_v59, %v9356_v31  ;;  %v11195_v31 = vld [vmem:[#allocation84_spill] sm:$0xff] }
 0xa09   : > { %v9395_v28 = vpop.eup %7085  ;;  %7105 = vpow2.f32 %v3260_v9  ;;  %v2771_v8 = vadd.f32 %v2747_v45, %v9387_v51  ;;  %v2745_v14 = vpop.xlane.xlu0 %2744  ;;  %v3336_v35 = vpack.c.bf16 %v9389_v46, %v9374_v43  ;;  %v11188_v9 = vld [vmem:[#allocation96_spill] sm:$0xff]  ;;  %v2913_v45 = vadd.f32 %v9121_v23, %v9341_v53 }
 0xa0a   : > { %v9401_v40 = vpop.eup %7087  ;;  %7107 = vpow2.f32 %v3256_v39  ;;  %v2770_v26 = vadd.f32 %v2745_v14, %v9393_v25  ;;  %v3337_v44 = vpack.c.bf16 %v9385_v13, %v9395_v28  ;;  %v2632_v56 = vsub.f32 -inf, %v11188_v9 }
 0xa0b   : > { %v7090_v55 = vpop.eup %7089  ;;  %7109 = vpow2.f32 %v3258_v34  ;;  %6570 = vmatprep.mubr.bf16.mxu1 %v3336_v35  ;;  %v9413_v14 = vmul.f32 %v7080_v54, %v2361_v61  ;;  %v2658_v32 = vmul.f32 1.442695, %v2631_v27  ;;  %v11189_v61 = vld [vmem:[#allocation25_spill] sm:$0xff]  ;;  %v9431_v27 = vmul.f32 0.0, %v9362_v60  ;;  %v11191_v35 = vld [vmem:[#allocation42_spill] sm:$0xff] }
 0xa0c   : > { %v7092_v5 = vpop.eup %7091  ;;  %7111 = vpow2.f32 %v2654_v50  ;;  %6571 = vmatmul.mubr.bf16.gmra.mrb[68].mxu1 %v3337_v44  ;;  %v2189_v39 = vpop.xlane.xlu1 %2188  ;;  %v9415_v11 = vmul.f32 %v7090_v55, %v2362_v62  ;;  %v1513_v50 = vsub.f32 -inf, %v11189_v61  ;;  %v3236_v60 = vsub.f32 %v9179_v36, %v9367_v20 }
 0xa0d   : > { %v7094_v7 = vpop.eup %7093  ;;  %7113 = vrcp.f32 %v2771_v8  ;;  %v2211_v9 = vadd.f32 %v2189_v39, %v9383_v15  ;;  %v2187_v1 = vpop.xlane.xlu0 %2186  ;;  %v9418_v23 = vmul.f32 %v7092_v5, %v2913_v45  ;;  %v11190_v8 = vld [vmem:[#allocation94_spill] sm:$0xff]  ;;  %v2363_v55 = vadd.f32 %v11195_v31, %v9381_v37  ;;  %v11199_v31 = vld [vmem:[#allocation99_spill] sm:$0xff] }
 0xa0e   : > { %v9420_v53 = vpop.eup %7095  ;;  %7115 = vrcp.f32 %v2770_v26  ;;  %v2210_v34 = vadd.f32 %v2187_v1, %v9381_v37  ;;  %v9423_v59 = vmul.f32 %v7094_v7, %v2914_v30  ;;  %v2634_v5 = vsub.f32 -inf, %v11190_v8  ;;  %1646 = vadd.xlane.f32.xlu0 %v11191_v35  ;;  %v11192_v7 = vld [vmem:[#allocation97_spill] sm:$0xff] }
 0xa0f   : > { %v9427_v54 = vpop.eup %7097  ;;  %7117 = vrcp.f32 %v2211_v9  ;;  %v9436_v1 = vmul.f32 0.0, %v9353_v17  ;;  %v2633_v26 = vsub.f32 -inf, %v11192_v7  ;;  %v11193_v30 = vld [vmem:[#allocation41_spill] sm:$0xff]  ;;  %v2660_v17 = vmul.f32 1.442695, %v2632_v56 }
 0xa10   : > { %v7100_v62 = vpop.eup %7099  ;;  %7119 = vrcp.f32 %v2210_v34  ;;  %v2193_v44 = vpop.xlane.xlu1 %2192  ;;  %1644 = vadd.xlane.f32.xlu1 %v11193_v30  ;;  %v9450_v35 = vmul.f32 1.442695, %v1513_v50  ;;  %v2664_v7 = vmul.f32 1.442695, %v2634_v5  ;;  %v11194_v30 = vld [vmem:[#allocation26_spill] sm:$0xff] }
 0xa11   : > { %v7102_v45 = vpop.eup %7101  ;;  %7121 = vpow2.f32 %v2100_v38  ;;  %v2213_v39 = vadd.f32 %v2193_v44, %v9431_v27  ;;  %v2191_v9 = vpop.xlane.xlu0 %2190  ;;  %v3234_v38 = vsub.f32 %v9182_v58, %v9378_v18  ;;  %v11197_v50 = vld [vmem:[#allocation86_spill] sm:$0xff]  ;;  %v3266_v20 = vmul.f32 1.442695, %v3236_v60 }
 0xa12   : > { %v9445_v61 = vpop.eup %7103  ;;  %7123 = vpow2.f32 %v2658_v32  ;;  %v2212_v34 = vadd.f32 %v2191_v9, %v9436_v1  ;;  %v2662_v32 = vmul.f32 1.442695, %v2633_v26  ;;  %v2364_v5 = vadd.f32 %v11197_v50, %v9383_v15 }
 0xa13   : > { %v9448_v8 = vpop.eup %7105  ;;  %7125 = vrcp.f32 %v2213_v39  ;;  %v2916_v26 = vadd.f32 %v11199_v31, %v9387_v51 }
 0xa14   : > { %v9454_v36 = vpop.eup %7107  ;;  %7127 = vrcp.f32 %v2212_v34  ;;  %v9459_v56 = vpop.xlane.xlu1 %3172  ;;  %1648 = vadd.xlane.f32.xlu1 %v11198_v63  ;;  %v9472_v34 = vmul.f32 0.0, %v7102_v45  ;;  %v11200_v63 = vld [vmem:[#allocation98_spill] sm:$0xff] }
 0xa15   : > { %11196 = vst [vmem:[#allocation64_spill] sm:$0xff] %v9459_v56  ;;  %v9461_v9 = vpop.eup %7109  ;;  %v3237_v58 = vsub.f32 %v9185_v21, %v9459_v56  ;;  %v2749_v39 = vpop.xlane.xlu0 %2748  ;;  %v3338_v44 = vpack.c.bf16 %v9454_v36, %v9445_v61  ;;  %7129 = vpow2.f32 %v2660_v17  ;;  %v2915_v50 = vadd.f32 %v11200_v63, %v9393_v25 }
 0xa16   : > { %v7112_v37 = vpop.eup %7111  ;;  %v3339_v15 = vpack.c.bf16 %v9448_v8, %v9461_v9  ;;  %7131 = vpow2.f32 %v2664_v7  ;;  %v3262_v21 = vmul.f32 1.442695, %v3234_v38  ;;  %v9479_v17 = vmul.f32 0.0, %v7100_v62 }
 0xa17   : > { %v7114_v60 = vpop.eup %7113  ;;  %v3268_v18 = vmul.f32 1.442695, %v3237_v58  ;;  %6574 = vmatprep.mubr.bf16.mxu1 %v3338_v44  ;;  %7133 = vpow2.f32 %v2662_v32  ;;  %v2772_v7 = vadd.f32 %v2749_v39, %v9472_v34  ;;  %v9491_v62 = vmul.f32 0.0, %v7112_v37 }
 0xa18   : > { %v7116_v56 = vpop.eup %7115  ;;  %6575 = vmatmul.mubr.bf16.gmra.mrb[72].mxu1 %v3339_v15  ;;  %v9481_v51 = vpop.xlane.xlu1 %3168  ;;  %v9483_v45 = vmul.f32 %v7114_v60, %v2916_v26  ;;  %7135 = vpow2.f32 %v3266_v20  ;;  %3292 = vadd.xlane.f32.xlu1 %v9313_v33  ;;  %v11202_v15 = vld [vmem:[#allocation27_spill] sm:$0xff]  ;;  %v11203_v60 = vld [vmem:[#allocation85_spill] sm:$0xff] }
 0xa19   : > { %v7118_v31 = vpop.eup %7117  ;;  %v3235_v25 = vsub.f32 %v9187_v42, %v9481_v51  ;;  %v2753_v38 = vpop.xlane.xlu0 %2752  ;;  %v9489_v44 = vmul.f32 %v7116_v56, %v2915_v50  ;;  %7137 = vpow2.f32 %v3268_v18  ;;  %v1516_v56 = vsub.f32 -inf, %v11202_v15  ;;  %v11204_v50 = vld [vmem:[#allocation83_spill] sm:$0xff] }
 0xa1a   : > { %v7120_v6 = vpop.eup %7119  ;;  %v2774_v32 = vadd.f32 %v2753_v38, %v9479_v17  ;;  %v9494_v58 = vmul.f32 %v7118_v31, %v2364_v5  ;;  %7139 = vpow2.f32 %v3262_v21  ;;  %v2366_v37 = vadd.f32 %v11203_v60, %v9431_v27 }
 0xa1b   : > { %v7122_v26 = vpop.eup %7121  ;;  %v3264_v20 = vmul.f32 1.442695, %v3235_v25  ;;  %v9498_v39 = vmul.f32 %v7120_v6, %v2363_v55  ;;  %v9504_v18 = vmul.f32 0.0, %v9401_v40  ;;  %v2365_v21 = vadd.f32 %v11204_v50, %v9436_v1 }
 0xa1c   : > { %v7124_v42 = vpop.eup %7123  ;;  %7141 = vrcp.f32 %v2774_v32  ;;  %v2751_v5 = vpop.xlane.xlu1 %2750  ;;  %3288 = vadd.xlane.f32.xlu1 %v9317_v49  ;;  %v2666_v27 = vmul.f32 1.442695, %v2635_v41  ;;  %v9520_v49 = vmul.f32 0.0, %v9420_v53  ;;  %v11205_v41 = vsub.f32 -inf, %v11194_v30 }
 0xa1d   : > { %v7126_v63 = vpop.eup %7125  ;;  %7143 = vrcp.f32 %v2772_v7  ;;  %v2773_v55 = vadd.f32 %v2751_v5, %v9491_v62  ;;  %v2195_v31 = vpop.xlane.xlu0 %2194  ;;  %v9515_v32 = vmul.f32 0.0, %v7124_v42  ;;  %v1536_v50 = vmul.f32 1.442695, %v1516_v56 }
 0xa1e   : > { %v7128_v38 = vpop.eup %7127  ;;  %7145 = vpow2.f32 %v3264_v20  ;;  %v2214_v40 = vadd.f32 %v2195_v31, %v9504_v18  ;;  %v9513_v6 = vmul.f32 %v7126_v63, %v2366_v37  ;;  %v1540_v20 = vmul.f32 1.442695, %v11205_v41  ;;  %v11208_v41 = vld [vmem:[#allocation31_spill] sm:$0xff] }
 0xa1f   : > { %7147 = vrcp.f32 %v2773_v55  ;;  %v9517_v1 = vmul.f32 %v7128_v38, %v2365_v21  ;;  %v7130_v7 = vpop.eup %7129  ;;  %v9532_v55 = vmul.f32 0.0, %v7122_v26  ;;  %v11206_v38 = vld [vmem:[#allocation100_spill] sm:$0xff]  ;;  %v11207_v26 = vpack.c.bf16 %v9282_v10, %v9287_v2  ;;  %v11209_v10 = vld [vmem:[#allocation101_spill] sm:$0xff] }
 0xa20   : > { %7149 = vrcp.f32 %v2214_v40  ;;  %v2755_v15 = vpop.xlane.xlu1 %2754  ;;  %v7132_v60 = vpop.eup %7131  ;;  %3300 = vadd.xlane.f32.xlu1 %v9385_v13  ;;  %v9536_v30 = vmul.f32 0.0, %v7130_v7  ;;  %v2919_v56 = vadd.f32 %v11206_v38, %v9479_v17  ;;  %v2917_v2 = vadd.f32 %v11209_v10, %v9472_v34 }
 0xa21   : > { %7151 = vpow2.f32 %v9450_v35  ;;  %v2775_v42 = vadd.f32 %v2755_v15, %v9515_v32  ;;  %v2199_v37 = vpop.xlane.xlu0 %2198  ;;  %v7134_v63 = vpop.eup %7133  ;;  %v11213_v34 = vpack.c.bf16 %v9351_v29, %v9349_v3  ;;  %v9586_v29 = vmul.f32 0.0, %v9346_v48 }
 0xa22   : > { %7153 = vpow2.f32 %v2666_v27  ;;  %v2216_v53 = vadd.f32 %v2199_v37, %v9520_v49  ;;  %v9530_v21 = vpop.eup %7135 }
 0xa23   : > { %7155 = vrcp.f32 %v2775_v42  ;;  %v9534_v35 = vpop.eup %7137 }
 0xa24   : > { %7157 = vrcp.f32 %v2216_v53  ;;  %v2197_v13 = vpop.xlane.xlu1 %2196  ;;  %v9538_v31 = vpop.eup %7139  ;;  %3296 = vadd.xlane.f32.xlu1 %v9389_v46  ;;  %3553 = vrot.lane.b32.xlu0 %v11207_v26, %s7699_s20  ;;  %v3341_v7 = vpack.c.bf16 %v9534_v35, %v9530_v21  ;;  %v9553_v46 = vmul.f32 0.0, %v9427_v54  ;;  %v11212_v54 = vld [vmem:[#allocation88_spill] sm:$0xff] }
 0xa25   : > { %7159 = vpow2.f32 %v1540_v20  ;;  %v2215_v27 = vadd.f32 %v2197_v13, %v9532_v55  ;;  %v2757_v40 = vpop.xlane.xlu0 %2756  ;;  %v1517_v20 = vsub.f32 -inf, %v11208_v41  ;;  %v11210_v13 = vld [vmem:[#allocation103_spill] sm:$0xff]  ;;  %v11211_v41 = vld [vmem:[#allocation29_spill] sm:$0xff] }
 0xa26   : > { %v7142_v15 = vpop.eup %7141  ;;  %7161 = vpow2.f32 %v1536_v50  ;;  %v2776_v42 = vadd.f32 %v2757_v40, %v9536_v30  ;;  %v2918_v38 = vadd.f32 %v11210_v13, %v9491_v62  ;;  %v9563_v50 = vmul.f32 0.0, %v7132_v60 }
 0xa27   : > { %v7144_v17 = vpop.eup %7143  ;;  %7163 = vrcp.f32 %v2215_v27  ;;  %v9555_v37 = vmul.f32 %v7142_v15, %v2919_v56  ;;  %v1519_v5 = vsub.f32 -inf, %v11211_v41  ;;  %v2367_v27 = vadd.f32 %v11212_v54, %v9504_v18  ;;  %v11214_v54 = vld [vmem:[#allocation102_spill] sm:$0xff] }
 0xa28   : > { %v9557_v53 = vpop.eup %7145  ;;  %7165 = vrcp.f32 %v2776_v42  ;;  %v2201_v26 = vpop.xlane.xlu1 %2200  ;;  %3308 = vadd.xlane.f32.xlu1 %v9448_v8  ;;  %3531 = vrot.lane.b32.xlu0 %v11213_v34, %s7700_s24  ;;  %v1538_v42 = vmul.f32 1.442695, %v1517_v20  ;;  %v9577_v13 = vmul.f32 %v7144_v17, %v2917_v2  ;;  %v9581_v41 = vmul.f32 0.0, %v7134_v63  ;;  %v11215_v63 = vld [vmem:[#allocation28_spill] sm:$0xff] }
 0xa29   : > { %v7148_v40 = vpop.eup %7147  ;;  %v2217_v56 = vadd.f32 %v2201_v26, %v9553_v46  ;;  %v2761_v62 = vpop.xlane.xlu0 %2760  ;;  %v3340_v60 = vpack.c.bf16 %v9557_v53, %v9538_v31  ;;  %v2920_v20 = vadd.f32 %v11214_v54, %v9515_v32 }
 0xa2a   : > { %v7150_v15 = vpop.eup %7149  ;;  %v2778_v10 = vadd.f32 %v2761_v62, %v9563_v50  ;;  %v9579_v18 = vmul.f32 %v7148_v40, %v2918_v38  ;;  %v1520_v40 = vsub.f32 -inf, %v11215_v63 }
 0xa2b   : > { %v7152_v8 = vpop.eup %7151  ;;  %7167 = vrcp.f32 %v2217_v56  ;;  %6578 = vmatprep.mubr.bf16.mxu1 %v3340_v60  ;;  %v9583_v26 = vmul.f32 %v7150_v15, %v2367_v27  ;;  %v11216_v56 = vld [vmem:[#allocation87_spill] sm:$0xff]  ;;  %v1542_v60 = vmul.f32 1.442695, %v1519_v5  ;;  %v11221_v5 = vld [vmem:[#allocation89_spill] sm:$0xff] }
 0xa2c   : > { %v7154_v3 = vpop.eup %7153  ;;  %7169 = vrcp.f32 %v2778_v10  ;;  %6579 = vmatmul.mubr.bf16.gmra.mrb[76].mxu1 %v3341_v7  ;;  %v2759_v17 = vpop.xlane.xlu1 %2758  ;;  %v2369_v27 = vadd.f32 %v11216_v56, %v9520_v49  ;;  %3304 = vadd.xlane.f32.xlu1 %v9454_v36  ;;  %v1610_v49 = vmul.f32 0.0, %v9289_v22  ;;  %v11218_v36 = vld [vmem:[#allocation90_spill] sm:$0xff] }
 0xa2d   : > { %v7156_v38 = vpop.eup %7155  ;;  %v2777_v48 = vadd.f32 %v2759_v17, %v9581_v41  ;;  %v1625_v34 = vpop.xlane.xlu0 %1624  ;;  %7171 = vpow2.f32 %v1538_v42  ;;  %v2731_v10 = vmul.f32 0.0, %v7154_v3  ;;  %v2368_v56 = vadd.f32 %v11218_v36, %v9532_v55 }
 0xa2e   : > { %v7158_v62 = vpop.eup %7157  ;;  %v1656_v32 = vadd.f32 %v1625_v34, %v9586_v29  ;;  %v9598_v7 = vmul.f32 %v7156_v38, %v2920_v20  ;;  %v1544_v34 = vmul.f32 1.442695, %v1520_v40  ;;  %v11219_v20 = vld [vmem:[#allocation105_spill] sm:$0xff]  ;;  %v1609_v55 = vmul.f32 0.0, %v7152_v8 }
 0xa2f   : > { %v7160_v15 = vpop.eup %7159  ;;  %7173 = vrcp.f32 %v2777_v48  ;;  %v9600_v54 = vmul.f32 %v7158_v62, %v2369_v27  ;;  %v2921_v38 = vadd.f32 %v11219_v20, %v9536_v30  ;;  %v11220_v62 = vld [vmem:[#allocation30_spill] sm:$0xff]  ;;  %v2370_v40 = vadd.f32 %v11221_v5, %v9553_v46 }
 0xa30   : > { %v7162_v63 = vpop.eup %7161  ;;  %7175 = vrcp.f32 %v1656_v32  ;;  %v2763_v17 = vpop.xlane.xlu1 %2762  ;;  %v1521_v2 = vsub.f32 -inf, %v11220_v62  ;;  %v11224_v62 = vld [vmem:[#allocation107_spill] sm:$0xff] }
 0xa31   : > { %11217 = vst [vmem:[#allocation68_spill] sm:$0xff] %v9600_v54  ;;  %v7164_v42 = vpop.eup %7163  ;;  %v2779_v3 = vadd.f32 %v2763_v17, %v2731_v10  ;;  %v1629_v48 = vpop.xlane.xlu0 %1628  ;;  %7177 = vpow2.f32 %v1542_v60  ;;  %v1612_v36 = vmul.f32 0.0, %v7162_v63  ;;  %v11222_v60 = vld [vmem:[#allocation104_spill] sm:$0xff]  ;;  %v1611_v63 = vmul.f32 0.0, %v9330_v16 }
 0xa32   : > { %v7166_v27 = vpop.eup %7165  ;;  %v1658_v22 = vadd.f32 %v1629_v48, %v1610_v49  ;;  %v9610_v25 = vmul.f32 %v7164_v42, %v2368_v56  ;;  %v2923_v20 = vadd.f32 %v11222_v60, %v9563_v50  ;;  %v1546_v8 = vmul.f32 1.442695, %v1521_v2  ;;  %v11225_v2 = vld [vmem:[#allocation48_spill] sm:$0xff] }
 0xa33   : > { %7179 = vrcp.f32 %v2779_v3  ;;  %v9612_v32 = vmul.f32 %v7166_v27, %v2921_v38  ;;  %v1614_v27 = vmul.f32 0.0, %v7160_v15 }
 0xa34   : > { %7181 = vrcp.f32 %v1658_v22  ;;  %v1627_v33 = vpop.xlane.xlu1 %1626  ;;  %v2922_v22 = vadd.f32 %v11224_v62, %v9581_v41 }
 0xa35   : > { %v7168_v17 = vpop.eup %7167  ;;  %v1657_v48 = vadd.f32 %v1627_v33, %v1609_v55  ;;  %v1633_v56 = vpop.xlane.xlu0 %1632  ;;  %7183 = vpow2.f32 %v1544_v34 }
 0xa36   : > { %v7170_v42 = vpop.eup %7169  ;;  %v1660_v38 = vadd.f32 %v1633_v56, %v1612_v36  ;;  %v9620_v3 = vmul.f32 %v7168_v17, %v2370_v40  ;;  %v1777_v40 = vadd.f32 %v11225_v2, %v9586_v29  ;;  %v11227_v29 = vld [vmem:[#allocation47_spill] sm:$0xff] }
 0xa37   : > { %7185 = vrcp.f32 %v1657_v48  ;;  %v9623_v46 = vmul.f32 %v7170_v42, %v2923_v20  ;;  %v7172_v5 = vpop.eup %7171  ;;  %v11226_v42 = vld [vmem:[#allocation106_spill] sm:$0xff] }
 0xa38   : > { %7187 = vrcp.f32 %v1660_v38  ;;  %v1631_v50 = vpop.xlane.xlu1 %1630  ;;  %v1613_v15 = vmul.f32 0.0, %v7172_v5  ;;  %v2924_v38 = vadd.f32 %v11226_v42, %v2731_v10 }
 0xa39   : > { %11223 = vst [vmem:[#allocation23_spill] sm:$0xff] %v9623_v46  ;;  %v7174_v34 = vpop.eup %7173  ;;  %v1659_v17 = vadd.f32 %v1631_v50, %v1611_v63  ;;  %v1637_v60 = vpop.xlane.xlu0 %1636  ;;  %7189 = vpow2.f32 %v1546_v8  ;;  %v1779_v50 = vadd.f32 %v11227_v29, %v1610_v49  ;;  %v11228_v8 = vpack.c.bf16 %v9423_v59, %v9418_v23 }
 0xa3a   : > { %v7176_v16 = vpop.eup %7175  ;;  %v1662_v20 = vadd.f32 %v1637_v60, %v1614_v27  ;;  %v9631_v48 = vmul.f32 %v7174_v34, %v2922_v22 }
 0xa3b   : > { %7191 = vrcp.f32 %v1659_v17  ;;  %v1809_v56 = vmul.f32 %v7176_v16, %v1777_v40  ;;  %v7178_v41 = vpop.eup %7177  ;;  %v11229_v40 = vld [vmem:[#allocation50_spill] sm:$0xff] }
 0xa3c   : > { %7193 = vrcp.f32 %v1662_v20  ;;  %v1635_v62 = vpop.xlane.xlu1 %1634  ;;  %v1615_v22 = vmul.f32 0.0, %v7178_v41  ;;  %v1778_v17 = vadd.f32 %v11229_v40, %v1609_v55  ;;  %v11230_v20 = vld [vmem:[#allocation52_spill] sm:$0xff]  ;;  %v11231_v41 = vld [vmem:[#allocation49_spill] sm:$0xff] }
 0xa3d   : > { %v7180_v30 = vpop.eup %7179  ;;  %v1661_v2 = vadd.f32 %v1635_v62, %v1613_v15  ;;  %3555 = vrot.lane.b32.xlu1 %v11228_v8, %s7699_s20  ;;  %v1781_v42 = vadd.f32 %v11230_v20, %v1612_v36  ;;  %v3528_v40 = vpop.permute.xlu0 %3527 }
 0xa3e   : > { %v7182_v54 = vpop.eup %7181  ;;  %v9641_v5 = vmul.f32 %v7180_v30, %v2924_v38 }
 0xa3f   : > { %7195 = vrcp.f32 %v1661_v2  ;;  %v1811_v10 = vmul.f32 %v7182_v54, %v1779_v50  ;;  %v7184_v34 = vpop.eup %7183  ;;  %v1780_v54 = vadd.f32 %v11231_v41, %v1611_v63  ;;  %v11232_v2 = vld [vmem:[#allocation51_spill] sm:$0xff] }
 0xa40   : > { %v1639_v60 = vpop.xlane.xlu1 %1638  ;;  %v1616_v23 = vmul.f32 0.0, %v7184_v34  ;;  %v1783_v8 = vadd.f32 %v11232_v2, %v1614_v27  ;;  %v11235_v27 = vld [vmem:[#allocation53_spill] sm:$0xff] }
 0xa41   : > { %v7186_v49 = vpop.eup %7185  ;;  %v1663_v62 = vadd.f32 %v1639_v60, %v1615_v22  ;;  %v1784_v41 = vadd.f32 %v11235_v27, %v1615_v22 }
 0xa42   : > { %v7188_v29 = vpop.eup %7187  ;;  %v1810_v33 = vmul.f32 %v7186_v49, %v1778_v17  ;;  %v11233_v17 = vld [vmem:[#allocation54_spill] sm:$0xff] }
 0xa43   : > { %7197 = vrcp.f32 %v1663_v62  ;;  %v9647_v59 = vmul.f32 %v7188_v29, %v1781_v42  ;;  %v7190_v30 = vpop.eup %7189  ;;  %v1782_v49 = vadd.f32 %v11233_v17, %v1613_v15  ;;  %v11234_v42 = vld [vmem:[#allocation45_spill] sm:$0xff]  ;;  %v11241_v17 = vld [vmem:[#allocation35_spill] sm:$0xff] }
 0xa44   : > { %v1825_v38 = vpack.c.bf16 %v1810_v33, %v1809_v56  ;;  %v1641_v50 = vpop.xlane.xlu1 %1640  ;;  %v1617_v20 = vmul.f32 0.0, %v7190_v30 }
 0xa45   : > { %v7192_v55 = vpop.eup %7191  ;;  %v1664_v16 = vadd.f32 %v1641_v50, %v1616_v23 }
 0xa46   : > { %v7194_v46 = vpop.eup %7193  ;;  %v3593_v36 = vsel %vm1334_vm0, %v1825_v38, %v3528_v40  ;;  %v1812_v60 = vmul.f32 %v7192_v55, %v1780_v54  ;;  %v11237_v55 = vld [vmem:[#allocation58_spill] sm:$0xff]  ;;  %v11240_v40 = vld [vmem:[#allocation33_spill] sm:$0xff] }
 0xa47   : > { %7199 = vrcp.f32 %v1664_v16  ;;  %v9652_v34 = vmul.f32 %v7194_v46, %v1783_v8  ;;  %1650 = vadd.xlane.f32.xlu0 %v11234_v42  ;;  %v11236_v46 = vld [vmem:[#allocation56_spill] sm:$0xff]  ;;  %v1786_v2 = vadd.f32 %v11237_v55, %v1617_v20 }
 0xa48   : > { %v1643_v63 = vpop.xlane.xlu1 %1642  ;;  %v1826_v33 = vpack.c.bf16 %v1812_v60, %v1811_v10  ;;  %v1785_v38 = vadd.f32 %v11236_v46, %v1616_v23  ;;  %v1522_v60 = vsub.f32 -inf, %v11240_v40 }
 0xa49   : > { %v7196_v56 = vpop.eup %7195  ;;  %v1665_v62 = vadd.f32 %v1643_v63, %v1617_v20 }
 0xa4a   : > { %v1814_v29 = vmul.f32 %v7196_v56, %v1782_v49  ;;  %v1548_v20 = vmul.f32 1.442695, %v1522_v60  ;;  %v11245_v60 = vld [vmem:[#allocation60_spill] sm:$0xff] }
 0xa4b   : > { %7201 = vrcp.f32 %v1665_v62  ;;  %3290 = vadd.xlane.f32.xlu0 %v9322_v4 }
 0xa4c   : > { %v1827_v54 = vpack.c.bf16 %v1814_v29, %v9647_v59 }
 0xa4d   : > { %v7198_v30 = vpop.eup %7197 }
 0xa4e   : > { %v9659_v16 = vmul.f32 %v7198_v30, %v1784_v41 }
 0xa4f   : > { %3286 = vadd.xlane.f32.xlu0 %v9308_v19 }
 0xa50   : > { %v1828_v15 = vpack.c.bf16 %v9659_v16, %v9652_v34  ;;  %v11271_v34 = vld [vmem:[#allocation59_spill] sm:$0xff] }
 0xa51   : > { %v7200_v10 = vpop.eup %7199 }
 0xa52   : > { %v9665_v50 = vmul.f32 %v7200_v10, %v1785_v38 }
 0xa53   : > { %3298 = vadd.xlane.f32.xlu0 %v9395_v28 }
 0xa55   : > { %v7202_v4 = vpop.eup %7201 }
 0xa56   : > { %v9669_v22 = vmul.f32 %v7202_v4, %v1786_v2  ;;  %v11243_v2 = vld [vmem:[#allocation57_spill] sm:$0xff] }
 0xa57   : > { %3294 = vadd.xlane.f32.xlu0 %v9374_v43  ;;  %v11238_v43 = vpack.c.bf16 %v9415_v11, %v9413_v14  ;;  %v11242_v14 = vld [vmem:[#allocation44_spill] sm:$0xff] }
 0xa58   : > { %v1829_v23 = vpack.c.bf16 %v9669_v22, %v9665_v50 }
 0xa5b   : > { %3306 = vadd.xlane.f32.xlu0 %v9461_v9  ;;  %v11239_v9 = vld [vmem:[#allocation34_spill] sm:$0xff] }
 0xa5d   : > { %v3530_v19 = vpop.permute.xlu1 %3529 }
 0xa5e   : > { %v3596_v59 = vsel %vm1334_vm0, %v1826_v33, %v3530_v19 }
 0xa5f   : > { %3302 = vadd.xlane.f32.xlu0 %v9445_v61  ;;  %v1523_v61 = vsub.f32 -inf, %v11239_v9 }
 0xa61   : > { %3316 = vadd.xlane.f32.xlu1 %v9534_v35  ;;  %v3552_v8 = vpop.permute.xlu0 %3551  ;;  %v1550_v35 = vmul.f32 1.442695, %v1523_v61 }
 0xa62   : > { %v9679_v28 = vsel %vm3615_vm1, %v3593_v36, %v3552_v8  ;;  %v1524_v36 = vsub.f32 -inf, %v11241_v17  ;;  %v11244_v8 = vld [vmem:[#allocation55_spill] sm:$0xff] }
 0xa63   : > { %3314 = vadd.xlane.f32.xlu0 %v9530_v21  ;;  %7203 = vpow2.f32 %v1550_v35 }
 0xa64   : > { %7205 = vpow2.f32 %v1548_v20  ;;  %v1552_v21 = vmul.f32 1.442695, %v1524_v36 }
 0xa65   : > { %3312 = vadd.xlane.f32.xlu1 %v9557_v53 }
 0xa66   : > { %7207 = vpow2.f32 %v1552_v21 }
 0xa67   : > { %3310 = vadd.xlane.f32.xlu0 %v9538_v31 }
 0xa6d   : > { %v7204_v53 = vpop.eup %7203 }
 0xa6e   : > { %v7206_v49 = vpop.eup %7205  ;;  %v1619_v31 = vmul.f32 0.0, %v7204_v53  ;;  %v11246_v53 = vpack.c.bf16 %v9483_v45, %v9489_v44  ;;  %v3177_v44 = vsub.f32 -inf, %v9254_v0  ;;  %v3181_v0 = vsub.f32 -inf, %v9302_v24 }
 0xa6f   : > { %v1618_v63 = vmul.f32 0.0, %v7206_v49 }
 0xa70   : > { %v7208_v11 = vpop.eup %7207  ;;  %v1788_v4 = vadd.f32 %v11243_v2, %v1619_v31  ;;  %v11250_v2 = vld [vmem:[#allocation65_spill] sm:$0xff] }
 0xa71   : > { %v1620_v27 = vmul.f32 0.0, %v7208_v11 }
 0xa73   : > { %v1789_v35 = vadd.f32 %v11245_v60, %v1620_v27 }
 0xa7d   : > { %3533 = vrot.lane.b32.xlu0 %v11238_v43, %s7700_s24  ;;  %v1787_v43 = vadd.f32 %v11244_v8, %v1618_v63  ;;  %v11251_v8 = vld [vmem:[#allocation36_spill] sm:$0xff] }
 0xa9b   : > { %v1647_v42 = vpop.xlane.xlu0 %1646 }
 0xa9c   : > { %v1667_v33 = vadd.f32 %v1647_v42, %v1619_v31  ;;  %1654 = vadd.xlane.f32.xlu0 %v11242_v14  ;;  %v11247_v31 = vpack.c.bf16 %v9494_v58, %v9498_v39  ;;  %v11249_v14 = vld [vmem:[#allocation40_spill] sm:$0xff]  ;;  %v3176_v39 = vsub.f32 -inf, %v9242_v47  ;;  %v3180_v47 = vsub.f32 -inf, %v9276_v57  ;;  %v6792_v57 = vld [vmem:[#allocation10 + $0x28] sm:$0xff]  }
 0xa9d   : > { %v1645_v56 = vpop.xlane.xlu1 %1644  ;;  %v1525_v11 = vsub.f32 -inf, %v11249_v14 }
 0xa9e   : > { %7209 = vrcp.f32 %v1667_v33  ;;  %v1666_v62 = vadd.f32 %v1645_v56, %v1618_v63  ;;  %v11248_v63 = vpack.c.bf16 %v9579_v18, %v9577_v13  ;;  %v6787_v56 = vld [vmem:[#allocation10] sm:$0xff]   ;;  %v6789_v13 = vld [vmem:[#allocation10 + $0x10] sm:$0xff]   ;;  %v3194_v18 = vmul.f32 1.442695, %v3176_v39 }
 0xa9f   : > { %v3554_v29 = vpop.permute.xlu0 %3553  ;;  %6582 = vmatprep.subr.bf16.mxu1 %v6787_v56  ;;  %v1554_v58 = vmul.f32 1.442695, %v1525_v11 }
 0xaa0   : > { %7211 = vrcp.f32 %v1666_v62  ;;  %v9693_v41 = vsel %vm3615_vm1, %v3596_v59, %v3554_v29  ;;  %v6788_v62 = vld [vmem:[#allocation10 + $0x8] sm:$0xff]   ;;  %6583 = vmatpush3.bf16.msra.mxu1 %v6787_v56  ;;  %v3196_v29 = vmul.f32 1.442695, %v3177_v44 }
 0xaa1   : > { %v1649_v30 = vpop.xlane.xlu1 %1648  ;;  %6584 = vmatprep.subr.bf16.mxu1 %v6788_v62  ;;  %v11254_v44 = vld [vmem:[#allocation67_spill] sm:$0xff] }
 0xaa2   : > { %v1668_v46 = vadd.f32 %v1649_v30, %v1620_v27  ;;  %v3175_v27 = vsub.f32 -inf, %v9266_v12  ;;  %v3174_v30 = vsub.f32 -inf, %v9244_v52  ;;  %v3204_v12 = vmul.f32 1.442695, %v3181_v0  ;;  %v11255_v0 = vld [vmem:[#allocation37_spill] sm:$0xff] }
 0xaa3   : > { %v3532_v38 = vpop.permute.xlu0 %3531  ;;  %v3178_v52 = vsub.f32 -inf, %v11251_v8  ;;  %v3183_v56 = vsub.f32 -inf, %v11254_v44 }
 0xaa4   : > { %7213 = vrcp.f32 %v1668_v46  ;;  %v3599_v10 = vsel %vm1334_vm0, %v1827_v54, %v3532_v38  ;;  %6585 = vmatpush3.bf16.msra.mxu1 %v6788_v62  ;;  %v3192_v46 = vmul.f32 1.442695, %v3175_v27  ;;  %v6790_v38 = vld [vmem:[#allocation10 + $0x18] sm:$0xff]  }
 0xaa5   : > { %v9696_v55 = vpop.xlane.xlu1 %3292  ;;  %7215 = vpow2.f32 %v1554_v58  ;;  %6586 = vmatprep.subr.bf16.mxu1 %v6789_v13  ;;  %v3198_v11 = vmul.f32 1.442695, %v3178_v52 }
 0xaa6   : > { %7217 = vpow2.f32 %v3196_v29  ;;  %v6793_v29 = vld [vmem:[#allocation10 + $0x30] sm:$0xff]  }
 0xaa7   : > { %7219 = vpow2.f32 %v3194_v18 }
 0xaa8   : > { %v7210_v19 = vpop.eup %7209  ;;  %6587 = vmatpush3.bf16.msra.mxu1 %v6789_v13  ;;  %7221 = vpow2.f32 %v3192_v46 }
 0xaa9   : > { %v9700_v9 = vpop.xlane.xlu1 %3288  ;;  %v9702_v61 = vmul.f32 %v7210_v19, %v1788_v4  ;;  %v3179_v4 = vsub.f32 -inf, %v11250_v2  ;;  %6588 = vmatprep.subr.bf16.mxu1 %v6790_v38  ;;  %v6791_v19 = vld [vmem:[#allocation10 + $0x20] sm:$0xff]  }
 0xaaa   : > { %v7212_v40 = vpop.eup %7211 }
 0xaab   : > { %v9704_v59 = vmul.f32 %v7212_v40, %v1787_v43  ;;  %v3202_v43 = vmul.f32 1.442695, %v3180_v47  ;;  %v11252_v40 = vld [vmem:[#allocation63_spill] sm:$0xff] }
 0xaac   : > { %v3185_v60 = vsub.f32 -inf, %v11252_v40  ;;  %6589 = vmatpush3.bf16.msra.mxu1 %v6790_v38  ;;  %v3182_v38 = vsub.f32 -inf, %v11255_v0  ;;  %v6794_v0 = vld [vmem:[#allocation10 + $0x38] sm:$0xff]  }
 0xaad   : > { %v9707_v20 = vpop.xlane.xlu1 %3300  ;;  %v1830_v54 = vpack.c.bf16 %v9702_v61, %v9704_v59  ;;  %6590 = vmatprep.subr.bf16.mxu1 %v6791_v19 }
 0xaae   : > { %v7214_v17 = vpop.eup %7213  ;;  %v3212_v58 = vmul.f32 1.442695, %v3185_v60  ;;  %v3206_v60 = vmul.f32 1.442695, %v3182_v38 }
 0xaaf   : > { %v9711_v36 = vmul.f32 %v7214_v17, %v1789_v35  ;;  %v3200_v35 = vmul.f32 1.442695, %v3179_v4 }
 0xab0   : > { %6591 = vmatpush3.bf16.msra.mxu1 %v6791_v19  ;;  %v11256_v19 = vld [vmem:[#allocation66_spill] sm:$0xff] }
 0xab1   : > { %v9713_v21 = vpop.xlane.xlu1 %3296  ;;  %6592 = vmatprep.subr.bf16.mxu1 %v6792_v57  ;;  %v3188_v8 = vsub.f32 -inf, %v11256_v19 }
 0xab2   : > { %3557 = vrot.lane.b32.xlu0 %v11246_v53, %s7699_s20  ;;  %v7216_v53 = vpop.eup %7215 }
 0xab3   : > { %v7218_v14 = vpop.eup %7217  ;;  %v1621_v39 = vmul.f32 0.0, %v7216_v53 }
 0xab4   : > { %v7220_v27 = vpop.eup %7219  ;;  %v9754_v18 = vmul.f32 0.0, %v7218_v14  ;;  %6593 = vmatpush3.bf16.msra.mxu1 %v6792_v57  ;;  %v3218_v14 = vmul.f32 1.442695, %v3188_v8 }
 0xab5   : > { %v9719_v49 = vpop.xlane.xlu1 %3308  ;;  %v7222_v46 = vpop.eup %7221  ;;  %v3272_v2 = vmul.f32 0.0, %v7220_v27  ;;  %6594 = vmatprep.subr.bf16.mxu1 %v6793_v29 }
 0xab6   : > { %3535 = vrot.lane.b32.xlu0 %v11247_v31, %s7700_s24  ;;  %v11253_v31 = vld [vmem:[#allocation39_spill] sm:$0xff]  ;;  %v9760_v52 = vmul.f32 0.0, %v7222_v46 }
 0xab8   : > { %6595 = vmatpush3.bf16.msra.mxu1 %v6793_v29 }
 0xab9   : > { %v9725_v42 = vpop.xlane.xlu1 %3304  ;;  %6596 = vmatprep.subr.bf16.mxu1 %v6794_v0 }
 0xaba   : > { %3559 = vrot.lane.b32.xlu0 %v11248_v63, %s7699_s20  ;;  %v3184_v63 = vsub.f32 -inf, %v11253_v31 }
 0xabc   : > { %v3210_v13 = vmul.f32 1.442695, %v3184_v63  ;;  %6597 = vmatpush3.bf16.msra.mxu1 %v6794_v0 }
 0xabd   : > { %v3556_v33 = vpop.permute.xlu1 %3555 }
 0xabe   : > { %v9733_v45 = vsel %vm3615_vm1, %v3599_v10, %v3556_v33  ;;  %v3190_v10 = vmul.f32 1.442695, %v3174_v30 }
 0xac0   : > { %7223 = vpow2.f32 %v3190_v10  ;;  %v3208_v10 = vmul.f32 1.442695, %v3183_v56 }
 0xac1   : > { %7225 = vpow2.f32 %v3204_v12  ;;  %v3321_v12 = vadd.f32 %v9696_v55, %v9754_v18  ;;  %v3319_v55 = vadd.f32 %v9700_v9, %v9760_v52 }
 0xac2   : > { %7227 = vpow2.f32 %v3202_v43 }
 0xac3   : > { %7229 = vpow2.f32 %v3200_v35  ;;  %v11257_v35 = vld [vmem:[#allocation64_spill] sm:$0xff] }
 0xac4   : > { %7231 = vpow2.f32 %v3198_v11  ;;  %v3189_v53 = vsub.f32 -inf, %v11257_v35  ;;  %v11258_v11 = vld [vmem:[#allocation22_spill] sm:$0xff] }
 0xac5   : > { %7233 = vpow2.f32 %v3212_v58  ;;  %v3186_v44 = vsub.f32 -inf, %v11258_v11 }
 0xac7   : > { %v3214_v8 = vmul.f32 1.442695, %v3186_v44 }
 0xaca   : > { %v7224_v4 = vpop.eup %7223 }
 0xacb   : > { %v7226_v40 = vpop.eup %7225  ;;  %v3270_v57 = vmul.f32 0.0, %v7224_v4  ;;  %v11259_v4 = vld [vmem:[#allocation62_spill] sm:$0xff] }
 0xacc   : > { %v7228_v63 = vpop.eup %7227  ;;  %v9766_v56 = vmul.f32 0.0, %v7226_v40  ;;  %v1790_v19 = vadd.f32 %v11259_v4, %v1621_v39 }
 0xacd   : > { %v7230_v27 = vpop.eup %7229 }
 0xace   : > { %v9744_v24 = vpop.f32.mrb[64].mxu1  ;;  %v3325_v9 = vadd.f32 %v9707_v20, %v9766_v56  ;;  %v7232_v38 = vpop.eup %7231 }
 0xacf   : > { %v9746_v17 = vpop.f32.mrb[65].mxu1  ;;  %v3274_v44 = vmul.f32 0.0, %v7232_v38 }
 0xad0   : > { %v9749_v33 = vpop.f32.mrb[66].mxu1  ;;  %v3463_v4 = vadd.f32 %v9746_v17, %v3270_v57 }
 0xad1   : > { %v9752_v62 = vpop.f32.mrb[67].mxu1 }
 0xad2   : > { %v3464_v0 = vadd.f32 %v9752_v62, %v9760_v52 }
 0xad4   : > { %v1651_v30 = vpop.xlane.xlu0 %1650 }
 0xad5   : > { %v1669_v47 = vadd.f32 %v1651_v30, %v1621_v39  ;;  %v3187_v30 = vsub.f32 -inf, %v9481_v51  ;;  %v9776_v51 = vmul.f32 0.0, %v7230_v27  ;;  %v3466_v39 = vadd.f32 %v9749_v33, %v9754_v18 }
 0xad6   : > { %v3465_v27 = vadd.f32 %v9744_v24, %v3272_v2 }
 0xad7   : > { %7235 = vrcp.f32 %v1669_v47  ;;  %v3216_v20 = vmul.f32 1.442695, %v3187_v30 }
 0xad8   : > { %7237 = vpow2.f32 %v3210_v13  ;;  %v3291_v43 = vpop.xlane.xlu0 %3290  ;;  %v3220_v13 = vmul.f32 1.442695, %v3189_v53 }
 0xad9   : > { %7239 = vpow2.f32 %v3208_v10  ;;  %v3320_v31 = vadd.f32 %v3291_v43, %v3272_v2  ;;  %v3276_v10 = vmul.f32 0.0, %v7228_v63 }
 0xada   : > { %7241 = vrcp.f32 %v3321_v12  ;;  %v7234_v12 = vpop.eup %7233 }
 0xadb   : > { %7243 = vrcp.f32 %v3320_v31  ;;  %v9784_v11 = vmul.f32 0.0, %v7234_v12 }
 0xadc   : > { %v3287_v58 = vpop.xlane.xlu0 %3286  ;;  %7245 = vpow2.f32 %v3206_v60 }
 0xadd   : > { %v3318_v46 = vadd.f32 %v3287_v58, %v3270_v57  ;;  %7247 = vrcp.f32 %v3319_v55  ;;  %v3323_v55 = vadd.f32 %v9713_v21, %v9776_v51  ;;  %v3329_v21 = vadd.f32 %v9719_v49, %v9784_v11 }
 0xadf   : > { %v9771_v29 = vpop.f32.mrb[68].mxu1  ;;  %7249 = vrcp.f32 %v3318_v46 }
 0xae0   : > { %v9773_v47 = vpop.f32.mrb[69].mxu1  ;;  %7251 = vpow2.f32 %v3218_v14  ;;  %v3299_v40 = vpop.xlane.xlu0 %3298  ;;  %v3469_v57 = vadd.f32 %v9771_v29, %v3276_v10 }
 0xae1   : > { %v6573_v43 = vpop.f32.mrb[70].mxu1  ;;  %v7236_v60 = vpop.eup %7235  ;;  %7253 = vpow2.f32 %v3220_v13  ;;  %v3324_v35 = vadd.f32 %v3299_v40, %v3276_v10  ;;  %v3467_v10 = vadd.f32 %v9773_v47, %v3274_v44 }
 0xae2   : > { %v3419_v53 = vpop.f32.mrb[71].mxu1  ;;  %v7238_v31 = vpop.eup %7237  ;;  %7255 = vrcp.f32 %v3325_v9  ;;  %v9782_v63 = vmul.f32 %v7236_v60, %v1790_v19 }
 0xae3   : > { %v7240_v14 = vpop.eup %7239  ;;  %7257 = vrcp.f32 %v3324_v35  ;;  %v3280_v12 = vmul.f32 0.0, %v7238_v31 }
 0xae4   : > { %v7242_v58 = vpop.eup %7241  ;;  %7259 = vpow2.f32 %v3214_v8  ;;  %v3295_v13 = vpop.xlane.xlu0 %3294  ;;  %v1831_v30 = vpack.c.bf16 %v9782_v63, %v9711_v36  ;;  %v3279_v2 = vmul.f32 0.0, %v7240_v14 }
 0xae5   : > { %v7244_v46 = vpop.eup %7243  ;;  %7261 = vpow2.f32 %v3216_v20  ;;  %v3322_v33 = vadd.f32 %v3295_v13, %v3274_v44  ;;  %v3498_v18 = vmul.f32 %v7242_v58, %v3466_v39 }
 0xae6   : > { %7263 = vrcp.f32 %v3323_v55  ;;  %v3497_v9 = vmul.f32 %v7244_v46, %v3465_v27  ;;  %v7246_v38 = vpop.eup %7245  ;;  %v3327_v20 = vadd.f32 %v9725_v42, %v3279_v2  ;;  %v3470_v55 = vadd.f32 %v6573_v43, %v9766_v56 }
 0xae7   : > { %7265 = vrcp.f32 %v3322_v33  ;;  %v7248_v24 = vpop.eup %7247  ;;  %v3278_v39 = vmul.f32 0.0, %v7246_v38  ;;  %v3468_v43 = vadd.f32 %v3419_v53, %v9776_v51 }
 0xae8   : > { %v3307_v19 = vpop.xlane.xlu0 %3306  ;;  %v3512_v8 = vpack.c.bf16 %v3498_v18, %v3497_v9  ;;  %7267 = vrcp.f32 %v3329_v21  ;;  %v3496_v35 = vmul.f32 %v7248_v24, %v3464_v0 }
 0xae9   : > { %v7250_v40 = vpop.eup %7249  ;;  %v3328_v60 = vadd.f32 %v3307_v19, %v3280_v12 }
 0xaea   : > { %v7252_v49 = vpop.eup %7251  ;;  %3577 = vrot.lane.b32.xlu1 %v3512_v8, %s7698_s17  ;;  %v3495_v52 = vmul.f32 %v7250_v40, %v3463_v4 }
 0xaeb   : > { %v6576_v62 = vpop.f32.mrb[72].mxu1  ;;  %v7254_v31 = vpop.eup %7253  ;;  %7269 = vrcp.f32 %v3328_v60  ;;  %v3284_v8 = vmul.f32 0.0, %v7252_v49 }
 0xaec   : > { %v3432_v14 = vpop.f32.mrb[73].mxu1  ;;  %v7256_v17 = vpop.eup %7255  ;;  %v3511_v13 = vpack.c.bf16 %v3496_v35, %v3495_v52  ;;  %7271 = vrcp.f32 %v3327_v20  ;;  %v3285_v38 = vmul.f32 0.0, %v7254_v31 }
 0xaed   : > { %v6577_v58 = vpop.f32.mrb[74].mxu1  ;;  %v3303_v27 = vpop.xlane.xlu0 %3302  ;;  %v9798_v56 = vmul.f32 %v7256_v17, %v3470_v55  ;;  %v3473_v17 = vadd.f32 %v6576_v62, %v3280_v12 }
 0xaee   : > { %v7258_v46 = vpop.eup %7257  ;;  %v3326_v21 = vadd.f32 %v3303_v27, %v3278_v39  ;;  %v3435_v42 = vpop.f32.mrb[75].mxu1  ;;  %3575 = vrot.lane.b32.xlu1 %v3511_v13, %s7698_s17  ;;  %v3474_v51 = vadd.f32 %v6577_v58, %v9784_v11  ;;  %v3471_v11 = vadd.f32 %v3432_v14, %v3278_v39  ;;  %v11260_v14 = vpack.c.bf16 %v9610_v25, %v9583_v26 }
 0xaef   : > { %v7260_v33 = vpop.eup %7259  ;;  %v3317_v18 = vpop.xlane.xlu1 %3316  ;;  %v9802_v0 = vmul.f32 %v7258_v46, %v3469_v57  ;;  %v11263_v25 = vpack.c.bf16 %v9513_v6, %v9517_v1  ;;  %v11264_v26 = vpack.c.bf16 %v9598_v7, %v9555_v37 }
 0xaf0   : > { %v7262_v9 = vpop.eup %7261  ;;  %7273 = vrcp.f32 %v3326_v21  ;;  %v3333_v53 = vadd.f32 %v3317_v18, %v3285_v38  ;;  %v3282_v52 = vmul.f32 0.0, %v7260_v33 }
 0xaf1   : > { %v7264_v29 = vpop.eup %7263  ;;  %v3315_v24 = vpop.xlane.xlu0 %3314  ;;  %v3514_v4 = vpack.c.bf16 %v9798_v56, %v9802_v0  ;;  %v3283_v55 = vmul.f32 0.0, %v7262_v9  ;;  %v3472_v56 = vadd.f32 %v3435_v42, %v3279_v2 }
 0xaf2   : > { %v7266_v19 = vpop.eup %7265  ;;  %v3500_v40 = vmul.f32 %v7264_v29, %v3468_v43  ;;  %v3332_v57 = vadd.f32 %v3315_v24, %v3284_v8  ;;  %7275 = vrcp.f32 %v3333_v53 }
 0xaf3   : > { %v3313_v60 = vpop.xlane.xlu1 %3312  ;;  %v3499_v20 = vmul.f32 %v7266_v19, %v3467_v10  ;;  %v7268_v35 = vpop.eup %7267 }
 0xaf4   : > { %v3331_v31 = vadd.f32 %v3313_v60, %v3283_v55  ;;  %v3506_v21 = vmul.f32 %v7268_v35, %v3474_v51 }
 0xaf5   : > { %v3311_v27 = vpop.xlane.xlu0 %3310  ;;  %v3513_v47 = vpack.c.bf16 %v3500_v40, %v3499_v20  ;;  %v7270_v44 = vpop.eup %7269 }
 0xaf6   : > { %v3330_v13 = vadd.f32 %v3311_v27, %v3282_v52  ;;  %v3505_v46 = vmul.f32 %v7270_v44, %v3473_v17  ;;  %v7272_v49 = vpop.eup %7271 }
 0xaf7   : > { %v3504_v33 = vmul.f32 %v7272_v49, %v3472_v56 }
 0xaf8   : > { %7277 = vrcp.f32 %v3330_v13  ;;  %v3516_v58 = vpack.c.bf16 %v3506_v21, %v3505_v46 }
 0xaf9   : > { %7279 = vrcp.f32 %v3332_v57  ;;  %v3534_v27 = vpop.permute.xlu0 %3533 }
 0xafa   : > { %v7274_v43 = vpop.eup %7273  ;;  %7281 = vrcp.f32 %v3331_v31 }
 0xafb   : > { %v3503_v18 = vmul.f32 %v7274_v43, %v3471_v11 }
 0xafc   : > { %v7276_v29 = vpop.eup %7275 }
 0xafd   : > { %v3515_v12 = vpack.c.bf16 %v3504_v33, %v3503_v18 }
 0xaff   : > { %v6580_v62 = vpop.f32.mrb[76].mxu1  ;;  %3583 = vrot.lane.b32.xlu0 %v3515_v12, %s7698_s17 }
 0xb00   : > { %v3477_v0 = vadd.f32 %v6580_v62, %v3284_v8  ;;  %v3448_v9 = vpop.f32.mrb[77].mxu1 }
 0xb01   : > { %v3475_v10 = vadd.f32 %v3448_v9, %v3282_v52  ;;  %v6581_v24 = vpop.f32.mrb[78].mxu1  ;;  %v11261_v52 = vpack.c.bf16 %v9631_v48, %v9612_v32  ;;  %v11265_v32 = vld [vmem:[#allocation68_spill] sm:$0xff] }
 0xb02   : > { %v7278_v2 = vpop.eup %7277  ;;  %v3478_v42 = vadd.f32 %v6581_v24, %v3285_v38  ;;  %v3451_v19 = vpop.f32.mrb[79].mxu1  ;;  %v11262_v38 = vld [vmem:[#allocation46_spill] sm:$0xff]  ;;  %v11266_v48 = vpack.c.bf16 %v9620_v3, %v11265_v32 }
 0xb03   : > { %v7280_v40 = vpop.eup %7279  ;;  %v3476_v39 = vadd.f32 %v3451_v19, %v3283_v55  ;;  %3539 = vrot.lane.b32.xlu0 %v11260_v14, %s7700_s24  ;;  %v3507_v20 = vmul.f32 %v7278_v2, %v3475_v10  ;;  %v11269_v3 = vld [vmem:[#allocation38_spill] sm:$0xff] }
 0xb04   : > { %v7282_v51 = vpop.eup %7281  ;;  %v3509_v53 = vmul.f32 %v7280_v40, %v3477_v0  ;;  %v3510_v60 = vmul.f32 %v7276_v29, %v3478_v42  ;;  %v1527_v57 = vsub.f32 -inf, %v11269_v3  ;;  %v3602_v0 = vsel %vm1334_vm0, %v1828_v15, %v3534_v27  ;;  %v11272_v15 = vld [vmem:[#allocation61_spill] sm:$0xff]  ;;  %v1123_v27 = vld [vmem:[%s8000_s6 + $0x10] sm:$0xff] }
 0xb05   : > { %v3508_v35 = vmul.f32 %v7282_v51, %v3476_v39 }
 0xb06   : > { %v3518_v8 = vpack.c.bf16 %v3510_v60, %v3509_v53 }
 0xb07   : > { %v3517_v17 = vpack.c.bf16 %v3508_v35, %v3507_v20  ;;  %3563 = vrot.lane.b32.xlu0 %v11261_v52, %s7699_s20 }
 0xb0b   : > { %3587 = vrot.lane.b32.xlu0 %v3517_v17, %s7698_s17 }
 0xb12   : > { %1652 = vadd.xlane.f32.xlu1 %v11262_v38 }
 0xb23   : > { %3579 = vrot.lane.b32.xlu1 %v3513_v47, %s7698_s17  ;;  %v11270_v47 = vld [vmem:[#allocation32_spill] sm:$0xff] }
 0xb24   : > { %v1526_v44 = vsub.f32 -inf, %v11270_v47 }
 0xb26   : > { %v1556_v13 = vmul.f32 1.442695, %v1526_v44 }
 0xb27   : > { %3581 = vrot.lane.b32.xlu1 %v3514_v4, %s7698_s17  ;;  %v11267_v4 = vld [vmem:[#allocation23_spill] sm:$0xff] }
 0xb28   : > { %v11268_v55 = vpack.c.bf16 %v9641_v5, %v11267_v4  ;;  %v1558_v5 = vmul.f32 1.442695, %v1527_v57 }
 0xb29   : > { %v1655_v31 = vpop.xlane.xlu0 %1654 }
 0xb2a   : > { %7283 = vpow2.f32 %v1558_v5 }
 0xb2b   : > { %3537 = vrot.lane.b32.xlu1 %v11263_v25, %s7700_s24  ;;  %7285 = vpow2.f32 %v1556_v13 }
 0xb2d   : > { %v3558_v46 = vpop.permute.xlu0 %3557 }
 0xb2e   : > { %v3623_v29 = vsel %vm3615_vm1, %v3602_v0, %v3558_v46  ;;  %v1128_v0 = vld [vmem:[%s8000_s6 + $0x38] sm:$0xff] }
 0xb2f   : > { %3561 = vrot.lane.b32.xlu1 %v11264_v26, %s7699_s20  ;;  %v9879_v26 = vld [vmem:[%s10918_s5] ss:$0 sm:$0xff] }
 0xb31   : > { %v3536_v21 = vpop.permute.xlu0 %3535 }
 0xb32   : > { %v3605_v10 = vsel %vm1334_vm0, %v1829_v23, %v3536_v21  ;;  %v1125_v21 = vld [vmem:[%s8000_s6 + $0x20] sm:$0xff] }
 0xb33   : > { %3585 = vrot.lane.b32.xlu1 %v3516_v58, %s7698_s17 }
 0xb34   : > { %v7284_v56 = vpop.eup %7283 }
 0xb35   : > { %v1623_v49 = vmul.f32 0.0, %v7284_v56  ;;  %v3560_v58 = vpop.permute.xlu0 %3559 }
 0xb36   : > { %v3625_v2 = vsel %vm3615_vm1, %v3605_v10, %v3560_v58 }
 0xb37   : > { %3541 = vrot.lane.b32.xlu1 %v11266_v48, %s7700_s24  ;;  %v1671_v11 = vadd.f32 %v1655_v31, %v1623_v49  ;;  %v1792_v40 = vadd.f32 %v11272_v15, %v1623_v49  ;;  %v1121_v48 = vld [vmem:[%s8000_s6] sm:$0xff]  ;;  %v1124_v31 = vld [vmem:[%s8000_s6 + $0x18] sm:$0xff]  ;;  %s10810_s24 = scalar_lea.vmem [#allocation14], %s5763_s14  ;;  %s11385_s14 = sld [smem:[#allocation20_spill]] }
 0xb38   : > { %s5625_s16 = sshll.u32 %s10810_s24, 4  ;;  %s10861_s16 = int_to_ptr.vmem [resolvable:$true] %s5625_s16 }
 0xb39   : > { %7287 = vrcp.f32 %v1671_v11  ;;  %v1126_v11 = vld [vmem:[%s8000_s6 + $0x28] sm:$0xff]  ;;  %p7600_p3 = scmp.lt.s32.totalorder %s10861_s16, %s7598_s13 }
 0xb3b   : > { %3565 = vrot.lane.b32.xlu1 %v11268_v55, %s7699_s20  ;;  %s11370_s20 = sld [smem:[#allocation112_spill]] }
 0xb3d   : > { %s5909_s28 = sshll.u32 %s11385_s14, 11 }
 0xb3f   : > { %3589 = vrot.lane.b32.xlu1 %v3518_v8, %s7698_s17 }
 0xb5c   : > { %v3578_v6 = vpop.permute.xlu1 %3577 }
 0xb5d   : > { %v3637_v7 = vsel %vm3632_vm2, %v9693_v41, %v3578_v6 }
 0xb60   : > { %v3576_v1 = vpop.permute.xlu1 %3575 }
 0xb61   : > { %v3634_v37 = vsel %vm3632_vm2, %v9679_v28, %v3576_v1  ;;  %v7286_v28 = vpop.eup %7285  ;;  %v1122_v1 = vld [vmem:[%s8000_s6 + $0x8] sm:$0xff] }
 0xb62   : > { %6598 = vmatprep.mubr.bf16.mxu1 %v3634_v37  ;;  %v1622_v41 = vmul.f32 0.0, %v7286_v28  ;;  %v7288_v19 = vpop.eup %7287 }
 0xb63   : > { %6599 = vmatmul.mubr.bf16.vlgmr.msra.gmra.mrb[80].mxu1 %v3637_v7  ;;  %v1824_v22 = vmul.f32 %v7288_v19, %v1792_v40  ;;  %v1130_v19 = vld [vmem:[%s8000_s6 + $0x48] sm:$0xff] }
 0xb64   : > { %v1791_v16 = vadd.f32 %v11271_v34, %v1622_v41 }
 0xb71   : > { %v3584_v18 = vpop.permute.xlu0 %3583 }
 0xb75   : > { %v3540_v9 = vpop.permute.xlu0 %3539 }
 0xb76   : > { %v3611_v35 = vsel %vm1334_vm0, %v1831_v30, %v3540_v9 }
 0xb79   : > { %v3564_v51 = vpop.permute.xlu0 %3563 }
 0xb7a   : > { %v3629_v52 = vsel %vm3615_vm1, %v3611_v35, %v3564_v51 }
 0xb7d   : > { %v3588_v60 = vpop.permute.xlu0 %3587 }
 0xb7e   : > { %v3652_v25 = vsel %vm3632_vm2, %v3629_v52, %v3588_v60  ;;  %v1133_v60 = vld [vmem:[%s8000_s6 + $0x60] sm:$0xff] }
 0xb9f   : > { %v1653_v43 = vpop.xlane.xlu1 %1652 }
 0xba0   : > { %v1670_v33 = vadd.f32 %v1653_v43, %v1622_v41 }
 0xba2   : > { %7289 = vrcp.f32 %v1670_v33  ;;  %v1127_v33 = vld [vmem:[%s8000_s6 + $0x30] sm:$0xff] }
 0xba3   : > { %v3580_v12 = vpop.permute.xlu1 %3579 }
 0xba4   : > { %v3640_v62 = vsel %vm3632_vm2, %v9733_v45, %v3580_v12  ;;  %v3646_v45 = vsel %vm3632_vm2, %v3625_v2, %v3584_v18 }
 0xba5   : > { %6602 = vmatprep.mubr.bf16.mxu1 %v3640_v62 }
 0xba7   : > { %v3582_v24 = vpop.permute.xlu1 %3581 }
 0xba8   : > { %v3643_v42 = vsel %vm3632_vm2, %v3623_v29, %v3582_v24  ;;  %v1129_v24 = vld [vmem:[%s8000_s6 + $0x40] sm:$0xff] }
 0xba9   : > { %6603 = vmatmul.mubr.bf16.gmra.mrb[84].mxu1 %v3643_v42 }
 0xbaa   : > { %6606 = vmatprep.mubr.bf16.mxu1 %v3646_v45 }
 0xbab   : > { %v3538_v39 = vpop.permute.xlu1 %3537 }
 0xbac   : > { %v7290_v14 = vpop.eup %7289  ;;  %v3608_v20 = vsel %vm1334_vm0, %v1830_v54, %v3538_v39  ;;  %v1131_v39 = vld [vmem:[%s8000_s6 + $0x50] sm:$0xff] }
 0xbad   : > { %v1823_v50 = vmul.f32 %v7290_v14, %v1791_v16 }
 0xbaf   : > { %v3562_v23 = vpop.permute.xlu1 %3561  ;;  %v1832_v53 = vpack.c.bf16 %v1824_v22, %v1823_v50  ;;  %v1132_v50 = vld [vmem:[%s8000_s6 + $0x58] sm:$0xff] }
 0xbb0   : > { %v3627_v8 = vsel %vm3615_vm1, %v3608_v20, %v3562_v23 }
 0xbb3   : > { %v3586_v17 = vpop.permute.xlu1 %3585 }
 0xbb4   : > { %v3649_v38 = vsel %vm3632_vm2, %v3627_v8, %v3586_v17  ;;  %v1134_v17 = vld [vmem:[%s8000_s6 + $0x68] sm:$0xff] }
 0xbb5   : > { %6607 = vmatmul.mubr.bf16.gmra.mrb[88].mxu1 %v3649_v38 }
 0xbb6   : > { %6610 = vmatprep.mubr.bf16.mxu1 %v3652_v25 }
 0xbb7   : > { %v3542_v61 = vpop.permute.xlu1 %3541 }
 0xbb8   : > { %v3614_v54 = vsel %vm1334_vm0, %v1832_v53, %v3542_v61 }
 0xbbb   : > { %v3566_v59 = vpop.permute.xlu1 %3565 }
 0xbbc   : > { %v3631_v36 = vsel %vm3615_vm1, %v3614_v54, %v3566_v59  ;;  %v1135_v59 = vld [vmem:[%s8000_s6 + $0x70] sm:$0xff] }
 0xbbf   : > { %v3590_v63 = vpop.permute.xlu1 %3589 }
 0xbc0   : > { %v3655_v30 = vsel %vm3632_vm2, %v3631_v36, %v3590_v63  ;;  %v1136_v63 = vld [vmem:[%s8000_s6 + $0x78] sm:$0xff]  ;;  %s11290_s6 = sld [smem:[#allocation110_spill]] }
 0xbc1   : > { %6611 = vmatmul.mubr.bf16.gmra.mrb[92].mxu1 %v3655_v30 }
 0xc36   : > { %v6600_v32 = vpop.f32.mrb[80].mxu1 }
 0xc37   : > { %v3762_v4 = vpop.f32.mrb[81].mxu1  ;;  %v3771_v7 = vadd.f32 %v6600_v32, %v9879_v26 }
 0xc38   : > { %v3763_v55 = vadd.f32 %v9879_v26, %v3762_v4  ;;  %v6601_v6 = vpop.f32.mrb[82].mxu1  ;;  %v6797_v4 = vld [vmem:[#allocation11 + $0x4] ss:$16 sps:$4 sm:$0xff]  }
 0xc39   : > { %v3765_v37 = vpop.f32.mrb[83].mxu1  ;;  %v9892_v44 = vadd.f32 %v3771_v7, %v1123_v27  ;;  %v3774_v5 = vadd.f32 %v6601_v6, %v9879_v26  ;;  %v6800_v6 = vld [vmem:[#allocation11 + $0xc] ss:$16 sps:$4 sm:$0xff]   ;;  %4286 = vmatprep.subr.bf16.mxu0 %v6797_v4  ;;  %v6804_v7 = vld [vmem:[#allocation11 + $0x28] ss:$16 sps:$4 sm:$0xff]  }
 0xc3a   : > { %v9885_v3 = vadd.f32 %v3763_v55, %v1121_v48  ;;  %v3766_v57 = vadd.f32 %v9879_v26, %v3765_v37  ;;  %v6795_v48 = vld [vmem:[#allocation11] ss:$16 sps:$4 sm:$0xff]   ;;  %v6798_v55 = vld [vmem:[#allocation11 + $0x8] ss:$16 sps:$4 sm:$0xff]   ;;  %4399 = vmatprep.subr.bf16.mxu1 %v6800_v6 }
 0xc3b   : > { %11275 = vst [vmem:[#allocation77_spill] sm:$0xff] %v9892_v44  ;;  %v9898_v13 = vadd.f32 %v3774_v5, %v1124_v31  ;;  %4287 = vmatpush1.bf16.msra.mxu0 %v6795_v48  ;;  %v6801_v37 = vld [vmem:[#allocation11 + $0x20] ss:$16 sps:$4 sm:$0xff]   ;;  %4400 = vmatpush1.bf16.msra.mxu1 %v6798_v55  ;;  %v7701_v48 = vmov 0  }
 0xc3c   : > { %11273 = vst [vmem:[#allocation78_spill] sm:$0xff] %v9885_v3  ;;  %v9889_v47 = vadd.f32 %v3766_v57, %v1122_v1  ;;  %3843 = vadd.xlane.f32.xlu0 %v9885_v3  ;;  %v6806_v1 = vld [vmem:[#allocation11 + $0x2c] ss:$16 sps:$4 sm:$0xff]   ;;  %4318 = vmatprep.mubr.bf16.mxu0 %v7701_v48 }
 0xc3d   : > { %11276 = vst [vmem:[#allocation70_spill] sm:$0xff] %v9898_v13  ;;  %4401 = vmatprep.subr.bf16.mxu1 %v6806_v1  ;;  %4431 = vmatprep.mubr.bf16.mxu1 %v7701_v48 }
 0xc3e   : > { %11274 = vst [vmem:[#allocation24_spill] sm:$0xff] %v9889_v47  ;;  %3845 = vadd.xlane.f32.xlu1 %v9889_v47 }
 0xc3f   : > { %4402 = vmatpush1.bf16.msra.mxu1 %v6804_v7 }
 0xc40   : > { %3847 = vadd.xlane.f32.xlu0 %v9892_v44 }
 0xc44   : > { %3849 = vadd.xlane.f32.xlu0 %v9898_v13 }
 0xc7c   : > { %v6604_v46 = vpop.f32.mrb[84].mxu1 }
 0xc7d   : > { %v3778_v56 = vpop.f32.mrb[85].mxu1  ;;  %v3787_v41 = vadd.f32 %v6604_v46, %v9879_v26 }
 0xc7e   : > { %v3779_v49 = vadd.f32 %v9879_v26, %v3778_v56  ;;  %v6605_v28 = vpop.f32.mrb[86].mxu1 }
 0xc7f   : > { %v3781_v58 = vpop.f32.mrb[87].mxu1  ;;  %v3790_v12 = vadd.f32 %v6605_v28, %v9879_v26  ;;  %v9914_v9 = vadd.f32 %v3787_v41, %v1127_v33 }
 0xc80   : > { %v9905_v43 = vadd.f32 %v3779_v49, %v1125_v21  ;;  %v3782_v18 = vadd.f32 %v9879_v26, %v3781_v58 }
 0xc81   : > { %11279 = vst [vmem:[#allocation72_spill] sm:$0xff] %v9914_v9  ;;  %v9917_v29 = vadd.f32 %v3790_v12, %v1128_v0 }
 0xc82   : > { %11277 = vst [vmem:[#allocation69_spill] sm:$0xff] %v9905_v43  ;;  %v9910_v62 = vadd.f32 %v3782_v18, %v1126_v11  ;;  %3851 = vadd.xlane.f32.xlu0 %v9905_v43 }
 0xc83   : > { %11280 = vst [vmem:[#allocation75_spill] sm:$0xff] %v9917_v29 }
 0xc84   : > { %11278 = vst [vmem:[#allocation71_spill] sm:$0xff] %v9910_v62  ;;  %3853 = vadd.xlane.f32.xlu1 %v9910_v62 }
 0xc86   : > { %3855 = vadd.xlane.f32.xlu0 %v9914_v9 }
 0xc88   : > { %3857 = vadd.xlane.f32.xlu1 %v9917_v29  ;;  %v6608_v10 = vpop.f32.mrb[88].mxu1 }
 0xc89   : > { %v3794_v2 = vpop.f32.mrb[89].mxu1  ;;  %v3803_v16 = vadd.f32 %v6608_v10, %v9879_v26  ;;  %v6809_v10 = vld [vmem:[#allocation11 + $0x44] ss:$16 sps:$4 sm:$0xff]  }
 0xc8a   : > { %v3795_v42 = vadd.f32 %v9879_v26, %v3794_v2  ;;  %v6609_v45 = vpop.f32.mrb[90].mxu1  ;;  %v6807_v2 = vld [vmem:[#allocation11 + $0x40] ss:$16 sps:$4 sm:$0xff]  }
 0xc8b   : > { %v3797_v34 = vpop.f32.mrb[91].mxu1  ;;  %v3806_v14 = vadd.f32 %v6609_v45, %v9879_v26  ;;  %v9934_v22 = vadd.f32 %v3803_v16, %v1131_v39  ;;  %v6815_v45 = vld [vmem:[#allocation11 + $0x64] ss:$16 sps:$4 sm:$0xff]   ;;  %v6816_v16 = vld [vmem:[#allocation11 + $0x68] ss:$16 sps:$4 sm:$0xff]  }
 0xc8c   : > { %v9925_v15 = vadd.f32 %v3795_v42, %v1129_v24  ;;  %v3798_v40 = vadd.f32 %v9879_v26, %v3797_v34  ;;  %v6812_v24 = vld [vmem:[#allocation11 + $0x4c] ss:$16 sps:$4 sm:$0xff]   ;;  %v6810_v42 = vld [vmem:[#allocation11 + $0x48] ss:$16 sps:$4 sm:$0xff]   ;;  %v6813_v34 = vld [vmem:[#allocation11 + $0x60] ss:$16 sps:$4 sm:$0xff]  }
 0xc8d   : > { %11283 = vst [vmem:[#allocation82_spill] sm:$0xff] %v9934_v22  ;;  %v9937_v23 = vadd.f32 %v3806_v14, %v1132_v50  ;;  %4403 = vmatprep.subr.bf16.mxu1 %v6812_v24  ;;  %v6824_v39 = vld [vmem:[#allocation11 + $0x8c] ss:$16 sps:$4 sm:$0xff]   ;;  %v6819_v14 = vld [vmem:[#allocation11 + $0x80] ss:$16 sps:$4 sm:$0xff]  }
 0xc8e   : > { %11281 = vst [vmem:[#allocation73_spill] sm:$0xff] %v9925_v15  ;;  %v9930_v51 = vadd.f32 %v3798_v40, %v1130_v19  ;;  %3859 = vadd.xlane.f32.xlu0 %v9925_v15  ;;  %4404 = vmatpush1.bf16.msra.mxu1 %v6810_v42  ;;  %v6818_v19 = vld [vmem:[#allocation11 + $0x6c] ss:$16 sps:$4 sm:$0xff]   ;;  %v6821_v40 = vld [vmem:[#allocation11 + $0x84] ss:$16 sps:$4 sm:$0xff]  }
 0xc8f   : > { %11284 = vst [vmem:[#allocation74_spill] sm:$0xff] %v9937_v23  ;;  %4405 = vmatprep.subr.bf16.mxu1 %v6818_v19  ;;  %v6822_v50 = vld [vmem:[#allocation11 + $0x88] ss:$16 sps:$4 sm:$0xff]  }
 0xc90   : > { %11282 = vst [vmem:[#allocation80_spill] sm:$0xff] %v9930_v51  ;;  %3861 = vadd.xlane.f32.xlu1 %v9930_v51 }
 0xc92   : > { %3863 = vadd.xlane.f32.xlu0 %v9934_v22  ;;  %4406 = vmatpush1.bf16.msra.mxu1 %v6816_v16 }
 0xc93   : > { %4407 = vmatprep.subr.bf16.mxu1 %v6824_v39 }
 0xc94   : > { %3865 = vadd.xlane.f32.xlu1 %v9937_v23  ;;  %v6612_v53 = vpop.f32.mrb[92].mxu1 }
 0xc95   : > { %v3810_v20 = vpop.f32.mrb[93].mxu1  ;;  %v3819_v38 = vadd.f32 %v6612_v53, %v9879_v26  ;;  %v6827_v53 = vld [vmem:[#allocation11 + $0xa4] ss:$16 sps:$4 sm:$0xff]  }
 0xc96   : > { %v3811_v35 = vadd.f32 %v9879_v26, %v3810_v20  ;;  %v6613_v8 = vpop.f32.mrb[94].mxu1  ;;  %4408 = vmatpush1.bf16.msra.mxu1 %v6822_v50  ;;  %v6825_v20 = vld [vmem:[#allocation11 + $0xa0] ss:$16 sps:$4 sm:$0xff]  }
 0xc97   : > { %v3813_v52 = vpop.f32.mrb[95].mxu1  ;;  %v3822_v54 = vadd.f32 %v6613_v8, %v9879_v26  ;;  %v9954_v30 = vadd.f32 %v3819_v38, %v1135_v59  ;;  %v6833_v8 = vld [vmem:[#allocation11 + $0xc4] ss:$16 sps:$4 sm:$0xff]   ;;  %v6834_v38 = vld [vmem:[#allocation11 + $0xc8] ss:$16 sps:$4 sm:$0xff]  }
 0xc98   : > { %v9945_v25 = vadd.f32 %v3811_v35, %v1133_v60  ;;  %v3814_v61 = vadd.f32 %v9879_v26, %v3813_v52  ;;  %v6803_v26 = vld [vmem:[#allocation11 + $0x24] ss:$16 sps:$4 sm:$0xff]   ;;  %v6830_v60 = vld [vmem:[#allocation11 + $0xac] ss:$16 sps:$4 sm:$0xff]   ;;  %v6828_v35 = vld [vmem:[#allocation11 + $0xa8] ss:$16 sps:$4 sm:$0xff]  }
 0xc99   : > { %11287 = vst [vmem:[#allocation76_spill] sm:$0xff] %v9954_v30  ;;  %v9957_v32 = vadd.f32 %v3822_v54, %v1136_v63  ;;  %4288 = vmatprep.subr.bf16.mxu0 %v6803_v26  ;;  %4409 = vmatprep.subr.bf16.mxu1 %v6830_v60  ;;  %v6831_v52 = vld [vmem:[#allocation11 + $0xc0] ss:$16 sps:$4 sm:$0xff]   ;;  %v6839_v59 = vld [vmem:[#allocation11 + $0xe4] ss:$16 sps:$4 sm:$0xff]  }
 0xc9a   : > { %11285 = vst [vmem:[#allocation91_spill] sm:$0xff] %v9945_v25  ;;  %v9950_v36 = vadd.f32 %v3814_v61, %v1134_v17  ;;  %3867 = vadd.xlane.f32.xlu0 %v9945_v25  ;;  %4289 = vmatpush1.bf16.msra.mxu0 %v6801_v37  ;;  %v6836_v17 = vld [vmem:[#allocation11 + $0xcc] ss:$16 sps:$4 sm:$0xff]   ;;  %v6837_v61 = vld [vmem:[#allocation11 + $0xe0] ss:$16 sps:$4 sm:$0xff]  }
 0xc9b   : > { %11288 = vst [vmem:[#allocation79_spill] sm:$0xff] %v9957_v32  ;;  %4290 = vmatprep.subr.bf16.mxu0 %v6809_v10  ;;  %4410 = vmatpush1.bf16.msra.mxu1 %v6828_v35  ;;  %v6840_v54 = vld [vmem:[#allocation11 + $0xe8] ss:$16 sps:$4 sm:$0xff]   ;;  %v6842_v63 = vld [vmem:[#allocation11 + $0xec] ss:$16 sps:$4 sm:$0xff]  }
 0xc9c   : > { %11286 = vst [vmem:[#allocation93_spill] sm:$0xff] %v9950_v36  ;;  %3869 = vadd.xlane.f32.xlu1 %v9950_v36  ;;  %4411 = vmatprep.subr.bf16.mxu1 %v6836_v17 }
 0xc9e   : > { %3871 = vadd.xlane.f32.xlu0 %v9954_v30  ;;  %4291 = vmatpush1.bf16.msra.mxu0 %v6807_v2 }
 0xc9f   : > { %4292 = vmatprep.subr.bf16.mxu0 %v6815_v45  ;;  %4412 = vmatpush1.bf16.msra.mxu1 %v6834_v38 }
 0xca0   : > { %3873 = vadd.xlane.f32.xlu1 %v9957_v32  ;;  %4413 = vmatprep.subr.bf16.mxu1 %v6842_v63 }
 0xca2   : > { %4293 = vmatpush1.bf16.msra.mxu0 %v6813_v34 }
 0xca3   : > { %4294 = vmatprep.subr.bf16.mxu0 %v6821_v40  ;;  %4414 = vmatpush1.bf16.msra.mxu1 %v6840_v54 }
 0xca6   : > { %4295 = vmatpush1.bf16.msra.mxu0 %v6819_v14 }
 0xca7   : > { %4296 = vmatprep.subr.bf16.mxu0 %v6827_v53 }
 0xcaa   : > { %4297 = vmatpush1.bf16.msra.mxu0 %v6825_v20 }
 0xcab   : > { %4298 = vmatprep.subr.bf16.mxu0 %v6833_v8 }
 0xcae   : > { %4299 = vmatpush1.bf16.msra.mxu0 %v6831_v52 }
 0xcaf   : > { %4300 = vmatprep.subr.bf16.mxu0 %v6839_v59 }
 0xcb2   : > { %4301 = vmatpush1.bf16.msra.mxu0 %v6837_v61 }
 0xcc9   : > { %v3844_v57 = vpop.xlane.xlu0 %3843 }
 0xcca   : > { %v3876_v27 = vmul.f32 0.0078125, %v3844_v57 }
 0xccb   : > { %v3846_v5 = vpop.xlane.xlu1 %3845 }
 0xccc   : > { %v9962_v31 = vsub.f32 %v9885_v3, %v3876_v27  ;;  %v3877_v46 = vmul.f32 0.0078125, %v3846_v5 }
 0xccd   : > { %v3848_v21 = vpop.xlane.xlu0 %3847 }
 0xcce   : > { %v9965_v56 = vsub.f32 %v9889_v47, %v3877_v46  ;;  %v3878_v49 = vmul.f32 0.0078125, %v3848_v21  ;;  %v3908_v28 = vmul.f32 %v9962_v31, %v9962_v31 }
 0xcd0   : > { %v9970_v11 = vsub.f32 %v9892_v44, %v3878_v49  ;;  %3924 = vadd.xlane.f32.xlu0 %v3908_v28  ;;  %v3909_v58 = vmul.f32 %v9965_v56, %v9965_v56 }
 0xcd1   : > { %v3850_v41 = vpop.xlane.xlu0 %3849 }
 0xcd2   : > { %v3879_v18 = vmul.f32 0.0078125, %v3850_v41  ;;  %3926 = vadd.xlane.f32.xlu1 %v3909_v58  ;;  %v3910_v33 = vmul.f32 %v9970_v11, %v9970_v11 }
 0xcd4   : > { %v9977_v12 = vsub.f32 %v9898_v13, %v3879_v18  ;;  %3928 = vadd.xlane.f32.xlu0 %v3910_v33 }
 0xcd6   : > { %v3911_v0 = vmul.f32 %v9977_v12, %v9977_v12 }
 0xcd8   : > { %3930 = vadd.xlane.f32.xlu1 %v3911_v0 }
 0xd0f   : > { %v3852_v4 = vpop.xlane.xlu0 %3851 }
 0xd10   : > { %v3880_v55 = vmul.f32 0.0078125, %v3852_v4 }
 0xd11   : > { %v3854_v6 = vpop.xlane.xlu1 %3853 }
 0xd12   : > { %v9984_v26 = vsub.f32 %v9905_v43, %v3880_v55  ;;  %v3881_v1 = vmul.f32 0.0078125, %v3854_v6 }
 0xd13   : > { %v3856_v37 = vpop.xlane.xlu0 %3855 }
 0xd14   : > { %v9987_v7 = vsub.f32 %v9910_v62, %v3881_v1  ;;  %v3882_v57 = vmul.f32 0.0078125, %v3856_v37  ;;  %v3912_v27 = vmul.f32 %v9984_v26, %v9984_v26 }
 0xd15   : > { %v3858_v5 = vpop.xlane.xlu1 %3857 }
 0xd16   : > { %v9992_v46 = vsub.f32 %v9914_v9, %v3882_v57  ;;  %v3883_v21 = vmul.f32 0.0078125, %v3858_v5  ;;  %3932 = vadd.xlane.f32.xlu0 %v3912_v27  ;;  %v3913_v49 = vmul.f32 %v9987_v7, %v9987_v7 }
 0xd18   : > { %v9997_v28 = vsub.f32 %v9917_v29, %v3883_v21  ;;  %3934 = vadd.xlane.f32.xlu1 %v3913_v49  ;;  %v3914_v58 = vmul.f32 %v9992_v46, %v9992_v46 }
 0xd1a   : > { %3936 = vadd.xlane.f32.xlu0 %v3914_v58  ;;  %v3915_v41 = vmul.f32 %v9997_v28, %v9997_v28 }
 0xd1b   : > { %v3860_v18 = vpop.xlane.xlu0 %3859 }
 0xd1c   : > { %v3884_v33 = vmul.f32 0.0078125, %v3860_v18  ;;  %3938 = vadd.xlane.f32.xlu1 %v3915_v41 }
 0xd1d   : > { %v3862_v0 = vpop.xlane.xlu1 %3861 }
 0xd1e   : > { %v10004_v10 = vsub.f32 %v9925_v15, %v3884_v33  ;;  %v3885_v24 = vmul.f32 0.0078125, %v3862_v0 }
 0xd1f   : > { %v3864_v2 = vpop.xlane.xlu0 %3863 }
 0xd20   : > { %v10007_v42 = vsub.f32 %v9930_v51, %v3885_v24  ;;  %v3886_v45 = vmul.f32 0.0078125, %v3864_v2  ;;  %v3916_v19 = vmul.f32 %v10004_v10, %v10004_v10 }
 0xd21   : > { %v3866_v34 = vpop.xlane.xlu1 %3865 }
 0xd22   : > { %v10012_v16 = vsub.f32 %v9934_v22, %v3886_v45  ;;  %v3887_v40 = vmul.f32 0.0078125, %v3866_v34  ;;  %3940 = vadd.xlane.f32.xlu0 %v3916_v19  ;;  %v3917_v39 = vmul.f32 %v10007_v42, %v10007_v42  ;;  %v10046_v19 = vld [vmem:[%s11289_s3] ss:$0 sm:$0xff]  ;;  %s11387_s3 = sld [smem:[#allocation113_spill]] }
 0xd24   : > { %v10017_v14 = vsub.f32 %v9937_v23, %v3887_v40  ;;  %3942 = vadd.xlane.f32.xlu1 %v3917_v39  ;;  %v3918_v50 = vmul.f32 %v10012_v16, %v10012_v16 }
 0xd26   : > { %3944 = vadd.xlane.f32.xlu0 %v3918_v50  ;;  %v3919_v53 = vmul.f32 %v10017_v14, %v10017_v14 }
 0xd27   : > { %v3868_v60 = vpop.xlane.xlu0 %3867 }
 0xd28   : > { %v3888_v20 = vmul.f32 0.0078125, %v3868_v60  ;;  %3946 = vadd.xlane.f32.xlu1 %v3919_v53  ;;  %v10054_v60 = vld [vmem:[%s11290_s6] ss:$0 sm:$0xff]  ;;  %s10859_s9 = scalar_lea.hbm %s11387_s3, %s5909_s28  ;;  %s7593_s6 = scalar_lea.vmem %s10861_s16, 2048 }
 0xd29   : > { %v3870_v35 = vpop.xlane.xlu1 %3869  ;;  %p7594_p8 = scmp.ne.s32.totalorder %s10861_s16, %s7593_s6 }
 0xd2a   : > { %v10024_v8 = vsub.f32 %v9945_v25, %v3888_v20  ;;  %v3889_v17 = vmul.f32 0.0078125, %v3870_v35 }
 0xd2b   : > { %v3872_v52 = vpop.xlane.xlu0 %3871  ;;  %p7595_p6 = pnand %p7594_p8, %p7939_p5 }
 0xd2c   : > { %v10027_v38 = vsub.f32 %v9950_v36, %v3889_v17  ;;  %v3890_v61 = vmul.f32 0.0078125, %v3872_v52  ;;  %v3920_v59 = vmul.f32 %v10024_v8, %v10024_v8 }
 0xd2d   : > { %v3874_v54 = vpop.xlane.xlu1 %3873  ;;  %p7596_p10 = pneg %p7595_p6 }
 0xd2e   : > { %v10032_v63 = vsub.f32 %v9954_v30, %v3890_v61  ;;  %v3891_v4 = vmul.f32 0.0078125, %v3874_v54  ;;  %3948 = vadd.xlane.f32.xlu0 %v3920_v59  ;;  %v3921_v55 = vmul.f32 %v10027_v38, %v10027_v38 }
 0xd30   : > { %v10037_v6 = vsub.f32 %v9957_v32, %v3891_v4  ;;  %3950 = vadd.xlane.f32.xlu1 %v3921_v55  ;;  %v3922_v1 = vmul.f32 %v10032_v63, %v10032_v63 }
 0xd32   : > { %3952 = vadd.xlane.f32.xlu0 %v3922_v1  ;;  %v3923_v37 = vmul.f32 %v10037_v6, %v10037_v6 }
 0xd34   : > { %3954 = vadd.xlane.f32.xlu1 %v3923_v37 }
 0xd5d   : > { %v3925_v57 = vpop.xlane.xlu0 %3924 }
 0xd5e   : > { %v3956_v27 = vmul.f32 0.0078125, %v3925_v57 }
 0xd5f   : > { %v3927_v5 = vpop.xlane.xlu1 %3926 }
 0xd60   : > { %v3972_v21 = vadd.f32 1e-05, %v3956_v27  ;;  %v3957_v49 = vmul.f32 0.0078125, %v3927_v5 }
 0xd61   : > { %v3929_v58 = vpop.xlane.xlu0 %3928 }
 0xd62   : > { %7291 = vrsqrt.f32 %v3972_v21  ;;  %v3973_v41 = vadd.f32 1e-05, %v3957_v49  ;;  %v3958_v18 = vmul.f32 0.0078125, %v3929_v58 }
 0xd64   : > { %7293 = vrsqrt.f32 %v3973_v41  ;;  %v3974_v33 = vadd.f32 1e-05, %v3958_v18 }
 0xd65   : > { %v3931_v0 = vpop.xlane.xlu1 %3930 }
 0xd66   : > { %7295 = vrsqrt.f32 %v3974_v33  ;;  %v3959_v24 = vmul.f32 0.0078125, %v3931_v0 }
 0xd68   : > { %v3975_v2 = vadd.f32 1e-05, %v3959_v24 }
 0xd6a   : > { %7297 = vrsqrt.f32 %v3975_v2 }
 0xd6c   : > { %v7292_v45 = vpop.eup %7291 }
 0xd6d   : > { %v4004_v34 = vmul.f32 %v7292_v45, %v9962_v31 }
 0xd6e   : > { %v7294_v40 = vpop.eup %7293 }
 0xd6f   : > { %v4026_v39 = vmul.f32 %v10046_v19, %v4004_v34  ;;  %v4005_v50 = vmul.f32 %v7294_v40, %v9965_v56 }
 0xd70   : > { %v7296_v53 = vpop.eup %7295 }
 0xd71   : > { %v4027_v20 = vmul.f32 %v10046_v19, %v4005_v50  ;;  %v4048_v35 = vadd.f32 %v10054_v60, %v4026_v39  ;;  %v4006_v52 = vmul.f32 %v7296_v53, %v9970_v11 }
 0xd73   : > { %v4049_v17 = vadd.f32 %v10054_v60, %v4027_v20  ;;  %v4028_v56 = vmul.f32 %v10046_v19, %v4006_v52 }
 0xd74   : > { %v7298_v31 = vpop.eup %7297 }
 0xd75   : > { %v4064_v61 = vpack.c.bf16 %v4049_v17, %v4048_v35  ;;  %v4007_v59 = vmul.f32 %v7298_v31, %v9977_v12  ;;  %v4050_v55 = vadd.f32 %v10054_v60, %v4028_v56 }
 0xd77   : > { %4319 = vmatmul.mubr.bf16.vlgmr.msra.gmra.mrb[96].mxu0 %v4064_v61  ;;  %4432 = vmatmul.mubr.bf16.vlgmr.msra.gmra.mrb[96].mxu1 %v4064_v61  ;;  %v4029_v54 = vmul.f32 %v10046_v19, %v4007_v59 }
 0xd78   : > { %4328 = vmatprep.mubr.bf16.mxu0 %v7701_v48  ;;  %4441 = vmatprep.mubr.bf16.mxu1 %v7701_v48 }
 0xd79   : > { %v4051_v4 = vadd.f32 %v10054_v60, %v4029_v54 }
 0xd7b   : > { %v4065_v1 = vpack.c.bf16 %v4051_v4, %v4050_v55 }
 0xd7f   : > { %4329 = vmatmul.mubr.bf16.gmra.mrb[100].mxu0 %v4065_v1  ;;  %4442 = vmatmul.mubr.bf16.gmra.mrb[100].mxu1 %v4065_v1 }
 0xd80   : > { %4338 = vmatprep.mubr.bf16.mxu0 %v7701_v48  ;;  %4451 = vmatprep.mubr.bf16.mxu1 %v7701_v48 }
 0xda3   : > { %v3933_v11 = vpop.xlane.xlu0 %3932 }
 0xda4   : > { %v3960_v12 = vmul.f32 0.0078125, %v3933_v11 }
 0xda5   : > { %v3935_v37 = vpop.xlane.xlu1 %3934 }
 0xda6   : > { %v3976_v57 = vadd.f32 1e-05, %v3960_v12  ;;  %v3961_v27 = vmul.f32 0.0078125, %v3935_v37 }
 0xda7   : > { %v3937_v5 = vpop.xlane.xlu0 %3936 }
 0xda8   : > { %7299 = vrsqrt.f32 %v3976_v57  ;;  %v3977_v21 = vadd.f32 1e-05, %v3961_v27  ;;  %v3962_v49 = vmul.f32 0.0078125, %v3937_v5 }
 0xda9   : > { %v3939_v58 = vpop.xlane.xlu1 %3938 }
 0xdaa   : > { %7301 = vrsqrt.f32 %v3977_v21  ;;  %v3978_v41 = vadd.f32 1e-05, %v3962_v49  ;;  %v3963_v18 = vmul.f32 0.0078125, %v3939_v58 }
 0xdac   : > { %7303 = vrsqrt.f32 %v3978_v41  ;;  %v3979_v33 = vadd.f32 1e-05, %v3963_v18 }
 0xdae   : > { %7305 = vrsqrt.f32 %v3979_v33 }
 0xdaf   : > { %v3941_v0 = vpop.xlane.xlu0 %3940 }
 0xdb0   : > { %v3964_v24 = vmul.f32 0.0078125, %v3941_v0 }
 0xdb1   : > { %v3943_v2 = vpop.xlane.xlu1 %3942 }
 0xdb2   : > { %v7300_v45 = vpop.eup %7299  ;;  %v3980_v34 = vadd.f32 1e-05, %v3964_v24  ;;  %v3965_v40 = vmul.f32 0.0078125, %v3943_v2 }
 0xdb3   : > { %v3945_v39 = vpop.xlane.xlu0 %3944  ;;  %v4008_v50 = vmul.f32 %v7300_v45, %v9984_v26 }
 0xdb4   : > { %v7302_v53 = vpop.eup %7301  ;;  %7307 = vrsqrt.f32 %v3980_v34  ;;  %v3981_v20 = vadd.f32 1e-05, %v3965_v40  ;;  %v3966_v35 = vmul.f32 0.0078125, %v3945_v39 }
 0xdb5   : > { %v3947_v17 = vpop.xlane.xlu1 %3946  ;;  %v4009_v52 = vmul.f32 %v7302_v53, %v9987_v7  ;;  %v4030_v31 = vmul.f32 %v10046_v19, %v4008_v50 }
 0xdb6   : > { %v7304_v61 = vpop.eup %7303  ;;  %7309 = vrsqrt.f32 %v3981_v20  ;;  %v3967_v59 = vmul.f32 0.0078125, %v3947_v17  ;;  %v3982_v4 = vadd.f32 1e-05, %v3966_v35 }
 0xdb7   : > { %v4031_v56 = vmul.f32 %v10046_v19, %v4009_v52  ;;  %v4052_v1 = vadd.f32 %v10054_v60, %v4030_v31  ;;  %v4010_v11 = vmul.f32 %v7304_v61, %v9992_v46 }
 0xdb8   : > { %v7306_v54 = vpop.eup %7305  ;;  %v3983_v55 = vadd.f32 1e-05, %v3967_v59 }
 0xdb9   : > { %v4053_v26 = vadd.f32 %v10054_v60, %v4031_v56  ;;  %v4011_v12 = vmul.f32 %v7306_v54, %v9997_v28  ;;  %v4032_v21 = vmul.f32 %v10046_v19, %v4010_v11  ;;  %v6846_v11 = vld [vmem:[#allocation13 + $0x80] sm:$0xff]  }
 0xdba   : > { %7311 = vrsqrt.f32 %v3983_v55  ;;  %v6844_v55 = vld [vmem:[#allocation13 + $0xc0] sm:$0xff]  }
 0xdbb   : > { %v3949_v7 = vpop.xlane.xlu0 %3948  ;;  %v4066_v37 = vpack.c.bf16 %v4053_v26, %v4052_v1  ;;  %v4033_v57 = vmul.f32 %v10046_v19, %v4011_v12  ;;  %7313 = vrsqrt.f32 %v3982_v4  ;;  %v4054_v24 = vadd.f32 %v10054_v60, %v4032_v21  ;;  %v6843_v4 = vld [vmem:[#allocation13 + $0x40] sm:$0xff]   ;;  %6166 = vmatprep.subr.bf16.mxu1 %v6844_v55  ;;  %v6850_v21 = vld [vmem:[#allocation13 + $0x88] sm:$0xff]   ;;  %v6871_v55 = vld [vmem:[#allocation13 + $0x78] sm:$0xff]  }
 0xdbc   : > { %v3968_v27 = vmul.f32 0.0078125, %v3949_v7  ;;  %6102 = vmatprep.subr.bf16.mxu0 %v6843_v4  ;;  %6167 = vmatpush3.bf16.msra.mxu1 %v6846_v11  ;;  %v6870_v4 = vld [vmem:[#allocation13 + $0xb0] sm:$0xff]   ;;  %v4106_v11 = vlaneseq }
 0xdbd   : > { %v3951_v5 = vpop.xlane.xlu1 %3950  ;;  %4339 = vmatmul.mubr.bf16.gmra.mrb[104].mxu0 %v4066_v37  ;;  %4452 = vmatmul.mubr.bf16.gmra.mrb[104].mxu1 %v4066_v37  ;;  %v4055_v46 = vadd.f32 %v10054_v60, %v4033_v57  ;;  %v6847_v57 = vld [vmem:[#allocation13 + $0x48] sm:$0xff]  }
 0xdbe   : > { %v7308_v49 = vpop.eup %7307  ;;  %v3969_v58 = vmul.f32 0.0078125, %v3951_v5  ;;  %4348 = vmatprep.mubr.bf16.mxu0 %v7701_v48  ;;  %4461 = vmatprep.mubr.bf16.mxu1 %v7701_v48  ;;  %v3984_v41 = vadd.f32 1e-05, %v3968_v27  ;;  %v6848_v27 = vld [vmem:[#allocation13 + $0xc8] sm:$0xff]  }
 0xdbf   : > { %v3953_v33 = vpop.xlane.xlu0 %3952  ;;  %v4012_v2 = vmul.f32 %v7308_v49, %v10004_v10  ;;  %v4067_v40 = vpack.c.bf16 %v4055_v46, %v4054_v24  ;;  %v6849_v5 = vld [vmem:[#allocation13 + $0x8] sm:$0xff]   ;;  %6168 = vmatprep.subr.bf16.mxu1 %v6848_v27 }
 0xdc0   : > { %v7310_v28 = vpop.eup %7309  ;;  %v3985_v18 = vadd.f32 1e-05, %v3969_v58  ;;  %v3970_v53 = vmul.f32 0.0078125, %v3953_v33  ;;  %6169 = vmatpush3.bf16.msra.mxu1 %v6850_v21  ;;  %v6852_v33 = vld [vmem:[#allocation13 + $0xd0] sm:$0xff]  }
 0xdc1   : > { %v3955_v0 = vpop.xlane.xlu1 %3954  ;;  %v4013_v45 = vmul.f32 %v7310_v28, %v10007_v42  ;;  %v4034_v20 = vmul.f32 %v10046_v19, %v4012_v2  ;;  %6170 = vmatprep.subr.bf16.mxu1 %v6852_v33  ;;  %v6853_v2 = vld [vmem:[#allocation13 + $0x10] sm:$0xff]  }
 0xdc2   : > { %7315 = vrsqrt.f32 %v3985_v18  ;;  %v3971_v34 = vmul.f32 0.0078125, %v3955_v0  ;;  %v3986_v52 = vadd.f32 1e-05, %v3970_v53  ;;  %v6851_v18 = vld [vmem:[#allocation13 + $0x50] sm:$0xff]   ;;  %v6857_v53 = vld [vmem:[#allocation13 + $0x18] sm:$0xff]  }
 0xdc3   : > { %v4035_v39 = vmul.f32 %v10046_v19, %v4013_v45  ;;  %7317 = vrsqrt.f32 %v3984_v41  ;;  %v4056_v31 = vadd.f32 %v10054_v60, %v4034_v20  ;;  %v6854_v45 = vld [vmem:[#allocation13 + $0x90] sm:$0xff]   ;;  %v6858_v20 = vld [vmem:[#allocation13 + $0x98] sm:$0xff]  }
 0xdc4   : > { %v7312_v50 = vpop.eup %7311  ;;  %v3987_v17 = vadd.f32 1e-05, %v3971_v34  ;;  %6171 = vmatpush3.bf16.msra.mxu1 %v6854_v45 }
 0xdc5   : > { %4349 = vmatmul.mubr.bf16.gmra.mrb[108].mxu0 %v4067_v40  ;;  %4462 = vmatmul.mubr.bf16.gmra.mrb[108].mxu1 %v4067_v40  ;;  %v7314_v35 = vpop.eup %7313  ;;  %v4057_v10 = vadd.f32 %v10054_v60, %v4035_v39  ;;  %v4015_v42 = vmul.f32 %v7312_v50, %v10017_v14  ;;  %v6845_v14 = vld [vmem:[#allocation13] sm:$0xff]   ;;  %v6855_v39 = vld [vmem:[#allocation13 + $0x58] sm:$0xff]  }
 0xdc6   : > { %4358 = vmatprep.mubr.bf16.mxu0 %v7701_v48  ;;  %4471 = vmatprep.mubr.bf16.mxu1 %v7701_v48  ;;  %v4014_v61 = vmul.f32 %v7314_v35, %v10012_v16  ;;  %7319 = vrsqrt.f32 %v3987_v17  ;;  %v6856_v50 = vld [vmem:[#allocation13 + $0xd8] sm:$0xff]   ;;  %v6859_v35 = vld [vmem:[#allocation13 + $0x60] sm:$0xff]  }
 0xdc7   : > { %v4068_v59 = vpack.c.bf16 %v4057_v10, %v4056_v31  ;;  %v4037_v56 = vmul.f32 %v10046_v19, %v4015_v42  ;;  %7321 = vrsqrt.f32 %v3986_v52  ;;  %6103 = vmatpush3.bf16.msra.mxu0 %v6845_v14  ;;  %6172 = vmatprep.subr.bf16.mxu1 %v6856_v50  ;;  %v6860_v17 = vld [vmem:[#allocation13 + $0xe0] sm:$0xff]   ;;  %v6864_v31 = vld [vmem:[#allocation13 + $0xe8] sm:$0xff]   ;;  %v6874_v14 = vld [vmem:[#allocation13 + $0xb8] sm:$0xff]  }
 0xdc8   : > { %v4036_v1 = vmul.f32 %v10046_v19, %v4014_v61  ;;  %6104 = vmatprep.subr.bf16.mxu0 %v6847_v57  ;;  %6173 = vmatpush3.bf16.msra.mxu1 %v6858_v20  ;;  %v6861_v42 = vld [vmem:[#allocation13 + $0x20] sm:$0xff]  }
 0xdc9   : > { %v4059_v16 = vadd.f32 %v10054_v60, %v4037_v56  ;;  %v6862_v52 = vld [vmem:[#allocation13 + $0xa0] sm:$0xff]   ;;  %6174 = vmatprep.subr.bf16.mxu1 %v6860_v17  ;;  %v6867_v56 = vld [vmem:[#allocation13 + $0x70] sm:$0xff]  }
 0xdca   : > { %v4058_v7 = vadd.f32 %v10054_v60, %v4036_v1  ;;  %v6872_v1 = vld [vmem:[#allocation13 + $0xf8] sm:$0xff]  }
 0xdcb   : > { %6105 = vmatpush3.bf16.msra.mxu0 %v6849_v5 }
 0xdcc   : > { %v7316_v54 = vpop.eup %7315  ;;  %v4069_v49 = vpack.c.bf16 %v4059_v16, %v4058_v7  ;;  %6106 = vmatprep.subr.bf16.mxu0 %v6851_v18  ;;  %6175 = vmatpush3.bf16.msra.mxu1 %v6862_v52  ;;  %v4107_v16 = vshrl.u32 %v4106_v11, 7 }
 0xdcd   : > { %4359 = vmatmul.mubr.bf16.gmra.mrb[112].mxu0 %v4068_v59  ;;  %4472 = vmatmul.mubr.bf16.gmra.mrb[112].mxu1 %v4068_v59  ;;  %v7318_v26 = vpop.eup %7317  ;;  %v4017_v12 = vmul.f32 %v7316_v54, %v10027_v38  ;;  %v6866_v59 = vld [vmem:[#allocation13 + $0xa8] sm:$0xff]   ;;  %v6868_v54 = vld [vmem:[#allocation13 + $0xf0] sm:$0xff]  }
 0xdce   : > { %4368 = vmatprep.mubr.bf16.mxu0 %v7701_v48  ;;  %4481 = vmatprep.mubr.bf16.mxu1 %v7701_v48  ;;  %v4016_v37 = vmul.f32 %v7318_v26, %v10024_v8  ;;  %v6873_v26 = vld [vmem:[#allocation13 + $0x38] sm:$0xff]   ;;  %v4116_v7 = vsub.s32 2, %v4107_v16  ;;  %v4112_v57 = vsub.s32 1, %v4107_v16  ;;  %v4120_v21 = vsub.s32 3, %v4107_v16 }
 0xdcf   : > { %v4039_v58 = vmul.f32 %v10046_v19, %v4017_v12  ;;  %6107 = vmatpush3.bf16.msra.mxu0 %v6853_v2  ;;  %6176 = vmatprep.subr.bf16.mxu1 %v6864_v31  ;;  %v4108_v12 = vsub.s32 0, %v4107_v16 }
 0xdd0   : > { %v7320_v46 = vpop.eup %7319  ;;  %v4038_v38 = vmul.f32 %v10046_v19, %v4016_v37  ;;  %6108 = vmatprep.subr.bf16.mxu0 %v6855_v39  ;;  %6177 = vmatpush3.bf16.msra.mxu1 %v6866_v59  ;;  %v4104_v37 = vld [vmem:[%s11291_s15] sm:$0xf]  ;;  %s7599_s15 = scalar_lea.vmem %s7598_s13, 4096 }
 0xdd1   : > { %v7322_v28 = vpop.eup %7321  ;;  %v4061_v8 = vadd.f32 %v10054_v60, %v4039_v58  ;;  %v4019_v41 = vmul.f32 %v7320_v46, %v10037_v6  ;;  %6178 = vmatprep.subr.bf16.mxu1 %v6868_v54  ;;  %v10118_v27 = vrot.slane %v4104_v37, %v4108_v12  ;;  %v10120_v5 = vrot.slane %v4104_v37, %v4116_v7  ;;  %p7601_p7 = scmp.lt.s32.totalorder %s7599_s15, %s7593_s6 }
 0xdd2   : > { %v4060_v0 = vadd.f32 %v10054_v60, %v4038_v38  ;;  %v4018_v24 = vmul.f32 %v7322_v28, %v10032_v63  ;;  %v10122_v46 = vrot.slane %v4104_v37, %v4112_v57  ;;  %v10126_v18 = vrot.slane %v4104_v37, %v4120_v21 }
 0xdd3   : > { %v4041_v40 = vmul.f32 %v10046_v19, %v4019_v41  ;;  %6109 = vmatpush3.bf16.msra.mxu0 %v6857_v53  ;;  %p7602_p9 = por %p7601_p7, %p7600_p3 }
 0xdd4   : > { %v4070_v34 = vpack.c.bf16 %v4061_v8, %v4060_v0  ;;  %v4040_v6 = vmul.f32 %v10046_v19, %v4018_v24  ;;  %6110 = vmatprep.subr.bf16.mxu0 %v6859_v35  ;;  %v6863_v19 = vld [vmem:[#allocation13 + $0x68] sm:$0xff]   ;;  %6179 = vmatpush3.bf16.msra.mxu1 %v6870_v4 }
 0xdd5   : > { %4369 = vmatmul.mubr.bf16.gmra.mrb[116].mxu0 %v4069_v49  ;;  %4482 = vmatmul.mubr.bf16.gmra.mrb[116].mxu1 %v4069_v49  ;;  %v4063_v63 = vadd.f32 %v10054_v60, %v4041_v40  ;;  %p7603_p0 = pnand %p7602_p9, %p7596_p10 }
 0xdd6   : > { %4378 = vmatprep.mubr.bf16.mxu0 %v7701_v48  ;;  %4491 = vmatprep.mubr.bf16.mxu1 %v7701_v48  ;;  %v4062_v10 = vadd.f32 %v10054_v60, %v4040_v6  ;;  %v6869_v60 = vld [vmem:[#allocation13 + $0x30] sm:$0xff]  }
 0xdd7   : > { %6111 = vmatpush3.bf16.msra.mxu0 %v6861_v42  ;;  %6180 = vmatprep.subr.bf16.mxu1 %v6872_v1 }
 0xdd8   : > { %v4071_v61 = vpack.c.bf16 %v4063_v63, %v4062_v10  ;;  %6112 = vmatprep.subr.bf16.mxu0 %v6863_v19  ;;  %6181 = vmatpush3.bf16.msra.mxu1 %v6874_v14 }
 0xddd   : > { %4379 = vmatmul.mubr.bf16.gmra.mrb[120].mxu0 %v4070_v34  ;;  %4492 = vmatmul.mubr.bf16.gmra.mrb[120].mxu1 %v4070_v34 }
 0xdde   : > { %4388 = vmatprep.mubr.bf16.mxu0 %v7701_v48  ;;  %4501 = vmatprep.mubr.bf16.mxu1 %v7701_v48  ;;  %v6865_v48 = vld [vmem:[#allocation13 + $0x28] sm:$0xff]  }
 0xddf   : > { %6113 = vmatpush3.bf16.msra.mxu0 %v6865_v48 }
 0xde0   : > { %6114 = vmatprep.subr.bf16.mxu0 %v6867_v56 }
 0xde3   : > { %6115 = vmatpush3.bf16.msra.mxu0 %v6869_v60 }
 0xde4   : > { %6116 = vmatprep.subr.bf16.mxu0 %v6871_v55 }
 0xde5   : > { %4389 = vmatmul.mubr.bf16.gmra.mrb[124].mxu0 %v4071_v61  ;;  %4502 = vmatmul.mubr.bf16.gmra.mrb[124].mxu1 %v4071_v61 }
 0xde7   : > { %6117 = vmatpush3.bf16.msra.mxu0 %v6873_v26 }
 0xe4a   : > { %v4320_v49 = vpop.f32.mrb[96].mxu0  ;;  %v4433_v58 = vpop.f32.mrb[96].mxu1 }
 0xe4b   : > { %v4321_v38 = vadd.f32 %v4320_v49, %v10118_v27  ;;  %v4434_v28 = vadd.f32 %v4433_v58, %v10120_v5  ;;  %v4322_v8 = vpop.f32.mrb[97].mxu0  ;;  %v4435_v41 = vpop.f32.mrb[97].mxu1 }
 0xe4c   : > { %v4324_v33 = vpop.f32.mrb[98].mxu0  ;;  %v4437_v0 = vpop.f32.mrb[98].mxu1  ;;  %v10129_v45 = vadd.f32 %v4322_v8, %v10122_v46  ;;  %v10139_v63 = vadd.f32 %v4435_v41, %v10126_v18 }
 0xe4d   : > { %v4576_v24 = vmul.f32 0.044715, %v4321_v38  ;;  %v4578_v2 = vmul.f32 0.044715, %v4434_v28  ;;  %v4325_v34 = vadd.f32 %v4324_v33, %v10118_v27  ;;  %v10133_v40 = vadd.f32 %v4437_v0, %v10120_v5  ;;  %v4326_v39 = vpop.f32.mrb[99].mxu0  ;;  %v4439_v50 = vpop.f32.mrb[99].mxu1 }
 0xe4e   : > { %v10136_v20 = vadd.f32 %v4326_v39, %v10122_v46  ;;  %v10142_v17 = vadd.f32 %v4439_v50, %v10126_v18  ;;  %v10144_v10 = vmul.f32 0.5, %v4321_v38  ;;  %v4577_v31 = vmul.f32 0.044715, %v10129_v45 }
 0xe4f   : > { %v4640_v6 = vmul.f32 %v4576_v24, %v4321_v38  ;;  %v4642_v53 = vmul.f32 %v4578_v2, %v4434_v28  ;;  %v4580_v35 = vmul.f32 0.044715, %v4325_v34  ;;  %v4582_v19 = vmul.f32 0.044715, %v10133_v40 }
 0xe50   : > { %v4581_v48 = vmul.f32 0.044715, %v10136_v20  ;;  %v10149_v60 = vmul.f32 0.5, %v4434_v28  ;;  %v4579_v14 = vmul.f32 0.044715, %v10139_v63 }
 0xe51   : > { %v4704_v42 = vmul.f32 %v4640_v6, %v4321_v38  ;;  %v4706_v52 = vmul.f32 %v4642_v53, %v4434_v28  ;;  %v4644_v61 = vmul.f32 %v4580_v35, %v4325_v34  ;;  %v4646_v55 = vmul.f32 %v4582_v19, %v10133_v40 }
 0xe52   : > { %v4330_v59 = vpop.f32.mrb[100].mxu0  ;;  %v4443_v56 = vpop.f32.mrb[100].mxu1  ;;  %v4583_v16 = vmul.f32 0.044715, %v10142_v17  ;;  %v4645_v41 = vmul.f32 %v4581_v48, %v10136_v20  ;;  %v4643_v39 = vmul.f32 %v4579_v14, %v10139_v63 }
 0xe53   : > { %v4768_v54 = vadd.f32 %v4704_v42, %v4321_v38  ;;  %v4770_v4 = vadd.f32 %v4706_v52, %v4434_v28  ;;  %v4332_v1 = vpop.f32.mrb[101].mxu0  ;;  %v4445_v26 = vpop.f32.mrb[101].mxu1  ;;  %v4708_v11 = vmul.f32 %v4644_v61, %v4325_v34  ;;  %v10155_v12 = vadd.f32 %v4330_v59, %v10118_v27 }
 0xe54   : > { %v4334_v7 = vpop.f32.mrb[102].mxu0  ;;  %v4447_v37 = vpop.f32.mrb[102].mxu1  ;;  %v4710_v49 = vmul.f32 %v4646_v55, %v10133_v40  ;;  %v4641_v28 = vmul.f32 %v4577_v31, %v10129_v45  ;;  %v10161_v33 = vadd.f32 %v4443_v56, %v10120_v5  ;;  %v10166_v2 = vadd.f32 %v4332_v1, %v10122_v46 }
 0xe55   : > { %v4832_v57 = vmul.f32 0.7978846, %v4768_v54  ;;  %v4834_v21 = vmul.f32 0.7978846, %v4770_v4  ;;  %v4336_v58 = vpop.f32.mrb[103].mxu0  ;;  %v4449_v38 = vpop.f32.mrb[103].mxu1  ;;  %v4772_v8 = vadd.f32 %v4708_v11, %v4325_v34  ;;  %v4647_v6 = vmul.f32 %v4583_v16, %v10142_v17 }
 0xe56   : > { %v4774_v0 = vadd.f32 %v4710_v49, %v10133_v40  ;;  %v4584_v24 = vmul.f32 0.044715, %v10155_v12  ;;  %v4585_v35 = vmul.f32 0.044715, %v10166_v2  ;;  %v10172_v42 = vadd.f32 %v4445_v26, %v10126_v18 }
 0xe57   : > { %7323 = vtanh.f32 %v4832_v57  ;;  %v4836_v50 = vmul.f32 0.7978846, %v4772_v8  ;;  %v10175_v52 = vadd.f32 %v4334_v7, %v10118_v27  ;;  %v4705_v19 = vmul.f32 %v4641_v28, %v10129_v45 }
 0xe58   : > { %7325 = vtanh.f32 %v4834_v21  ;;  %v4838_v53 = vmul.f32 0.7978846, %v4774_v0  ;;  %v4709_v31 = vmul.f32 %v4645_v41, %v10136_v20  ;;  %v10180_v61 = vadd.f32 %v4447_v37, %v10120_v5 }
 0xe59   : > { %7327 = vtanh.f32 %v4836_v50  ;;  %v4648_v48 = vmul.f32 %v4584_v24, %v10155_v12  ;;  %v4586_v59 = vmul.f32 0.044715, %v10161_v33  ;;  %v4587_v56 = vmul.f32 0.044715, %v10172_v42 }
 0xe5a   : > { %7329 = vtanh.f32 %v4838_v53  ;;  %v4516_v54 = vmul.f32 0.5, %v4325_v34  ;;  %v4649_v4 = vmul.f32 %v4585_v35, %v10166_v2  ;;  %v10187_v55 = vadd.f32 %v4336_v58, %v10122_v46 }
 0xe5b   : > { %v10190_v1 = vadd.f32 %v4449_v38, %v10126_v18  ;;  %v4707_v26 = vmul.f32 %v4643_v39, %v10139_v63  ;;  %v4711_v14 = vmul.f32 %v4647_v6, %v10142_v17  ;;  %v4588_v11 = vmul.f32 0.044715, %v10175_v52 }
 0xe5c   : > { %v4590_v16 = vmul.f32 0.044715, %v10180_v61  ;;  %v4651_v7 = vmul.f32 %v4587_v56, %v10172_v42  ;;  %v4589_v34 = vmul.f32 0.044715, %v10187_v55  ;;  %v4769_v57 = vadd.f32 %v4705_v19, %v10129_v45 }
 0xe5d   : > { %v4591_v37 = vmul.f32 0.044715, %v10190_v1  ;;  %v4518_v21 = vmul.f32 0.5, %v10133_v40  ;;  %v4712_v49 = vmul.f32 %v4648_v48, %v10155_v12  ;;  %v4650_v58 = vmul.f32 %v4586_v59, %v10161_v33 }
 0xe5e   : > { %v4773_v38 = vadd.f32 %v4709_v31, %v10136_v20  ;;  %v4713_v28 = vmul.f32 %v4649_v4, %v10166_v2  ;;  %v4653_v8 = vmul.f32 %v4589_v34, %v10187_v55  ;;  %v4833_v0 = vmul.f32 0.7978846, %v4769_v57 }
 0xe5f   : > { %v4655_v41 = vmul.f32 %v4591_v37, %v10190_v1  ;;  %v4652_v39 = vmul.f32 %v4588_v11, %v10175_v52  ;;  %v4771_v6 = vadd.f32 %v4707_v26, %v10139_v63  ;;  %v4775_v40 = vadd.f32 %v4711_v14, %v10142_v17 }
 0xe60   : > { %v4837_v50 = vmul.f32 0.7978846, %v4773_v38  ;;  %v4715_v35 = vmul.f32 %v4651_v7, %v10172_v42  ;;  %v4654_v19 = vmul.f32 %v4590_v16, %v10180_v61  ;;  %v4717_v31 = vmul.f32 %v4653_v8, %v10187_v55 }
 0xe61   : > { %v7324_v24 = vpop.eup %7323  ;;  %7331 = vtanh.f32 %v4833_v0  ;;  %v4835_v48 = vmul.f32 0.7978846, %v4771_v6  ;;  %v4839_v59 = vmul.f32 0.7978846, %v4775_v40  ;;  %v4714_v11 = vmul.f32 %v4650_v58, %v10161_v33 }
 0xe62   : > { %v7326_v53 = vpop.eup %7325  ;;  %7333 = vtanh.f32 %v4837_v50  ;;  %v4960_v56 = vadd.f32 1.0, %v7324_v24  ;;  %v4719_v34 = vmul.f32 %v4655_v41, %v10190_v1  ;;  %v4777_v14 = vadd.f32 %v4713_v28, %v10166_v2 }
 0xe63   : > { %v7328_v4 = vpop.eup %7327  ;;  %v4962_v26 = vadd.f32 1.0, %v7326_v53  ;;  %v4716_v7 = vmul.f32 %v4652_v39, %v10175_v52  ;;  %7335 = vtanh.f32 %v4835_v48  ;;  %v4781_v57 = vadd.f32 %v4717_v31, %v10187_v55 }
 0xe64   : > { %v7330_v37 = vpop.eup %7329  ;;  %v4964_v16 = vadd.f32 1.0, %v7328_v4  ;;  %v4718_v38 = vmul.f32 %v4654_v19, %v10180_v61  ;;  %7337 = vtanh.f32 %v4839_v59  ;;  %v4841_v0 = vmul.f32 0.7978846, %v4777_v14 }
 0xe65   : > { %v4966_v8 = vadd.f32 1.0, %v7330_v37  ;;  %v5024_v24 = vmul.f32 %v4960_v56, %v10144_v10  ;;  %v4845_v50 = vmul.f32 0.7978846, %v4781_v57  ;;  %v4779_v41 = vadd.f32 %v4715_v35, %v10172_v42 }
 0xe66   : > { %v5028_v58 = vmul.f32 %v4964_v16, %v4516_v54  ;;  %v5026_v28 = vmul.f32 %v4962_v26, %v10149_v60  ;;  %7339 = vtanh.f32 %v4841_v0  ;;  %v4783_v39 = vadd.f32 %v4719_v34, %v10190_v1 }
 0xe67   : > { %v5030_v6 = vmul.f32 %v4966_v8, %v4518_v21  ;;  %7341 = vtanh.f32 %v4845_v50  ;;  %v4843_v53 = vmul.f32 0.7978846, %v4779_v41  ;;  %v4776_v48 = vadd.f32 %v4712_v49, %v10155_v12 }
 0xe68   : > { %v5088_v40 = vpack.c.bf16 %v5028_v58, %v5024_v24  ;;  %v4847_v19 = vmul.f32 0.7978846, %v4783_v39  ;;  %v4780_v59 = vadd.f32 %v4716_v7, %v10175_v52  ;;  %v4778_v10 = vadd.f32 %v4714_v11, %v10161_v33 }
 0xe69   : > { %v5090_v31 = vpack.c.bf16 %v5030_v6, %v5026_v28  ;;  %7343 = vtanh.f32 %v4843_v53  ;;  %v4840_v35 = vmul.f32 0.7978846, %v4776_v48  ;;  %v4782_v21 = vadd.f32 %v4718_v38, %v10180_v61 }
 0xe6a   : > { %7345 = vtanh.f32 %v4847_v19  ;;  %v4844_v60 = vmul.f32 0.7978846, %v4780_v59  ;;  %v4513_v4 = vmul.f32 0.5, %v10129_v45  ;;  %v4842_v26 = vmul.f32 0.7978846, %v4778_v10 }
 0xe6b   : > { %v7332_v54 = vpop.eup %7331  ;;  %v4517_v14 = vmul.f32 0.5, %v10136_v20  ;;  %7347 = vtanh.f32 %v4840_v35  ;;  %v4846_v49 = vmul.f32 0.7978846, %v4782_v21  ;;  %v4515_v0 = vmul.f32 0.5, %v10139_v63 }
 0xe6c   : > { %v7334_v56 = vpop.eup %7333  ;;  %v4961_v34 = vadd.f32 1.0, %v7332_v54  ;;  %7349 = vtanh.f32 %v4844_v60  ;;  %v4519_v38 = vmul.f32 0.5, %v10142_v17  ;;  %v4521_v6 = vmul.f32 0.5, %v10166_v2 }
 0xe6d   : > { %v4965_v37 = vadd.f32 1.0, %v7334_v56  ;;  %v7336_v7 = vpop.eup %7335  ;;  %7351 = vtanh.f32 %v4842_v26  ;;  %v4525_v39 = vmul.f32 0.5, %v10187_v55  ;;  %v4523_v54 = vmul.f32 0.5, %v10172_v42 }
 0xe6e   : > { %v7338_v16 = vpop.eup %7337  ;;  %v5025_v11 = vmul.f32 %v4961_v34, %v4513_v4  ;;  %v4963_v8 = vadd.f32 1.0, %v7336_v7  ;;  %7353 = vtanh.f32 %v4846_v49  ;;  %v4527_v35 = vmul.f32 0.5, %v10190_v1 }
 0xe6f   : > { %v5029_v57 = vmul.f32 %v4965_v37, %v4517_v14  ;;  %v4967_v24 = vadd.f32 1.0, %v7338_v16  ;;  %v4524_v14 = vmul.f32 0.5, %v10175_v52  ;;  %v4522_v42 = vmul.f32 0.5, %v10161_v33 }
 0xe70   : > { %v7340_v45 = vpop.eup %7339  ;;  %v5027_v20 = vmul.f32 %v4963_v8, %v4515_v0 }
 0xe71   : > { %v5089_v58 = vpack.c.bf16 %v5029_v57, %v5025_v11  ;;  %v7342_v50 = vpop.eup %7341  ;;  %v5031_v41 = vmul.f32 %v4967_v24, %v4519_v38  ;;  %v4969_v28 = vadd.f32 1.0, %v7340_v45 }
 0xe72   : > { %v4973_v53 = vadd.f32 1.0, %v7342_v50 }
 0xe73   : > { %5415 = vmatprep.mubr.bf16.mxu0 %v5089_v58  ;;  %v7344_v19 = vpop.eup %7343  ;;  %v5091_v48 = vpack.c.bf16 %v5031_v41, %v5027_v20  ;;  %v5033_v59 = vmul.f32 %v4969_v28, %v4521_v6 }
 0xe74   : > { %5416 = vmatmul.mubr.bf16.vlgmr.msra.gmra.mrb[128].mxu0 %v5088_v40  ;;  %v7346_v63 = vpop.eup %7345  ;;  %v5037_v17 = vmul.f32 %v4973_v53, %v4525_v39  ;;  %v4971_v10 = vadd.f32 1.0, %v7344_v19  ;;  %v4520_v40 = vmul.f32 0.5, %v10155_v12 }
 0xe75   : > { %5512 = vmatprep.mubr.bf16.mxu1 %v5091_v48  ;;  %v4975_v60 = vadd.f32 1.0, %v7346_v63  ;;  %v7348_v21 = vpop.eup %7347 }
 0xe76   : > { %5513 = vmatmul.mubr.bf16.vlgmr.msra.gmra.mrb[128].mxu1 %v5090_v31  ;;  %v5093_v56 = vpack.c.bf16 %v5037_v17, %v5033_v59  ;;  %v7350_v2 = vpop.eup %7349  ;;  %v5035_v4 = vmul.f32 %v4971_v10, %v4523_v54  ;;  %v4968_v34 = vadd.f32 1.0, %v7348_v21  ;;  %v4526_v31 = vmul.f32 0.5, %v10180_v61 }
 0xe77   : > { %v5039_v55 = vmul.f32 %v4975_v60, %v4527_v35  ;;  %v7352_v26 = vpop.eup %7351  ;;  %v4972_v37 = vadd.f32 1.0, %v7350_v2 }
 0xe78   : > { %5423 = vmatprep.mubr.bf16.mxu0 %v5093_v56  ;;  %v7354_v49 = vpop.eup %7353  ;;  %v4970_v1 = vadd.f32 1.0, %v7352_v26  ;;  %v5032_v16 = vmul.f32 %v4968_v34, %v4520_v40 }
 0xe79   : > { %v5095_v7 = vpack.c.bf16 %v5039_v55, %v5035_v4  ;;  %v5036_v11 = vmul.f32 %v4972_v37, %v4524_v14  ;;  %v4974_v57 = vadd.f32 1.0, %v7354_v49 }
 0xe7a   : > { %v5034_v0 = vmul.f32 %v4970_v1, %v4522_v42 }
 0xe7b   : > { %5520 = vmatprep.mubr.bf16.mxu1 %v5095_v7  ;;  %v5092_v8 = vpack.c.bf16 %v5036_v11, %v5032_v16  ;;  %v5038_v38 = vmul.f32 %v4974_v57, %v4526_v31 }
 0xe7d   : > { %5424 = vmatmul.mubr.bf16.gmra.mrb[132].mxu0 %v5092_v8  ;;  %v5094_v24 = vpack.c.bf16 %v5038_v38, %v5034_v0 }
 0xe7f   : > { %5521 = vmatmul.mubr.bf16.gmra.mrb[132].mxu1 %v5094_v24 }
 0xe90   : > { %v4340_v12 = vpop.f32.mrb[104].mxu0  ;;  %v4453_v52 = vpop.f32.mrb[104].mxu1 }
 0xe91   : > { %v10240_v45 = vadd.f32 %v4340_v12, %v10118_v27  ;;  %v10243_v33 = vadd.f32 %v4453_v52, %v10120_v5  ;;  %v4342_v58 = vpop.f32.mrb[105].mxu0  ;;  %v4455_v50 = vpop.f32.mrb[105].mxu1 }
 0xe92   : > { %v10246_v61 = vadd.f32 %v4342_v58, %v10122_v46  ;;  %v10249_v20 = vadd.f32 %v4455_v50, %v10126_v18  ;;  %v4344_v41 = vpop.f32.mrb[106].mxu0  ;;  %v4457_v28 = vpop.f32.mrb[106].mxu1 }
 0xe93   : > { %v10252_v6 = vadd.f32 %v4344_v41, %v10118_v27  ;;  %v10255_v39 = vadd.f32 %v4457_v28, %v10120_v5  ;;  %v4346_v53 = vpop.f32.mrb[107].mxu0  ;;  %v4459_v19 = vpop.f32.mrb[107].mxu1  ;;  %v4592_v48 = vmul.f32 0.044715, %v10240_v45  ;;  %v4594_v63 = vmul.f32 0.044715, %v10243_v33 }
 0xe94   : > { %v4593_v59 = vmul.f32 0.044715, %v10246_v61  ;;  %v10261_v17 = vadd.f32 %v4346_v53, %v10122_v46  ;;  %v4595_v10 = vmul.f32 0.044715, %v10249_v20  ;;  %v10265_v54 = vadd.f32 %v4459_v19, %v10126_v18 }
 0xe95   : > { %v4596_v35 = vmul.f32 0.044715, %v10252_v6  ;;  %v4598_v60 = vmul.f32 0.044715, %v10255_v39  ;;  %v4656_v56 = vmul.f32 %v4592_v48, %v10240_v45  ;;  %v4658_v2 = vmul.f32 %v4594_v63, %v10243_v33 }
 0xe96   : > { %v4597_v21 = vmul.f32 0.044715, %v10261_v17  ;;  %v4657_v4 = vmul.f32 %v4593_v59, %v10246_v61  ;;  %v4659_v26 = vmul.f32 %v4595_v10, %v10249_v20  ;;  %v4599_v40 = vmul.f32 0.044715, %v10265_v54 }
 0xe97   : > { %v4660_v42 = vmul.f32 %v4596_v35, %v10252_v6  ;;  %v4662_v1 = vmul.f32 %v4598_v60, %v10255_v39  ;;  %v10306_v53 = vmul.f32 %v4656_v56, %v10240_v45  ;;  %v10309_v19 = vmul.f32 %v4658_v2, %v10243_v33 }
 0xe98   : > { %v4350_v55 = vpop.f32.mrb[108].mxu0  ;;  %v4463_v34 = vpop.f32.mrb[108].mxu1  ;;  %v4661_v8 = vmul.f32 %v4597_v21, %v10261_v17  ;;  %v10314_v59 = vmul.f32 %v4657_v4, %v10246_v61  ;;  %v10317_v10 = vmul.f32 %v4659_v26, %v10249_v20  ;;  %v4663_v2 = vmul.f32 %v4599_v40, %v10265_v54 }
 0xe99   : > { %v10276_v14 = vadd.f32 %v4350_v55, %v10118_v27  ;;  %v10279_v37 = vadd.f32 %v4463_v34, %v10120_v5  ;;  %v4352_v49 = vpop.f32.mrb[109].mxu0  ;;  %v4465_v7 = vpop.f32.mrb[109].mxu1  ;;  %v10322_v21 = vmul.f32 %v4660_v42, %v10252_v6  ;;  %v10325_v56 = vmul.f32 %v4662_v1, %v10255_v39 }
 0xe9a   : > { %v10284_v16 = vadd.f32 %v4352_v49, %v10122_v46  ;;  %v10287_v11 = vadd.f32 %v4465_v7, %v10126_v18  ;;  %v4354_v31 = vpop.f32.mrb[110].mxu0  ;;  %v4467_v57 = vpop.f32.mrb[110].mxu1  ;;  %v10330_v4 = vmul.f32 %v4661_v8, %v10261_v17 }
 0xe9b   : > { %11292 = vst [vmem:[#allocation92_spill] sm:$0xff] %v10276_v14  ;;  %11293 = vst [vmem:[#allocation81_spill] sm:$0xff] %v10279_v37  ;;  %v4600_v0 = vmul.f32 0.044715, %v10276_v14  ;;  %v10292_v38 = vadd.f32 %v4354_v31, %v10118_v27  ;;  %v10295_v24 = vadd.f32 %v4467_v57, %v10120_v5  ;;  %v4356_v12 = vpop.f32.mrb[111].mxu0  ;;  %v4469_v52 = vpop.f32.mrb[111].mxu1 }
 0xe9c   : > { %v4602_v58 = vmul.f32 0.044715, %v10279_v37  ;;  %v4601_v50 = vmul.f32 0.044715, %v10284_v16  ;;  %v10300_v41 = vadd.f32 %v4356_v12, %v10122_v46  ;;  %v10303_v28 = vadd.f32 %v4469_v52, %v10126_v18 }
 0xe9d   : > { %11294 = vst [vmem:[#allocation96_spill] sm:$0xff] %v10292_v38  ;;  %11295 = vst [vmem:[#allocation25_spill] sm:$0xff] %v10295_v24  ;;  %v4603_v48 = vmul.f32 0.044715, %v10287_v11  ;;  %v4604_v63 = vmul.f32 0.044715, %v10292_v38  ;;  %v4664_v34 = vmul.f32 %v4600_v0, %v10276_v14 }
 0xe9e   : > { %v4606_v35 = vmul.f32 0.044715, %v10295_v24  ;;  %v4605_v60 = vmul.f32 0.044715, %v10300_v41  ;;  %v4607_v55 = vmul.f32 0.044715, %v10303_v28  ;;  %v4666_v26 = vmul.f32 %v4602_v58, %v10279_v37 }
 0xe9f   : > { %v4665_v49 = vmul.f32 %v4601_v50, %v10284_v16  ;;  %v4667_v42 = vmul.f32 %v4603_v48, %v10287_v11  ;;  %v4668_v1 = vmul.f32 %v4604_v63, %v10292_v38 }
 0xea0   : > { %v4360_v7 = vpop.f32.mrb[112].mxu0  ;;  %v4473_v31 = vpop.f32.mrb[112].mxu1  ;;  %v4670_v0 = vmul.f32 %v4606_v35, %v10295_v24  ;;  %v4669_v52 = vmul.f32 %v4605_v60, %v10300_v41 }
 0xea1   : > { %v10338_v57 = vadd.f32 %v4360_v7, %v10118_v27  ;;  %v10341_v40 = vadd.f32 %v4473_v31, %v10120_v5  ;;  %v4362_v8 = vpop.f32.mrb[113].mxu0  ;;  %v4475_v12 = vpop.f32.mrb[113].mxu1  ;;  %v4671_v7 = vmul.f32 %v4607_v55, %v10303_v28  ;;  %v10366_v55 = vmul.f32 %v4664_v34, %v10276_v14 }
 0xea2   : > { %v10346_v58 = vadd.f32 %v4362_v8, %v10122_v46  ;;  %v10349_v50 = vadd.f32 %v4475_v12, %v10126_v18  ;;  %v4364_v48 = vpop.f32.mrb[114].mxu0  ;;  %v4477_v63 = vpop.f32.mrb[114].mxu1  ;;  %v10360_v8 = vmul.f32 %v4663_v2, %v10265_v54  ;;  %v10378_v2 = vmul.f32 %v4665_v49, %v10284_v16 }
 0xea3   : > { %11296 = vst [vmem:[#allocation94_spill] sm:$0xff] %v10338_v57  ;;  %11297 = vst [vmem:[#allocation42_spill] sm:$0xff] %v10341_v40  ;;  %v4608_v32 = vmul.f32 0.044715, %v10338_v57  ;;  %v10354_v31 = vadd.f32 %v4364_v48, %v10118_v27  ;;  %v10357_v30 = vadd.f32 %v4477_v63, %v10120_v5  ;;  %v4366_v35 = vpop.f32.mrb[115].mxu0  ;;  %v4479_v60 = vpop.f32.mrb[115].mxu1  ;;  %v10369_v48 = vmul.f32 %v4666_v26, %v10279_v37 }
 0xea4   : > { %v4610_v12 = vmul.f32 0.044715, %v10341_v40  ;;  %v4609_v36 = vmul.f32 0.044715, %v10346_v58  ;;  %v4611_v25 = vmul.f32 0.044715, %v10349_v50  ;;  %v10372_v63 = vadd.f32 %v4366_v35, %v10122_v46 }
 0xea5   : > { %11298 = vst [vmem:[#allocation97_spill] sm:$0xff] %v10357_v30  ;;  %11299 = vst [vmem:[#allocation41_spill] sm:$0xff] %v10366_v55  ;;  %v10375_v23 = vadd.f32 %v4479_v60, %v10126_v18  ;;  %v10381_v22 = vmul.f32 %v4667_v42, %v10287_v11  ;;  %v4612_v51 = vmul.f32 0.044715, %v10354_v31  ;;  %v4614_v34 = vmul.f32 0.044715, %v10357_v30 }
 0xea6   : > { %11300 = vst [vmem:[#allocation26_spill] sm:$0xff] %v10369_v48  ;;  %v10386_v15 = vmul.f32 %v4668_v1, %v10292_v38  ;;  %v10389_v26 = vmul.f32 %v4670_v0, %v10295_v24  ;;  %v10392_v35 = vmul.f32 %v4669_v52, %v10300_v41  ;;  %v10395_v60 = vmul.f32 %v4671_v7, %v10303_v28 }
 0xea7   : > { %v4672_v49 = vmul.f32 %v4608_v32, %v10338_v57  ;;  %v4674_v42 = vmul.f32 %v4610_v12, %v10341_v40  ;;  %v4673_v29 = vmul.f32 %v4609_v36, %v10346_v58  ;;  %v4675_v9 = vmul.f32 %v4611_v25, %v10349_v50 }
 0xea8   : > { %11301 = vst [vmem:[#allocation84_spill] sm:$0xff] %v10386_v15  ;;  %11302 = vst [vmem:[#allocation86_spill] sm:$0xff] %v10389_v26  ;;  %v4370_v62 = vpop.f32.mrb[116].mxu0  ;;  %v4483_v1 = vpop.f32.mrb[116].mxu1  ;;  %v4613_v43 = vmul.f32 0.044715, %v10372_v63  ;;  %v4676_v12 = vmul.f32 %v4612_v51, %v10354_v31  ;;  %v4678_v36 = vmul.f32 %v4614_v34, %v10357_v30 }
 0xea9   : > { %11303 = vst [vmem:[#allocation43_spill] sm:$0xff] %v10395_v60  ;;  %v4615_v0 = vmul.f32 0.044715, %v10375_v23  ;;  %v10404_v52 = vadd.f32 %v4370_v62, %v10118_v27  ;;  %v10407_v7 = vadd.f32 %v4483_v1, %v10120_v5  ;;  %v4372_v13 = vpop.f32.mrb[117].mxu0  ;;  %v4485_v32 = vpop.f32.mrb[117].mxu1  ;;  %v10434_v15 = vmul.f32 %v4672_v49, %v10338_v57 }
 0xeaa   : > { %v10412_v25 = vadd.f32 %v4372_v13, %v10122_v46  ;;  %v10415_v44 = vadd.f32 %v4485_v32, %v10126_v18  ;;  %v4374_v47 = vpop.f32.mrb[118].mxu0  ;;  %v4487_v3 = vpop.f32.mrb[118].mxu1  ;;  %v4677_v55 = vmul.f32 %v4613_v43, %v10372_v63  ;;  %v10455_v43 = vmul.f32 %v4676_v12, %v10354_v31 }
 0xeab   : > { %11304 = vst [vmem:[#allocation99_spill] sm:$0xff] %v10404_v52  ;;  %11305 = vst [vmem:[#allocation98_spill] sm:$0xff] %v10407_v7  ;;  %v4616_v62 = vmul.f32 0.044715, %v10404_v52  ;;  %v4618_v26 = vmul.f32 0.044715, %v10407_v7  ;;  %v10420_v1 = vadd.f32 %v4374_v47, %v10118_v27  ;;  %v10423_v24 = vadd.f32 %v4487_v3, %v10120_v5 }
 0xeac   : > { %11306 = vst [vmem:[#allocation95_spill] sm:$0xff] %v10415_v44  ;;  %v4376_v51 = vpop.f32.mrb[119].mxu0  ;;  %v4489_v34 = vpop.f32.mrb[119].mxu1  ;;  %v4617_v13 = vmul.f32 0.044715, %v10412_v25  ;;  %11310 = vst [vmem:[#allocation100_spill] sm:$0xff] %v10434_v15  ;;  %v10437_v47 = vmul.f32 %v4674_v42, %v10341_v40  ;;  %v4679_v14 = vmul.f32 %v4615_v0, %v10375_v23  ;;  %v10452_v40 = vmul.f32 %v4675_v9, %v10349_v50 }
 0xead   : > { %11307 = vst [vmem:[#allocation27_spill] sm:$0xff] %v10420_v1  ;;  %11308 = vst [vmem:[#allocation85_spill] sm:$0xff] %v10423_v24  ;;  %v4619_v48 = vmul.f32 0.044715, %v10415_v44  ;;  %v10428_v32 = vadd.f32 %v4376_v51, %v10122_v46  ;;  %v10431_v37 = vadd.f32 %v4489_v34, %v10126_v18  ;;  %v4620_v3 = vmul.f32 0.044715, %v10420_v1 }
 0xeae   : > { %11311 = vst [vmem:[#allocation31_spill] sm:$0xff] %v10437_v47  ;;  %v4622_v38 = vmul.f32 0.044715, %v10423_v24  ;;  %v10446_v34 = vmul.f32 %v4673_v29, %v10346_v58  ;;  %v4680_v49 = vmul.f32 %v4616_v62, %v10404_v52  ;;  %v4682_v42 = vmul.f32 %v4618_v26, %v10407_v7  ;;  %11313 = vst [vmem:[#allocation103_spill] sm:$0xff] %v10452_v40 }
 0xeaf   : > { %11309 = vst [vmem:[#allocation83_spill] sm:$0xff] %v10431_v37  ;;  %v4621_v51 = vmul.f32 0.044715, %v10428_v32  ;;  %v4623_v60 = vmul.f32 0.044715, %v10431_v37  ;;  %v4681_v47 = vmul.f32 %v4617_v13, %v10412_v25  ;;  %v10458_v0 = vmul.f32 %v4678_v36, %v10357_v30 }
 0xeb0   : > { %11312 = vst [vmem:[#allocation101_spill] sm:$0xff] %v10446_v34  ;;  %v4683_v15 = vmul.f32 %v4619_v48, %v10415_v44  ;;  %v4380_v57 = vpop.f32.mrb[120].mxu0  ;;  %v4493_v29 = vpop.f32.mrb[120].mxu1  ;;  %v4684_v34 = vmul.f32 %v4620_v3, %v10420_v1  ;;  %v4686_v62 = vmul.f32 %v4622_v38, %v10423_v24  ;;  %v10468_v12 = vmul.f32 %v4677_v55, %v10372_v63 }
 0xeb1   : > { %11314 = vst [vmem:[#allocation29_spill] sm:$0xff] %v10458_v0  ;;  %v4685_v26 = vmul.f32 %v4621_v51, %v10428_v32  ;;  %v10465_v13 = vadd.f32 %v4380_v57, %v10118_v27  ;;  %v4382_v9 = vpop.f32.mrb[121].mxu0  ;;  %v4495_v40 = vpop.f32.mrb[121].mxu1  ;;  %v10471_v36 = vmul.f32 %v4679_v14, %v10375_v23  ;;  %v4687_v48 = vmul.f32 %v4623_v60, %v10431_v37 }
 0xeb2   : > { %v10475_v0 = vadd.f32 %v4493_v29, %v10120_v5  ;;  %v4384_v3 = vpop.f32.mrb[122].mxu0  ;;  %v4497_v38 = vpop.f32.mrb[122].mxu1  ;;  %v10478_v51 = vmul.f32 %v4680_v49, %v10404_v52  ;;  %v10481_v57 = vmul.f32 %v4682_v42, %v10407_v7  ;;  %v10484_v30 = vmul.f32 %v4681_v47, %v10412_v25 }
 0xeb3   : > { %11315 = vst [vmem:[#allocation88_spill] sm:$0xff] %v10465_v13  ;;  %v10487_v55 = vadd.f32 %v4382_v9, %v10122_v46  ;;  %v10490_v14 = vmul.f32 %v4683_v15, %v10415_v44  ;;  %v10493_v60 = vadd.f32 %v4495_v40, %v10126_v18  ;;  %v4785_v29 = vadd.f32 %v10314_v59, %v10246_v61  ;;  %v4386_v42 = vpop.f32.mrb[123].mxu0 }
 0xeb4   : > { %11316 = vst [vmem:[#allocation102_spill] sm:$0xff] %v10475_v0  ;;  %11317 = vst [vmem:[#allocation28_spill] sm:$0xff] %v10478_v51  ;;  %v4789_v49 = vadd.f32 %v10330_v4, %v10261_v17  ;;  %v10500_v47 = vmul.f32 %v4684_v34, %v10420_v1  ;;  %v10503_v9 = vmul.f32 %v4686_v62, %v10423_v24  ;;  %v4624_v40 = vmul.f32 0.044715, %v10465_v13 }
 0xeb5   : > { %11318 = vst [vmem:[#allocation87_spill] sm:$0xff] %v10481_v57  ;;  %11319 = vst [vmem:[#allocation90_spill] sm:$0xff] %v10490_v14  ;;  %v4499_v57 = vpop.f32.mrb[123].mxu1  ;;  %v10506_v15 = vmul.f32 %v4685_v26, %v10428_v32  ;;  %v10510_v7 = vmul.f32 %v4687_v48, %v10431_v37  ;;  %v4626_v59 = vmul.f32 0.044715, %v10475_v0  ;;  %v10515_v34 = vmul.f32 0.5, %v10246_v61 }
 0xeb6   : > { %11320 = vst [vmem:[#allocation105_spill] sm:$0xff] %v10500_v47  ;;  %11321 = vst [vmem:[#allocation30_spill] sm:$0xff] %v10503_v9  ;;  %v4849_v51 = vmul.f32 0.7978846, %v4785_v29  ;;  %v4853_v4 = vmul.f32 0.7978846, %v4789_v49  ;;  %v4787_v62 = vadd.f32 %v10317_v10, %v10249_v20  ;;  %v4791_v26 = vadd.f32 %v10360_v8, %v10265_v54 }
 0xeb7   : > { %11322 = vst [vmem:[#allocation89_spill] sm:$0xff] %v10506_v15  ;;  %11323 = vst [vmem:[#allocation104_spill] sm:$0xff] %v10510_v7  ;;  %v4625_v52 = vmul.f32 0.044715, %v10487_v55  ;;  %v4627_v9 = vmul.f32 0.044715, %v10493_v60  ;;  %v10526_v29 = vadd.f32 %v4384_v3, %v10118_v27  ;;  %v10529_v1 = vadd.f32 %v4497_v38, %v10120_v5 }
 0xeb8   : > { %v10523_v48 = vmul.f32 0.5, %v10261_v17  ;;  %7355 = vtanh.f32 %v4849_v51  ;;  %v4390_v49 = vpop.f32.mrb[124].mxu0  ;;  %v4503_v24 = vpop.f32.mrb[124].mxu1  ;;  %v4851_v61 = vmul.f32 0.7978846, %v4787_v62  ;;  %v4688_v8 = vmul.f32 %v4624_v40, %v10465_v13 }
 0xeb9   : > { %11324 = vst [vmem:[#allocation107_spill] sm:$0xff] %v10526_v29  ;;  %7357 = vtanh.f32 %v4853_v4  ;;  %v4855_v47 = vmul.f32 0.7978846, %v4791_v26  ;;  %11325 = vst [vmem:[#allocation48_spill] sm:$0xff] %v10529_v1  ;;  %v4392_v10 = vpop.f32.mrb[125].mxu0  ;;  %v4505_v7 = vpop.f32.mrb[125].mxu1  ;;  %v4690_v37 = vmul.f32 %v4626_v59, %v10475_v0  ;;  %v4784_v3 = vadd.f32 %v10306_v53, %v10240_v45 }
 0xeba   : > { %v10534_v17 = vmul.f32 0.5, %v10249_v20  ;;  %v10538_v51 = vpop.f32.mrb[126].mxu0  ;;  %v10540_v4 = vpop.f32.mrb[126].mxu1  ;;  %v4689_v62 = vmul.f32 %v4625_v52, %v10487_v55  ;;  %v10544_v38 = vmul.f32 0.5, %v10265_v54  ;;  %7359 = vtanh.f32 %v4851_v61 }
 0xebb   : > { %v4788_v40 = vadd.f32 %v10322_v21, %v10252_v6  ;;  %v10548_v59 = vpop.f32.mrb[127].mxu0  ;;  %v10550_v20 = vpop.f32.mrb[127].mxu1  ;;  %7361 = vtanh.f32 %v4855_v47  ;;  %v4628_v53 = vmul.f32 0.044715, %v10526_v29  ;;  %v4630_v26 = vmul.f32 0.044715, %v10529_v1 }
 0xebc   : > { %v4848_v14 = vmul.f32 0.7978846, %v4784_v3  ;;  %v4691_v44 = vmul.f32 %v4627_v9, %v10493_v60  ;;  %v4786_v54 = vadd.f32 %v10309_v19, %v10243_v33  ;;  %v4790_v61 = vadd.f32 %v10325_v56, %v10255_v39 }
 0xebd   : > { %v4852_v52 = vmul.f32 0.7978846, %v4788_v40  ;;  %v10560_v21 = vmul.f32 %v4688_v8, %v10465_v13  ;;  %v10563_v15 = vmul.f32 %v4690_v37, %v10475_v0  ;;  %v10566_v47 = vadd.f32 %v4386_v42, %v10122_v46 }
 0xebe   : > { %7363 = vtanh.f32 %v4848_v14  ;;  %v4850_v3 = vmul.f32 0.7978846, %v4786_v54  ;;  %v4854_v9 = vmul.f32 0.7978846, %v4790_v61  ;;  %v10569_v40 = vadd.f32 %v4499_v57, %v10126_v18 }
 0xebf   : > { %11326 = vst [vmem:[#allocation106_spill] sm:$0xff] %v10560_v21  ;;  %11327 = vst [vmem:[#allocation47_spill] sm:$0xff] %v10563_v15  ;;  %7365 = vtanh.f32 %v4852_v52  ;;  %v10572_v19 = vmul.f32 %v4689_v62, %v10487_v55  ;;  %v4692_v56 = vmul.f32 %v4628_v53, %v10526_v29  ;;  %v4694_v8 = vmul.f32 %v4630_v26, %v10529_v1 }
 0xec0   : > { %v10577_v37 = vadd.f32 %v4390_v49, %v10118_v27  ;;  %v10580_v14 = vmul.f32 %v4691_v44, %v10493_v60  ;;  %7367 = vtanh.f32 %v4850_v3  ;;  %v10583_v42 = vadd.f32 %v4503_v24, %v10120_v5 }
 0xec1   : > { %v10586_v57 = vadd.f32 %v4392_v10, %v10122_v46  ;;  %v4528_v62 = vmul.f32 0.5, %v10240_v45  ;;  %v4532_v53 = vmul.f32 0.5, %v10252_v6  ;;  %v4530_v26 = vmul.f32 0.5, %v10243_v33 }
 0xec2   : > { %11328 = vst [vmem:[#allocation50_spill] sm:$0xff] %v10580_v14  ;;  %v7356_v52 = vpop.eup %7355  ;;  %7369 = vtanh.f32 %v4854_v9  ;;  %v4534_v44 = vmul.f32 0.5, %v10255_v39  ;;  %v4629_v61 = vmul.f32 0.044715, %v10566_v47  ;;  %v4631_v24 = vmul.f32 0.044715, %v10569_v40 }
 0xec3   : > { %v7358_v49 = vpop.eup %7357  ;;  %v4977_v54 = vadd.f32 1.0, %v7356_v52  ;;  %v10595_v10 = vmul.f32 %v4692_v56, %v10526_v29  ;;  %v10598_v15 = vmul.f32 %v4694_v8, %v10529_v1  ;;  %v4632_v45 = vmul.f32 0.044715, %v10577_v37 }
 0xec4   : > { %v4981_v3 = vadd.f32 1.0, %v7358_v49  ;;  %v7360_v6 = vpop.eup %7359  ;;  %v4634_v33 = vmul.f32 0.044715, %v10583_v42  ;;  %v4633_v9 = vmul.f32 0.044715, %v10586_v57  ;;  %v10604_v39 = vadd.f32 %v4505_v7, %v10126_v18 }
 0xec5   : > { %11329 = vst [vmem:[#allocation52_spill] sm:$0xff] %v10595_v10  ;;  %11330 = vst [vmem:[#allocation49_spill] sm:$0xff] %v10598_v15  ;;  %v10607_v52 = vmul.f32 0.5, %v10284_v16  ;;  %v7362_v49 = vpop.eup %7361  ;;  %v5041_v56 = vmul.f32 %v4977_v54, %v10515_v34  ;;  %v4979_v8 = vadd.f32 1.0, %v7360_v6  ;;  %v4793_v15 = vadd.f32 %v10378_v2, %v10284_v16 }
 0xec6   : > { %v5045_v0 = vmul.f32 %v4981_v3, %v10523_v48  ;;  %v4983_v1 = vadd.f32 1.0, %v7362_v49  ;;  %v4693_v10 = vmul.f32 %v4629_v61, %v10566_v47  ;;  %v4695_v29 = vmul.f32 %v4631_v24, %v10569_v40 }
 0xec7   : > { %v10616_v7 = vmul.f32 0.5, %v10300_v41  ;;  %v4696_v14 = vmul.f32 %v4632_v45, %v10577_v37  ;;  %v4797_v34 = vadd.f32 %v10392_v35, %v10300_v41  ;;  %v4857_v48 = vmul.f32 0.7978846, %v4793_v15  ;;  %v11331_v35 = vld [vmem:[#allocation43_spill] sm:$0xff] }
 0xec8   : > { %v7364_v21 = vpop.eup %7363  ;;  %v5097_v13 = vpack.c.bf16 %v5045_v0, %v5041_v56  ;;  %v5043_v3 = vmul.f32 %v4979_v8, %v10534_v17  ;;  %v5047_v16 = vmul.f32 %v4983_v1, %v10544_v38  ;;  %v4698_v61 = vmul.f32 %v4634_v33, %v10583_v42 }
 0xec9   : > { %v7366_v54 = vpop.eup %7365  ;;  %v4976_v2 = vadd.f32 1.0, %v7364_v21  ;;  %v4697_v6 = vmul.f32 %v4633_v9, %v10586_v57  ;;  %v4861_v49 = vmul.f32 0.7978846, %v4797_v34  ;;  %7371 = vtanh.f32 %v4857_v48 }
 0xeca   : > { %5431 = vmatprep.mubr.bf16.mxu0 %v5097_v13  ;;  %v4980_v24 = vadd.f32 1.0, %v7366_v54  ;;  %v7368_v0 = vpop.eup %7367  ;;  %v5099_v45 = vpack.c.bf16 %v5047_v16, %v5043_v3  ;;  %v4635_v56 = vmul.f32 0.044715, %v10604_v39  ;;  %v4795_v41 = vadd.f32 %v10381_v22, %v10287_v11 }
 0xecb   : > { %v4799_v15 = vadd.f32 %v11331_v35, %v10303_v28  ;;  %v5040_v17 = vmul.f32 %v4976_v2, %v4528_v62  ;;  %v4978_v21 = vadd.f32 1.0, %v7368_v0  ;;  %7373 = vtanh.f32 %v4861_v49  ;;  %v11334_v2 = vld [vmem:[#allocation96_spill] sm:$0xff] }
 0xecc   : > { %v7370_v1 = vpop.eup %7369  ;;  %v5044_v38 = vmul.f32 %v4980_v24, %v4532_v53  ;;  %5528 = vmatprep.mubr.bf16.mxu1 %v5099_v45  ;;  %v4859_v33 = vmul.f32 0.7978846, %v4795_v41  ;;  %v10632_v8 = vadd.f32 %v10538_v51, %v10118_v27  ;;  %v10635_v48 = vmul.f32 %v4693_v10, %v10566_v47  ;;  %v11332_v51 = vld [vmem:[#allocation92_spill] sm:$0xff]  ;;  %v11333_v10 = vld [vmem:[#allocation41_spill] sm:$0xff] }
 0xecd   : > { %v4982_v13 = vadd.f32 1.0, %v7370_v1  ;;  %v4863_v9 = vmul.f32 0.7978846, %v4799_v15  ;;  %v10638_v22 = vmul.f32 %v4695_v29, %v10569_v40  ;;  %v10642_v62 = vadd.f32 %v10540_v4, %v10120_v5  ;;  %v11335_v29 = vld [vmem:[#allocation84_spill] sm:$0xff]  ;;  %v11336_v45 = vld [vmem:[#allocation81_spill] sm:$0xff] }
 0xece   : > { %v5096_v34 = vpack.c.bf16 %v5044_v38, %v5040_v17  ;;  %v5042_v53 = vmul.f32 %v4978_v21, %v4530_v26  ;;  %v4699_v3 = vmul.f32 %v4635_v56, %v10604_v39  ;;  %7375 = vtanh.f32 %v4859_v33  ;;  %v11337_v56 = vld [vmem:[#allocation26_spill] sm:$0xff]  ;;  %v11338_v1 = vld [vmem:[#allocation25_spill] sm:$0xff] }
 0xecf   : > { %v5046_v54 = vmul.f32 %v4982_v13, %v4534_v44  ;;  %v10646_v27 = vmul.f32 %v4696_v14, %v10577_v37  ;;  %7377 = vtanh.f32 %v4863_v9  ;;  %v4792_v16 = vadd.f32 %v11333_v10, %v11332_v51 }
 0xed0   : > { %5432 = vmatmul.mubr.bf16.gmra.mrb[136].mxu0 %v5096_v34  ;;  %v4796_v24 = vadd.f32 %v11335_v29, %v11334_v2  ;;  %v10653_v5 = vmul.f32 %v4698_v61, %v10583_v42  ;;  %v10656_v4 = vmul.f32 %v4697_v6, %v10586_v57  ;;  %v4636_v26 = vmul.f32 0.044715, %v10632_v8  ;;  %v11339_v6 = vld [vmem:[#allocation86_spill] sm:$0xff] }
 0xed1   : > { %v5098_v49 = vpack.c.bf16 %v5046_v54, %v5042_v53  ;;  %v4638_v44 = vmul.f32 0.044715, %v10642_v62  ;;  %v4856_v14 = vmul.f32 0.7978846, %v4792_v16  ;;  %v4794_v41 = vadd.f32 %v11337_v56, %v11336_v45 }
 0xed2   : > { %v4860_v0 = vmul.f32 0.7978846, %v4796_v24  ;;  %v10663_v35 = vmul.f32 %v4699_v3, %v10604_v39  ;;  %v4539_v15 = vmul.f32 0.5, %v10287_v11  ;;  %v4543_v61 = vmul.f32 0.5, %v10303_v28  ;;  %v11340_v28 = vld [vmem:[#allocation101_spill] sm:$0xff] }
 0xed3   : > { %5529 = vmatmul.mubr.bf16.gmra.mrb[136].mxu1 %v5098_v49  ;;  %v4798_v17 = vadd.f32 %v11339_v6, %v11338_v1  ;;  %v7372_v38 = vpop.eup %7371  ;;  %v4536_v21 = vmul.f32 0.5, %v11332_v51  ;;  %v10671_v13 = vmul.f32 0.5, %v11334_v2  ;;  %7379 = vtanh.f32 %v4856_v14 }
 0xed4   : > { %v4858_v33 = vmul.f32 0.7978846, %v4794_v41  ;;  %v4985_v9 = vadd.f32 1.0, %v7372_v38  ;;  %v4700_v34 = vmul.f32 %v4636_v26, %v10632_v8  ;;  %7381 = vtanh.f32 %v4860_v0 }
 0xed5   : > { %v4862_v53 = vmul.f32 0.7978846, %v4798_v17  ;;  %v7374_v54 = vpop.eup %7373  ;;  %v4702_v11 = vmul.f32 %v4638_v44, %v10642_v62  ;;  %v4801_v3 = vadd.f32 %v11340_v28, %v10346_v58  ;;  %v4805_v51 = vadd.f32 %v10468_v12, %v10372_v63 }
 0xed6   : > { %7383 = vtanh.f32 %v4858_v33  ;;  %v4989_v10 = vadd.f32 1.0, %v7374_v54  ;;  %v4538_v16 = vmul.f32 0.5, %v11336_v45  ;;  %v4542_v2 = vmul.f32 0.5, %v11338_v1  ;;  %v11341_v45 = vld [vmem:[#allocation103_spill] sm:$0xff] }
 0xed7   : > { %7385 = vtanh.f32 %v4862_v53  ;;  %v10683_v29 = vadd.f32 %v10548_v59, %v10122_v46  ;;  %v10687_v24 = vadd.f32 %v10550_v20, %v10126_v18  ;;  %v4865_v49 = vmul.f32 0.7978846, %v4801_v3  ;;  %v11345_v3 = vld [vmem:[#allocation31_spill] sm:$0xff] }
 0xed8   : > { %v4869_v26 = vmul.f32 0.7978846, %v4805_v51  ;;  %v7376_v44 = vpop.eup %7375  ;;  %v5049_v14 = vmul.f32 %v4985_v9, %v10607_v52  ;;  %v5053_v12 = vmul.f32 %v4989_v10, %v10616_v7  ;;  %v10692_v0 = vmul.f32 %v4700_v34, %v10632_v8  ;;  %v11342_v9 = vld [vmem:[#allocation94_spill] sm:$0xff]  ;;  %v11343_v34 = vld [vmem:[#allocation100_spill] sm:$0xff] }
 0xed9   : > { %v4803_v56 = vadd.f32 %v11341_v45, %v10349_v50  ;;  %v7378_v41 = vpop.eup %7377  ;;  %v4987_v46 = vadd.f32 1.0, %v7376_v44  ;;  %v10697_v59 = vmul.f32 %v4702_v11, %v10642_v62  ;;  %7387 = vtanh.f32 %v4865_v49 }
 0xeda   : > { %v4807_v18 = vadd.f32 %v10471_v36, %v10375_v23  ;;  %v5101_v20 = vpack.c.bf16 %v5053_v12, %v5049_v14  ;;  %v4991_v1 = vadd.f32 1.0, %v7378_v41  ;;  %7389 = vtanh.f32 %v4869_v26 }
 0xedb   : > { %v4867_v52 = vmul.f32 0.7978846, %v4803_v56  ;;  %v5051_v7 = vmul.f32 %v4987_v46, %v4539_v15  ;;  %v4637_v6 = vmul.f32 0.044715, %v10683_v29  ;;  %v4639_v17 = vmul.f32 0.044715, %v10687_v24 }
 0xedc   : > { %v4871_v38 = vmul.f32 0.7978846, %v4807_v18  ;;  %5439 = vmatprep.mubr.bf16.mxu0 %v5101_v20  ;;  %v5055_v33 = vmul.f32 %v4991_v1, %v4543_v61  ;;  %v4800_v53 = vadd.f32 %v11343_v34, %v11342_v9  ;;  %v4804_v54 = vadd.f32 %v10455_v43, %v10354_v31  ;;  %v11344_v15 = vld [vmem:[#allocation42_spill] sm:$0xff]  ;;  %v11346_v56 = vld [vmem:[#allocation97_spill] sm:$0xff] }
 0xedd   : > { %7391 = vtanh.f32 %v4867_v52  ;;  %v7380_v36 = vpop.eup %7379  ;;  %v4545_v11 = vmul.f32 0.5, %v10346_v58  ;;  %v4549_v28 = vmul.f32 0.5, %v10372_v63  ;;  %v4802_v51 = vadd.f32 %v11345_v3, %v11344_v15  ;;  %v11347_v43 = vld [vmem:[#allocation29_spill] sm:$0xff] }
 0xede   : > { %7393 = vtanh.f32 %v4871_v38  ;;  %v7382_v10 = vpop.eup %7381  ;;  %v5103_v49 = vpack.c.bf16 %v5055_v33, %v5051_v7  ;;  %v4984_v26 = vadd.f32 1.0, %v7380_v36  ;;  %v4864_v61 = vmul.f32 0.7978846, %v4800_v53  ;;  %v11348_v33 = vld [vmem:[#allocation89_spill] sm:$0xff] }
 0xedf   : > { %v4868_v44 = vmul.f32 0.7978846, %v4804_v54  ;;  %v4988_v12 = vadd.f32 1.0, %v7382_v10  ;;  %v4701_v45 = vmul.f32 %v4637_v6, %v10683_v29  ;;  %v4806_v41 = vadd.f32 %v11347_v43, %v11346_v56 }
 0xee0   : > { %v7384_v14 = vpop.eup %7383  ;;  %v4866_v46 = vmul.f32 0.7978846, %v4802_v51  ;;  %5536 = vmatprep.mubr.bf16.mxu1 %v5103_v49  ;;  %v5048_v63 = vmul.f32 %v4984_v26, %v4536_v21  ;;  %v4703_v20 = vmul.f32 %v4639_v17, %v10687_v24  ;;  %7395 = vtanh.f32 %v4864_v61  ;;  %v11349_v26 = vld [vmem:[#allocation95_spill] sm:$0xff] }
 0xee1   : > { %v7386_v58 = vpop.eup %7385  ;;  %v4986_v18 = vadd.f32 1.0, %v7384_v14  ;;  %v5052_v1 = vmul.f32 %v4988_v12, %v10671_v13  ;;  %7397 = vtanh.f32 %v4868_v44  ;;  %v4870_v7 = vmul.f32 0.7978846, %v4806_v41  ;;  %v11351_v44 = vld [vmem:[#allocation83_spill] sm:$0xff]  ;;  %v11352_v14 = vld [vmem:[#allocation104_spill] sm:$0xff] }
 0xee2   : > { %v4990_v52 = vadd.f32 1.0, %v7386_v58  ;;  %v4547_v38 = vmul.f32 0.5, %v10349_v50  ;;  %7399 = vtanh.f32 %v4866_v46  ;;  %v4809_v6 = vadd.f32 %v10484_v30, %v10412_v25  ;;  %v11350_v30 = vld [vmem:[#allocation90_spill] sm:$0xff] }
 0xee3   : > { %v4813_v34 = vadd.f32 %v11348_v33, %v10428_v32  ;;  %v7388_v53 = vpop.eup %7387  ;;  %v5100_v21 = vpack.c.bf16 %v5052_v1, %v5048_v63  ;;  %v5050_v54 = vmul.f32 %v4986_v18, %v4538_v16  ;;  %7401 = vtanh.f32 %v4870_v7  ;;  %v11354_v7 = vld [vmem:[#allocation28_spill] sm:$0xff]  ;;  %v11355_v33 = vld [vmem:[#allocation27_spill] sm:$0xff] }
 0xee4   : > { %v5054_v36 = vmul.f32 %v4990_v52, %v4542_v2  ;;  %v7390_v17 = vpop.eup %7389  ;;  %v10722_v13 = vmul.f32 %v4701_v45, %v10683_v29  ;;  %v4993_v3 = vadd.f32 1.0, %v7388_v53  ;;  %v4873_v51 = vmul.f32 0.7978846, %v4809_v6  ;;  %v11353_v52 = vld [vmem:[#allocation99_spill] sm:$0xff] }
 0xee5   : > { %v4877_v10 = vmul.f32 0.7978846, %v4813_v34  ;;  %5440 = vmatmul.mubr.bf16.gmra.mrb[140].mxu0 %v5100_v21  ;;  %v4997_v49 = vadd.f32 1.0, %v7390_v17  ;;  %v4811_v61 = vadd.f32 %v11350_v30, %v11349_v26  ;;  %v4815_v12 = vadd.f32 %v11352_v14, %v11351_v44  ;;  %v11356_v34 = vld [vmem:[#allocation105_spill] sm:$0xff] }
 0xee6   : > { %v5102_v50 = vpack.c.bf16 %v5054_v36, %v5050_v54  ;;  %v10729_v16 = vmul.f32 %v4703_v20, %v10687_v24  ;;  %v5057_v2 = vmul.f32 %v4993_v3, %v4545_v11  ;;  %v4551_v45 = vmul.f32 0.5, %v10375_v23  ;;  %v11359_v30 = vld [vmem:[#allocation85_spill] sm:$0xff] }
 0xee7   : > { %v7392_v43 = vpop.eup %7391  ;;  %7403 = vtanh.f32 %v4873_v51  ;;  %v5061_v46 = vmul.f32 %v4997_v49, %v4549_v28  ;;  %v4875_v63 = vmul.f32 0.7978846, %v4811_v61  ;;  %v4879_v1 = vmul.f32 0.7978846, %v4815_v12  ;;  %v11360_v61 = vld [vmem:[#allocation30_spill] sm:$0xff] }
 0xee8   : > { %v7394_v41 = vpop.eup %7393  ;;  %5537 = vmatmul.mubr.bf16.gmra.mrb[140].mxu1 %v5102_v50  ;;  %v4995_v58 = vadd.f32 1.0, %v7392_v43  ;;  %7405 = vtanh.f32 %v4877_v10  ;;  %v4808_v6 = vadd.f32 %v11354_v7, %v11353_v52  ;;  %v4812_v53 = vadd.f32 %v11356_v34, %v11355_v33  ;;  %v11357_v10 = vld [vmem:[#allocation98_spill] sm:$0xff]  ;;  %v11358_v50 = vld [vmem:[#allocation87_spill] sm:$0xff] }
 0xee9   : > { %v4999_v18 = vadd.f32 1.0, %v7394_v41  ;;  %v5105_v20 = vpack.c.bf16 %v5061_v46, %v5057_v2  ;;  %v4544_v11 = vmul.f32 0.5, %v11342_v9  ;;  %7407 = vtanh.f32 %v4875_v63 }
 0xeea   : > { %v5059_v21 = vmul.f32 %v4995_v58, %v4547_v38  ;;  %v7396_v23 = vpop.eup %7395  ;;  %7409 = vtanh.f32 %v4879_v1  ;;  %v4872_v28 = vmul.f32 0.7978846, %v4808_v6  ;;  %v4876_v36 = vmul.f32 0.7978846, %v4812_v53 }
 0xeeb   : > { %v5063_v54 = vmul.f32 %v4999_v18, %v4551_v45  ;;  %v7398_v17 = vpop.eup %7397  ;;  %5447 = vmatprep.mubr.bf16.mxu0 %v5105_v20  ;;  %v4548_v3 = vmul.f32 0.5, %v10354_v31  ;;  %v4992_v51 = vadd.f32 1.0, %v7396_v23  ;;  %v4810_v49 = vadd.f32 %v11358_v50, %v11357_v10 }
 0xeec   : > { %v4814_v14 = vadd.f32 %v11360_v61, %v11359_v30  ;;  %v7400_v38 = vpop.eup %7399  ;;  %v4996_v9 = vadd.f32 1.0, %v7398_v17  ;;  %v4546_v43 = vmul.f32 0.5, %v11344_v15  ;;  %7411 = vtanh.f32 %v4872_v28 }
 0xeed   : > { %v5107_v12 = vpack.c.bf16 %v5063_v54, %v5059_v21  ;;  %v7402_v2 = vpop.eup %7401  ;;  %v4550_v45 = vmul.f32 0.5, %v11346_v56  ;;  %v4994_v41 = vadd.f32 1.0, %v7400_v38  ;;  %7413 = vtanh.f32 %v4876_v36  ;;  %v11361_v36 = vld [vmem:[#allocation50_spill] sm:$0xff] }
 0xeee   : > { %v4874_v46 = vmul.f32 0.7978846, %v4810_v49  ;;  %v5056_v31 = vmul.f32 %v4992_v51, %v4544_v11  ;;  %v5060_v58 = vmul.f32 %v4996_v9, %v4548_v3  ;;  %v4998_v63 = vadd.f32 1.0, %v7402_v2  ;;  %v11362_v9 = vld [vmem:[#allocation88_spill] sm:$0xff] }
 0xeef   : > { %5544 = vmatprep.mubr.bf16.mxu1 %v5107_v12  ;;  %v4878_v18 = vmul.f32 0.7978846, %v4814_v14  ;;  %v4553_v1 = vmul.f32 0.5, %v10412_v25  ;;  %v4817_v7 = vadd.f32 %v10572_v19, %v10487_v55  ;;  %v4821_v15 = vadd.f32 %v10635_v48, %v10566_v47 }
 0xef0   : > { %7415 = vtanh.f32 %v4874_v46  ;;  %v5104_v34 = vpack.c.bf16 %v5060_v58, %v5056_v31  ;;  %v5058_v56 = vmul.f32 %v4994_v41, %v4546_v43  ;;  %v5062_v53 = vmul.f32 %v4998_v63, %v4550_v45  ;;  %v11363_v43 = vld [vmem:[#allocation106_spill] sm:$0xff]  ;;  %v11364_v45 = vld [vmem:[#allocation107_spill] sm:$0xff] }
 0xef1   : > { %v7404_v6 = vpop.eup %7403  ;;  %7417 = vtanh.f32 %v4878_v18  ;;  %v4557_v21 = vmul.f32 0.5, %v10428_v32  ;;  %v4881_v23 = vmul.f32 0.7978846, %v4817_v7  ;;  %v4885_v54 = vmul.f32 0.7978846, %v4821_v15 }
 0xef2   : > { %v7406_v20 = vpop.eup %7405  ;;  %v5001_v11 = vadd.f32 1.0, %v7404_v6  ;;  %5448 = vmatmul.mubr.bf16.gmra.mrb[144].mxu0 %v5104_v34  ;;  %v5106_v25 = vpack.c.bf16 %v5062_v53, %v5058_v56  ;;  %v4819_v19 = vadd.f32 %v11361_v36, %v10493_v60  ;;  %v4823_v48 = vadd.f32 %v10638_v22, %v10569_v40  ;;  %v11365_v22 = vld [vmem:[#allocation52_spill] sm:$0xff]  ;;  %v11366_v34 = vld [vmem:[#allocation102_spill] sm:$0xff]  ;;  %v11367_v56 = vld [vmem:[#allocation47_spill] sm:$0xff] }
 0xef3   : > { %v5005_v28 = vadd.f32 1.0, %v7406_v20  ;;  %v7408_v17 = vpop.eup %7407  ;;  %v4555_v51 = vmul.f32 0.5, %v11349_v26  ;;  %v4559_v50 = vmul.f32 0.5, %v11351_v44  ;;  %7419 = vtanh.f32 %v4881_v23  ;;  %v11368_v23 = vld [vmem:[#allocation48_spill] sm:$0xff] }
 0xef4   : > { %v5065_v3 = vmul.f32 %v5001_v11, %v4553_v1  ;;  %v7410_v32 = vpop.eup %7409  ;;  %5545 = vmatmul.mubr.bf16.gmra.mrb[144].mxu1 %v5106_v25  ;;  %v5003_v61 = vadd.f32 1.0, %v7408_v17  ;;  %7421 = vtanh.f32 %v4885_v54  ;;  %v4883_v14 = vmul.f32 0.7978846, %v4819_v19 }
 0xef5   : > { %v5069_v49 = vmul.f32 %v5005_v28, %v4557_v21  ;;  %v5007_v38 = vadd.f32 1.0, %v7410_v32  ;;  %v4887_v12 = vmul.f32 0.7978846, %v4823_v48  ;;  %v4816_v2 = vadd.f32 %v11363_v43, %v11362_v9 }
 0xef6   : > { %v4820_v41 = vadd.f32 %v11365_v22, %v11364_v45  ;;  %v7412_v46 = vpop.eup %7411  ;;  %v5067_v26 = vmul.f32 %v5003_v61, %v4555_v51  ;;  %v4552_v44 = vmul.f32 0.5, %v11353_v52  ;;  %7423 = vtanh.f32 %v4883_v14  ;;  %v11369_v52 = vld [vmem:[#allocation49_spill] sm:$0xff] }
 0xef7   : > { %v5109_v31 = vpack.c.bf16 %v5069_v49, %v5065_v3  ;;  %v7414_v58 = vpop.eup %7413  ;;  %v5071_v63 = vmul.f32 %v5007_v38, %v4559_v50  ;;  %v5000_v18 = vadd.f32 1.0, %v7412_v46  ;;  %7425 = vtanh.f32 %v4887_v12 }
 0xef8   : > { %v4880_v1 = vmul.f32 0.7978846, %v4816_v2  ;;  %v4556_v7 = vmul.f32 0.5, %v11355_v33  ;;  %v5004_v15 = vadd.f32 1.0, %v7414_v58  ;;  %v4884_v6 = vmul.f32 0.7978846, %v4820_v41 }
 0xef9   : > { %5455 = vmatprep.mubr.bf16.mxu0 %v5109_v31  ;;  %v4818_v53 = vadd.f32 %v11367_v56, %v11366_v34  ;;  %v5111_v21 = vpack.c.bf16 %v5071_v63, %v5067_v26  ;;  %v5064_v11 = vmul.f32 %v5000_v18, %v4552_v44  ;;  %v4822_v54 = vadd.f32 %v11369_v52, %v11368_v23 }
 0xefa   : > { %v7416_v20 = vpop.eup %7415  ;;  %7427 = vtanh.f32 %v4880_v1  ;;  %v5068_v28 = vmul.f32 %v5004_v15, %v4556_v7  ;;  %v4554_v33 = vmul.f32 0.5, %v11357_v10  ;;  %v4558_v48 = vmul.f32 0.5, %v11359_v30 }
 0xefb   : > { %v7418_v25 = vpop.eup %7417  ;;  %v5002_v36 = vadd.f32 1.0, %v7416_v20  ;;  %7429 = vtanh.f32 %v4884_v6  ;;  %v4882_v19 = vmul.f32 0.7978846, %v4818_v53  ;;  %5552 = vmatprep.mubr.bf16.mxu1 %v5111_v21  ;;  %v4886_v3 = vmul.f32 0.7978846, %v4822_v54 }
 0xefc   : > { %v5006_v17 = vadd.f32 1.0, %v7418_v25  ;;  %v5108_v51 = vpack.c.bf16 %v5068_v28, %v5064_v11  ;;  %v4561_v50 = vmul.f32 0.5, %v10487_v55  ;;  %v4825_v32 = vadd.f32 %v10656_v4, %v10586_v57 }
 0xefd   : > { %7431 = vtanh.f32 %v4882_v19  ;;  %v7420_v49 = vpop.eup %7419  ;;  %v5066_v61 = vmul.f32 %v5002_v36, %v4554_v33  ;;  %v4829_v38 = vadd.f32 %v10722_v13, %v10683_v29  ;;  %v4565_v10 = vmul.f32 0.5, %v10566_v47 }
 0xefe   : > { %v5070_v14 = vmul.f32 %v5006_v17, %v4558_v48  ;;  %7433 = vtanh.f32 %v4886_v3  ;;  %v7422_v12 = vpop.eup %7421  ;;  %5456 = vmatmul.mubr.bf16.gmra.mrb[148].mxu0 %v5108_v51  ;;  %v5009_v30 = vadd.f32 1.0, %v7420_v49  ;;  %v4889_v43 = vmul.f32 0.7978846, %v4825_v32 }
 0xeff   : > { %v4827_v55 = vadd.f32 %v10663_v35, %v10604_v39  ;;  %v5013_v22 = vadd.f32 1.0, %v7422_v12  ;;  %v4893_v41 = vmul.f32 0.7978846, %v4829_v38  ;;  %v4831_v4 = vadd.f32 %v10729_v16, %v10687_v24 }
 0xf00   : > { %v5110_v2 = vpack.c.bf16 %v5070_v14, %v5066_v61  ;;  %v7424_v46 = vpop.eup %7423  ;;  %v5073_v31 = vmul.f32 %v5009_v30, %v4561_v50  ;;  %v4563_v26 = vmul.f32 0.5, %v10493_v60  ;;  %7435 = vtanh.f32 %v4889_v43 }
 0xf01   : > { %v4891_v13 = vmul.f32 0.7978846, %v4827_v55  ;;  %v7426_v44 = vpop.eup %7425  ;;  %v5077_v47 = vmul.f32 %v5013_v22, %v4565_v10  ;;  %v5011_v58 = vadd.f32 1.0, %v7424_v46  ;;  %7437 = vtanh.f32 %v4893_v41 }
 0xf02   : > { %5553 = vmatmul.mubr.bf16.gmra.mrb[148].mxu1 %v5110_v2  ;;  %v4895_v63 = vmul.f32 0.7978846, %v4831_v4  ;;  %v4567_v35 = vmul.f32 0.5, %v10569_v40  ;;  %v5015_v18 = vadd.f32 1.0, %v7426_v44  ;;  %v4824_v1 = vadd.f32 %v10646_v27, %v10577_v37 }
 0xf03   : > { %7439 = vtanh.f32 %v4891_v13  ;;  %v5113_v7 = vpack.c.bf16 %v5077_v47, %v5073_v31  ;;  %v4560_v15 = vmul.f32 0.5, %v11362_v9  ;;  %v4828_v60 = vadd.f32 %v10692_v0, %v10632_v8 }
 0xf04   : > { %v7428_v16 = vpop.eup %7427  ;;  %7441 = vtanh.f32 %v4895_v63  ;;  %v5075_v56 = vmul.f32 %v5011_v58, %v4563_v26  ;;  %v5079_v53 = vmul.f32 %v5015_v18, %v4567_v35  ;;  %v4888_v21 = vmul.f32 0.7978846, %v4824_v1 }
 0xf05   : > { %v7430_v6 = vpop.eup %7429  ;;  %v5008_v20 = vadd.f32 1.0, %v7428_v16  ;;  %5463 = vmatprep.mubr.bf16.mxu0 %v5113_v7  ;;  %v4564_v40 = vmul.f32 0.5, %v11364_v45  ;;  %v4892_v52 = vmul.f32 0.7978846, %v4828_v60  ;;  %v4826_v27 = vadd.f32 %v10653_v5, %v10583_v42 }
 0xf06   : > { %v5012_v11 = vadd.f32 1.0, %v7430_v6  ;;  %v5115_v25 = vpack.c.bf16 %v5079_v53, %v5075_v56  ;;  %7443 = vtanh.f32 %v4888_v21  ;;  %v4830_v0 = vadd.f32 %v10697_v59, %v10642_v62 }
 0xf07   : > { %v7432_v54 = vpop.eup %7431  ;;  %v5072_v9 = vmul.f32 %v5008_v20, %v4560_v15  ;;  %7445 = vtanh.f32 %v4892_v52  ;;  %v4890_v33 = vmul.f32 0.7978846, %v4826_v27  ;;  %v4562_v45 = vmul.f32 0.5, %v11366_v34 }
 0xf08   : > { %v7434_v28 = vpop.eup %7433  ;;  %v5076_v36 = vmul.f32 %v5012_v11, %v4564_v40  ;;  %v5010_v19 = vadd.f32 1.0, %v7432_v54  ;;  %5560 = vmatprep.mubr.bf16.mxu1 %v5115_v25  ;;  %v4566_v48 = vmul.f32 0.5, %v11368_v23  ;;  %v4894_v3 = vmul.f32 0.7978846, %v4830_v0 }
 0xf09   : > { %v5014_v17 = vadd.f32 1.0, %v7434_v28  ;;  %7447 = vtanh.f32 %v4890_v33  ;;  %v4569_v38 = vmul.f32 0.5, %v10586_v57  ;;  %v4573_v12 = vmul.f32 0.5, %v10683_v29  ;;  %v11371_v28 = vld [vmem:[#allocation78_spill] sm:$0xff]  ;;  %v11372_v33 = vld [vmem:[#allocation24_spill] sm:$0xff] }
 0xf0a   : > { %v5112_v5 = vpack.c.bf16 %v5076_v36, %v5072_v9  ;;  %v7436_v51 = vpop.eup %7435  ;;  %v5074_v50 = vmul.f32 %v5010_v19, %v4562_v45  ;;  %7449 = vtanh.f32 %v4894_v3  ;;  %v4571_v23 = vmul.f32 0.5, %v10604_v39 }
 0xf0b   : > { %v5078_v32 = vmul.f32 %v5014_v17, %v4566_v48  ;;  %v7438_v49 = vpop.eup %7437  ;;  %v5017_v59 = vadd.f32 1.0, %v7436_v51  ;;  %v4575_v2 = vmul.f32 0.5, %v10687_v24  ;;  %v4568_v29 = vmul.f32 0.5, %v10577_v37 }
 0xf0c   : > { %5464 = vmatmul.mubr.bf16.gmra.mrb[152].mxu0 %v5112_v5  ;;  %v5021_v34 = vadd.f32 1.0, %v7438_v49  ;;  %v4572_v44 = vmul.f32 0.5, %v10632_v8  ;;  %v4570_v18 = vmul.f32 0.5, %v10583_v42  ;;  %v4574_v1 = vmul.f32 0.5, %v10642_v62  ;;  %v10803_v8 = vld [vmem:[%s11370_s20] ss:$0 sm:$0xff] }
 0xf0d   : > { %v7440_v61 = vpop.eup %7439  ;;  %v5114_v14 = vpack.c.bf16 %v5078_v32, %v5074_v50  ;;  %v5081_v43 = vmul.f32 %v5017_v59, %v4569_v38 }
 0xf0e   : > { %v7442_v10 = vpop.eup %7441  ;;  %v5019_v30 = vadd.f32 1.0, %v7440_v61  ;;  %v5085_v55 = vmul.f32 %v5021_v34, %v4573_v12 }
 0xf0f   : > { %5561 = vmatmul.mubr.bf16.gmra.mrb[152].mxu1 %v5114_v14  ;;  %v5023_v22 = vadd.f32 1.0, %v7442_v10 }
 0xf10   : > { %v7444_v41 = vpop.eup %7443  ;;  %v5117_v4 = vpack.c.bf16 %v5085_v55, %v5081_v43  ;;  %v5083_v46 = vmul.f32 %v5019_v30, %v4571_v23  ;;  %v11373_v23 = vld [vmem:[#allocation77_spill] sm:$0xff]  ;;  %v11374_v55 = vld [vmem:[#allocation70_spill] sm:$0xff] }
 0xf11   : > { %v5087_v31 = vmul.f32 %v5023_v22, %v4575_v2  ;;  %v7446_v26 = vpop.eup %7445  ;;  %v5016_v13 = vadd.f32 1.0, %v7444_v41 }
 0xf12   : > { %5471 = vmatprep.mubr.bf16.mxu0 %v5117_v4  ;;  %v5020_v39 = vadd.f32 1.0, %v7446_v26 }
 0xf13   : > { %v5119_v57 = vpack.c.bf16 %v5087_v31, %v5083_v46  ;;  %v7448_v47 = vpop.eup %7447  ;;  %v5080_v63 = vmul.f32 %v5016_v13, %v4568_v29 }
 0xf14   : > { %v7450_v58 = vpop.eup %7449  ;;  %v5084_v35 = vmul.f32 %v5020_v39, %v4572_v44  ;;  %v5018_v24 = vadd.f32 1.0, %v7448_v47 }
 0xf15   : > { %5568 = vmatprep.mubr.bf16.mxu1 %v5119_v57  ;;  %v5022_v16 = vadd.f32 1.0, %v7450_v58 }
 0xf16   : > { %v5116_v7 = vpack.c.bf16 %v5084_v35, %v5080_v63  ;;  %v5082_v15 = vmul.f32 %v5018_v24, %v4570_v18  ;;  %v11375_v24 = vld [vmem:[#allocation69_spill] sm:$0xff] }
 0xf17   : > { %v5086_v60 = vmul.f32 %v5022_v16, %v4574_v1  ;;  %v11376_v16 = vld [vmem:[#allocation71_spill] sm:$0xff] }
 0xf18   : > { %5472 = vmatmul.mubr.bf16.gmra.mrb[156].mxu0 %v5116_v7 }
 0xf19   : > { %v5118_v6 = vpack.c.bf16 %v5086_v60, %v5082_v15 }
 0xf1b   : > { %5569 = vmatmul.mubr.bf16.gmra.mrb[156].mxu1 %v5118_v6 }
 0xf47   : > { %v6118_v37 = vpop.f32.mrb[128].mxu0 }
 0xf48   : > { %v6119_v56 = vpop.f32.mrb[129].mxu0 }
 0xf49   : > { %v6120_v53 = vadd.f32 %v6119_v56, %v6118_v37  ;;  %v6121_v20 = vpop.f32.mrb[130].mxu0  ;;  %v6182_v42 = vpop.f32.mrb[128].mxu1 }
 0xf4a   : > { %v6122_v21 = vpop.f32.mrb[131].mxu0  ;;  %v6183_v40 = vpop.f32.mrb[129].mxu1 }
 0xf4b   : > { %v5418_v62 = vadd.f32 %v6120_v53, %v10803_v8  ;;  %v6123_v11 = vadd.f32 %v6122_v21, %v6121_v20  ;;  %v6184_v52 = vadd.f32 %v6183_v40, %v6182_v42  ;;  %v6185_v27 = vpop.f32.mrb[130].mxu1 }
 0xf4c   : > { %v6186_v25 = vpop.f32.mrb[131].mxu1 }
 0xf4d   : > { %v5421_v54 = vadd.f32 %v6123_v11, %v10803_v8  ;;  %v5515_v9 = vadd.f32 %v6184_v52, %v5418_v62  ;;  %v6187_v0 = vadd.f32 %v6186_v25, %v6185_v27  ;;  %v11377_v25 = vld [vmem:[#allocation72_spill] sm:$0xff] }
 0xf4f   : > { %v5577_v36 = vadd.f32 %v5515_v9, %v11371_v28  ;;  %v5518_v19 = vadd.f32 %v6187_v0, %v5421_v54  ;;  %v11378_v28 = vld [vmem:[#allocation75_spill] sm:$0xff] }
 0xf50   : > { %v6124_v48 = vpop.f32.mrb[132].mxu0 }
 0xf51   : > { %5593 = vst [vmem:[%s10810_s24] sm:$0xff] %v5577_v36  ;;  %v5578_v45 = vadd.f32 %v5518_v19, %v11372_v33  ;;  %v6125_v17 = vpop.f32.mrb[133].mxu0 }
 0xf52   : > { %v6188_v3 = vpop.f32.mrb[132].mxu1  ;;  %v6126_v5 = vadd.f32 %v6125_v17, %v6124_v48  ;;  %v6127_v51 = vpop.f32.mrb[134].mxu0 }
 0xf53   : > { %5594 = vst [vmem:[%s10810_s24 + $0x8] sm:$0xff] %v5578_v45  ;;  %v6189_v50 = vpop.f32.mrb[133].mxu1  ;;  %v6128_v32 = vpop.f32.mrb[135].mxu0 }
 0xf54   : > { %v5426_v49 = vadd.f32 %v6126_v5, %v10803_v8  ;;  %v6190_v59 = vadd.f32 %v6189_v50, %v6188_v3  ;;  %v6191_v61 = vpop.f32.mrb[134].mxu1  ;;  %v6129_v14 = vadd.f32 %v6128_v32, %v6127_v51 }
 0xf55   : > { %v6192_v38 = vpop.f32.mrb[135].mxu1 }
 0xf56   : > { %v5523_v12 = vadd.f32 %v6190_v59, %v5426_v49  ;;  %v5429_v34 = vadd.f32 %v6129_v14, %v10803_v8  ;;  %v6193_v10 = vadd.f32 %v6192_v38, %v6191_v61 }
 0xf58   : > { %v5579_v30 = vadd.f32 %v5523_v12, %v11373_v23  ;;  %v5526_v43 = vadd.f32 %v6193_v10, %v5429_v34  ;;  %v11379_v12 = vld [vmem:[#allocation73_spill] sm:$0xff]  ;;  %v11380_v23 = vld [vmem:[#allocation80_spill] sm:$0xff] }
 0xf5a   : > { %5595 = vst [vmem:[%s10810_s24 + $0x10] sm:$0xff] %v5579_v30  ;;  %v5580_v2 = vadd.f32 %v5526_v43, %v11374_v55 }
 0xf5c   : > { %5596 = vst [vmem:[%s10810_s24 + $0x18] sm:$0xff] %v5580_v2 }
 0xfa3   : > { %v6130_v22 = vpop.f32.mrb[136].mxu0 }
 0xfa4   : > { %v6131_v41 = vpop.f32.mrb[137].mxu0 }
 0xfa5   : > { %v6132_v4 = vadd.f32 %v6131_v41, %v6130_v22  ;;  %v6133_v46 = vpop.f32.mrb[138].mxu0 }
 0xfa6   : > { %v6194_v31 = vpop.f32.mrb[136].mxu1  ;;  %v6134_v26 = vpop.f32.mrb[139].mxu0 }
 0xfa7   : > { %v5434_v13 = vadd.f32 %v6132_v4, %v10803_v8  ;;  %v6195_v57 = vpop.f32.mrb[137].mxu1  ;;  %v6135_v29 = vadd.f32 %v6134_v26, %v6133_v46 }
 0xfa8   : > { %v6196_v44 = vadd.f32 %v6195_v57, %v6194_v31  ;;  %v6197_v39 = vpop.f32.mrb[138].mxu1 }
 0xfa9   : > { %v5437_v47 = vadd.f32 %v6135_v29, %v10803_v8  ;;  %v6198_v58 = vpop.f32.mrb[139].mxu1 }
 0xfaa   : > { %v5531_v63 = vadd.f32 %v6196_v44, %v5434_v13  ;;  %v6199_v35 = vadd.f32 %v6198_v58, %v6197_v39  ;;  %v11381_v58 = vld [vmem:[#allocation82_spill] sm:$0xff] }
 0xfac   : > { %v5581_v18 = vadd.f32 %v5531_v63, %v11375_v24  ;;  %v5534_v1 = vadd.f32 %v6199_v35, %v5437_v47  ;;  %v11382_v24 = vld [vmem:[#allocation74_spill] sm:$0xff] }
 0xfae   : > { %5597 = vst [vmem:[%s10810_s24 + $0x20] sm:$0xff] %v5581_v18  ;;  %v5582_v7 = vadd.f32 %v5534_v1, %v11376_v16 }
 0xfb0   : > { %5598 = vst [vmem:[%s10810_s24 + $0x28] sm:$0xff] %v5582_v7 }
 0xfb8   : > { %v6136_v15 = vpop.f32.mrb[140].mxu0 }
 0xfb9   : > { %v6137_v60 = vpop.f32.mrb[141].mxu0 }
 0xfba   : > { %v6138_v37 = vadd.f32 %v6137_v60, %v6136_v15  ;;  %v6139_v56 = vpop.f32.mrb[142].mxu0 }
 0xfbb   : > { %v6200_v6 = vpop.f32.mrb[140].mxu1  ;;  %v6140_v20 = vpop.f32.mrb[143].mxu0 }
 0xfbc   : > { %v6201_v53 = vpop.f32.mrb[141].mxu1  ;;  %v5442_v42 = vadd.f32 %v6138_v37, %v10803_v8  ;;  %v6141_v40 = vadd.f32 %v6140_v20, %v6139_v56 }
 0xfbd   : > { %v6202_v21 = vadd.f32 %v6201_v53, %v6200_v6  ;;  %v6203_v62 = vpop.f32.mrb[142].mxu1 }
 0xfbe   : > { %v6204_v11 = vpop.f32.mrb[143].mxu1  ;;  %v5445_v27 = vadd.f32 %v6141_v40, %v10803_v8 }
 0xfbf   : > { %v5539_v52 = vadd.f32 %v6202_v21, %v5442_v42  ;;  %v6205_v54 = vadd.f32 %v6204_v11, %v6203_v62 }
 0xfc1   : > { %v5583_v9 = vadd.f32 %v5539_v52, %v11377_v25  ;;  %v5542_v0 = vadd.f32 %v6205_v54, %v5445_v27  ;;  %v11383_v52 = vld [vmem:[#allocation91_spill] sm:$0xff]  ;;  %v11384_v25 = vld [vmem:[#allocation93_spill] sm:$0xff] }
 0xfc3   : > { %5599 = vst [vmem:[%s10810_s24 + $0x30] sm:$0xff] %v5583_v9  ;;  %v5584_v36 = vadd.f32 %v5542_v0, %v11378_v28 }
 0xfc5   : > { %5600 = vst [vmem:[%s10810_s24 + $0x38] sm:$0xff] %v5584_v36  ;;  %v6142_v19 = vpop.f32.mrb[144].mxu0 }
 0xfc6   : > { %v6143_v33 = vpop.f32.mrb[145].mxu0 }
 0xfc7   : > { %v6206_v45 = vpop.f32.mrb[144].mxu1  ;;  %v6144_v48 = vadd.f32 %v6143_v33, %v6142_v19  ;;  %v6145_v17 = vpop.f32.mrb[146].mxu0 }
 0xfc8   : > { %v6207_v3 = vpop.f32.mrb[145].mxu1  ;;  %v6146_v5 = vpop.f32.mrb[147].mxu0 }
 0xfc9   : > { %v5450_v51 = vadd.f32 %v6144_v48, %v10803_v8  ;;  %v6208_v50 = vadd.f32 %v6207_v3, %v6206_v45  ;;  %v6209_v32 = vpop.f32.mrb[146].mxu1  ;;  %v6147_v49 = vadd.f32 %v6146_v5, %v6145_v17 }
 0xfca   : > { %v6210_v59 = vpop.f32.mrb[147].mxu1 }
 0xfcb   : > { %v5547_v61 = vadd.f32 %v6208_v50, %v5450_v51  ;;  %v5453_v14 = vadd.f32 %v6147_v49, %v10803_v8  ;;  %v6211_v38 = vadd.f32 %v6210_v59, %v6209_v32 }
 0xfcd   : > { %v5585_v34 = vadd.f32 %v5547_v61, %v11379_v12  ;;  %v5550_v10 = vadd.f32 %v6211_v38, %v5453_v14  ;;  %v11386_v61 = vld [vmem:[#allocation76_spill] sm:$0xff] }
 0xfcf   : > { %5601 = vst [vmem:[%s10810_s24 + $0x40] sm:$0xff] %v5585_v34  ;;  %v5586_v30 = vadd.f32 %v5550_v10, %v11380_v23 }
 0xfd1   : > { %5602 = vst [vmem:[%s10810_s24 + $0x48] sm:$0xff] %v5586_v30  ;;  %v6148_v43 = vpop.f32.mrb[148].mxu0 }
 0xfd2   : > { %v6149_v55 = vpop.f32.mrb[149].mxu0 }
 0xfd3   : > { %v6150_v2 = vadd.f32 %v6149_v55, %v6148_v43  ;;  %v6151_v22 = vpop.f32.mrb[150].mxu0 }
 0xfd4   : > { %v6152_v4 = vpop.f32.mrb[151].mxu0 }
 0xfd5   : > { %v6212_v41 = vpop.f32.mrb[148].mxu1  ;;  %v5458_v46 = vadd.f32 %v6150_v2, %v10803_v8  ;;  %v6153_v26 = vadd.f32 %v6152_v4, %v6151_v22 }
 0xfd6   : > { %v6213_v31 = vpop.f32.mrb[149].mxu1 }
 0xfd7   : > { %v6214_v13 = vadd.f32 %v6213_v31, %v6212_v41  ;;  %v6215_v57 = vpop.f32.mrb[150].mxu1  ;;  %v5461_v29 = vadd.f32 %v6153_v26, %v10803_v8 }
 0xfd8   : > { %v6216_v44 = vpop.f32.mrb[151].mxu1 }
 0xfd9   : > { %v5555_v39 = vadd.f32 %v6214_v13, %v5458_v46  ;;  %v6217_v47 = vadd.f32 %v6216_v44, %v6215_v57 }
 0xfdb   : > { %v5587_v63 = vadd.f32 %v5555_v39, %v11381_v58  ;;  %v5558_v35 = vadd.f32 %v6217_v47, %v5461_v29 }
 0xfdd   : > { %5603 = vst [vmem:[%s10810_s24 + $0x50] sm:$0xff] %v5587_v63  ;;  %v5588_v18 = vadd.f32 %v5558_v35, %v11382_v24 }
 0xfdf   : > { %5604 = vst [vmem:[%s10810_s24 + $0x58] sm:$0xff] %v5588_v18  ;;  %v6154_v1 = vpop.f32.mrb[152].mxu0 }
 0xfe0   : > { %v6155_v16 = vpop.f32.mrb[153].mxu0 }
 0xfe1   : > { %v6156_v7 = vadd.f32 %v6155_v16, %v6154_v1  ;;  %v6157_v15 = vpop.f32.mrb[154].mxu0 }
 0xfe2   : > { %v6218_v60 = vpop.f32.mrb[152].mxu1  ;;  %v6158_v6 = vpop.f32.mrb[155].mxu0 }
 0xfe3   : > { %v5466_v37 = vadd.f32 %v6156_v7, %v10803_v8  ;;  %v6219_v56 = vpop.f32.mrb[153].mxu1  ;;  %v6159_v53 = vadd.f32 %v6158_v6, %v6157_v15 }
 0xfe4   : > { %v6220_v20 = vadd.f32 %v6219_v56, %v6218_v60  ;;  %v6221_v42 = vpop.f32.mrb[154].mxu1 }
 0xfe5   : > { %v5469_v21 = vadd.f32 %v6159_v53, %v10803_v8  ;;  %v6222_v62 = vpop.f32.mrb[155].mxu1 }
 0xfe6   : > { %v5563_v40 = vadd.f32 %v6220_v20, %v5466_v37  ;;  %v6223_v11 = vadd.f32 %v6222_v62, %v6221_v42 }
 0xfe8   : > { %v5589_v27 = vadd.f32 %v5563_v40, %v11383_v52  ;;  %v5566_v54 = vadd.f32 %v6223_v11, %v5469_v21 }
 0xfea   : > { %5605 = vst [vmem:[%s10810_s24 + $0x60] sm:$0xff] %v5589_v27  ;;  %v5590_v9 = vadd.f32 %v5566_v54, %v11384_v25 }
 0xfeb   : > { %v6160_v0 = vpop.f32.mrb[156].mxu0 }
 0xfec   : > { %5606 = vst [vmem:[%s10810_s24 + $0x68] sm:$0xff] %v5590_v9  ;;  %v6161_v28 = vpop.f32.mrb[157].mxu0 }
 0xfed   : > { %v6162_v36 = vadd.f32 %v6161_v28, %v6160_v0  ;;  %v6163_v19 = vpop.f32.mrb[158].mxu0 }
 0xfee   : > { %v6224_v33 = vpop.f32.mrb[156].mxu1  ;;  %v6164_v45 = vpop.f32.mrb[159].mxu0 }
 0xfef   : > { %v5474_v48 = vadd.f32 %v6162_v36, %v10803_v8  ;;  %v6225_v17 = vpop.f32.mrb[157].mxu1  ;;  %v6165_v3 = vadd.f32 %v6164_v45, %v6163_v19 }
 0xff0   : > { %v6226_v5 = vadd.f32 %v6225_v17, %v6224_v33  ;;  %v6227_v51 = vpop.f32.mrb[158].mxu1 }
 0xff1   : > { %v5477_v50 = vadd.f32 %v6165_v3, %v10803_v8  ;;  %v6228_v32 = vpop.f32.mrb[159].mxu1  ;;  %v11388_v8 = vld [vmem:[#allocation79_spill] sm:$0xff] }
 0xff2   : > { %v5571_v49 = vadd.f32 %v6226_v5, %v5474_v48  ;;  %v6229_v59 = vadd.f32 %v6228_v32, %v6227_v51 }
 0xff4   : > { %v5591_v14 = vadd.f32 %v5571_v49, %v11386_v61  ;;  %v5574_v38 = vadd.f32 %v6229_v59, %v5477_v50 }
 0xff6   : > { %5607 = vst [vmem:[%s10810_s24 + $0x70] sm:$0xff] %v5591_v14  ;;  %v5592_v12 = vadd.f32 %v5574_v38, %v11388_v8 }
 0xff8   : > { %5608 = vst [vmem:[%s10810_s24 + $0x78] sm:$0xff] %v5592_v12 }
 0xff9   : > { %7606 = shalt.err (!%p7603_p0)
}
 0xffa   : > { %s7607_s21 = scalar_lea.hbm %s10859_s9, 2048  ;;  %s7611_s24 = scalar_lea.hbm %s11387_s3, 4096 }
 0xffb   : > { %p7608_p4 = scmp.ne.s32.totalorder %s10859_s9, %s7607_s21  ;;  %p7612_p12 = scmp.lt.u32.totalorder %s10859_s9, %s11387_s3 }
 0xffc   : > { %p7613_p1 = scmp.lt.u32.totalorder %s7611_s24, %s7607_s21  ;;  %p7615_p8 = scmp.lt.u32.totalorder %s7607_s21, %s10859_s9 }
 0xffd   : > { %p7609_p13 = pnand %p7608_p4, %p7939_p5 }
 0xffe   : > { %p7614_p11 = por %p7613_p1, %p7612_p12 }
 0xfff   : > { %p7610_p2 = pneg %p7609_p13 }
0x1000   : > { %p7616_p6 = por %p7615_p8, %p7614_p11 }
0x1002   : > { %p7617_p10 = pnand %p7616_p6, %p7610_p2 }
0x1004   : > { %7620 = shalt.err (!%p7617_p10)
}
0x1005   : > { %s7703_s19 = smov 128   ;;  %s7704_s30 = smov 8  }
0x1006   : > { %6664 = dma.vmem_to_hbm [thread:$0]  (%p7939_p5), %s10861_s16, 2048, %s10859_s9, %s5610_s7, %s7703_s19, %s7703_s19, %s7704_s30  }
0x1007 PF: > { %s11389_s6 = sld [smem:[#allocation19_spill]]  ;;  %s11390_s29 = sld [smem:[#allocation21_spill]] }
0x1008   : > { %p11392_p7 = scmp.ge.s32.totalorder %s7683_s26, 2 }
0x100d   : > { %s5640_s13 = sand.u32 1, %s11389_s6   ;;  %p11391_p3 = scmp.ne.s32.totalorder %s11390_s29, 0 }
0x100e   : > { %s5641_s15 = scalar_lea.sflag [#allocation7], %s5640_s13 }
0x100f   : > { %p6684_p9 = pnand %p11392_p7, %p11391_p3 }
0x1011   : > { %7658 = dma.done.wait (!%p6684_p9), %s5641_s15, 2048  }
0x1012   : > { %7660 = vsyncadd (!%p6684_p9), %s5641_s15, 4294965248  ;;  %s30_s26 = sadd.s32 1, %s7683_s26   ;;  %s11393_s21 = smov %s7667_s22 }
0x1013   : > { %p27_p0 = scmp.ge.s32.totalorder %s30_s26, 4   ;;  %s11394_s22 = smov %s7671_s23 }
0x1014   : > { %s11395_s23 = smov %s7948_s27  ;;  %s11396_s24 = smov %s7679_s25 }
0x1015   : > { %s11397_s25 = smov %s11399_s12  ;;  %29 = sbr.rel (!%p27_p0) target bundleno = 15 (0xf), region = 135 }
0x101c   :  { %5646 = vsyncpa [#allocation6], 1 }
0x101d   :  { %5648 = vsyncpa [#allocation6 + $0x1], 1 }
0x101e   :  { %5649 = vsyncpa [#allocation9], 1 }
0x101f   :  { %5650 = vsyncpa [#allocation12], 1 }
0x1020   :  { %5651 = vsyncpa [#allocation7], 1 }
0x1021   :  { %5653 = vsyncpa [#allocation7 + $0x1], 1 }

</bundles_post_ra>
